<compile_context>
chip_gen: v7x
topology: tpu7x:2x2x1
jax: 0.10.0
libtpu: 0.0.40
codegen_flags: <defaults>
</compile_context>

<pallas_src>
import jax
import jax.numpy as jnp
from jax.experimental import pallas as pl
from jax.experimental.pallas import tpu as pltpu

# ---- model hyper-parameters (from the PyTorch spec) ----
N_EMBD = 64
N_HEAD = 4
HEAD_SIZE = N_EMBD // N_HEAD
N_LAYER = 4
BLOCK_SIZE = 128
VOCAB = 39          # len(chars)
N_CLASSES = 14      # len(class_map)
LN_EPS = 1e-5


def _layer_norm(h, g, b):
    mu = jnp.mean(h, axis=-1, keepdims=True)
    var = jnp.mean((h - mu) ** 2, axis=-1, keepdims=True)
    return (h - mu) * jax.lax.rsqrt(var + LN_EPS) * g + b


def _make_kernel(b_blk, T):
    M = b_blk * T
    C = N_EMBD
    H = N_HEAD
    hs = HEAD_SIZE
    scale = hs ** -0.5

    def kernel(idx_ref,                                    # (1, M, 1) int32 VMEM
               tok_ref, pos_ref,
               ln1g_ref, ln1b_ref, wqkv_ref, wo_ref, bo_ref,
               ln2g_ref, ln2b_ref, w1_ref, b1_ref, w2_ref, b2_ref,
               lnfg_ref, lnfb_ref, lmw_ref, lmb_ref,
               out_ref, att_ref):
        # ---- token embedding: vectorized one-hot matmul (gather-free) ----
        ids = idx_ref[0]                                             # (M, 1) int32
        vocab_ids = jax.lax.broadcasted_iota(jnp.int32, (1, VOCAB), 1)
        onehot = (ids == vocab_ids).astype(jnp.float32)              # (M, VOCAB)
        x = jnp.dot(onehot, tok_ref[...],
                    preferred_element_type=jnp.float32) + pos_ref[...]   # (M, C) f32

        row = jax.lax.broadcasted_iota(jnp.int32, (T, T), 0)
        col = jax.lax.broadcasted_iota(jnp.int32, (T, T), 1)
        causal = row >= col                                          # tril mask

        for layer in range(N_LAYER):
            # ---- self-attention branch: LN1 -> fused QKV -> per-head attn -> proj ----
            h = _layer_norm(x, ln1g_ref[layer], ln1b_ref[layer])
            qkv = jnp.dot(h.astype(jnp.bfloat16), wqkv_ref[layer],
                          preferred_element_type=jnp.float32)        # (M, 3C) f32

            for bb in range(b_blk):                                  # per sequence
                r0 = bb * T
                for hh in range(H):                                  # per head
                    c0 = hh * hs
                    q = (qkv[r0:r0 + T, c0:c0 + hs] * scale).astype(jnp.bfloat16)
                    k = qkv[r0:r0 + T, C + c0:C + c0 + hs].astype(jnp.bfloat16)
                    v = qkv[r0:r0 + T, 2 * C + c0:2 * C + c0 + hs].astype(jnp.bfloat16)
                    s = jax.lax.dot_general(                         # Q @ K^T, no .T
                        q, k, (((1,), (1,)), ((), ())),
                        preferred_element_type=jnp.float32)          # (T, T) f32
                    s = jnp.where(causal, s, -1e30)                  # finite mask
                    s = s - jnp.max(s, axis=-1, keepdims=True)
                    p = jnp.exp(s)
                    p = p * pl.reciprocal(jnp.sum(p, axis=-1, keepdims=True),
                                          approx=True)               # softmax (dropout=id)
                    ho = jnp.dot(p.astype(jnp.bfloat16), v,
                                 preferred_element_type=jnp.float32)  # (T, hs) f32
                    # place head output into its lane range of the (M, C) slab
                    att_ref[r0:r0 + T, c0:c0 + hs] = ho

            sa = jnp.dot(att_ref[...].astype(jnp.bfloat16), wo_ref[layer],
                         preferred_element_type=jnp.float32) + bo_ref[layer]
            x = x + sa                                               # first residual

            # ---- feed-forward branch: LN2 -> Linear(4C) -> ReLU -> Linear(C) ----
            h2 = _layer_norm(x, ln2g_ref[layer], ln2b_ref[layer])
            f = jnp.dot(h2.astype(jnp.bfloat16), w1_ref[layer],
                        preferred_element_type=jnp.float32) + b1_ref[layer]
            f = jnp.maximum(f, 0.0)
            f = jnp.dot(f.astype(jnp.bfloat16), w2_ref[layer],
                        preferred_element_type=jnp.float32) + b2_ref[layer]
            x = x + f                                                # second residual

        # ---- final LN; sum over sequence FIRST, then lm_head (sum∘linear) ----
        xf = _layer_norm(x, lnfg_ref[...], lnfb_ref[...])            # (M, C)
        xsum = jnp.concatenate(
            [jnp.sum(xf[bb * T:(bb + 1) * T, :], axis=0, keepdims=True)
             for bb in range(b_blk)], axis=0)                        # (b_blk, C)
        logits = (jnp.dot(xsum, lmw_ref[...],
                          preferred_element_type=jnp.float32)
                  + T * lmb_ref[...])                                # (b_blk, n_cls)
        out_ref[0] = logits

    return kernel


def _num_grid_blocks(B, T):
    """1 grid step on single-TC v5e/v6e; even 'parallel' split on dual-TC v7x."""
    try:
        kind = jax.devices()[0].device_kind.lower()
    except Exception:
        kind = ""
    dual_core = "v7" in kind
    nb = 2 if (dual_core and B % 2 == 0 and B >= 2) else 1
    # For very large batches, add steps so the per-step slab stays modest
    # (keeps nb a divisor of B; slab target ~<=1024 rows).
    max_rows = 1024
    while (B // nb) * T > max_rows and nb < B:
        nxt = nb + 1
        while nxt <= B and B % nxt != 0:
            nxt += 1
        if nxt > B:
            break
        nb = nxt
    return nb


def xfmr_forward(idx, kp):
    """idx: (B, T) int32 token ids. Returns logits (B, N_CLASSES) f32."""
    B, T = idx.shape
    nb = _num_grid_blocks(B, T)
    b_blk = B // nb
    M = b_blk * T

    kernel = _make_kernel(b_blk, T)

    pos_tiled = jnp.tile(kp['pos'][:T], (b_blk, 1))                  # (M, C) f32

    weights = [kp['tok'], pos_tiled,
               kp['ln1g'], kp['ln1b'], kp['wqkv'], kp['wo'], kp['bo'],
               kp['ln2g'], kp['ln2b'], kp['w1'], kp['b1'], kp['w2'], kp['b2'],
               kp['lnfg'], kp['lnfb'], kp['lmw'], kp['lmb']]

    def const_spec(p):
        # full-array block, constant across the grid
        return pl.BlockSpec(p.shape, lambda i, nd=p.ndim: (0,) * nd)

    idx3 = idx.astype(jnp.int32).reshape(nb, M, 1)

    in_specs = ([pl.BlockSpec((1, M, 1), lambda i: (i, 0, 0))]
                + [const_spec(w) for w in weights])
    out_spec = pl.BlockSpec((1, b_blk, N_CLASSES), lambda i: (i, 0, 0))

    out = pl.pallas_call(
        kernel,
        out_shape=jax.ShapeDtypeStruct((nb, b_blk, N_CLASSES), jnp.float32),
        grid_spec=pltpu.PrefetchScalarGridSpec(
            num_scalar_prefetch=0,
            grid=(nb,),
            in_specs=in_specs,
            out_specs=out_spec,
            scratch_shapes=[pltpu.VMEM((M, N_EMBD), jnp.float32)],   # attn out slab
        ),
        compiler_params=pltpu.CompilerParams(
            dimension_semantics=("parallel",)),
    )(idx3, *weights)
    return out.reshape(B, N_CLASSES)


# ---------------- parameters ----------------
def make_params(key):
    C, L = N_EMBD, N_LAYER
    std = 0.02
    ks = iter(jax.random.split(key, 16))

    def rnd(shape):
        return std * jax.random.normal(next(ks), shape, jnp.float32)

    return dict(
        tok=rnd((VOCAB, C)),
        pos=rnd((BLOCK_SIZE, C)),
        ln1g=jnp.ones((L, C), jnp.float32), ln1b=jnp.zeros((L, C), jnp.float32),
        wq=rnd((L, C, C)), wk=rnd((L, C, C)), wv=rnd((L, C, C)),
        wo=rnd((L, C, C)), bo=rnd((L, C)),
        ln2g=jnp.ones((L, C), jnp.float32), ln2b=jnp.zeros((L, C), jnp.float32),
        w1=rnd((L, C, 4 * C)), b1=rnd((L, 4 * C)),
        w2=rnd((L, 4 * C, C)), b2=rnd((L, C)),
        lnfg=jnp.ones((C,), jnp.float32), lnfb=jnp.zeros((C,), jnp.float32),
        lmw=rnd((C, N_CLASSES)), lmb=rnd((N_CLASSES,)),
    )


def to_kernel_params(p):
    """Fuse QKV along the output (lane) dim; cast matmul weights to bf16."""
    C, L = N_EMBD, N_LAYER
    wqkv = jnp.concatenate([p['wq'], p['wk'], p['wv']], axis=-1)     # (L, C, 3C)
    return dict(
        tok=p['tok'],                            # f32: one-hot embedding stays exact
        pos=p['pos'],
        ln1g=p['ln1g'].reshape(L, 1, C), ln1b=p['ln1b'].reshape(L, 1, C),
        wqkv=wqkv.astype(jnp.bfloat16),
        wo=p['wo'].astype(jnp.bfloat16),                             # (L, C, C)
        bo=p['bo'].reshape(L, 1, C),
        ln2g=p['ln2g'].reshape(L, 1, C), ln2b=p['ln2b'].reshape(L, 1, C),
        w1=p['w1'].astype(jnp.bfloat16), b1=p['b1'].reshape(L, 1, 4 * C),
        w2=p['w2'].astype(jnp.bfloat16), b2=p['b2'].reshape(L, 1, C),
        lnfg=p['lnfg'].reshape(1, C), lnfb=p['lnfb'].reshape(1, C),
        lmw=p['lmw'],                                                # f32 (tiny)
        lmb=p['lmb'].reshape(1, N_CLASSES),
    )


# ---------------- pure-JAX f32 reference ----------------
def reference_forward(idx, p):
    B, T = idx.shape
    C, H, hs, L = N_EMBD, N_HEAD, HEAD_SIZE, N_LAYER

    def ln(h, g, b):
        mu = jnp.mean(h, axis=-1, keepdims=True)
        var = jnp.mean((h - mu) ** 2, axis=-1, keepdims=True)
        return (h - mu) / jnp.sqrt(var + LN_EPS) * g + b

    x = p['tok'][idx] + p['pos'][:T]
    mask = jnp.tril(jnp.ones((T, T), bool))
    for l in range(L):
        h = ln(x, p['ln1g'][l], p['ln1b'][l])
        q = (h @ p['wq'][l]).reshape(B, T, H, hs).transpose(0, 2, 1, 3)
        k = (h @ p['wk'][l]).reshape(B, T, H, hs).transpose(0, 2, 1, 3)
        v = (h @ p['wv'][l]).reshape(B, T, H, hs).transpose(0, 2, 1, 3)
        s = jnp.einsum('bhqd,bhkd->bhqk', q, k) * hs ** -0.5
        s = jnp.where(mask, s, -jnp.inf)
        a = jax.nn.softmax(s, axis=-1)
        att = jnp.einsum('bhqk,bhkd->bhqd', a, v).transpose(0, 2, 1, 3).reshape(B, T, C)
        x = x + att @ p['wo'][l] + p['bo'][l]
        h2 = ln(x, p['ln2g'][l], p['ln2b'][l])
        x = x + jnp.maximum(h2 @ p['w1'][l] + p['b1'][l], 0.0) @ p['w2'][l] + p['b2'][l]
    x = ln(x, p['lnfg'], p['lnfb'])
    logits = x @ p['lmw'] + p['lmb']
    return jnp.sum(logits, axis=1)               # (B, N_CLASSES)


if __name__ == "__main__":
    key = jax.random.PRNGKey(0)
    k_idx, k_par = jax.random.split(key)

    B, T = 2, 8                                  # T <= block_size (128)
    idx = jax.random.randint(k_idx, (B, T), 0, VOCAB, dtype=jnp.int32)

    params = make_params(k_par)
    kparams = to_kernel_params(params)

    logits = xfmr_forward(idx, kparams)
    logits = jax.block_until_ready(logits)

    ref = reference_forward(idx, params)
    assert logits.shape == (B, N_CLASSES)
    # bf16 matmul operands (f32 accumulate) + approx reciprocal -> loosened tolerance
    assert jnp.allclose(logits, ref, atol=3e-2, rtol=3e-2), (
        f"mismatch vs reference: max abs diff {jnp.max(jnp.abs(logits - ref))}")

    print("KERNEL_OK")
</pallas_src>

<mosaic_0001>
module attributes {stable_mosaic.version = 11 : i64} {
  func.func @kernel(%arg0: i32, %arg1: memref<1x16x1xi32, #tpu.memory_space<vmem>>, %arg2: memref<39x64xf32, #tpu.memory_space<vmem>>, %arg3: memref<16x64xf32, #tpu.memory_space<vmem>>, %arg4: memref<4x1x64xf32, #tpu.memory_space<vmem>>, %arg5: memref<4x1x64xf32, #tpu.memory_space<vmem>>, %arg6: memref<4x64x192xbf16, #tpu.memory_space<vmem>>, %arg7: memref<4x64x64xbf16, #tpu.memory_space<vmem>>, %arg8: memref<4x1x64xf32, #tpu.memory_space<vmem>>, %arg9: memref<4x1x64xf32, #tpu.memory_space<vmem>>, %arg10: memref<4x1x64xf32, #tpu.memory_space<vmem>>, %arg11: memref<4x64x256xbf16, #tpu.memory_space<vmem>>, %arg12: memref<4x1x256xf32, #tpu.memory_space<vmem>>, %arg13: memref<4x256x64xbf16, #tpu.memory_space<vmem>>, %arg14: memref<4x1x64xf32, #tpu.memory_space<vmem>>, %arg15: memref<1x64xf32, #tpu.memory_space<vmem>>, %arg16: memref<1x64xf32, #tpu.memory_space<vmem>>, %arg17: memref<64x14xf32, #tpu.memory_space<vmem>>, %arg18: memref<1x14xf32, #tpu.memory_space<vmem>>, %arg19: memref<1x2x14xf32, #tpu.memory_space<vmem>>, %arg20: memref<16x64xf32, #tpu.memory_space<vmem>>) attributes {dimension_semantics = [#tpu.dimension_semantics<parallel>], iteration_bounds = array<i64: 1>, scalar_prefetch = 0 : i64, scratch_operands = 1 : i64, tpu.core_type = #tpu.core_type<tc>, window_params = [{transform_indices = @transform_0, window_bounds = array<i64: 1, 16, 1>}, {pipeline_mode = #tpu.pipeline_mode<synchronous>, transform_indices = @transform_1, window_bounds = array<i64: 39, 64>}, {pipeline_mode = #tpu.pipeline_mode<synchronous>, transform_indices = @transform_2, window_bounds = array<i64: 16, 64>}, {pipeline_mode = #tpu.pipeline_mode<synchronous>, transform_indices = @transform_3, window_bounds = array<i64: 4, 1, 64>}, {pipeline_mode = #tpu.pipeline_mode<synchronous>, transform_indices = @transform_4, window_bounds = array<i64: 4, 1, 64>}, {pipeline_mode = #tpu.pipeline_mode<synchronous>, transform_indices = @transform_5, window_bounds = array<i64: 4, 64, 192>}, {pipeline_mode = #tpu.pipeline_mode<synchronous>, transform_indices = @transform_6, window_bounds = array<i64: 4, 64, 64>}, {pipeline_mode = #tpu.pipeline_mode<synchronous>, transform_indices = @transform_7, window_bounds = array<i64: 4, 1, 64>}, {pipeline_mode = #tpu.pipeline_mode<synchronous>, transform_indices = @transform_8, window_bounds = array<i64: 4, 1, 64>}, {pipeline_mode = #tpu.pipeline_mode<synchronous>, transform_indices = @transform_9, window_bounds = array<i64: 4, 1, 64>}, {pipeline_mode = #tpu.pipeline_mode<synchronous>, transform_indices = @transform_10, window_bounds = array<i64: 4, 64, 256>}, {pipeline_mode = #tpu.pipeline_mode<synchronous>, transform_indices = @transform_11, window_bounds = array<i64: 4, 1, 256>}, {pipeline_mode = #tpu.pipeline_mode<synchronous>, transform_indices = @transform_12, window_bounds = array<i64: 4, 256, 64>}, {pipeline_mode = #tpu.pipeline_mode<synchronous>, transform_indices = @transform_13, window_bounds = array<i64: 4, 1, 64>}, {pipeline_mode = #tpu.pipeline_mode<synchronous>, transform_indices = @transform_14, window_bounds = array<i64: 1, 64>}, {pipeline_mode = #tpu.pipeline_mode<synchronous>, transform_indices = @transform_15, window_bounds = array<i64: 1, 64>}, {pipeline_mode = #tpu.pipeline_mode<synchronous>, transform_indices = @transform_16, window_bounds = array<i64: 64, 14>}, {pipeline_mode = #tpu.pipeline_mode<synchronous>, transform_indices = @transform_17, window_bounds = array<i64: 1, 14>}, {transform_indices = @transform_18, window_bounds = array<i64: 1, 2, 14>}]} {
    %c0 = arith.constant 0 : index
    %c0_0 = arith.constant 0 : index
    %c0_1 = arith.constant 0 : index
    %0 = vector.load %arg1[%c0, %c0_0, %c0_1] : memref<1x16x1xi32, #tpu.memory_space<vmem>>, vector<1x16x1xi32>
    %1 = vector.shape_cast %0 : vector<1x16x1xi32> to vector<16x1xi32>
    %2 = tpu.iota {dimensions = array<i32: 1>} : vector<1x39xi32>
    %3 = vector.broadcast %1 : vector<16x1xi32> to vector<16x39xi32>
    %4 = vector.broadcast %2 : vector<1x39xi32> to vector<16x39xi32>
    %5 = arith.cmpi eq, %3, %4 : vector<16x39xi32>
    %6 = arith.extui %5 : vector<16x39xi1> to vector<16x39xi32>
    %7 = arith.sitofp %6 : vector<16x39xi32> to vector<16x39xf32>
    %c0_2 = arith.constant 0 : index
    %c0_3 = arith.constant 0 : index
    %8 = vector.load %arg2[%c0_2, %c0_3] : memref<39x64xf32, #tpu.memory_space<vmem>>, vector<39x64xf32>
    %cst = arith.constant dense<0.000000e+00> : vector<16x64xf32>
    %9 = tpu.matmul %7, %8, %cst {dimension_numbers = #tpu.dot_dimension_numbers<[1], [0], [0], [1], [0, 0, 1, 1], [], []>} : vector<16x39xf32>, vector<39x64xf32>, vector<16x64xf32> -> vector<16x64xf32>
    %c0_4 = arith.constant 0 : index
    %c0_5 = arith.constant 0 : index
    %10 = vector.load %arg3[%c0_4, %c0_5] : memref<16x64xf32, #tpu.memory_space<vmem>>, vector<16x64xf32>
    %11 = arith.addf %9, %10 : vector<16x64xf32>
    %12 = tpu.iota {dimensions = array<i32: 0>} : vector<8x8xi32>
    %13 = tpu.iota {dimensions = array<i32: 1>} : vector<8x8xi32>
    %14 = arith.cmpi sge, %12, %13 : vector<8x8xi32>
    %c0_6 = arith.constant 0 : index
    %c0_7 = arith.constant 0 : index
    %c0_8 = arith.constant 0 : index
    %15 = vector.load %arg4[%c0_6, %c0_7, %c0_8] : memref<4x1x64xf32, #tpu.memory_space<vmem>>, vector<1x1x64xf32>
    %16 = vector.shape_cast %15 : vector<1x1x64xf32> to vector<1x64xf32>
    %c0_9 = arith.constant 0 : index
    %c0_10 = arith.constant 0 : index
    %c0_11 = arith.constant 0 : index
    %17 = vector.load %arg5[%c0_9, %c0_10, %c0_11] : memref<4x1x64xf32, #tpu.memory_space<vmem>>, vector<1x1x64xf32>
    %18 = vector.shape_cast %17 : vector<1x1x64xf32> to vector<1x64xf32>
    %cst_12 = arith.constant dense<0.000000e+00> : vector<16xf32>
    %19 = vector.multi_reduction <add>, %11, %cst_12 [1] : vector<16x64xf32> to vector<16xf32>
    %20 = vector.shape_cast %19 : vector<16xf32> to vector<16x1xf32>
    %cst_13 = arith.constant 6.400000e+01 : f32
    %21 = vector.broadcast %cst_13 : f32 to vector<16x1xf32>
    %22 = arith.divf %20, %21 : vector<16x1xf32>
    %23 = vector.broadcast %22 : vector<16x1xf32> to vector<16x64xf32>
    %24 = arith.subf %11, %23 : vector<16x64xf32>
    %25 = arith.mulf %24, %24 : vector<16x64xf32>
    %cst_14 = arith.constant dense<0.000000e+00> : vector<16xf32>
    %26 = vector.multi_reduction <add>, %25, %cst_14 [1] : vector<16x64xf32> to vector<16xf32>
    %27 = vector.shape_cast %26 : vector<16xf32> to vector<16x1xf32>
    %cst_15 = arith.constant 6.400000e+01 : f32
    %28 = vector.broadcast %cst_15 : f32 to vector<16x1xf32>
    %29 = arith.divf %27, %28 : vector<16x1xf32>
    %30 = vector.broadcast %22 : vector<16x1xf32> to vector<16x64xf32>
    %31 = arith.subf %11, %30 : vector<16x64xf32>
    %cst_16 = arith.constant 9.99999974E-6 : f32
    %32 = vector.broadcast %cst_16 : f32 to vector<16x1xf32>
    %33 = arith.addf %29, %32 : vector<16x1xf32>
    %34 = math.rsqrt %33 : vector<16x1xf32>
    %35 = vector.broadcast %34 : vector<16x1xf32> to vector<16x64xf32>
    %36 = arith.mulf %31, %35 : vector<16x64xf32>
    %37 = vector.broadcast %16 : vector<1x64xf32> to vector<16x64xf32>
    %38 = arith.mulf %36, %37 : vector<16x64xf32>
    %39 = vector.broadcast %18 : vector<1x64xf32> to vector<16x64xf32>
    %40 = arith.addf %38, %39 : vector<16x64xf32>
    %41 = arith.truncf %40 : vector<16x64xf32> to vector<16x64xbf16>
    %c0_17 = arith.constant 0 : index
    %c0_18 = arith.constant 0 : index
    %c0_19 = arith.constant 0 : index
    %42 = vector.load %arg6[%c0_17, %c0_18, %c0_19] : memref<4x64x192xbf16, #tpu.memory_space<vmem>>, vector<1x64x192xbf16>
    %43 = vector.shape_cast %42 : vector<1x64x192xbf16> to vector<64x192xbf16>
    %cst_20 = arith.constant dense<0.000000e+00> : vector<16x192xf32>
    %44 = tpu.matmul %41, %43, %cst_20 {dimension_numbers = #tpu.dot_dimension_numbers<[1], [0], [0], [1], [0, 0, 1, 1], [], []>} : vector<16x64xbf16>, vector<64x192xbf16>, vector<16x192xf32> -> vector<16x192xf32>
    %45 = vector.extract_strided_slice %44 {offsets = [0, 0], sizes = [8, 16], strides = [1, 1]} : vector<16x192xf32> to vector<8x16xf32>
    %cst_21 = arith.constant 2.500000e-01 : f32
    %46 = vector.broadcast %cst_21 : f32 to vector<8x16xf32>
    %47 = arith.mulf %45, %46 : vector<8x16xf32>
    %48 = arith.truncf %47 : vector<8x16xf32> to vector<8x16xbf16>
    %49 = vector.extract_strided_slice %44 {offsets = [0, 64], sizes = [8, 16], strides = [1, 1]} : vector<16x192xf32> to vector<8x16xf32>
    %50 = arith.truncf %49 : vector<8x16xf32> to vector<8x16xbf16>
    %51 = vector.extract_strided_slice %44 {offsets = [0, 128], sizes = [8, 16], strides = [1, 1]} : vector<16x192xf32> to vector<8x16xf32>
    %52 = arith.truncf %51 : vector<8x16xf32> to vector<8x16xbf16>
    %cst_22 = arith.constant dense<0.000000e+00> : vector<8x8xf32>
    %53 = tpu.matmul %48, %50, %cst_22 {dimension_numbers = #tpu.dot_dimension_numbers<[1], [1], [0], [0], [0, 0, 1, 0], [], []>} : vector<8x16xbf16>, vector<8x16xbf16>, vector<8x8xf32> -> vector<8x8xf32>
    %cst_23 = arith.constant -1.000000e+30 : f32
    %54 = vector.broadcast %cst_23 : f32 to vector<8x8xf32>
    %55 = arith.select %14, %53, %54 : vector<8x8xi1>, vector<8x8xf32>
    %cst_24 = arith.constant dense<0xFF800000> : vector<8xf32>
    %56 = vector.multi_reduction <maximumf>, %55, %cst_24 [1] : vector<8x8xf32> to vector<8xf32>
    %57 = vector.shape_cast %56 : vector<8xf32> to vector<8x1xf32>
    %58 = vector.broadcast %57 : vector<8x1xf32> to vector<8x8xf32>
    %59 = arith.subf %55, %58 : vector<8x8xf32>
    %60 = math.exp %59 : vector<8x8xf32>
    %cst_25 = arith.constant dense<0.000000e+00> : vector<8xf32>
    %61 = vector.multi_reduction <add>, %60, %cst_25 [1] : vector<8x8xf32> to vector<8xf32>
    %62 = vector.shape_cast %61 : vector<8xf32> to vector<8x1xf32>
    %63 = tpu.reciprocal %62 {approx = true} : vector<8x1xf32> -> vector<8x1xf32>
    %64 = vector.broadcast %63 : vector<8x1xf32> to vector<8x8xf32>
    %65 = arith.mulf %60, %64 : vector<8x8xf32>
    %66 = arith.truncf %65 : vector<8x8xf32> to vector<8x8xbf16>
    %cst_26 = arith.constant dense<0.000000e+00> : vector<8x16xf32>
    %67 = tpu.matmul %66, %52, %cst_26 {dimension_numbers = #tpu.dot_dimension_numbers<[1], [0], [0], [1], [0, 0, 1, 1], [], []>} : vector<8x8xbf16>, vector<8x16xbf16>, vector<8x16xf32> -> vector<8x16xf32>
    %c0_27 = arith.constant 0 : index
    %c0_28 = arith.constant 0 : index
    %68 = vector.load %arg20[%c0_27, %c0_28] : memref<16x64xf32, #tpu.memory_space<vmem>>, vector<8x16xf32>
    tpu.vector_store %arg20[%c0_27, %c0_28], %67 {strides = array<i32>} : memref<16x64xf32, #tpu.memory_space<vmem>>, vector<8x16xf32>,
    %69 = vector.extract_strided_slice %44 {offsets = [0, 16], sizes = [8, 16], strides = [1, 1]} : vector<16x192xf32> to vector<8x16xf32>
    %cst_29 = arith.constant 2.500000e-01 : f32
    %70 = vector.broadcast %cst_29 : f32 to vector<8x16xf32>
    %71 = arith.mulf %69, %70 : vector<8x16xf32>
    %72 = arith.truncf %71 : vector<8x16xf32> to vector<8x16xbf16>
    %73 = vector.extract_strided_slice %44 {offsets = [0, 80], sizes = [8, 16], strides = [1, 1]} : vector<16x192xf32> to vector<8x16xf32>
    %74 = arith.truncf %73 : vector<8x16xf32> to vector<8x16xbf16>
    %75 = vector.extract_strided_slice %44 {offsets = [0, 144], sizes = [8, 16], strides = [1, 1]} : vector<16x192xf32> to vector<8x16xf32>
    %76 = arith.truncf %75 : vector<8x16xf32> to vector<8x16xbf16>
    %cst_30 = arith.constant dense<0.000000e+00> : vector<8x8xf32>
    %77 = tpu.matmul %72, %74, %cst_30 {dimension_numbers = #tpu.dot_dimension_numbers<[1], [1], [0], [0], [0, 0, 1, 0], [], []>} : vector<8x16xbf16>, vector<8x16xbf16>, vector<8x8xf32> -> vector<8x8xf32>
    %cst_31 = arith.constant -1.000000e+30 : f32
    %78 = vector.broadcast %cst_31 : f32 to vector<8x8xf32>
    %79 = arith.select %14, %77, %78 : vector<8x8xi1>, vector<8x8xf32>
    %cst_32 = arith.constant dense<0xFF800000> : vector<8xf32>
    %80 = vector.multi_reduction <maximumf>, %79, %cst_32 [1] : vector<8x8xf32> to vector<8xf32>
    %81 = vector.shape_cast %80 : vector<8xf32> to vector<8x1xf32>
    %82 = vector.broadcast %81 : vector<8x1xf32> to vector<8x8xf32>
    %83 = arith.subf %79, %82 : vector<8x8xf32>
    %84 = math.exp %83 : vector<8x8xf32>
    %cst_33 = arith.constant dense<0.000000e+00> : vector<8xf32>
    %85 = vector.multi_reduction <add>, %84, %cst_33 [1] : vector<8x8xf32> to vector<8xf32>
    %86 = vector.shape_cast %85 : vector<8xf32> to vector<8x1xf32>
    %87 = tpu.reciprocal %86 {approx = true} : vector<8x1xf32> -> vector<8x1xf32>
    %88 = vector.broadcast %87 : vector<8x1xf32> to vector<8x8xf32>
    %89 = arith.mulf %84, %88 : vector<8x8xf32>
    %90 = arith.truncf %89 : vector<8x8xf32> to vector<8x8xbf16>
    %cst_34 = arith.constant dense<0.000000e+00> : vector<8x16xf32>
    %91 = tpu.matmul %90, %76, %cst_34 {dimension_numbers = #tpu.dot_dimension_numbers<[1], [0], [0], [1], [0, 0, 1, 1], [], []>} : vector<8x8xbf16>, vector<8x16xbf16>, vector<8x16xf32> -> vector<8x16xf32>
    %c0_35 = arith.constant 0 : index
    %c16 = arith.constant 16 : index
    %92 = vector.load %arg20[%c0_35, %c16] : memref<16x64xf32, #tpu.memory_space<vmem>>, vector<8x16xf32>
    tpu.vector_store %arg20[%c0_35, %c16], %91 {strides = array<i32>} : memref<16x64xf32, #tpu.memory_space<vmem>>, vector<8x16xf32>,
    %93 = vector.extract_strided_slice %44 {offsets = [0, 32], sizes = [8, 16], strides = [1, 1]} : vector<16x192xf32> to vector<8x16xf32>
    %cst_36 = arith.constant 2.500000e-01 : f32
    %94 = vector.broadcast %cst_36 : f32 to vector<8x16xf32>
    %95 = arith.mulf %93, %94 : vector<8x16xf32>
    %96 = arith.truncf %95 : vector<8x16xf32> to vector<8x16xbf16>
    %97 = vector.extract_strided_slice %44 {offsets = [0, 96], sizes = [8, 16], strides = [1, 1]} : vector<16x192xf32> to vector<8x16xf32>
    %98 = arith.truncf %97 : vector<8x16xf32> to vector<8x16xbf16>
    %99 = vector.extract_strided_slice %44 {offsets = [0, 160], sizes = [8, 16], strides = [1, 1]} : vector<16x192xf32> to vector<8x16xf32>
    %100 = arith.truncf %99 : vector<8x16xf32> to vector<8x16xbf16>
    %cst_37 = arith.constant dense<0.000000e+00> : vector<8x8xf32>
    %101 = tpu.matmul %96, %98, %cst_37 {dimension_numbers = #tpu.dot_dimension_numbers<[1], [1], [0], [0], [0, 0, 1, 0], [], []>} : vector<8x16xbf16>, vector<8x16xbf16>, vector<8x8xf32> -> vector<8x8xf32>
    %cst_38 = arith.constant -1.000000e+30 : f32
    %102 = vector.broadcast %cst_38 : f32 to vector<8x8xf32>
    %103 = arith.select %14, %101, %102 : vector<8x8xi1>, vector<8x8xf32>
    %cst_39 = arith.constant dense<0xFF800000> : vector<8xf32>
    %104 = vector.multi_reduction <maximumf>, %103, %cst_39 [1] : vector<8x8xf32> to vector<8xf32>
    %105 = vector.shape_cast %104 : vector<8xf32> to vector<8x1xf32>
    %106 = vector.broadcast %105 : vector<8x1xf32> to vector<8x8xf32>
    %107 = arith.subf %103, %106 : vector<8x8xf32>
    %108 = math.exp %107 : vector<8x8xf32>
    %cst_40 = arith.constant dense<0.000000e+00> : vector<8xf32>
    %109 = vector.multi_reduction <add>, %108, %cst_40 [1] : vector<8x8xf32> to vector<8xf32>
    %110 = vector.shape_cast %109 : vector<8xf32> to vector<8x1xf32>
    %111 = tpu.reciprocal %110 {approx = true} : vector<8x1xf32> -> vector<8x1xf32>
    %112 = vector.broadcast %111 : vector<8x1xf32> to vector<8x8xf32>
    %113 = arith.mulf %108, %112 : vector<8x8xf32>
    %114 = arith.truncf %113 : vector<8x8xf32> to vector<8x8xbf16>
    %cst_41 = arith.constant dense<0.000000e+00> : vector<8x16xf32>
    %115 = tpu.matmul %114, %100, %cst_41 {dimension_numbers = #tpu.dot_dimension_numbers<[1], [0], [0], [1], [0, 0, 1, 1], [], []>} : vector<8x8xbf16>, vector<8x16xbf16>, vector<8x16xf32> -> vector<8x16xf32>
    %c0_42 = arith.constant 0 : index
    %c32 = arith.constant 32 : index
    %116 = vector.load %arg20[%c0_42, %c32] : memref<16x64xf32, #tpu.memory_space<vmem>>, vector<8x16xf32>
    tpu.vector_store %arg20[%c0_42, %c32], %115 {strides = array<i32>} : memref<16x64xf32, #tpu.memory_space<vmem>>, vector<8x16xf32>,
    %117 = vector.extract_strided_slice %44 {offsets = [0, 48], sizes = [8, 16], strides = [1, 1]} : vector<16x192xf32> to vector<8x16xf32>
    %cst_43 = arith.constant 2.500000e-01 : f32
    %118 = vector.broadcast %cst_43 : f32 to vector<8x16xf32>
    %119 = arith.mulf %117, %118 : vector<8x16xf32>
    %120 = arith.truncf %119 : vector<8x16xf32> to vector<8x16xbf16>
    %121 = vector.extract_strided_slice %44 {offsets = [0, 112], sizes = [8, 16], strides = [1, 1]} : vector<16x192xf32> to vector<8x16xf32>
    %122 = arith.truncf %121 : vector<8x16xf32> to vector<8x16xbf16>
    %123 = vector.extract_strided_slice %44 {offsets = [0, 176], sizes = [8, 16], strides = [1, 1]} : vector<16x192xf32> to vector<8x16xf32>
    %124 = arith.truncf %123 : vector<8x16xf32> to vector<8x16xbf16>
    %cst_44 = arith.constant dense<0.000000e+00> : vector<8x8xf32>
    %125 = tpu.matmul %120, %122, %cst_44 {dimension_numbers = #tpu.dot_dimension_numbers<[1], [1], [0], [0], [0, 0, 1, 0], [], []>} : vector<8x16xbf16>, vector<8x16xbf16>, vector<8x8xf32> -> vector<8x8xf32>
    %cst_45 = arith.constant -1.000000e+30 : f32
    %126 = vector.broadcast %cst_45 : f32 to vector<8x8xf32>
    %127 = arith.select %14, %125, %126 : vector<8x8xi1>, vector<8x8xf32>
    %cst_46 = arith.constant dense<0xFF800000> : vector<8xf32>
    %128 = vector.multi_reduction <maximumf>, %127, %cst_46 [1] : vector<8x8xf32> to vector<8xf32>
    %129 = vector.shape_cast %128 : vector<8xf32> to vector<8x1xf32>
    %130 = vector.broadcast %129 : vector<8x1xf32> to vector<8x8xf32>
    %131 = arith.subf %127, %130 : vector<8x8xf32>
    %132 = math.exp %131 : vector<8x8xf32>
    %cst_47 = arith.constant dense<0.000000e+00> : vector<8xf32>
    %133 = vector.multi_reduction <add>, %132, %cst_47 [1] : vector<8x8xf32> to vector<8xf32>
    %134 = vector.shape_cast %133 : vector<8xf32> to vector<8x1xf32>
    %135 = tpu.reciprocal %134 {approx = true} : vector<8x1xf32> -> vector<8x1xf32>
    %136 = vector.broadcast %135 : vector<8x1xf32> to vector<8x8xf32>
    %137 = arith.mulf %132, %136 : vector<8x8xf32>
    %138 = arith.truncf %137 : vector<8x8xf32> to vector<8x8xbf16>
    %cst_48 = arith.constant dense<0.000000e+00> : vector<8x16xf32>
    %139 = tpu.matmul %138, %124, %cst_48 {dimension_numbers = #tpu.dot_dimension_numbers<[1], [0], [0], [1], [0, 0, 1, 1], [], []>} : vector<8x8xbf16>, vector<8x16xbf16>, vector<8x16xf32> -> vector<8x16xf32>
    %c0_49 = arith.constant 0 : index
    %c48 = arith.constant 48 : index
    %140 = vector.load %arg20[%c0_49, %c48] : memref<16x64xf32, #tpu.memory_space<vmem>>, vector<8x16xf32>
    tpu.vector_store %arg20[%c0_49, %c48], %139 {strides = array<i32>} : memref<16x64xf32, #tpu.memory_space<vmem>>, vector<8x16xf32>,
    %141 = vector.extract_strided_slice %44 {offsets = [8, 0], sizes = [8, 16], strides = [1, 1]} : vector<16x192xf32> to vector<8x16xf32>
    %cst_50 = arith.constant 2.500000e-01 : f32
    %142 = vector.broadcast %cst_50 : f32 to vector<8x16xf32>
    %143 = arith.mulf %141, %142 : vector<8x16xf32>
    %144 = arith.truncf %143 : vector<8x16xf32> to vector<8x16xbf16>
    %145 = vector.extract_strided_slice %44 {offsets = [8, 64], sizes = [8, 16], strides = [1, 1]} : vector<16x192xf32> to vector<8x16xf32>
    %146 = arith.truncf %145 : vector<8x16xf32> to vector<8x16xbf16>
    %147 = vector.extract_strided_slice %44 {offsets = [8, 128], sizes = [8, 16], strides = [1, 1]} : vector<16x192xf32> to vector<8x16xf32>
    %148 = arith.truncf %147 : vector<8x16xf32> to vector<8x16xbf16>
    %cst_51 = arith.constant dense<0.000000e+00> : vector<8x8xf32>
    %149 = tpu.matmul %144, %146, %cst_51 {dimension_numbers = #tpu.dot_dimension_numbers<[1], [1], [0], [0], [0, 0, 1, 0], [], []>} : vector<8x16xbf16>, vector<8x16xbf16>, vector<8x8xf32> -> vector<8x8xf32>
    %cst_52 = arith.constant -1.000000e+30 : f32
    %150 = vector.broadcast %cst_52 : f32 to vector<8x8xf32>
    %151 = arith.select %14, %149, %150 : vector<8x8xi1>, vector<8x8xf32>
    %cst_53 = arith.constant dense<0xFF800000> : vector<8xf32>
    %152 = vector.multi_reduction <maximumf>, %151, %cst_53 [1] : vector<8x8xf32> to vector<8xf32>
    %153 = vector.shape_cast %152 : vector<8xf32> to vector<8x1xf32>
    %154 = vector.broadcast %153 : vector<8x1xf32> to vector<8x8xf32>
    %155 = arith.subf %151, %154 : vector<8x8xf32>
    %156 = math.exp %155 : vector<8x8xf32>
    %cst_54 = arith.constant dense<0.000000e+00> : vector<8xf32>
    %157 = vector.multi_reduction <add>, %156, %cst_54 [1] : vector<8x8xf32> to vector<8xf32>
    %158 = vector.shape_cast %157 : vector<8xf32> to vector<8x1xf32>
    %159 = tpu.reciprocal %158 {approx = true} : vector<8x1xf32> -> vector<8x1xf32>
    %160 = vector.broadcast %159 : vector<8x1xf32> to vector<8x8xf32>
    %161 = arith.mulf %156, %160 : vector<8x8xf32>
    %162 = arith.truncf %161 : vector<8x8xf32> to vector<8x8xbf16>
    %cst_55 = arith.constant dense<0.000000e+00> : vector<8x16xf32>
    %163 = tpu.matmul %162, %148, %cst_55 {dimension_numbers = #tpu.dot_dimension_numbers<[1], [0], [0], [1], [0, 0, 1, 1], [], []>} : vector<8x8xbf16>, vector<8x16xbf16>, vector<8x16xf32> -> vector<8x16xf32>
    %c8 = arith.constant 8 : index
    %c0_56 = arith.constant 0 : index
    %164 = vector.load %arg20[%c8, %c0_56] : memref<16x64xf32, #tpu.memory_space<vmem>>, vector<8x16xf32>
    tpu.vector_store %arg20[%c8, %c0_56], %163 {strides = array<i32>} : memref<16x64xf32, #tpu.memory_space<vmem>>, vector<8x16xf32>,
    %165 = vector.extract_strided_slice %44 {offsets = [8, 16], sizes = [8, 16], strides = [1, 1]} : vector<16x192xf32> to vector<8x16xf32>
    %cst_57 = arith.constant 2.500000e-01 : f32
    %166 = vector.broadcast %cst_57 : f32 to vector<8x16xf32>
    %167 = arith.mulf %165, %166 : vector<8x16xf32>
    %168 = arith.truncf %167 : vector<8x16xf32> to vector<8x16xbf16>
    %169 = vector.extract_strided_slice %44 {offsets = [8, 80], sizes = [8, 16], strides = [1, 1]} : vector<16x192xf32> to vector<8x16xf32>
    %170 = arith.truncf %169 : vector<8x16xf32> to vector<8x16xbf16>
    %171 = vector.extract_strided_slice %44 {offsets = [8, 144], sizes = [8, 16], strides = [1, 1]} : vector<16x192xf32> to vector<8x16xf32>
    %172 = arith.truncf %171 : vector<8x16xf32> to vector<8x16xbf16>
    %cst_58 = arith.constant dense<0.000000e+00> : vector<8x8xf32>
    %173 = tpu.matmul %168, %170, %cst_58 {dimension_numbers = #tpu.dot_dimension_numbers<[1], [1], [0], [0], [0, 0, 1, 0], [], []>} : vector<8x16xbf16>, vector<8x16xbf16>, vector<8x8xf32> -> vector<8x8xf32>
    %cst_59 = arith.constant -1.000000e+30 : f32
    %174 = vector.broadcast %cst_59 : f32 to vector<8x8xf32>
    %175 = arith.select %14, %173, %174 : vector<8x8xi1>, vector<8x8xf32>
    %cst_60 = arith.constant dense<0xFF800000> : vector<8xf32>
    %176 = vector.multi_reduction <maximumf>, %175, %cst_60 [1] : vector<8x8xf32> to vector<8xf32>
    %177 = vector.shape_cast %176 : vector<8xf32> to vector<8x1xf32>
    %178 = vector.broadcast %177 : vector<8x1xf32> to vector<8x8xf32>
    %179 = arith.subf %175, %178 : vector<8x8xf32>
    %180 = math.exp %179 : vector<8x8xf32>
    %cst_61 = arith.constant dense<0.000000e+00> : vector<8xf32>
    %181 = vector.multi_reduction <add>, %180, %cst_61 [1] : vector<8x8xf32> to vector<8xf32>
    %182 = vector.shape_cast %181 : vector<8xf32> to vector<8x1xf32>
    %183 = tpu.reciprocal %182 {approx = true} : vector<8x1xf32> -> vector<8x1xf32>
    %184 = vector.broadcast %183 : vector<8x1xf32> to vector<8x8xf32>
    %185 = arith.mulf %180, %184 : vector<8x8xf32>
    %186 = arith.truncf %185 : vector<8x8xf32> to vector<8x8xbf16>
    %cst_62 = arith.constant dense<0.000000e+00> : vector<8x16xf32>
    %187 = tpu.matmul %186, %172, %cst_62 {dimension_numbers = #tpu.dot_dimension_numbers<[1], [0], [0], [1], [0, 0, 1, 1], [], []>} : vector<8x8xbf16>, vector<8x16xbf16>, vector<8x16xf32> -> vector<8x16xf32>
    %c8_63 = arith.constant 8 : index
    %c16_64 = arith.constant 16 : index
    %188 = vector.load %arg20[%c8_63, %c16_64] : memref<16x64xf32, #tpu.memory_space<vmem>>, vector<8x16xf32>
    tpu.vector_store %arg20[%c8_63, %c16_64], %187 {strides = array<i32>} : memref<16x64xf32, #tpu.memory_space<vmem>>, vector<8x16xf32>,
    %189 = vector.extract_strided_slice %44 {offsets = [8, 32], sizes = [8, 16], strides = [1, 1]} : vector<16x192xf32> to vector<8x16xf32>
    %cst_65 = arith.constant 2.500000e-01 : f32
    %190 = vector.broadcast %cst_65 : f32 to vector<8x16xf32>
    %191 = arith.mulf %189, %190 : vector<8x16xf32>
    %192 = arith.truncf %191 : vector<8x16xf32> to vector<8x16xbf16>
    %193 = vector.extract_strided_slice %44 {offsets = [8, 96], sizes = [8, 16], strides = [1, 1]} : vector<16x192xf32> to vector<8x16xf32>
    %194 = arith.truncf %193 : vector<8x16xf32> to vector<8x16xbf16>
    %195 = vector.extract_strided_slice %44 {offsets = [8, 160], sizes = [8, 16], strides = [1, 1]} : vector<16x192xf32> to vector<8x16xf32>
    %196 = arith.truncf %195 : vector<8x16xf32> to vector<8x16xbf16>
    %cst_66 = arith.constant dense<0.000000e+00> : vector<8x8xf32>
    %197 = tpu.matmul %192, %194, %cst_66 {dimension_numbers = #tpu.dot_dimension_numbers<[1], [1], [0], [0], [0, 0, 1, 0], [], []>} : vector<8x16xbf16>, vector<8x16xbf16>, vector<8x8xf32> -> vector<8x8xf32>
    %cst_67 = arith.constant -1.000000e+30 : f32
    %198 = vector.broadcast %cst_67 : f32 to vector<8x8xf32>
    %199 = arith.select %14, %197, %198 : vector<8x8xi1>, vector<8x8xf32>
    %cst_68 = arith.constant dense<0xFF800000> : vector<8xf32>
    %200 = vector.multi_reduction <maximumf>, %199, %cst_68 [1] : vector<8x8xf32> to vector<8xf32>
    %201 = vector.shape_cast %200 : vector<8xf32> to vector<8x1xf32>
    %202 = vector.broadcast %201 : vector<8x1xf32> to vector<8x8xf32>
    %203 = arith.subf %199, %202 : vector<8x8xf32>
    %204 = math.exp %203 : vector<8x8xf32>
    %cst_69 = arith.constant dense<0.000000e+00> : vector<8xf32>
    %205 = vector.multi_reduction <add>, %204, %cst_69 [1] : vector<8x8xf32> to vector<8xf32>
    %206 = vector.shape_cast %205 : vector<8xf32> to vector<8x1xf32>
    %207 = tpu.reciprocal %206 {approx = true} : vector<8x1xf32> -> vector<8x1xf32>
    %208 = vector.broadcast %207 : vector<8x1xf32> to vector<8x8xf32>
    %209 = arith.mulf %204, %208 : vector<8x8xf32>
    %210 = arith.truncf %209 : vector<8x8xf32> to vector<8x8xbf16>
    %cst_70 = arith.constant dense<0.000000e+00> : vector<8x16xf32>
    %211 = tpu.matmul %210, %196, %cst_70 {dimension_numbers = #tpu.dot_dimension_numbers<[1], [0], [0], [1], [0, 0, 1, 1], [], []>} : vector<8x8xbf16>, vector<8x16xbf16>, vector<8x16xf32> -> vector<8x16xf32>
    %c8_71 = arith.constant 8 : index
    %c32_72 = arith.constant 32 : index
    %212 = vector.load %arg20[%c8_71, %c32_72] : memref<16x64xf32, #tpu.memory_space<vmem>>, vector<8x16xf32>
    tpu.vector_store %arg20[%c8_71, %c32_72], %211 {strides = array<i32>} : memref<16x64xf32, #tpu.memory_space<vmem>>, vector<8x16xf32>,
    %213 = vector.extract_strided_slice %44 {offsets = [8, 48], sizes = [8, 16], strides = [1, 1]} : vector<16x192xf32> to vector<8x16xf32>
    %cst_73 = arith.constant 2.500000e-01 : f32
    %214 = vector.broadcast %cst_73 : f32 to vector<8x16xf32>
    %215 = arith.mulf %213, %214 : vector<8x16xf32>
    %216 = arith.truncf %215 : vector<8x16xf32> to vector<8x16xbf16>
    %217 = vector.extract_strided_slice %44 {offsets = [8, 112], sizes = [8, 16], strides = [1, 1]} : vector<16x192xf32> to vector<8x16xf32>
    %218 = arith.truncf %217 : vector<8x16xf32> to vector<8x16xbf16>
    %219 = vector.extract_strided_slice %44 {offsets = [8, 176], sizes = [8, 16], strides = [1, 1]} : vector<16x192xf32> to vector<8x16xf32>
    %220 = arith.truncf %219 : vector<8x16xf32> to vector<8x16xbf16>
    %cst_74 = arith.constant dense<0.000000e+00> : vector<8x8xf32>
    %221 = tpu.matmul %216, %218, %cst_74 {dimension_numbers = #tpu.dot_dimension_numbers<[1], [1], [0], [0], [0, 0, 1, 0], [], []>} : vector<8x16xbf16>, vector<8x16xbf16>, vector<8x8xf32> -> vector<8x8xf32>
    %cst_75 = arith.constant -1.000000e+30 : f32
    %222 = vector.broadcast %cst_75 : f32 to vector<8x8xf32>
    %223 = arith.select %14, %221, %222 : vector<8x8xi1>, vector<8x8xf32>
    %cst_76 = arith.constant dense<0xFF800000> : vector<8xf32>
    %224 = vector.multi_reduction <maximumf>, %223, %cst_76 [1] : vector<8x8xf32> to vector<8xf32>
    %225 = vector.shape_cast %224 : vector<8xf32> to vector<8x1xf32>
    %226 = vector.broadcast %225 : vector<8x1xf32> to vector<8x8xf32>
    %227 = arith.subf %223, %226 : vector<8x8xf32>
    %228 = math.exp %227 : vector<8x8xf32>
    %cst_77 = arith.constant dense<0.000000e+00> : vector<8xf32>
    %229 = vector.multi_reduction <add>, %228, %cst_77 [1] : vector<8x8xf32> to vector<8xf32>
    %230 = vector.shape_cast %229 : vector<8xf32> to vector<8x1xf32>
    %231 = tpu.reciprocal %230 {approx = true} : vector<8x1xf32> -> vector<8x1xf32>
    %232 = vector.broadcast %231 : vector<8x1xf32> to vector<8x8xf32>
    %233 = arith.mulf %228, %232 : vector<8x8xf32>
    %234 = arith.truncf %233 : vector<8x8xf32> to vector<8x8xbf16>
    %cst_78 = arith.constant dense<0.000000e+00> : vector<8x16xf32>
    %235 = tpu.matmul %234, %220, %cst_78 {dimension_numbers = #tpu.dot_dimension_numbers<[1], [0], [0], [1], [0, 0, 1, 1], [], []>} : vector<8x8xbf16>, vector<8x16xbf16>, vector<8x16xf32> -> vector<8x16xf32>
    %c8_79 = arith.constant 8 : index
    %c48_80 = arith.constant 48 : index
    %236 = vector.load %arg20[%c8_79, %c48_80] : memref<16x64xf32, #tpu.memory_space<vmem>>, vector<8x16xf32>
    tpu.vector_store %arg20[%c8_79, %c48_80], %235 {strides = array<i32>} : memref<16x64xf32, #tpu.memory_space<vmem>>, vector<8x16xf32>,
    %c0_81 = arith.constant 0 : index
    %c0_82 = arith.constant 0 : index
    %237 = vector.load %arg20[%c0_81, %c0_82] : memref<16x64xf32, #tpu.memory_space<vmem>>, vector<16x64xf32>
    %238 = arith.truncf %237 : vector<16x64xf32> to vector<16x64xbf16>
    %c0_83 = arith.constant 0 : index
    %c0_84 = arith.constant 0 : index
    %c0_85 = arith.constant 0 : index
    %239 = vector.load %arg7[%c0_83, %c0_84, %c0_85] : memref<4x64x64xbf16, #tpu.memory_space<vmem>>, vector<1x64x64xbf16>
    %240 = vector.shape_cast %239 : vector<1x64x64xbf16> to vector<64x64xbf16>
    %cst_86 = arith.constant dense<0.000000e+00> : vector<16x64xf32>
    %241 = tpu.matmul %238, %240, %cst_86 {dimension_numbers = #tpu.dot_dimension_numbers<[1], [0], [0], [1], [0, 0, 1, 1], [], []>} : vector<16x64xbf16>, vector<64x64xbf16>, vector<16x64xf32> -> vector<16x64xf32>
    %c0_87 = arith.constant 0 : index
    %c0_88 = arith.constant 0 : index
    %c0_89 = arith.constant 0 : index
    %242 = vector.load %arg8[%c0_87, %c0_88, %c0_89] : memref<4x1x64xf32, #tpu.memory_space<vmem>>, vector<1x1x64xf32>
    %243 = vector.shape_cast %242 : vector<1x1x64xf32> to vector<1x64xf32>
    %244 = vector.broadcast %243 : vector<1x64xf32> to vector<16x64xf32>
    %245 = arith.addf %241, %244 : vector<16x64xf32>
    %246 = arith.addf %11, %245 : vector<16x64xf32>
    %c0_90 = arith.constant 0 : index
    %c0_91 = arith.constant 0 : index
    %c0_92 = arith.constant 0 : index
    %247 = vector.load %arg9[%c0_90, %c0_91, %c0_92] : memref<4x1x64xf32, #tpu.memory_space<vmem>>, vector<1x1x64xf32>
    %248 = vector.shape_cast %247 : vector<1x1x64xf32> to vector<1x64xf32>
    %c0_93 = arith.constant 0 : index
    %c0_94 = arith.constant 0 : index
    %c0_95 = arith.constant 0 : index
    %249 = vector.load %arg10[%c0_93, %c0_94, %c0_95] : memref<4x1x64xf32, #tpu.memory_space<vmem>>, vector<1x1x64xf32>
    %250 = vector.shape_cast %249 : vector<1x1x64xf32> to vector<1x64xf32>
    %cst_96 = arith.constant dense<0.000000e+00> : vector<16xf32>
    %251 = vector.multi_reduction <add>, %246, %cst_96 [1] : vector<16x64xf32> to vector<16xf32>
    %252 = vector.shape_cast %251 : vector<16xf32> to vector<16x1xf32>
    %cst_97 = arith.constant 6.400000e+01 : f32
    %253 = vector.broadcast %cst_97 : f32 to vector<16x1xf32>
    %254 = arith.divf %252, %253 : vector<16x1xf32>
    %255 = vector.broadcast %254 : vector<16x1xf32> to vector<16x64xf32>
    %256 = arith.subf %246, %255 : vector<16x64xf32>
    %257 = arith.mulf %256, %256 : vector<16x64xf32>
    %cst_98 = arith.constant dense<0.000000e+00> : vector<16xf32>
    %258 = vector.multi_reduction <add>, %257, %cst_98 [1] : vector<16x64xf32> to vector<16xf32>
    %259 = vector.shape_cast %258 : vector<16xf32> to vector<16x1xf32>
    %cst_99 = arith.constant 6.400000e+01 : f32
    %260 = vector.broadcast %cst_99 : f32 to vector<16x1xf32>
    %261 = arith.divf %259, %260 : vector<16x1xf32>
    %262 = vector.broadcast %254 : vector<16x1xf32> to vector<16x64xf32>
    %263 = arith.subf %246, %262 : vector<16x64xf32>
    %cst_100 = arith.constant 9.99999974E-6 : f32
    %264 = vector.broadcast %cst_100 : f32 to vector<16x1xf32>
    %265 = arith.addf %261, %264 : vector<16x1xf32>
    %266 = math.rsqrt %265 : vector<16x1xf32>
    %267 = vector.broadcast %266 : vector<16x1xf32> to vector<16x64xf32>
    %268 = arith.mulf %263, %267 : vector<16x64xf32>
    %269 = vector.broadcast %248 : vector<1x64xf32> to vector<16x64xf32>
    %270 = arith.mulf %268, %269 : vector<16x64xf32>
    %271 = vector.broadcast %250 : vector<1x64xf32> to vector<16x64xf32>
    %272 = arith.addf %270, %271 : vector<16x64xf32>
    %273 = arith.truncf %272 : vector<16x64xf32> to vector<16x64xbf16>
    %c0_101 = arith.constant 0 : index
    %c0_102 = arith.constant 0 : index
    %c0_103 = arith.constant 0 : index
    %274 = vector.load %arg11[%c0_101, %c0_102, %c0_103] : memref<4x64x256xbf16, #tpu.memory_space<vmem>>, vector<1x64x256xbf16>
    %275 = vector.shape_cast %274 : vector<1x64x256xbf16> to vector<64x256xbf16>
    %cst_104 = arith.constant dense<0.000000e+00> : vector<16x256xf32>
    %276 = tpu.matmul %273, %275, %cst_104 {dimension_numbers = #tpu.dot_dimension_numbers<[1], [0], [0], [1], [0, 0, 1, 1], [], []>} : vector<16x64xbf16>, vector<64x256xbf16>, vector<16x256xf32> -> vector<16x256xf32>
    %c0_105 = arith.constant 0 : index
    %c0_106 = arith.constant 0 : index
    %c0_107 = arith.constant 0 : index
    %277 = vector.load %arg12[%c0_105, %c0_106, %c0_107] : memref<4x1x256xf32, #tpu.memory_space<vmem>>, vector<1x1x256xf32>
    %278 = vector.shape_cast %277 : vector<1x1x256xf32> to vector<1x256xf32>
    %279 = vector.broadcast %278 : vector<1x256xf32> to vector<16x256xf32>
    %280 = arith.addf %276, %279 : vector<16x256xf32>
    %cst_108 = arith.constant 0.000000e+00 : f32
    %281 = vector.broadcast %cst_108 : f32 to vector<16x256xf32>
    %282 = arith.maximumf %280, %281 : vector<16x256xf32>
    %283 = arith.truncf %282 : vector<16x256xf32> to vector<16x256xbf16>
    %c0_109 = arith.constant 0 : index
    %c0_110 = arith.constant 0 : index
    %c0_111 = arith.constant 0 : index
    %284 = vector.load %arg13[%c0_109, %c0_110, %c0_111] : memref<4x256x64xbf16, #tpu.memory_space<vmem>>, vector<1x256x64xbf16>
    %285 = vector.shape_cast %284 : vector<1x256x64xbf16> to vector<256x64xbf16>
    %cst_112 = arith.constant dense<0.000000e+00> : vector<16x64xf32>
    %286 = tpu.matmul %283, %285, %cst_112 {dimension_numbers = #tpu.dot_dimension_numbers<[1], [0], [0], [1], [0, 0, 1, 1], [], []>} : vector<16x256xbf16>, vector<256x64xbf16>, vector<16x64xf32> -> vector<16x64xf32>
    %c0_113 = arith.constant 0 : index
    %c0_114 = arith.constant 0 : index
    %c0_115 = arith.constant 0 : index
    %287 = vector.load %arg14[%c0_113, %c0_114, %c0_115] : memref<4x1x64xf32, #tpu.memory_space<vmem>>, vector<1x1x64xf32>
    %288 = vector.shape_cast %287 : vector<1x1x64xf32> to vector<1x64xf32>
    %289 = vector.broadcast %288 : vector<1x64xf32> to vector<16x64xf32>
    %290 = arith.addf %286, %289 : vector<16x64xf32>
    %291 = arith.addf %246, %290 : vector<16x64xf32>
    %c1 = arith.constant 1 : index
    %c0_116 = arith.constant 0 : index
    %c0_117 = arith.constant 0 : index
    %292 = vector.load %arg4[%c1, %c0_116, %c0_117] : memref<4x1x64xf32, #tpu.memory_space<vmem>>, vector<1x1x64xf32>
    %293 = vector.shape_cast %292 : vector<1x1x64xf32> to vector<1x64xf32>
    %c1_118 = arith.constant 1 : index
    %c0_119 = arith.constant 0 : index
    %c0_120 = arith.constant 0 : index
    %294 = vector.load %arg5[%c1_118, %c0_119, %c0_120] : memref<4x1x64xf32, #tpu.memory_space<vmem>>, vector<1x1x64xf32>
    %295 = vector.shape_cast %294 : vector<1x1x64xf32> to vector<1x64xf32>
    %cst_121 = arith.constant dense<0.000000e+00> : vector<16xf32>
    %296 = vector.multi_reduction <add>, %291, %cst_121 [1] : vector<16x64xf32> to vector<16xf32>
    %297 = vector.shape_cast %296 : vector<16xf32> to vector<16x1xf32>
    %cst_122 = arith.constant 6.400000e+01 : f32
    %298 = vector.broadcast %cst_122 : f32 to vector<16x1xf32>
    %299 = arith.divf %297, %298 : vector<16x1xf32>
    %300 = vector.broadcast %299 : vector<16x1xf32> to vector<16x64xf32>
    %301 = arith.subf %291, %300 : vector<16x64xf32>
    %302 = arith.mulf %301, %301 : vector<16x64xf32>
    %cst_123 = arith.constant dense<0.000000e+00> : vector<16xf32>
    %303 = vector.multi_reduction <add>, %302, %cst_123 [1] : vector<16x64xf32> to vector<16xf32>
    %304 = vector.shape_cast %303 : vector<16xf32> to vector<16x1xf32>
    %cst_124 = arith.constant 6.400000e+01 : f32
    %305 = vector.broadcast %cst_124 : f32 to vector<16x1xf32>
    %306 = arith.divf %304, %305 : vector<16x1xf32>
    %307 = vector.broadcast %299 : vector<16x1xf32> to vector<16x64xf32>
    %308 = arith.subf %291, %307 : vector<16x64xf32>
    %cst_125 = arith.constant 9.99999974E-6 : f32
    %309 = vector.broadcast %cst_125 : f32 to vector<16x1xf32>
    %310 = arith.addf %306, %309 : vector<16x1xf32>
    %311 = math.rsqrt %310 : vector<16x1xf32>
    %312 = vector.broadcast %311 : vector<16x1xf32> to vector<16x64xf32>
    %313 = arith.mulf %308, %312 : vector<16x64xf32>
    %314 = vector.broadcast %293 : vector<1x64xf32> to vector<16x64xf32>
    %315 = arith.mulf %313, %314 : vector<16x64xf32>
    %316 = vector.broadcast %295 : vector<1x64xf32> to vector<16x64xf32>
    %317 = arith.addf %315, %316 : vector<16x64xf32>
    %318 = arith.truncf %317 : vector<16x64xf32> to vector<16x64xbf16>
    %c1_126 = arith.constant 1 : index
    %c0_127 = arith.constant 0 : index
    %c0_128 = arith.constant 0 : index
    %319 = vector.load %arg6[%c1_126, %c0_127, %c0_128] : memref<4x64x192xbf16, #tpu.memory_space<vmem>>, vector<1x64x192xbf16>
    %320 = vector.shape_cast %319 : vector<1x64x192xbf16> to vector<64x192xbf16>
    %cst_129 = arith.constant dense<0.000000e+00> : vector<16x192xf32>
    %321 = tpu.matmul %318, %320, %cst_129 {dimension_numbers = #tpu.dot_dimension_numbers<[1], [0], [0], [1], [0, 0, 1, 1], [], []>} : vector<16x64xbf16>, vector<64x192xbf16>, vector<16x192xf32> -> vector<16x192xf32>
    %322 = vector.extract_strided_slice %321 {offsets = [0, 0], sizes = [8, 16], strides = [1, 1]} : vector<16x192xf32> to vector<8x16xf32>
    %cst_130 = arith.constant 2.500000e-01 : f32
    %323 = vector.broadcast %cst_130 : f32 to vector<8x16xf32>
    %324 = arith.mulf %322, %323 : vector<8x16xf32>
    %325 = arith.truncf %324 : vector<8x16xf32> to vector<8x16xbf16>
    %326 = vector.extract_strided_slice %321 {offsets = [0, 64], sizes = [8, 16], strides = [1, 1]} : vector<16x192xf32> to vector<8x16xf32>
    %327 = arith.truncf %326 : vector<8x16xf32> to vector<8x16xbf16>
    %328 = vector.extract_strided_slice %321 {offsets = [0, 128], sizes = [8, 16], strides = [1, 1]} : vector<16x192xf32> to vector<8x16xf32>
    %329 = arith.truncf %328 : vector<8x16xf32> to vector<8x16xbf16>
    %cst_131 = arith.constant dense<0.000000e+00> : vector<8x8xf32>
    %330 = tpu.matmul %325, %327, %cst_131 {dimension_numbers = #tpu.dot_dimension_numbers<[1], [1], [0], [0], [0, 0, 1, 0], [], []>} : vector<8x16xbf16>, vector<8x16xbf16>, vector<8x8xf32> -> vector<8x8xf32>
    %cst_132 = arith.constant -1.000000e+30 : f32
    %331 = vector.broadcast %cst_132 : f32 to vector<8x8xf32>
    %332 = arith.select %14, %330, %331 : vector<8x8xi1>, vector<8x8xf32>
    %cst_133 = arith.constant dense<0xFF800000> : vector<8xf32>
    %333 = vector.multi_reduction <maximumf>, %332, %cst_133 [1] : vector<8x8xf32> to vector<8xf32>
    %334 = vector.shape_cast %333 : vector<8xf32> to vector<8x1xf32>
    %335 = vector.broadcast %334 : vector<8x1xf32> to vector<8x8xf32>
    %336 = arith.subf %332, %335 : vector<8x8xf32>
    %337 = math.exp %336 : vector<8x8xf32>
    %cst_134 = arith.constant dense<0.000000e+00> : vector<8xf32>
    %338 = vector.multi_reduction <add>, %337, %cst_134 [1] : vector<8x8xf32> to vector<8xf32>
    %339 = vector.shape_cast %338 : vector<8xf32> to vector<8x1xf32>
    %340 = tpu.reciprocal %339 {approx = true} : vector<8x1xf32> -> vector<8x1xf32>
    %341 = vector.broadcast %340 : vector<8x1xf32> to vector<8x8xf32>
    %342 = arith.mulf %337, %341 : vector<8x8xf32>
    %343 = arith.truncf %342 : vector<8x8xf32> to vector<8x8xbf16>
    %cst_135 = arith.constant dense<0.000000e+00> : vector<8x16xf32>
    %344 = tpu.matmul %343, %329, %cst_135 {dimension_numbers = #tpu.dot_dimension_numbers<[1], [0], [0], [1], [0, 0, 1, 1], [], []>} : vector<8x8xbf16>, vector<8x16xbf16>, vector<8x16xf32> -> vector<8x16xf32>
    %c0_136 = arith.constant 0 : index
    %c0_137 = arith.constant 0 : index
    %345 = vector.load %arg20[%c0_136, %c0_137] : memref<16x64xf32, #tpu.memory_space<vmem>>, vector<8x16xf32>
    tpu.vector_store %arg20[%c0_136, %c0_137], %344 {strides = array<i32>} : memref<16x64xf32, #tpu.memory_space<vmem>>, vector<8x16xf32>,
    %346 = vector.extract_strided_slice %321 {offsets = [0, 16], sizes = [8, 16], strides = [1, 1]} : vector<16x192xf32> to vector<8x16xf32>
    %cst_138 = arith.constant 2.500000e-01 : f32
    %347 = vector.broadcast %cst_138 : f32 to vector<8x16xf32>
    %348 = arith.mulf %346, %347 : vector<8x16xf32>
    %349 = arith.truncf %348 : vector<8x16xf32> to vector<8x16xbf16>
    %350 = vector.extract_strided_slice %321 {offsets = [0, 80], sizes = [8, 16], strides = [1, 1]} : vector<16x192xf32> to vector<8x16xf32>
    %351 = arith.truncf %350 : vector<8x16xf32> to vector<8x16xbf16>
    %352 = vector.extract_strided_slice %321 {offsets = [0, 144], sizes = [8, 16], strides = [1, 1]} : vector<16x192xf32> to vector<8x16xf32>
    %353 = arith.truncf %352 : vector<8x16xf32> to vector<8x16xbf16>
    %cst_139 = arith.constant dense<0.000000e+00> : vector<8x8xf32>
    %354 = tpu.matmul %349, %351, %cst_139 {dimension_numbers = #tpu.dot_dimension_numbers<[1], [1], [0], [0], [0, 0, 1, 0], [], []>} : vector<8x16xbf16>, vector<8x16xbf16>, vector<8x8xf32> -> vector<8x8xf32>
    %cst_140 = arith.constant -1.000000e+30 : f32
    %355 = vector.broadcast %cst_140 : f32 to vector<8x8xf32>
    %356 = arith.select %14, %354, %355 : vector<8x8xi1>, vector<8x8xf32>
    %cst_141 = arith.constant dense<0xFF800000> : vector<8xf32>
    %357 = vector.multi_reduction <maximumf>, %356, %cst_141 [1] : vector<8x8xf32> to vector<8xf32>
    %358 = vector.shape_cast %357 : vector<8xf32> to vector<8x1xf32>
    %359 = vector.broadcast %358 : vector<8x1xf32> to vector<8x8xf32>
    %360 = arith.subf %356, %359 : vector<8x8xf32>
    %361 = math.exp %360 : vector<8x8xf32>
    %cst_142 = arith.constant dense<0.000000e+00> : vector<8xf32>
    %362 = vector.multi_reduction <add>, %361, %cst_142 [1] : vector<8x8xf32> to vector<8xf32>
    %363 = vector.shape_cast %362 : vector<8xf32> to vector<8x1xf32>
    %364 = tpu.reciprocal %363 {approx = true} : vector<8x1xf32> -> vector<8x1xf32>
    %365 = vector.broadcast %364 : vector<8x1xf32> to vector<8x8xf32>
    %366 = arith.mulf %361, %365 : vector<8x8xf32>
    %367 = arith.truncf %366 : vector<8x8xf32> to vector<8x8xbf16>
    %cst_143 = arith.constant dense<0.000000e+00> : vector<8x16xf32>
    %368 = tpu.matmul %367, %353, %cst_143 {dimension_numbers = #tpu.dot_dimension_numbers<[1], [0], [0], [1], [0, 0, 1, 1], [], []>} : vector<8x8xbf16>, vector<8x16xbf16>, vector<8x16xf32> -> vector<8x16xf32>
    %c0_144 = arith.constant 0 : index
    %c16_145 = arith.constant 16 : index
    %369 = vector.load %arg20[%c0_144, %c16_145] : memref<16x64xf32, #tpu.memory_space<vmem>>, vector<8x16xf32>
    tpu.vector_store %arg20[%c0_144, %c16_145], %368 {strides = array<i32>} : memref<16x64xf32, #tpu.memory_space<vmem>>, vector<8x16xf32>,
    %370 = vector.extract_strided_slice %321 {offsets = [0, 32], sizes = [8, 16], strides = [1, 1]} : vector<16x192xf32> to vector<8x16xf32>
    %cst_146 = arith.constant 2.500000e-01 : f32
    %371 = vector.broadcast %cst_146 : f32 to vector<8x16xf32>
    %372 = arith.mulf %370, %371 : vector<8x16xf32>
    %373 = arith.truncf %372 : vector<8x16xf32> to vector<8x16xbf16>
    %374 = vector.extract_strided_slice %321 {offsets = [0, 96], sizes = [8, 16], strides = [1, 1]} : vector<16x192xf32> to vector<8x16xf32>
    %375 = arith.truncf %374 : vector<8x16xf32> to vector<8x16xbf16>
    %376 = vector.extract_strided_slice %321 {offsets = [0, 160], sizes = [8, 16], strides = [1, 1]} : vector<16x192xf32> to vector<8x16xf32>
    %377 = arith.truncf %376 : vector<8x16xf32> to vector<8x16xbf16>
    %cst_147 = arith.constant dense<0.000000e+00> : vector<8x8xf32>
    %378 = tpu.matmul %373, %375, %cst_147 {dimension_numbers = #tpu.dot_dimension_numbers<[1], [1], [0], [0], [0, 0, 1, 0], [], []>} : vector<8x16xbf16>, vector<8x16xbf16>, vector<8x8xf32> -> vector<8x8xf32>
    %cst_148 = arith.constant -1.000000e+30 : f32
    %379 = vector.broadcast %cst_148 : f32 to vector<8x8xf32>
    %380 = arith.select %14, %378, %379 : vector<8x8xi1>, vector<8x8xf32>
    %cst_149 = arith.constant dense<0xFF800000> : vector<8xf32>
    %381 = vector.multi_reduction <maximumf>, %380, %cst_149 [1] : vector<8x8xf32> to vector<8xf32>
    %382 = vector.shape_cast %381 : vector<8xf32> to vector<8x1xf32>
    %383 = vector.broadcast %382 : vector<8x1xf32> to vector<8x8xf32>
    %384 = arith.subf %380, %383 : vector<8x8xf32>
    %385 = math.exp %384 : vector<8x8xf32>
    %cst_150 = arith.constant dense<0.000000e+00> : vector<8xf32>
    %386 = vector.multi_reduction <add>, %385, %cst_150 [1] : vector<8x8xf32> to vector<8xf32>
    %387 = vector.shape_cast %386 : vector<8xf32> to vector<8x1xf32>
    %388 = tpu.reciprocal %387 {approx = true} : vector<8x1xf32> -> vector<8x1xf32>
    %389 = vector.broadcast %388 : vector<8x1xf32> to vector<8x8xf32>
    %390 = arith.mulf %385, %389 : vector<8x8xf32>
    %391 = arith.truncf %390 : vector<8x8xf32> to vector<8x8xbf16>
    %cst_151 = arith.constant dense<0.000000e+00> : vector<8x16xf32>
    %392 = tpu.matmul %391, %377, %cst_151 {dimension_numbers = #tpu.dot_dimension_numbers<[1], [0], [0], [1], [0, 0, 1, 1], [], []>} : vector<8x8xbf16>, vector<8x16xbf16>, vector<8x16xf32> -> vector<8x16xf32>
    %c0_152 = arith.constant 0 : index
    %c32_153 = arith.constant 32 : index
    %393 = vector.load %arg20[%c0_152, %c32_153] : memref<16x64xf32, #tpu.memory_space<vmem>>, vector<8x16xf32>
    tpu.vector_store %arg20[%c0_152, %c32_153], %392 {strides = array<i32>} : memref<16x64xf32, #tpu.memory_space<vmem>>, vector<8x16xf32>,
    %394 = vector.extract_strided_slice %321 {offsets = [0, 48], sizes = [8, 16], strides = [1, 1]} : vector<16x192xf32> to vector<8x16xf32>
    %cst_154 = arith.constant 2.500000e-01 : f32
    %395 = vector.broadcast %cst_154 : f32 to vector<8x16xf32>
    %396 = arith.mulf %394, %395 : vector<8x16xf32>
    %397 = arith.truncf %396 : vector<8x16xf32> to vector<8x16xbf16>
    %398 = vector.extract_strided_slice %321 {offsets = [0, 112], sizes = [8, 16], strides = [1, 1]} : vector<16x192xf32> to vector<8x16xf32>
    %399 = arith.truncf %398 : vector<8x16xf32> to vector<8x16xbf16>
    %400 = vector.extract_strided_slice %321 {offsets = [0, 176], sizes = [8, 16], strides = [1, 1]} : vector<16x192xf32> to vector<8x16xf32>
    %401 = arith.truncf %400 : vector<8x16xf32> to vector<8x16xbf16>
    %cst_155 = arith.constant dense<0.000000e+00> : vector<8x8xf32>
    %402 = tpu.matmul %397, %399, %cst_155 {dimension_numbers = #tpu.dot_dimension_numbers<[1], [1], [0], [0], [0, 0, 1, 0], [], []>} : vector<8x16xbf16>, vector<8x16xbf16>, vector<8x8xf32> -> vector<8x8xf32>
    %cst_156 = arith.constant -1.000000e+30 : f32
    %403 = vector.broadcast %cst_156 : f32 to vector<8x8xf32>
    %404 = arith.select %14, %402, %403 : vector<8x8xi1>, vector<8x8xf32>
    %cst_157 = arith.constant dense<0xFF800000> : vector<8xf32>
    %405 = vector.multi_reduction <maximumf>, %404, %cst_157 [1] : vector<8x8xf32> to vector<8xf32>
    %406 = vector.shape_cast %405 : vector<8xf32> to vector<8x1xf32>
    %407 = vector.broadcast %406 : vector<8x1xf32> to vector<8x8xf32>
    %408 = arith.subf %404, %407 : vector<8x8xf32>
    %409 = math.exp %408 : vector<8x8xf32>
    %cst_158 = arith.constant dense<0.000000e+00> : vector<8xf32>
    %410 = vector.multi_reduction <add>, %409, %cst_158 [1] : vector<8x8xf32> to vector<8xf32>
    %411 = vector.shape_cast %410 : vector<8xf32> to vector<8x1xf32>
    %412 = tpu.reciprocal %411 {approx = true} : vector<8x1xf32> -> vector<8x1xf32>
    %413 = vector.broadcast %412 : vector<8x1xf32> to vector<8x8xf32>
    %414 = arith.mulf %409, %413 : vector<8x8xf32>
    %415 = arith.truncf %414 : vector<8x8xf32> to vector<8x8xbf16>
    %cst_159 = arith.constant dense<0.000000e+00> : vector<8x16xf32>
    %416 = tpu.matmul %415, %401, %cst_159 {dimension_numbers = #tpu.dot_dimension_numbers<[1], [0], [0], [1], [0, 0, 1, 1], [], []>} : vector<8x8xbf16>, vector<8x16xbf16>, vector<8x16xf32> -> vector<8x16xf32>
    %c0_160 = arith.constant 0 : index
    %c48_161 = arith.constant 48 : index
    %417 = vector.load %arg20[%c0_160, %c48_161] : memref<16x64xf32, #tpu.memory_space<vmem>>, vector<8x16xf32>
    tpu.vector_store %arg20[%c0_160, %c48_161], %416 {strides = array<i32>} : memref<16x64xf32, #tpu.memory_space<vmem>>, vector<8x16xf32>,
    %418 = vector.extract_strided_slice %321 {offsets = [8, 0], sizes = [8, 16], strides = [1, 1]} : vector<16x192xf32> to vector<8x16xf32>
    %cst_162 = arith.constant 2.500000e-01 : f32
    %419 = vector.broadcast %cst_162 : f32 to vector<8x16xf32>
    %420 = arith.mulf %418, %419 : vector<8x16xf32>
    %421 = arith.truncf %420 : vector<8x16xf32> to vector<8x16xbf16>
    %422 = vector.extract_strided_slice %321 {offsets = [8, 64], sizes = [8, 16], strides = [1, 1]} : vector<16x192xf32> to vector<8x16xf32>
    %423 = arith.truncf %422 : vector<8x16xf32> to vector<8x16xbf16>
    %424 = vector.extract_strided_slice %321 {offsets = [8, 128], sizes = [8, 16], strides = [1, 1]} : vector<16x192xf32> to vector<8x16xf32>
    %425 = arith.truncf %424 : vector<8x16xf32> to vector<8x16xbf16>
    %cst_163 = arith.constant dense<0.000000e+00> : vector<8x8xf32>
    %426 = tpu.matmul %421, %423, %cst_163 {dimension_numbers = #tpu.dot_dimension_numbers<[1], [1], [0], [0], [0, 0, 1, 0], [], []>} : vector<8x16xbf16>, vector<8x16xbf16>, vector<8x8xf32> -> vector<8x8xf32>
    %cst_164 = arith.constant -1.000000e+30 : f32
    %427 = vector.broadcast %cst_164 : f32 to vector<8x8xf32>
    %428 = arith.select %14, %426, %427 : vector<8x8xi1>, vector<8x8xf32>
    %cst_165 = arith.constant dense<0xFF800000> : vector<8xf32>
    %429 = vector.multi_reduction <maximumf>, %428, %cst_165 [1] : vector<8x8xf32> to vector<8xf32>
    %430 = vector.shape_cast %429 : vector<8xf32> to vector<8x1xf32>
    %431 = vector.broadcast %430 : vector<8x1xf32> to vector<8x8xf32>
    %432 = arith.subf %428, %431 : vector<8x8xf32>
    %433 = math.exp %432 : vector<8x8xf32>
    %cst_166 = arith.constant dense<0.000000e+00> : vector<8xf32>
    %434 = vector.multi_reduction <add>, %433, %cst_166 [1] : vector<8x8xf32> to vector<8xf32>
    %435 = vector.shape_cast %434 : vector<8xf32> to vector<8x1xf32>
    %436 = tpu.reciprocal %435 {approx = true} : vector<8x1xf32> -> vector<8x1xf32>
    %437 = vector.broadcast %436 : vector<8x1xf32> to vector<8x8xf32>
    %438 = arith.mulf %433, %437 : vector<8x8xf32>
    %439 = arith.truncf %438 : vector<8x8xf32> to vector<8x8xbf16>
    %cst_167 = arith.constant dense<0.000000e+00> : vector<8x16xf32>
    %440 = tpu.matmul %439, %425, %cst_167 {dimension_numbers = #tpu.dot_dimension_numbers<[1], [0], [0], [1], [0, 0, 1, 1], [], []>} : vector<8x8xbf16>, vector<8x16xbf16>, vector<8x16xf32> -> vector<8x16xf32>
    %c8_168 = arith.constant 8 : index
    %c0_169 = arith.constant 0 : index
    %441 = vector.load %arg20[%c8_168, %c0_169] : memref<16x64xf32, #tpu.memory_space<vmem>>, vector<8x16xf32>
    tpu.vector_store %arg20[%c8_168, %c0_169], %440 {strides = array<i32>} : memref<16x64xf32, #tpu.memory_space<vmem>>, vector<8x16xf32>,
    %442 = vector.extract_strided_slice %321 {offsets = [8, 16], sizes = [8, 16], strides = [1, 1]} : vector<16x192xf32> to vector<8x16xf32>
    %cst_170 = arith.constant 2.500000e-01 : f32
    %443 = vector.broadcast %cst_170 : f32 to vector<8x16xf32>
    %444 = arith.mulf %442, %443 : vector<8x16xf32>
    %445 = arith.truncf %444 : vector<8x16xf32> to vector<8x16xbf16>
    %446 = vector.extract_strided_slice %321 {offsets = [8, 80], sizes = [8, 16], strides = [1, 1]} : vector<16x192xf32> to vector<8x16xf32>
    %447 = arith.truncf %446 : vector<8x16xf32> to vector<8x16xbf16>
    %448 = vector.extract_strided_slice %321 {offsets = [8, 144], sizes = [8, 16], strides = [1, 1]} : vector<16x192xf32> to vector<8x16xf32>
    %449 = arith.truncf %448 : vector<8x16xf32> to vector<8x16xbf16>
    %cst_171 = arith.constant dense<0.000000e+00> : vector<8x8xf32>
    %450 = tpu.matmul %445, %447, %cst_171 {dimension_numbers = #tpu.dot_dimension_numbers<[1], [1], [0], [0], [0, 0, 1, 0], [], []>} : vector<8x16xbf16>, vector<8x16xbf16>, vector<8x8xf32> -> vector<8x8xf32>
    %cst_172 = arith.constant -1.000000e+30 : f32
    %451 = vector.broadcast %cst_172 : f32 to vector<8x8xf32>
    %452 = arith.select %14, %450, %451 : vector<8x8xi1>, vector<8x8xf32>
    %cst_173 = arith.constant dense<0xFF800000> : vector<8xf32>
    %453 = vector.multi_reduction <maximumf>, %452, %cst_173 [1] : vector<8x8xf32> to vector<8xf32>
    %454 = vector.shape_cast %453 : vector<8xf32> to vector<8x1xf32>
    %455 = vector.broadcast %454 : vector<8x1xf32> to vector<8x8xf32>
    %456 = arith.subf %452, %455 : vector<8x8xf32>
    %457 = math.exp %456 : vector<8x8xf32>
    %cst_174 = arith.constant dense<0.000000e+00> : vector<8xf32>
    %458 = vector.multi_reduction <add>, %457, %cst_174 [1] : vector<8x8xf32> to vector<8xf32>
    %459 = vector.shape_cast %458 : vector<8xf32> to vector<8x1xf32>
    %460 = tpu.reciprocal %459 {approx = true} : vector<8x1xf32> -> vector<8x1xf32>
    %461 = vector.broadcast %460 : vector<8x1xf32> to vector<8x8xf32>
    %462 = arith.mulf %457, %461 : vector<8x8xf32>
    %463 = arith.truncf %462 : vector<8x8xf32> to vector<8x8xbf16>
    %cst_175 = arith.constant dense<0.000000e+00> : vector<8x16xf32>
    %464 = tpu.matmul %463, %449, %cst_175 {dimension_numbers = #tpu.dot_dimension_numbers<[1], [0], [0], [1], [0, 0, 1, 1], [], []>} : vector<8x8xbf16>, vector<8x16xbf16>, vector<8x16xf32> -> vector<8x16xf32>
    %c8_176 = arith.constant 8 : index
    %c16_177 = arith.constant 16 : index
    %465 = vector.load %arg20[%c8_176, %c16_177] : memref<16x64xf32, #tpu.memory_space<vmem>>, vector<8x16xf32>
    tpu.vector_store %arg20[%c8_176, %c16_177], %464 {strides = array<i32>} : memref<16x64xf32, #tpu.memory_space<vmem>>, vector<8x16xf32>,
    %466 = vector.extract_strided_slice %321 {offsets = [8, 32], sizes = [8, 16], strides = [1, 1]} : vector<16x192xf32> to vector<8x16xf32>
    %cst_178 = arith.constant 2.500000e-01 : f32
    %467 = vector.broadcast %cst_178 : f32 to vector<8x16xf32>
    %468 = arith.mulf %466, %467 : vector<8x16xf32>
    %469 = arith.truncf %468 : vector<8x16xf32> to vector<8x16xbf16>
    %470 = vector.extract_strided_slice %321 {offsets = [8, 96], sizes = [8, 16], strides = [1, 1]} : vector<16x192xf32> to vector<8x16xf32>
    %471 = arith.truncf %470 : vector<8x16xf32> to vector<8x16xbf16>
    %472 = vector.extract_strided_slice %321 {offsets = [8, 160], sizes = [8, 16], strides = [1, 1]} : vector<16x192xf32> to vector<8x16xf32>
    %473 = arith.truncf %472 : vector<8x16xf32> to vector<8x16xbf16>
    %cst_179 = arith.constant dense<0.000000e+00> : vector<8x8xf32>
    %474 = tpu.matmul %469, %471, %cst_179 {dimension_numbers = #tpu.dot_dimension_numbers<[1], [1], [0], [0], [0, 0, 1, 0], [], []>} : vector<8x16xbf16>, vector<8x16xbf16>, vector<8x8xf32> -> vector<8x8xf32>
    %cst_180 = arith.constant -1.000000e+30 : f32
    %475 = vector.broadcast %cst_180 : f32 to vector<8x8xf32>
    %476 = arith.select %14, %474, %475 : vector<8x8xi1>, vector<8x8xf32>
    %cst_181 = arith.constant dense<0xFF800000> : vector<8xf32>
    %477 = vector.multi_reduction <maximumf>, %476, %cst_181 [1] : vector<8x8xf32> to vector<8xf32>
    %478 = vector.shape_cast %477 : vector<8xf32> to vector<8x1xf32>
    %479 = vector.broadcast %478 : vector<8x1xf32> to vector<8x8xf32>
    %480 = arith.subf %476, %479 : vector<8x8xf32>
    %481 = math.exp %480 : vector<8x8xf32>
    %cst_182 = arith.constant dense<0.000000e+00> : vector<8xf32>
    %482 = vector.multi_reduction <add>, %481, %cst_182 [1] : vector<8x8xf32> to vector<8xf32>
    %483 = vector.shape_cast %482 : vector<8xf32> to vector<8x1xf32>
    %484 = tpu.reciprocal %483 {approx = true} : vector<8x1xf32> -> vector<8x1xf32>
    %485 = vector.broadcast %484 : vector<8x1xf32> to vector<8x8xf32>
    %486 = arith.mulf %481, %485 : vector<8x8xf32>
    %487 = arith.truncf %486 : vector<8x8xf32> to vector<8x8xbf16>
    %cst_183 = arith.constant dense<0.000000e+00> : vector<8x16xf32>
    %488 = tpu.matmul %487, %473, %cst_183 {dimension_numbers = #tpu.dot_dimension_numbers<[1], [0], [0], [1], [0, 0, 1, 1], [], []>} : vector<8x8xbf16>, vector<8x16xbf16>, vector<8x16xf32> -> vector<8x16xf32>
    %c8_184 = arith.constant 8 : index
    %c32_185 = arith.constant 32 : index
    %489 = vector.load %arg20[%c8_184, %c32_185] : memref<16x64xf32, #tpu.memory_space<vmem>>, vector<8x16xf32>
    tpu.vector_store %arg20[%c8_184, %c32_185], %488 {strides = array<i32>} : memref<16x64xf32, #tpu.memory_space<vmem>>, vector<8x16xf32>,
    %490 = vector.extract_strided_slice %321 {offsets = [8, 48], sizes = [8, 16], strides = [1, 1]} : vector<16x192xf32> to vector<8x16xf32>
    %cst_186 = arith.constant 2.500000e-01 : f32
    %491 = vector.broadcast %cst_186 : f32 to vector<8x16xf32>
    %492 = arith.mulf %490, %491 : vector<8x16xf32>
    %493 = arith.truncf %492 : vector<8x16xf32> to vector<8x16xbf16>
    %494 = vector.extract_strided_slice %321 {offsets = [8, 112], sizes = [8, 16], strides = [1, 1]} : vector<16x192xf32> to vector<8x16xf32>
    %495 = arith.truncf %494 : vector<8x16xf32> to vector<8x16xbf16>
    %496 = vector.extract_strided_slice %321 {offsets = [8, 176], sizes = [8, 16], strides = [1, 1]} : vector<16x192xf32> to vector<8x16xf32>
    %497 = arith.truncf %496 : vector<8x16xf32> to vector<8x16xbf16>
    %cst_187 = arith.constant dense<0.000000e+00> : vector<8x8xf32>
    %498 = tpu.matmul %493, %495, %cst_187 {dimension_numbers = #tpu.dot_dimension_numbers<[1], [1], [0], [0], [0, 0, 1, 0], [], []>} : vector<8x16xbf16>, vector<8x16xbf16>, vector<8x8xf32> -> vector<8x8xf32>
    %cst_188 = arith.constant -1.000000e+30 : f32
    %499 = vector.broadcast %cst_188 : f32 to vector<8x8xf32>
    %500 = arith.select %14, %498, %499 : vector<8x8xi1>, vector<8x8xf32>
    %cst_189 = arith.constant dense<0xFF800000> : vector<8xf32>
    %501 = vector.multi_reduction <maximumf>, %500, %cst_189 [1] : vector<8x8xf32> to vector<8xf32>
    %502 = vector.shape_cast %501 : vector<8xf32> to vector<8x1xf32>
    %503 = vector.broadcast %502 : vector<8x1xf32> to vector<8x8xf32>
    %504 = arith.subf %500, %503 : vector<8x8xf32>
    %505 = math.exp %504 : vector<8x8xf32>
    %cst_190 = arith.constant dense<0.000000e+00> : vector<8xf32>
    %506 = vector.multi_reduction <add>, %505, %cst_190 [1] : vector<8x8xf32> to vector<8xf32>
    %507 = vector.shape_cast %506 : vector<8xf32> to vector<8x1xf32>
    %508 = tpu.reciprocal %507 {approx = true} : vector<8x1xf32> -> vector<8x1xf32>
    %509 = vector.broadcast %508 : vector<8x1xf32> to vector<8x8xf32>
    %510 = arith.mulf %505, %509 : vector<8x8xf32>
    %511 = arith.truncf %510 : vector<8x8xf32> to vector<8x8xbf16>
    %cst_191 = arith.constant dense<0.000000e+00> : vector<8x16xf32>
    %512 = tpu.matmul %511, %497, %cst_191 {dimension_numbers = #tpu.dot_dimension_numbers<[1], [0], [0], [1], [0, 0, 1, 1], [], []>} : vector<8x8xbf16>, vector<8x16xbf16>, vector<8x16xf32> -> vector<8x16xf32>
    %c8_192 = arith.constant 8 : index
    %c48_193 = arith.constant 48 : index
    %513 = vector.load %arg20[%c8_192, %c48_193] : memref<16x64xf32, #tpu.memory_space<vmem>>, vector<8x16xf32>
    tpu.vector_store %arg20[%c8_192, %c48_193], %512 {strides = array<i32>} : memref<16x64xf32, #tpu.memory_space<vmem>>, vector<8x16xf32>,
    %c0_194 = arith.constant 0 : index
    %c0_195 = arith.constant 0 : index
    %514 = vector.load %arg20[%c0_194, %c0_195] : memref<16x64xf32, #tpu.memory_space<vmem>>, vector<16x64xf32>
    %515 = arith.truncf %514 : vector<16x64xf32> to vector<16x64xbf16>
    %c1_196 = arith.constant 1 : index
    %c0_197 = arith.constant 0 : index
    %c0_198 = arith.constant 0 : index
    %516 = vector.load %arg7[%c1_196, %c0_197, %c0_198] : memref<4x64x64xbf16, #tpu.memory_space<vmem>>, vector<1x64x64xbf16>
    %517 = vector.shape_cast %516 : vector<1x64x64xbf16> to vector<64x64xbf16>
    %cst_199 = arith.constant dense<0.000000e+00> : vector<16x64xf32>
    %518 = tpu.matmul %515, %517, %cst_199 {dimension_numbers = #tpu.dot_dimension_numbers<[1], [0], [0], [1], [0, 0, 1, 1], [], []>} : vector<16x64xbf16>, vector<64x64xbf16>, vector<16x64xf32> -> vector<16x64xf32>
    %c1_200 = arith.constant 1 : index
    %c0_201 = arith.constant 0 : index
    %c0_202 = arith.constant 0 : index
    %519 = vector.load %arg8[%c1_200, %c0_201, %c0_202] : memref<4x1x64xf32, #tpu.memory_space<vmem>>, vector<1x1x64xf32>
    %520 = vector.shape_cast %519 : vector<1x1x64xf32> to vector<1x64xf32>
    %521 = vector.broadcast %520 : vector<1x64xf32> to vector<16x64xf32>
    %522 = arith.addf %518, %521 : vector<16x64xf32>
    %523 = arith.addf %291, %522 : vector<16x64xf32>
    %c1_203 = arith.constant 1 : index
    %c0_204 = arith.constant 0 : index
    %c0_205 = arith.constant 0 : index
    %524 = vector.load %arg9[%c1_203, %c0_204, %c0_205] : memref<4x1x64xf32, #tpu.memory_space<vmem>>, vector<1x1x64xf32>
    %525 = vector.shape_cast %524 : vector<1x1x64xf32> to vector<1x64xf32>
    %c1_206 = arith.constant 1 : index
    %c0_207 = arith.constant 0 : index
    %c0_208 = arith.constant 0 : index
    %526 = vector.load %arg10[%c1_206, %c0_207, %c0_208] : memref<4x1x64xf32, #tpu.memory_space<vmem>>, vector<1x1x64xf32>
    %527 = vector.shape_cast %526 : vector<1x1x64xf32> to vector<1x64xf32>
    %cst_209 = arith.constant dense<0.000000e+00> : vector<16xf32>
    %528 = vector.multi_reduction <add>, %523, %cst_209 [1] : vector<16x64xf32> to vector<16xf32>
    %529 = vector.shape_cast %528 : vector<16xf32> to vector<16x1xf32>
    %cst_210 = arith.constant 6.400000e+01 : f32
    %530 = vector.broadcast %cst_210 : f32 to vector<16x1xf32>
    %531 = arith.divf %529, %530 : vector<16x1xf32>
    %532 = vector.broadcast %531 : vector<16x1xf32> to vector<16x64xf32>
    %533 = arith.subf %523, %532 : vector<16x64xf32>
    %534 = arith.mulf %533, %533 : vector<16x64xf32>
    %cst_211 = arith.constant dense<0.000000e+00> : vector<16xf32>
    %535 = vector.multi_reduction <add>, %534, %cst_211 [1] : vector<16x64xf32> to vector<16xf32>
    %536 = vector.shape_cast %535 : vector<16xf32> to vector<16x1xf32>
    %cst_212 = arith.constant 6.400000e+01 : f32
    %537 = vector.broadcast %cst_212 : f32 to vector<16x1xf32>
    %538 = arith.divf %536, %537 : vector<16x1xf32>
    %539 = vector.broadcast %531 : vector<16x1xf32> to vector<16x64xf32>
    %540 = arith.subf %523, %539 : vector<16x64xf32>
    %cst_213 = arith.constant 9.99999974E-6 : f32
    %541 = vector.broadcast %cst_213 : f32 to vector<16x1xf32>
    %542 = arith.addf %538, %541 : vector<16x1xf32>
    %543 = math.rsqrt %542 : vector<16x1xf32>
    %544 = vector.broadcast %543 : vector<16x1xf32> to vector<16x64xf32>
    %545 = arith.mulf %540, %544 : vector<16x64xf32>
    %546 = vector.broadcast %525 : vector<1x64xf32> to vector<16x64xf32>
    %547 = arith.mulf %545, %546 : vector<16x64xf32>
    %548 = vector.broadcast %527 : vector<1x64xf32> to vector<16x64xf32>
    %549 = arith.addf %547, %548 : vector<16x64xf32>
    %550 = arith.truncf %549 : vector<16x64xf32> to vector<16x64xbf16>
    %c1_214 = arith.constant 1 : index
    %c0_215 = arith.constant 0 : index
    %c0_216 = arith.constant 0 : index
    %551 = vector.load %arg11[%c1_214, %c0_215, %c0_216] : memref<4x64x256xbf16, #tpu.memory_space<vmem>>, vector<1x64x256xbf16>
    %552 = vector.shape_cast %551 : vector<1x64x256xbf16> to vector<64x256xbf16>
    %cst_217 = arith.constant dense<0.000000e+00> : vector<16x256xf32>
    %553 = tpu.matmul %550, %552, %cst_217 {dimension_numbers = #tpu.dot_dimension_numbers<[1], [0], [0], [1], [0, 0, 1, 1], [], []>} : vector<16x64xbf16>, vector<64x256xbf16>, vector<16x256xf32> -> vector<16x256xf32>
    %c1_218 = arith.constant 1 : index
    %c0_219 = arith.constant 0 : index
    %c0_220 = arith.constant 0 : index
    %554 = vector.load %arg12[%c1_218, %c0_219, %c0_220] : memref<4x1x256xf32, #tpu.memory_space<vmem>>, vector<1x1x256xf32>
    %555 = vector.shape_cast %554 : vector<1x1x256xf32> to vector<1x256xf32>
    %556 = vector.broadcast %555 : vector<1x256xf32> to vector<16x256xf32>
    %557 = arith.addf %553, %556 : vector<16x256xf32>
    %cst_221 = arith.constant 0.000000e+00 : f32
    %558 = vector.broadcast %cst_221 : f32 to vector<16x256xf32>
    %559 = arith.maximumf %557, %558 : vector<16x256xf32>
    %560 = arith.truncf %559 : vector<16x256xf32> to vector<16x256xbf16>
    %c1_222 = arith.constant 1 : index
    %c0_223 = arith.constant 0 : index
    %c0_224 = arith.constant 0 : index
    %561 = vector.load %arg13[%c1_222, %c0_223, %c0_224] : memref<4x256x64xbf16, #tpu.memory_space<vmem>>, vector<1x256x64xbf16>
    %562 = vector.shape_cast %561 : vector<1x256x64xbf16> to vector<256x64xbf16>
    %cst_225 = arith.constant dense<0.000000e+00> : vector<16x64xf32>
    %563 = tpu.matmul %560, %562, %cst_225 {dimension_numbers = #tpu.dot_dimension_numbers<[1], [0], [0], [1], [0, 0, 1, 1], [], []>} : vector<16x256xbf16>, vector<256x64xbf16>, vector<16x64xf32> -> vector<16x64xf32>
    %c1_226 = arith.constant 1 : index
    %c0_227 = arith.constant 0 : index
    %c0_228 = arith.constant 0 : index
    %564 = vector.load %arg14[%c1_226, %c0_227, %c0_228] : memref<4x1x64xf32, #tpu.memory_space<vmem>>, vector<1x1x64xf32>
    %565 = vector.shape_cast %564 : vector<1x1x64xf32> to vector<1x64xf32>
    %566 = vector.broadcast %565 : vector<1x64xf32> to vector<16x64xf32>
    %567 = arith.addf %563, %566 : vector<16x64xf32>
    %568 = arith.addf %523, %567 : vector<16x64xf32>
    %c2 = arith.constant 2 : index
    %c0_229 = arith.constant 0 : index
    %c0_230 = arith.constant 0 : index
    %569 = vector.load %arg4[%c2, %c0_229, %c0_230] : memref<4x1x64xf32, #tpu.memory_space<vmem>>, vector<1x1x64xf32>
    %570 = vector.shape_cast %569 : vector<1x1x64xf32> to vector<1x64xf32>
    %c2_231 = arith.constant 2 : index
    %c0_232 = arith.constant 0 : index
    %c0_233 = arith.constant 0 : index
    %571 = vector.load %arg5[%c2_231, %c0_232, %c0_233] : memref<4x1x64xf32, #tpu.memory_space<vmem>>, vector<1x1x64xf32>
    %572 = vector.shape_cast %571 : vector<1x1x64xf32> to vector<1x64xf32>
    %cst_234 = arith.constant dense<0.000000e+00> : vector<16xf32>
    %573 = vector.multi_reduction <add>, %568, %cst_234 [1] : vector<16x64xf32> to vector<16xf32>
    %574 = vector.shape_cast %573 : vector<16xf32> to vector<16x1xf32>
    %cst_235 = arith.constant 6.400000e+01 : f32
    %575 = vector.broadcast %cst_235 : f32 to vector<16x1xf32>
    %576 = arith.divf %574, %575 : vector<16x1xf32>
    %577 = vector.broadcast %576 : vector<16x1xf32> to vector<16x64xf32>
    %578 = arith.subf %568, %577 : vector<16x64xf32>
    %579 = arith.mulf %578, %578 : vector<16x64xf32>
    %cst_236 = arith.constant dense<0.000000e+00> : vector<16xf32>
    %580 = vector.multi_reduction <add>, %579, %cst_236 [1] : vector<16x64xf32> to vector<16xf32>
    %581 = vector.shape_cast %580 : vector<16xf32> to vector<16x1xf32>
    %cst_237 = arith.constant 6.400000e+01 : f32
    %582 = vector.broadcast %cst_237 : f32 to vector<16x1xf32>
    %583 = arith.divf %581, %582 : vector<16x1xf32>
    %584 = vector.broadcast %576 : vector<16x1xf32> to vector<16x64xf32>
    %585 = arith.subf %568, %584 : vector<16x64xf32>
    %cst_238 = arith.constant 9.99999974E-6 : f32
    %586 = vector.broadcast %cst_238 : f32 to vector<16x1xf32>
    %587 = arith.addf %583, %586 : vector<16x1xf32>
    %588 = math.rsqrt %587 : vector<16x1xf32>
    %589 = vector.broadcast %588 : vector<16x1xf32> to vector<16x64xf32>
    %590 = arith.mulf %585, %589 : vector<16x64xf32>
    %591 = vector.broadcast %570 : vector<1x64xf32> to vector<16x64xf32>
    %592 = arith.mulf %590, %591 : vector<16x64xf32>
    %593 = vector.broadcast %572 : vector<1x64xf32> to vector<16x64xf32>
    %594 = arith.addf %592, %593 : vector<16x64xf32>
    %595 = arith.truncf %594 : vector<16x64xf32> to vector<16x64xbf16>
    %c2_239 = arith.constant 2 : index
    %c0_240 = arith.constant 0 : index
    %c0_241 = arith.constant 0 : index
    %596 = vector.load %arg6[%c2_239, %c0_240, %c0_241] : memref<4x64x192xbf16, #tpu.memory_space<vmem>>, vector<1x64x192xbf16>
    %597 = vector.shape_cast %596 : vector<1x64x192xbf16> to vector<64x192xbf16>
    %cst_242 = arith.constant dense<0.000000e+00> : vector<16x192xf32>
    %598 = tpu.matmul %595, %597, %cst_242 {dimension_numbers = #tpu.dot_dimension_numbers<[1], [0], [0], [1], [0, 0, 1, 1], [], []>} : vector<16x64xbf16>, vector<64x192xbf16>, vector<16x192xf32> -> vector<16x192xf32>
    %599 = vector.extract_strided_slice %598 {offsets = [0, 0], sizes = [8, 16], strides = [1, 1]} : vector<16x192xf32> to vector<8x16xf32>
    %cst_243 = arith.constant 2.500000e-01 : f32
    %600 = vector.broadcast %cst_243 : f32 to vector<8x16xf32>
    %601 = arith.mulf %599, %600 : vector<8x16xf32>
    %602 = arith.truncf %601 : vector<8x16xf32> to vector<8x16xbf16>
    %603 = vector.extract_strided_slice %598 {offsets = [0, 64], sizes = [8, 16], strides = [1, 1]} : vector<16x192xf32> to vector<8x16xf32>
    %604 = arith.truncf %603 : vector<8x16xf32> to vector<8x16xbf16>
    %605 = vector.extract_strided_slice %598 {offsets = [0, 128], sizes = [8, 16], strides = [1, 1]} : vector<16x192xf32> to vector<8x16xf32>
    %606 = arith.truncf %605 : vector<8x16xf32> to vector<8x16xbf16>
    %cst_244 = arith.constant dense<0.000000e+00> : vector<8x8xf32>
    %607 = tpu.matmul %602, %604, %cst_244 {dimension_numbers = #tpu.dot_dimension_numbers<[1], [1], [0], [0], [0, 0, 1, 0], [], []>} : vector<8x16xbf16>, vector<8x16xbf16>, vector<8x8xf32> -> vector<8x8xf32>
    %cst_245 = arith.constant -1.000000e+30 : f32
    %608 = vector.broadcast %cst_245 : f32 to vector<8x8xf32>
    %609 = arith.select %14, %607, %608 : vector<8x8xi1>, vector<8x8xf32>
    %cst_246 = arith.constant dense<0xFF800000> : vector<8xf32>
    %610 = vector.multi_reduction <maximumf>, %609, %cst_246 [1] : vector<8x8xf32> to vector<8xf32>
    %611 = vector.shape_cast %610 : vector<8xf32> to vector<8x1xf32>
    %612 = vector.broadcast %611 : vector<8x1xf32> to vector<8x8xf32>
    %613 = arith.subf %609, %612 : vector<8x8xf32>
    %614 = math.exp %613 : vector<8x8xf32>
    %cst_247 = arith.constant dense<0.000000e+00> : vector<8xf32>
    %615 = vector.multi_reduction <add>, %614, %cst_247 [1] : vector<8x8xf32> to vector<8xf32>
    %616 = vector.shape_cast %615 : vector<8xf32> to vector<8x1xf32>
    %617 = tpu.reciprocal %616 {approx = true} : vector<8x1xf32> -> vector<8x1xf32>
    %618 = vector.broadcast %617 : vector<8x1xf32> to vector<8x8xf32>
    %619 = arith.mulf %614, %618 : vector<8x8xf32>
    %620 = arith.truncf %619 : vector<8x8xf32> to vector<8x8xbf16>
    %cst_248 = arith.constant dense<0.000000e+00> : vector<8x16xf32>
    %621 = tpu.matmul %620, %606, %cst_248 {dimension_numbers = #tpu.dot_dimension_numbers<[1], [0], [0], [1], [0, 0, 1, 1], [], []>} : vector<8x8xbf16>, vector<8x16xbf16>, vector<8x16xf32> -> vector<8x16xf32>
    %c0_249 = arith.constant 0 : index
    %c0_250 = arith.constant 0 : index
    %622 = vector.load %arg20[%c0_249, %c0_250] : memref<16x64xf32, #tpu.memory_space<vmem>>, vector<8x16xf32>
    tpu.vector_store %arg20[%c0_249, %c0_250], %621 {strides = array<i32>} : memref<16x64xf32, #tpu.memory_space<vmem>>, vector<8x16xf32>,
    %623 = vector.extract_strided_slice %598 {offsets = [0, 16], sizes = [8, 16], strides = [1, 1]} : vector<16x192xf32> to vector<8x16xf32>
    %cst_251 = arith.constant 2.500000e-01 : f32
    %624 = vector.broadcast %cst_251 : f32 to vector<8x16xf32>
    %625 = arith.mulf %623, %624 : vector<8x16xf32>
    %626 = arith.truncf %625 : vector<8x16xf32> to vector<8x16xbf16>
    %627 = vector.extract_strided_slice %598 {offsets = [0, 80], sizes = [8, 16], strides = [1, 1]} : vector<16x192xf32> to vector<8x16xf32>
    %628 = arith.truncf %627 : vector<8x16xf32> to vector<8x16xbf16>
    %629 = vector.extract_strided_slice %598 {offsets = [0, 144], sizes = [8, 16], strides = [1, 1]} : vector<16x192xf32> to vector<8x16xf32>
    %630 = arith.truncf %629 : vector<8x16xf32> to vector<8x16xbf16>
    %cst_252 = arith.constant dense<0.000000e+00> : vector<8x8xf32>
    %631 = tpu.matmul %626, %628, %cst_252 {dimension_numbers = #tpu.dot_dimension_numbers<[1], [1], [0], [0], [0, 0, 1, 0], [], []>} : vector<8x16xbf16>, vector<8x16xbf16>, vector<8x8xf32> -> vector<8x8xf32>
    %cst_253 = arith.constant -1.000000e+30 : f32
    %632 = vector.broadcast %cst_253 : f32 to vector<8x8xf32>
    %633 = arith.select %14, %631, %632 : vector<8x8xi1>, vector<8x8xf32>
    %cst_254 = arith.constant dense<0xFF800000> : vector<8xf32>
    %634 = vector.multi_reduction <maximumf>, %633, %cst_254 [1] : vector<8x8xf32> to vector<8xf32>
    %635 = vector.shape_cast %634 : vector<8xf32> to vector<8x1xf32>
    %636 = vector.broadcast %635 : vector<8x1xf32> to vector<8x8xf32>
    %637 = arith.subf %633, %636 : vector<8x8xf32>
    %638 = math.exp %637 : vector<8x8xf32>
    %cst_255 = arith.constant dense<0.000000e+00> : vector<8xf32>
    %639 = vector.multi_reduction <add>, %638, %cst_255 [1] : vector<8x8xf32> to vector<8xf32>
    %640 = vector.shape_cast %639 : vector<8xf32> to vector<8x1xf32>
    %641 = tpu.reciprocal %640 {approx = true} : vector<8x1xf32> -> vector<8x1xf32>
    %642 = vector.broadcast %641 : vector<8x1xf32> to vector<8x8xf32>
    %643 = arith.mulf %638, %642 : vector<8x8xf32>
    %644 = arith.truncf %643 : vector<8x8xf32> to vector<8x8xbf16>
    %cst_256 = arith.constant dense<0.000000e+00> : vector<8x16xf32>
    %645 = tpu.matmul %644, %630, %cst_256 {dimension_numbers = #tpu.dot_dimension_numbers<[1], [0], [0], [1], [0, 0, 1, 1], [], []>} : vector<8x8xbf16>, vector<8x16xbf16>, vector<8x16xf32> -> vector<8x16xf32>
    %c0_257 = arith.constant 0 : index
    %c16_258 = arith.constant 16 : index
    %646 = vector.load %arg20[%c0_257, %c16_258] : memref<16x64xf32, #tpu.memory_space<vmem>>, vector<8x16xf32>
    tpu.vector_store %arg20[%c0_257, %c16_258], %645 {strides = array<i32>} : memref<16x64xf32, #tpu.memory_space<vmem>>, vector<8x16xf32>,
    %647 = vector.extract_strided_slice %598 {offsets = [0, 32], sizes = [8, 16], strides = [1, 1]} : vector<16x192xf32> to vector<8x16xf32>
    %cst_259 = arith.constant 2.500000e-01 : f32
    %648 = vector.broadcast %cst_259 : f32 to vector<8x16xf32>
    %649 = arith.mulf %647, %648 : vector<8x16xf32>
    %650 = arith.truncf %649 : vector<8x16xf32> to vector<8x16xbf16>
    %651 = vector.extract_strided_slice %598 {offsets = [0, 96], sizes = [8, 16], strides = [1, 1]} : vector<16x192xf32> to vector<8x16xf32>
    %652 = arith.truncf %651 : vector<8x16xf32> to vector<8x16xbf16>
    %653 = vector.extract_strided_slice %598 {offsets = [0, 160], sizes = [8, 16], strides = [1, 1]} : vector<16x192xf32> to vector<8x16xf32>
    %654 = arith.truncf %653 : vector<8x16xf32> to vector<8x16xbf16>
    %cst_260 = arith.constant dense<0.000000e+00> : vector<8x8xf32>
    %655 = tpu.matmul %650, %652, %cst_260 {dimension_numbers = #tpu.dot_dimension_numbers<[1], [1], [0], [0], [0, 0, 1, 0], [], []>} : vector<8x16xbf16>, vector<8x16xbf16>, vector<8x8xf32> -> vector<8x8xf32>
    %cst_261 = arith.constant -1.000000e+30 : f32
    %656 = vector.broadcast %cst_261 : f32 to vector<8x8xf32>
    %657 = arith.select %14, %655, %656 : vector<8x8xi1>, vector<8x8xf32>
    %cst_262 = arith.constant dense<0xFF800000> : vector<8xf32>
    %658 = vector.multi_reduction <maximumf>, %657, %cst_262 [1] : vector<8x8xf32> to vector<8xf32>
    %659 = vector.shape_cast %658 : vector<8xf32> to vector<8x1xf32>
    %660 = vector.broadcast %659 : vector<8x1xf32> to vector<8x8xf32>
    %661 = arith.subf %657, %660 : vector<8x8xf32>
    %662 = math.exp %661 : vector<8x8xf32>
    %cst_263 = arith.constant dense<0.000000e+00> : vector<8xf32>
    %663 = vector.multi_reduction <add>, %662, %cst_263 [1] : vector<8x8xf32> to vector<8xf32>
    %664 = vector.shape_cast %663 : vector<8xf32> to vector<8x1xf32>
    %665 = tpu.reciprocal %664 {approx = true} : vector<8x1xf32> -> vector<8x1xf32>
    %666 = vector.broadcast %665 : vector<8x1xf32> to vector<8x8xf32>
    %667 = arith.mulf %662, %666 : vector<8x8xf32>
    %668 = arith.truncf %667 : vector<8x8xf32> to vector<8x8xbf16>
    %cst_264 = arith.constant dense<0.000000e+00> : vector<8x16xf32>
    %669 = tpu.matmul %668, %654, %cst_264 {dimension_numbers = #tpu.dot_dimension_numbers<[1], [0], [0], [1], [0, 0, 1, 1], [], []>} : vector<8x8xbf16>, vector<8x16xbf16>, vector<8x16xf32> -> vector<8x16xf32>
    %c0_265 = arith.constant 0 : index
    %c32_266 = arith.constant 32 : index
    %670 = vector.load %arg20[%c0_265, %c32_266] : memref<16x64xf32, #tpu.memory_space<vmem>>, vector<8x16xf32>
    tpu.vector_store %arg20[%c0_265, %c32_266], %669 {strides = array<i32>} : memref<16x64xf32, #tpu.memory_space<vmem>>, vector<8x16xf32>,
    %671 = vector.extract_strided_slice %598 {offsets = [0, 48], sizes = [8, 16], strides = [1, 1]} : vector<16x192xf32> to vector<8x16xf32>
    %cst_267 = arith.constant 2.500000e-01 : f32
    %672 = vector.broadcast %cst_267 : f32 to vector<8x16xf32>
    %673 = arith.mulf %671, %672 : vector<8x16xf32>
    %674 = arith.truncf %673 : vector<8x16xf32> to vector<8x16xbf16>
    %675 = vector.extract_strided_slice %598 {offsets = [0, 112], sizes = [8, 16], strides = [1, 1]} : vector<16x192xf32> to vector<8x16xf32>
    %676 = arith.truncf %675 : vector<8x16xf32> to vector<8x16xbf16>
    %677 = vector.extract_strided_slice %598 {offsets = [0, 176], sizes = [8, 16], strides = [1, 1]} : vector<16x192xf32> to vector<8x16xf32>
    %678 = arith.truncf %677 : vector<8x16xf32> to vector<8x16xbf16>
    %cst_268 = arith.constant dense<0.000000e+00> : vector<8x8xf32>
    %679 = tpu.matmul %674, %676, %cst_268 {dimension_numbers = #tpu.dot_dimension_numbers<[1], [1], [0], [0], [0, 0, 1, 0], [], []>} : vector<8x16xbf16>, vector<8x16xbf16>, vector<8x8xf32> -> vector<8x8xf32>
    %cst_269 = arith.constant -1.000000e+30 : f32
    %680 = vector.broadcast %cst_269 : f32 to vector<8x8xf32>
    %681 = arith.select %14, %679, %680 : vector<8x8xi1>, vector<8x8xf32>
    %cst_270 = arith.constant dense<0xFF800000> : vector<8xf32>
    %682 = vector.multi_reduction <maximumf>, %681, %cst_270 [1] : vector<8x8xf32> to vector<8xf32>
    %683 = vector.shape_cast %682 : vector<8xf32> to vector<8x1xf32>
    %684 = vector.broadcast %683 : vector<8x1xf32> to vector<8x8xf32>
    %685 = arith.subf %681, %684 : vector<8x8xf32>
    %686 = math.exp %685 : vector<8x8xf32>
    %cst_271 = arith.constant dense<0.000000e+00> : vector<8xf32>
    %687 = vector.multi_reduction <add>, %686, %cst_271 [1] : vector<8x8xf32> to vector<8xf32>
    %688 = vector.shape_cast %687 : vector<8xf32> to vector<8x1xf32>
    %689 = tpu.reciprocal %688 {approx = true} : vector<8x1xf32> -> vector<8x1xf32>
    %690 = vector.broadcast %689 : vector<8x1xf32> to vector<8x8xf32>
    %691 = arith.mulf %686, %690 : vector<8x8xf32>
    %692 = arith.truncf %691 : vector<8x8xf32> to vector<8x8xbf16>
    %cst_272 = arith.constant dense<0.000000e+00> : vector<8x16xf32>
    %693 = tpu.matmul %692, %678, %cst_272 {dimension_numbers = #tpu.dot_dimension_numbers<[1], [0], [0], [1], [0, 0, 1, 1], [], []>} : vector<8x8xbf16>, vector<8x16xbf16>, vector<8x16xf32> -> vector<8x16xf32>
    %c0_273 = arith.constant 0 : index
    %c48_274 = arith.constant 48 : index
    %694 = vector.load %arg20[%c0_273, %c48_274] : memref<16x64xf32, #tpu.memory_space<vmem>>, vector<8x16xf32>
    tpu.vector_store %arg20[%c0_273, %c48_274], %693 {strides = array<i32>} : memref<16x64xf32, #tpu.memory_space<vmem>>, vector<8x16xf32>,
    %695 = vector.extract_strided_slice %598 {offsets = [8, 0], sizes = [8, 16], strides = [1, 1]} : vector<16x192xf32> to vector<8x16xf32>
    %cst_275 = arith.constant 2.500000e-01 : f32
    %696 = vector.broadcast %cst_275 : f32 to vector<8x16xf32>
    %697 = arith.mulf %695, %696 : vector<8x16xf32>
    %698 = arith.truncf %697 : vector<8x16xf32> to vector<8x16xbf16>
    %699 = vector.extract_strided_slice %598 {offsets = [8, 64], sizes = [8, 16], strides = [1, 1]} : vector<16x192xf32> to vector<8x16xf32>
    %700 = arith.truncf %699 : vector<8x16xf32> to vector<8x16xbf16>
    %701 = vector.extract_strided_slice %598 {offsets = [8, 128], sizes = [8, 16], strides = [1, 1]} : vector<16x192xf32> to vector<8x16xf32>
    %702 = arith.truncf %701 : vector<8x16xf32> to vector<8x16xbf16>
    %cst_276 = arith.constant dense<0.000000e+00> : vector<8x8xf32>
    %703 = tpu.matmul %698, %700, %cst_276 {dimension_numbers = #tpu.dot_dimension_numbers<[1], [1], [0], [0], [0, 0, 1, 0], [], []>} : vector<8x16xbf16>, vector<8x16xbf16>, vector<8x8xf32> -> vector<8x8xf32>
    %cst_277 = arith.constant -1.000000e+30 : f32
    %704 = vector.broadcast %cst_277 : f32 to vector<8x8xf32>
    %705 = arith.select %14, %703, %704 : vector<8x8xi1>, vector<8x8xf32>
    %cst_278 = arith.constant dense<0xFF800000> : vector<8xf32>
    %706 = vector.multi_reduction <maximumf>, %705, %cst_278 [1] : vector<8x8xf32> to vector<8xf32>
    %707 = vector.shape_cast %706 : vector<8xf32> to vector<8x1xf32>
    %708 = vector.broadcast %707 : vector<8x1xf32> to vector<8x8xf32>
    %709 = arith.subf %705, %708 : vector<8x8xf32>
    %710 = math.exp %709 : vector<8x8xf32>
    %cst_279 = arith.constant dense<0.000000e+00> : vector<8xf32>
    %711 = vector.multi_reduction <add>, %710, %cst_279 [1] : vector<8x8xf32> to vector<8xf32>
    %712 = vector.shape_cast %711 : vector<8xf32> to vector<8x1xf32>
    %713 = tpu.reciprocal %712 {approx = true} : vector<8x1xf32> -> vector<8x1xf32>
    %714 = vector.broadcast %713 : vector<8x1xf32> to vector<8x8xf32>
    %715 = arith.mulf %710, %714 : vector<8x8xf32>
    %716 = arith.truncf %715 : vector<8x8xf32> to vector<8x8xbf16>
    %cst_280 = arith.constant dense<0.000000e+00> : vector<8x16xf32>
    %717 = tpu.matmul %716, %702, %cst_280 {dimension_numbers = #tpu.dot_dimension_numbers<[1], [0], [0], [1], [0, 0, 1, 1], [], []>} : vector<8x8xbf16>, vector<8x16xbf16>, vector<8x16xf32> -> vector<8x16xf32>
    %c8_281 = arith.constant 8 : index
    %c0_282 = arith.constant 0 : index
    %718 = vector.load %arg20[%c8_281, %c0_282] : memref<16x64xf32, #tpu.memory_space<vmem>>, vector<8x16xf32>
    tpu.vector_store %arg20[%c8_281, %c0_282], %717 {strides = array<i32>} : memref<16x64xf32, #tpu.memory_space<vmem>>, vector<8x16xf32>,
    %719 = vector.extract_strided_slice %598 {offsets = [8, 16], sizes = [8, 16], strides = [1, 1]} : vector<16x192xf32> to vector<8x16xf32>
    %cst_283 = arith.constant 2.500000e-01 : f32
    %720 = vector.broadcast %cst_283 : f32 to vector<8x16xf32>
    %721 = arith.mulf %719, %720 : vector<8x16xf32>
    %722 = arith.truncf %721 : vector<8x16xf32> to vector<8x16xbf16>
    %723 = vector.extract_strided_slice %598 {offsets = [8, 80], sizes = [8, 16], strides = [1, 1]} : vector<16x192xf32> to vector<8x16xf32>
    %724 = arith.truncf %723 : vector<8x16xf32> to vector<8x16xbf16>
    %725 = vector.extract_strided_slice %598 {offsets = [8, 144], sizes = [8, 16], strides = [1, 1]} : vector<16x192xf32> to vector<8x16xf32>
    %726 = arith.truncf %725 : vector<8x16xf32> to vector<8x16xbf16>
    %cst_284 = arith.constant dense<0.000000e+00> : vector<8x8xf32>
    %727 = tpu.matmul %722, %724, %cst_284 {dimension_numbers = #tpu.dot_dimension_numbers<[1], [1], [0], [0], [0, 0, 1, 0], [], []>} : vector<8x16xbf16>, vector<8x16xbf16>, vector<8x8xf32> -> vector<8x8xf32>
    %cst_285 = arith.constant -1.000000e+30 : f32
    %728 = vector.broadcast %cst_285 : f32 to vector<8x8xf32>
    %729 = arith.select %14, %727, %728 : vector<8x8xi1>, vector<8x8xf32>
    %cst_286 = arith.constant dense<0xFF800000> : vector<8xf32>
    %730 = vector.multi_reduction <maximumf>, %729, %cst_286 [1] : vector<8x8xf32> to vector<8xf32>
    %731 = vector.shape_cast %730 : vector<8xf32> to vector<8x1xf32>
    %732 = vector.broadcast %731 : vector<8x1xf32> to vector<8x8xf32>
    %733 = arith.subf %729, %732 : vector<8x8xf32>
    %734 = math.exp %733 : vector<8x8xf32>
    %cst_287 = arith.constant dense<0.000000e+00> : vector<8xf32>
    %735 = vector.multi_reduction <add>, %734, %cst_287 [1] : vector<8x8xf32> to vector<8xf32>
    %736 = vector.shape_cast %735 : vector<8xf32> to vector<8x1xf32>
    %737 = tpu.reciprocal %736 {approx = true} : vector<8x1xf32> -> vector<8x1xf32>
    %738 = vector.broadcast %737 : vector<8x1xf32> to vector<8x8xf32>
    %739 = arith.mulf %734, %738 : vector<8x8xf32>
    %740 = arith.truncf %739 : vector<8x8xf32> to vector<8x8xbf16>
    %cst_288 = arith.constant dense<0.000000e+00> : vector<8x16xf32>
    %741 = tpu.matmul %740, %726, %cst_288 {dimension_numbers = #tpu.dot_dimension_numbers<[1], [0], [0], [1], [0, 0, 1, 1], [], []>} : vector<8x8xbf16>, vector<8x16xbf16>, vector<8x16xf32> -> vector<8x16xf32>
    %c8_289 = arith.constant 8 : index
    %c16_290 = arith.constant 16 : index
    %742 = vector.load %arg20[%c8_289, %c16_290] : memref<16x64xf32, #tpu.memory_space<vmem>>, vector<8x16xf32>
    tpu.vector_store %arg20[%c8_289, %c16_290], %741 {strides = array<i32>} : memref<16x64xf32, #tpu.memory_space<vmem>>, vector<8x16xf32>,
    %743 = vector.extract_strided_slice %598 {offsets = [8, 32], sizes = [8, 16], strides = [1, 1]} : vector<16x192xf32> to vector<8x16xf32>
    %cst_291 = arith.constant 2.500000e-01 : f32
    %744 = vector.broadcast %cst_291 : f32 to vector<8x16xf32>
    %745 = arith.mulf %743, %744 : vector<8x16xf32>
    %746 = arith.truncf %745 : vector<8x16xf32> to vector<8x16xbf16>
    %747 = vector.extract_strided_slice %598 {offsets = [8, 96], sizes = [8, 16], strides = [1, 1]} : vector<16x192xf32> to vector<8x16xf32>
    %748 = arith.truncf %747 : vector<8x16xf32> to vector<8x16xbf16>
    %749 = vector.extract_strided_slice %598 {offsets = [8, 160], sizes = [8, 16], strides = [1, 1]} : vector<16x192xf32> to vector<8x16xf32>
    %750 = arith.truncf %749 : vector<8x16xf32> to vector<8x16xbf16>
    %cst_292 = arith.constant dense<0.000000e+00> : vector<8x8xf32>
    %751 = tpu.matmul %746, %748, %cst_292 {dimension_numbers = #tpu.dot_dimension_numbers<[1], [1], [0], [0], [0, 0, 1, 0], [], []>} : vector<8x16xbf16>, vector<8x16xbf16>, vector<8x8xf32> -> vector<8x8xf32>
    %cst_293 = arith.constant -1.000000e+30 : f32
    %752 = vector.broadcast %cst_293 : f32 to vector<8x8xf32>
    %753 = arith.select %14, %751, %752 : vector<8x8xi1>, vector<8x8xf32>
    %cst_294 = arith.constant dense<0xFF800000> : vector<8xf32>
    %754 = vector.multi_reduction <maximumf>, %753, %cst_294 [1] : vector<8x8xf32> to vector<8xf32>
    %755 = vector.shape_cast %754 : vector<8xf32> to vector<8x1xf32>
    %756 = vector.broadcast %755 : vector<8x1xf32> to vector<8x8xf32>
    %757 = arith.subf %753, %756 : vector<8x8xf32>
    %758 = math.exp %757 : vector<8x8xf32>
    %cst_295 = arith.constant dense<0.000000e+00> : vector<8xf32>
    %759 = vector.multi_reduction <add>, %758, %cst_295 [1] : vector<8x8xf32> to vector<8xf32>
    %760 = vector.shape_cast %759 : vector<8xf32> to vector<8x1xf32>
    %761 = tpu.reciprocal %760 {approx = true} : vector<8x1xf32> -> vector<8x1xf32>
    %762 = vector.broadcast %761 : vector<8x1xf32> to vector<8x8xf32>
    %763 = arith.mulf %758, %762 : vector<8x8xf32>
    %764 = arith.truncf %763 : vector<8x8xf32> to vector<8x8xbf16>
    %cst_296 = arith.constant dense<0.000000e+00> : vector<8x16xf32>
    %765 = tpu.matmul %764, %750, %cst_296 {dimension_numbers = #tpu.dot_dimension_numbers<[1], [0], [0], [1], [0, 0, 1, 1], [], []>} : vector<8x8xbf16>, vector<8x16xbf16>, vector<8x16xf32> -> vector<8x16xf32>
    %c8_297 = arith.constant 8 : index
    %c32_298 = arith.constant 32 : index
    %766 = vector.load %arg20[%c8_297, %c32_298] : memref<16x64xf32, #tpu.memory_space<vmem>>, vector<8x16xf32>
    tpu.vector_store %arg20[%c8_297, %c32_298], %765 {strides = array<i32>} : memref<16x64xf32, #tpu.memory_space<vmem>>, vector<8x16xf32>,
    %767 = vector.extract_strided_slice %598 {offsets = [8, 48], sizes = [8, 16], strides = [1, 1]} : vector<16x192xf32> to vector<8x16xf32>
    %cst_299 = arith.constant 2.500000e-01 : f32
    %768 = vector.broadcast %cst_299 : f32 to vector<8x16xf32>
    %769 = arith.mulf %767, %768 : vector<8x16xf32>
    %770 = arith.truncf %769 : vector<8x16xf32> to vector<8x16xbf16>
    %771 = vector.extract_strided_slice %598 {offsets = [8, 112], sizes = [8, 16], strides = [1, 1]} : vector<16x192xf32> to vector<8x16xf32>
    %772 = arith.truncf %771 : vector<8x16xf32> to vector<8x16xbf16>
    %773 = vector.extract_strided_slice %598 {offsets = [8, 176], sizes = [8, 16], strides = [1, 1]} : vector<16x192xf32> to vector<8x16xf32>
    %774 = arith.truncf %773 : vector<8x16xf32> to vector<8x16xbf16>
    %cst_300 = arith.constant dense<0.000000e+00> : vector<8x8xf32>
    %775 = tpu.matmul %770, %772, %cst_300 {dimension_numbers = #tpu.dot_dimension_numbers<[1], [1], [0], [0], [0, 0, 1, 0], [], []>} : vector<8x16xbf16>, vector<8x16xbf16>, vector<8x8xf32> -> vector<8x8xf32>
    %cst_301 = arith.constant -1.000000e+30 : f32
    %776 = vector.broadcast %cst_301 : f32 to vector<8x8xf32>
    %777 = arith.select %14, %775, %776 : vector<8x8xi1>, vector<8x8xf32>
    %cst_302 = arith.constant dense<0xFF800000> : vector<8xf32>
    %778 = vector.multi_reduction <maximumf>, %777, %cst_302 [1] : vector<8x8xf32> to vector<8xf32>
    %779 = vector.shape_cast %778 : vector<8xf32> to vector<8x1xf32>
    %780 = vector.broadcast %779 : vector<8x1xf32> to vector<8x8xf32>
    %781 = arith.subf %777, %780 : vector<8x8xf32>
    %782 = math.exp %781 : vector<8x8xf32>
    %cst_303 = arith.constant dense<0.000000e+00> : vector<8xf32>
    %783 = vector.multi_reduction <add>, %782, %cst_303 [1] : vector<8x8xf32> to vector<8xf32>
    %784 = vector.shape_cast %783 : vector<8xf32> to vector<8x1xf32>
    %785 = tpu.reciprocal %784 {approx = true} : vector<8x1xf32> -> vector<8x1xf32>
    %786 = vector.broadcast %785 : vector<8x1xf32> to vector<8x8xf32>
    %787 = arith.mulf %782, %786 : vector<8x8xf32>
    %788 = arith.truncf %787 : vector<8x8xf32> to vector<8x8xbf16>
    %cst_304 = arith.constant dense<0.000000e+00> : vector<8x16xf32>
    %789 = tpu.matmul %788, %774, %cst_304 {dimension_numbers = #tpu.dot_dimension_numbers<[1], [0], [0], [1], [0, 0, 1, 1], [], []>} : vector<8x8xbf16>, vector<8x16xbf16>, vector<8x16xf32> -> vector<8x16xf32>
    %c8_305 = arith.constant 8 : index
    %c48_306 = arith.constant 48 : index
    %790 = vector.load %arg20[%c8_305, %c48_306] : memref<16x64xf32, #tpu.memory_space<vmem>>, vector<8x16xf32>
    tpu.vector_store %arg20[%c8_305, %c48_306], %789 {strides = array<i32>} : memref<16x64xf32, #tpu.memory_space<vmem>>, vector<8x16xf32>,
    %c0_307 = arith.constant 0 : index
    %c0_308 = arith.constant 0 : index
    %791 = vector.load %arg20[%c0_307, %c0_308] : memref<16x64xf32, #tpu.memory_space<vmem>>, vector<16x64xf32>
    %792 = arith.truncf %791 : vector<16x64xf32> to vector<16x64xbf16>
    %c2_309 = arith.constant 2 : index
    %c0_310 = arith.constant 0 : index
    %c0_311 = arith.constant 0 : index
    %793 = vector.load %arg7[%c2_309, %c0_310, %c0_311] : memref<4x64x64xbf16, #tpu.memory_space<vmem>>, vector<1x64x64xbf16>
    %794 = vector.shape_cast %793 : vector<1x64x64xbf16> to vector<64x64xbf16>
    %cst_312 = arith.constant dense<0.000000e+00> : vector<16x64xf32>
    %795 = tpu.matmul %792, %794, %cst_312 {dimension_numbers = #tpu.dot_dimension_numbers<[1], [0], [0], [1], [0, 0, 1, 1], [], []>} : vector<16x64xbf16>, vector<64x64xbf16>, vector<16x64xf32> -> vector<16x64xf32>
    %c2_313 = arith.constant 2 : index
    %c0_314 = arith.constant 0 : index
    %c0_315 = arith.constant 0 : index
    %796 = vector.load %arg8[%c2_313, %c0_314, %c0_315] : memref<4x1x64xf32, #tpu.memory_space<vmem>>, vector<1x1x64xf32>
    %797 = vector.shape_cast %796 : vector<1x1x64xf32> to vector<1x64xf32>
    %798 = vector.broadcast %797 : vector<1x64xf32> to vector<16x64xf32>
    %799 = arith.addf %795, %798 : vector<16x64xf32>
    %800 = arith.addf %568, %799 : vector<16x64xf32>
    %c2_316 = arith.constant 2 : index
    %c0_317 = arith.constant 0 : index
    %c0_318 = arith.constant 0 : index
    %801 = vector.load %arg9[%c2_316, %c0_317, %c0_318] : memref<4x1x64xf32, #tpu.memory_space<vmem>>, vector<1x1x64xf32>
    %802 = vector.shape_cast %801 : vector<1x1x64xf32> to vector<1x64xf32>
    %c2_319 = arith.constant 2 : index
    %c0_320 = arith.constant 0 : index
    %c0_321 = arith.constant 0 : index
    %803 = vector.load %arg10[%c2_319, %c0_320, %c0_321] : memref<4x1x64xf32, #tpu.memory_space<vmem>>, vector<1x1x64xf32>
    %804 = vector.shape_cast %803 : vector<1x1x64xf32> to vector<1x64xf32>
    %cst_322 = arith.constant dense<0.000000e+00> : vector<16xf32>
    %805 = vector.multi_reduction <add>, %800, %cst_322 [1] : vector<16x64xf32> to vector<16xf32>
    %806 = vector.shape_cast %805 : vector<16xf32> to vector<16x1xf32>
    %cst_323 = arith.constant 6.400000e+01 : f32
    %807 = vector.broadcast %cst_323 : f32 to vector<16x1xf32>
    %808 = arith.divf %806, %807 : vector<16x1xf32>
    %809 = vector.broadcast %808 : vector<16x1xf32> to vector<16x64xf32>
    %810 = arith.subf %800, %809 : vector<16x64xf32>
    %811 = arith.mulf %810, %810 : vector<16x64xf32>
    %cst_324 = arith.constant dense<0.000000e+00> : vector<16xf32>
    %812 = vector.multi_reduction <add>, %811, %cst_324 [1] : vector<16x64xf32> to vector<16xf32>
    %813 = vector.shape_cast %812 : vector<16xf32> to vector<16x1xf32>
    %cst_325 = arith.constant 6.400000e+01 : f32
    %814 = vector.broadcast %cst_325 : f32 to vector<16x1xf32>
    %815 = arith.divf %813, %814 : vector<16x1xf32>
    %816 = vector.broadcast %808 : vector<16x1xf32> to vector<16x64xf32>
    %817 = arith.subf %800, %816 : vector<16x64xf32>
    %cst_326 = arith.constant 9.99999974E-6 : f32
    %818 = vector.broadcast %cst_326 : f32 to vector<16x1xf32>
    %819 = arith.addf %815, %818 : vector<16x1xf32>
    %820 = math.rsqrt %819 : vector<16x1xf32>
    %821 = vector.broadcast %820 : vector<16x1xf32> to vector<16x64xf32>
    %822 = arith.mulf %817, %821 : vector<16x64xf32>
    %823 = vector.broadcast %802 : vector<1x64xf32> to vector<16x64xf32>
    %824 = arith.mulf %822, %823 : vector<16x64xf32>
    %825 = vector.broadcast %804 : vector<1x64xf32> to vector<16x64xf32>
    %826 = arith.addf %824, %825 : vector<16x64xf32>
    %827 = arith.truncf %826 : vector<16x64xf32> to vector<16x64xbf16>
    %c2_327 = arith.constant 2 : index
    %c0_328 = arith.constant 0 : index
    %c0_329 = arith.constant 0 : index
    %828 = vector.load %arg11[%c2_327, %c0_328, %c0_329] : memref<4x64x256xbf16, #tpu.memory_space<vmem>>, vector<1x64x256xbf16>
    %829 = vector.shape_cast %828 : vector<1x64x256xbf16> to vector<64x256xbf16>
    %cst_330 = arith.constant dense<0.000000e+00> : vector<16x256xf32>
    %830 = tpu.matmul %827, %829, %cst_330 {dimension_numbers = #tpu.dot_dimension_numbers<[1], [0], [0], [1], [0, 0, 1, 1], [], []>} : vector<16x64xbf16>, vector<64x256xbf16>, vector<16x256xf32> -> vector<16x256xf32>
    %c2_331 = arith.constant 2 : index
    %c0_332 = arith.constant 0 : index
    %c0_333 = arith.constant 0 : index
    %831 = vector.load %arg12[%c2_331, %c0_332, %c0_333] : memref<4x1x256xf32, #tpu.memory_space<vmem>>, vector<1x1x256xf32>
    %832 = vector.shape_cast %831 : vector<1x1x256xf32> to vector<1x256xf32>
    %833 = vector.broadcast %832 : vector<1x256xf32> to vector<16x256xf32>
    %834 = arith.addf %830, %833 : vector<16x256xf32>
    %cst_334 = arith.constant 0.000000e+00 : f32
    %835 = vector.broadcast %cst_334 : f32 to vector<16x256xf32>
    %836 = arith.maximumf %834, %835 : vector<16x256xf32>
    %837 = arith.truncf %836 : vector<16x256xf32> to vector<16x256xbf16>
    %c2_335 = arith.constant 2 : index
    %c0_336 = arith.constant 0 : index
    %c0_337 = arith.constant 0 : index
    %838 = vector.load %arg13[%c2_335, %c0_336, %c0_337] : memref<4x256x64xbf16, #tpu.memory_space<vmem>>, vector<1x256x64xbf16>
    %839 = vector.shape_cast %838 : vector<1x256x64xbf16> to vector<256x64xbf16>
    %cst_338 = arith.constant dense<0.000000e+00> : vector<16x64xf32>
    %840 = tpu.matmul %837, %839, %cst_338 {dimension_numbers = #tpu.dot_dimension_numbers<[1], [0], [0], [1], [0, 0, 1, 1], [], []>} : vector<16x256xbf16>, vector<256x64xbf16>, vector<16x64xf32> -> vector<16x64xf32>
    %c2_339 = arith.constant 2 : index
    %c0_340 = arith.constant 0 : index
    %c0_341 = arith.constant 0 : index
    %841 = vector.load %arg14[%c2_339, %c0_340, %c0_341] : memref<4x1x64xf32, #tpu.memory_space<vmem>>, vector<1x1x64xf32>
    %842 = vector.shape_cast %841 : vector<1x1x64xf32> to vector<1x64xf32>
    %843 = vector.broadcast %842 : vector<1x64xf32> to vector<16x64xf32>
    %844 = arith.addf %840, %843 : vector<16x64xf32>
    %845 = arith.addf %800, %844 : vector<16x64xf32>
    %c3 = arith.constant 3 : index
    %c0_342 = arith.constant 0 : index
    %c0_343 = arith.constant 0 : index
    %846 = vector.load %arg4[%c3, %c0_342, %c0_343] : memref<4x1x64xf32, #tpu.memory_space<vmem>>, vector<1x1x64xf32>
    %847 = vector.shape_cast %846 : vector<1x1x64xf32> to vector<1x64xf32>
    %c3_344 = arith.constant 3 : index
    %c0_345 = arith.constant 0 : index
    %c0_346 = arith.constant 0 : index
    %848 = vector.load %arg5[%c3_344, %c0_345, %c0_346] : memref<4x1x64xf32, #tpu.memory_space<vmem>>, vector<1x1x64xf32>
    %849 = vector.shape_cast %848 : vector<1x1x64xf32> to vector<1x64xf32>
    %cst_347 = arith.constant dense<0.000000e+00> : vector<16xf32>
    %850 = vector.multi_reduction <add>, %845, %cst_347 [1] : vector<16x64xf32> to vector<16xf32>
    %851 = vector.shape_cast %850 : vector<16xf32> to vector<16x1xf32>
    %cst_348 = arith.constant 6.400000e+01 : f32
    %852 = vector.broadcast %cst_348 : f32 to vector<16x1xf32>
    %853 = arith.divf %851, %852 : vector<16x1xf32>
    %854 = vector.broadcast %853 : vector<16x1xf32> to vector<16x64xf32>
    %855 = arith.subf %845, %854 : vector<16x64xf32>
    %856 = arith.mulf %855, %855 : vector<16x64xf32>
    %cst_349 = arith.constant dense<0.000000e+00> : vector<16xf32>
    %857 = vector.multi_reduction <add>, %856, %cst_349 [1] : vector<16x64xf32> to vector<16xf32>
    %858 = vector.shape_cast %857 : vector<16xf32> to vector<16x1xf32>
    %cst_350 = arith.constant 6.400000e+01 : f32
    %859 = vector.broadcast %cst_350 : f32 to vector<16x1xf32>
    %860 = arith.divf %858, %859 : vector<16x1xf32>
    %861 = vector.broadcast %853 : vector<16x1xf32> to vector<16x64xf32>
    %862 = arith.subf %845, %861 : vector<16x64xf32>
    %cst_351 = arith.constant 9.99999974E-6 : f32
    %863 = vector.broadcast %cst_351 : f32 to vector<16x1xf32>
    %864 = arith.addf %860, %863 : vector<16x1xf32>
    %865 = math.rsqrt %864 : vector<16x1xf32>
    %866 = vector.broadcast %865 : vector<16x1xf32> to vector<16x64xf32>
    %867 = arith.mulf %862, %866 : vector<16x64xf32>
    %868 = vector.broadcast %847 : vector<1x64xf32> to vector<16x64xf32>
    %869 = arith.mulf %867, %868 : vector<16x64xf32>
    %870 = vector.broadcast %849 : vector<1x64xf32> to vector<16x64xf32>
    %871 = arith.addf %869, %870 : vector<16x64xf32>
    %872 = arith.truncf %871 : vector<16x64xf32> to vector<16x64xbf16>
    %c3_352 = arith.constant 3 : index
    %c0_353 = arith.constant 0 : index
    %c0_354 = arith.constant 0 : index
    %873 = vector.load %arg6[%c3_352, %c0_353, %c0_354] : memref<4x64x192xbf16, #tpu.memory_space<vmem>>, vector<1x64x192xbf16>
    %874 = vector.shape_cast %873 : vector<1x64x192xbf16> to vector<64x192xbf16>
    %cst_355 = arith.constant dense<0.000000e+00> : vector<16x192xf32>
    %875 = tpu.matmul %872, %874, %cst_355 {dimension_numbers = #tpu.dot_dimension_numbers<[1], [0], [0], [1], [0, 0, 1, 1], [], []>} : vector<16x64xbf16>, vector<64x192xbf16>, vector<16x192xf32> -> vector<16x192xf32>
    %876 = vector.extract_strided_slice %875 {offsets = [0, 0], sizes = [8, 16], strides = [1, 1]} : vector<16x192xf32> to vector<8x16xf32>
    %cst_356 = arith.constant 2.500000e-01 : f32
    %877 = vector.broadcast %cst_356 : f32 to vector<8x16xf32>
    %878 = arith.mulf %876, %877 : vector<8x16xf32>
    %879 = arith.truncf %878 : vector<8x16xf32> to vector<8x16xbf16>
    %880 = vector.extract_strided_slice %875 {offsets = [0, 64], sizes = [8, 16], strides = [1, 1]} : vector<16x192xf32> to vector<8x16xf32>
    %881 = arith.truncf %880 : vector<8x16xf32> to vector<8x16xbf16>
    %882 = vector.extract_strided_slice %875 {offsets = [0, 128], sizes = [8, 16], strides = [1, 1]} : vector<16x192xf32> to vector<8x16xf32>
    %883 = arith.truncf %882 : vector<8x16xf32> to vector<8x16xbf16>
    %cst_357 = arith.constant dense<0.000000e+00> : vector<8x8xf32>
    %884 = tpu.matmul %879, %881, %cst_357 {dimension_numbers = #tpu.dot_dimension_numbers<[1], [1], [0], [0], [0, 0, 1, 0], [], []>} : vector<8x16xbf16>, vector<8x16xbf16>, vector<8x8xf32> -> vector<8x8xf32>
    %cst_358 = arith.constant -1.000000e+30 : f32
    %885 = vector.broadcast %cst_358 : f32 to vector<8x8xf32>
    %886 = arith.select %14, %884, %885 : vector<8x8xi1>, vector<8x8xf32>
    %cst_359 = arith.constant dense<0xFF800000> : vector<8xf32>
    %887 = vector.multi_reduction <maximumf>, %886, %cst_359 [1] : vector<8x8xf32> to vector<8xf32>
    %888 = vector.shape_cast %887 : vector<8xf32> to vector<8x1xf32>
    %889 = vector.broadcast %888 : vector<8x1xf32> to vector<8x8xf32>
    %890 = arith.subf %886, %889 : vector<8x8xf32>
    %891 = math.exp %890 : vector<8x8xf32>
    %cst_360 = arith.constant dense<0.000000e+00> : vector<8xf32>
    %892 = vector.multi_reduction <add>, %891, %cst_360 [1] : vector<8x8xf32> to vector<8xf32>
    %893 = vector.shape_cast %892 : vector<8xf32> to vector<8x1xf32>
    %894 = tpu.reciprocal %893 {approx = true} : vector<8x1xf32> -> vector<8x1xf32>
    %895 = vector.broadcast %894 : vector<8x1xf32> to vector<8x8xf32>
    %896 = arith.mulf %891, %895 : vector<8x8xf32>
    %897 = arith.truncf %896 : vector<8x8xf32> to vector<8x8xbf16>
    %cst_361 = arith.constant dense<0.000000e+00> : vector<8x16xf32>
    %898 = tpu.matmul %897, %883, %cst_361 {dimension_numbers = #tpu.dot_dimension_numbers<[1], [0], [0], [1], [0, 0, 1, 1], [], []>} : vector<8x8xbf16>, vector<8x16xbf16>, vector<8x16xf32> -> vector<8x16xf32>
    %c0_362 = arith.constant 0 : index
    %c0_363 = arith.constant 0 : index
    %899 = vector.load %arg20[%c0_362, %c0_363] : memref<16x64xf32, #tpu.memory_space<vmem>>, vector<8x16xf32>
    tpu.vector_store %arg20[%c0_362, %c0_363], %898 {strides = array<i32>} : memref<16x64xf32, #tpu.memory_space<vmem>>, vector<8x16xf32>,
    %900 = vector.extract_strided_slice %875 {offsets = [0, 16], sizes = [8, 16], strides = [1, 1]} : vector<16x192xf32> to vector<8x16xf32>
    %cst_364 = arith.constant 2.500000e-01 : f32
    %901 = vector.broadcast %cst_364 : f32 to vector<8x16xf32>
    %902 = arith.mulf %900, %901 : vector<8x16xf32>
    %903 = arith.truncf %902 : vector<8x16xf32> to vector<8x16xbf16>
    %904 = vector.extract_strided_slice %875 {offsets = [0, 80], sizes = [8, 16], strides = [1, 1]} : vector<16x192xf32> to vector<8x16xf32>
    %905 = arith.truncf %904 : vector<8x16xf32> to vector<8x16xbf16>
    %906 = vector.extract_strided_slice %875 {offsets = [0, 144], sizes = [8, 16], strides = [1, 1]} : vector<16x192xf32> to vector<8x16xf32>
    %907 = arith.truncf %906 : vector<8x16xf32> to vector<8x16xbf16>
    %cst_365 = arith.constant dense<0.000000e+00> : vector<8x8xf32>
    %908 = tpu.matmul %903, %905, %cst_365 {dimension_numbers = #tpu.dot_dimension_numbers<[1], [1], [0], [0], [0, 0, 1, 0], [], []>} : vector<8x16xbf16>, vector<8x16xbf16>, vector<8x8xf32> -> vector<8x8xf32>
    %cst_366 = arith.constant -1.000000e+30 : f32
    %909 = vector.broadcast %cst_366 : f32 to vector<8x8xf32>
    %910 = arith.select %14, %908, %909 : vector<8x8xi1>, vector<8x8xf32>
    %cst_367 = arith.constant dense<0xFF800000> : vector<8xf32>
    %911 = vector.multi_reduction <maximumf>, %910, %cst_367 [1] : vector<8x8xf32> to vector<8xf32>
    %912 = vector.shape_cast %911 : vector<8xf32> to vector<8x1xf32>
    %913 = vector.broadcast %912 : vector<8x1xf32> to vector<8x8xf32>
    %914 = arith.subf %910, %913 : vector<8x8xf32>
    %915 = math.exp %914 : vector<8x8xf32>
    %cst_368 = arith.constant dense<0.000000e+00> : vector<8xf32>
    %916 = vector.multi_reduction <add>, %915, %cst_368 [1] : vector<8x8xf32> to vector<8xf32>
    %917 = vector.shape_cast %916 : vector<8xf32> to vector<8x1xf32>
    %918 = tpu.reciprocal %917 {approx = true} : vector<8x1xf32> -> vector<8x1xf32>
    %919 = vector.broadcast %918 : vector<8x1xf32> to vector<8x8xf32>
    %920 = arith.mulf %915, %919 : vector<8x8xf32>
    %921 = arith.truncf %920 : vector<8x8xf32> to vector<8x8xbf16>
    %cst_369 = arith.constant dense<0.000000e+00> : vector<8x16xf32>
    %922 = tpu.matmul %921, %907, %cst_369 {dimension_numbers = #tpu.dot_dimension_numbers<[1], [0], [0], [1], [0, 0, 1, 1], [], []>} : vector<8x8xbf16>, vector<8x16xbf16>, vector<8x16xf32> -> vector<8x16xf32>
    %c0_370 = arith.constant 0 : index
    %c16_371 = arith.constant 16 : index
    %923 = vector.load %arg20[%c0_370, %c16_371] : memref<16x64xf32, #tpu.memory_space<vmem>>, vector<8x16xf32>
    tpu.vector_store %arg20[%c0_370, %c16_371], %922 {strides = array<i32>} : memref<16x64xf32, #tpu.memory_space<vmem>>, vector<8x16xf32>,
    %924 = vector.extract_strided_slice %875 {offsets = [0, 32], sizes = [8, 16], strides = [1, 1]} : vector<16x192xf32> to vector<8x16xf32>
    %cst_372 = arith.constant 2.500000e-01 : f32
    %925 = vector.broadcast %cst_372 : f32 to vector<8x16xf32>
    %926 = arith.mulf %924, %925 : vector<8x16xf32>
    %927 = arith.truncf %926 : vector<8x16xf32> to vector<8x16xbf16>
    %928 = vector.extract_strided_slice %875 {offsets = [0, 96], sizes = [8, 16], strides = [1, 1]} : vector<16x192xf32> to vector<8x16xf32>
    %929 = arith.truncf %928 : vector<8x16xf32> to vector<8x16xbf16>
    %930 = vector.extract_strided_slice %875 {offsets = [0, 160], sizes = [8, 16], strides = [1, 1]} : vector<16x192xf32> to vector<8x16xf32>
    %931 = arith.truncf %930 : vector<8x16xf32> to vector<8x16xbf16>
    %cst_373 = arith.constant dense<0.000000e+00> : vector<8x8xf32>
    %932 = tpu.matmul %927, %929, %cst_373 {dimension_numbers = #tpu.dot_dimension_numbers<[1], [1], [0], [0], [0, 0, 1, 0], [], []>} : vector<8x16xbf16>, vector<8x16xbf16>, vector<8x8xf32> -> vector<8x8xf32>
    %cst_374 = arith.constant -1.000000e+30 : f32
    %933 = vector.broadcast %cst_374 : f32 to vector<8x8xf32>
    %934 = arith.select %14, %932, %933 : vector<8x8xi1>, vector<8x8xf32>
    %cst_375 = arith.constant dense<0xFF800000> : vector<8xf32>
    %935 = vector.multi_reduction <maximumf>, %934, %cst_375 [1] : vector<8x8xf32> to vector<8xf32>
    %936 = vector.shape_cast %935 : vector<8xf32> to vector<8x1xf32>
    %937 = vector.broadcast %936 : vector<8x1xf32> to vector<8x8xf32>
    %938 = arith.subf %934, %937 : vector<8x8xf32>
    %939 = math.exp %938 : vector<8x8xf32>
    %cst_376 = arith.constant dense<0.000000e+00> : vector<8xf32>
    %940 = vector.multi_reduction <add>, %939, %cst_376 [1] : vector<8x8xf32> to vector<8xf32>
    %941 = vector.shape_cast %940 : vector<8xf32> to vector<8x1xf32>
    %942 = tpu.reciprocal %941 {approx = true} : vector<8x1xf32> -> vector<8x1xf32>
    %943 = vector.broadcast %942 : vector<8x1xf32> to vector<8x8xf32>
    %944 = arith.mulf %939, %943 : vector<8x8xf32>
    %945 = arith.truncf %944 : vector<8x8xf32> to vector<8x8xbf16>
    %cst_377 = arith.constant dense<0.000000e+00> : vector<8x16xf32>
    %946 = tpu.matmul %945, %931, %cst_377 {dimension_numbers = #tpu.dot_dimension_numbers<[1], [0], [0], [1], [0, 0, 1, 1], [], []>} : vector<8x8xbf16>, vector<8x16xbf16>, vector<8x16xf32> -> vector<8x16xf32>
    %c0_378 = arith.constant 0 : index
    %c32_379 = arith.constant 32 : index
    %947 = vector.load %arg20[%c0_378, %c32_379] : memref<16x64xf32, #tpu.memory_space<vmem>>, vector<8x16xf32>
    tpu.vector_store %arg20[%c0_378, %c32_379], %946 {strides = array<i32>} : memref<16x64xf32, #tpu.memory_space<vmem>>, vector<8x16xf32>,
    %948 = vector.extract_strided_slice %875 {offsets = [0, 48], sizes = [8, 16], strides = [1, 1]} : vector<16x192xf32> to vector<8x16xf32>
    %cst_380 = arith.constant 2.500000e-01 : f32
    %949 = vector.broadcast %cst_380 : f32 to vector<8x16xf32>
    %950 = arith.mulf %948, %949 : vector<8x16xf32>
    %951 = arith.truncf %950 : vector<8x16xf32> to vector<8x16xbf16>
    %952 = vector.extract_strided_slice %875 {offsets = [0, 112], sizes = [8, 16], strides = [1, 1]} : vector<16x192xf32> to vector<8x16xf32>
    %953 = arith.truncf %952 : vector<8x16xf32> to vector<8x16xbf16>
    %954 = vector.extract_strided_slice %875 {offsets = [0, 176], sizes = [8, 16], strides = [1, 1]} : vector<16x192xf32> to vector<8x16xf32>
    %955 = arith.truncf %954 : vector<8x16xf32> to vector<8x16xbf16>
    %cst_381 = arith.constant dense<0.000000e+00> : vector<8x8xf32>
    %956 = tpu.matmul %951, %953, %cst_381 {dimension_numbers = #tpu.dot_dimension_numbers<[1], [1], [0], [0], [0, 0, 1, 0], [], []>} : vector<8x16xbf16>, vector<8x16xbf16>, vector<8x8xf32> -> vector<8x8xf32>
    %cst_382 = arith.constant -1.000000e+30 : f32
    %957 = vector.broadcast %cst_382 : f32 to vector<8x8xf32>
    %958 = arith.select %14, %956, %957 : vector<8x8xi1>, vector<8x8xf32>
    %cst_383 = arith.constant dense<0xFF800000> : vector<8xf32>
    %959 = vector.multi_reduction <maximumf>, %958, %cst_383 [1] : vector<8x8xf32> to vector<8xf32>
    %960 = vector.shape_cast %959 : vector<8xf32> to vector<8x1xf32>
    %961 = vector.broadcast %960 : vector<8x1xf32> to vector<8x8xf32>
    %962 = arith.subf %958, %961 : vector<8x8xf32>
    %963 = math.exp %962 : vector<8x8xf32>
    %cst_384 = arith.constant dense<0.000000e+00> : vector<8xf32>
    %964 = vector.multi_reduction <add>, %963, %cst_384 [1] : vector<8x8xf32> to vector<8xf32>
    %965 = vector.shape_cast %964 : vector<8xf32> to vector<8x1xf32>
    %966 = tpu.reciprocal %965 {approx = true} : vector<8x1xf32> -> vector<8x1xf32>
    %967 = vector.broadcast %966 : vector<8x1xf32> to vector<8x8xf32>
    %968 = arith.mulf %963, %967 : vector<8x8xf32>
    %969 = arith.truncf %968 : vector<8x8xf32> to vector<8x8xbf16>
    %cst_385 = arith.constant dense<0.000000e+00> : vector<8x16xf32>
    %970 = tpu.matmul %969, %955, %cst_385 {dimension_numbers = #tpu.dot_dimension_numbers<[1], [0], [0], [1], [0, 0, 1, 1], [], []>} : vector<8x8xbf16>, vector<8x16xbf16>, vector<8x16xf32> -> vector<8x16xf32>
    %c0_386 = arith.constant 0 : index
    %c48_387 = arith.constant 48 : index
    %971 = vector.load %arg20[%c0_386, %c48_387] : memref<16x64xf32, #tpu.memory_space<vmem>>, vector<8x16xf32>
    tpu.vector_store %arg20[%c0_386, %c48_387], %970 {strides = array<i32>} : memref<16x64xf32, #tpu.memory_space<vmem>>, vector<8x16xf32>,
    %972 = vector.extract_strided_slice %875 {offsets = [8, 0], sizes = [8, 16], strides = [1, 1]} : vector<16x192xf32> to vector<8x16xf32>
    %cst_388 = arith.constant 2.500000e-01 : f32
    %973 = vector.broadcast %cst_388 : f32 to vector<8x16xf32>
    %974 = arith.mulf %972, %973 : vector<8x16xf32>
    %975 = arith.truncf %974 : vector<8x16xf32> to vector<8x16xbf16>
    %976 = vector.extract_strided_slice %875 {offsets = [8, 64], sizes = [8, 16], strides = [1, 1]} : vector<16x192xf32> to vector<8x16xf32>
    %977 = arith.truncf %976 : vector<8x16xf32> to vector<8x16xbf16>
    %978 = vector.extract_strided_slice %875 {offsets = [8, 128], sizes = [8, 16], strides = [1, 1]} : vector<16x192xf32> to vector<8x16xf32>
    %979 = arith.truncf %978 : vector<8x16xf32> to vector<8x16xbf16>
    %cst_389 = arith.constant dense<0.000000e+00> : vector<8x8xf32>
    %980 = tpu.matmul %975, %977, %cst_389 {dimension_numbers = #tpu.dot_dimension_numbers<[1], [1], [0], [0], [0, 0, 1, 0], [], []>} : vector<8x16xbf16>, vector<8x16xbf16>, vector<8x8xf32> -> vector<8x8xf32>
    %cst_390 = arith.constant -1.000000e+30 : f32
    %981 = vector.broadcast %cst_390 : f32 to vector<8x8xf32>
    %982 = arith.select %14, %980, %981 : vector<8x8xi1>, vector<8x8xf32>
    %cst_391 = arith.constant dense<0xFF800000> : vector<8xf32>
    %983 = vector.multi_reduction <maximumf>, %982, %cst_391 [1] : vector<8x8xf32> to vector<8xf32>
    %984 = vector.shape_cast %983 : vector<8xf32> to vector<8x1xf32>
    %985 = vector.broadcast %984 : vector<8x1xf32> to vector<8x8xf32>
    %986 = arith.subf %982, %985 : vector<8x8xf32>
    %987 = math.exp %986 : vector<8x8xf32>
    %cst_392 = arith.constant dense<0.000000e+00> : vector<8xf32>
    %988 = vector.multi_reduction <add>, %987, %cst_392 [1] : vector<8x8xf32> to vector<8xf32>
    %989 = vector.shape_cast %988 : vector<8xf32> to vector<8x1xf32>
    %990 = tpu.reciprocal %989 {approx = true} : vector<8x1xf32> -> vector<8x1xf32>
    %991 = vector.broadcast %990 : vector<8x1xf32> to vector<8x8xf32>
    %992 = arith.mulf %987, %991 : vector<8x8xf32>
    %993 = arith.truncf %992 : vector<8x8xf32> to vector<8x8xbf16>
    %cst_393 = arith.constant dense<0.000000e+00> : vector<8x16xf32>
    %994 = tpu.matmul %993, %979, %cst_393 {dimension_numbers = #tpu.dot_dimension_numbers<[1], [0], [0], [1], [0, 0, 1, 1], [], []>} : vector<8x8xbf16>, vector<8x16xbf16>, vector<8x16xf32> -> vector<8x16xf32>
    %c8_394 = arith.constant 8 : index
    %c0_395 = arith.constant 0 : index
    %995 = vector.load %arg20[%c8_394, %c0_395] : memref<16x64xf32, #tpu.memory_space<vmem>>, vector<8x16xf32>
    tpu.vector_store %arg20[%c8_394, %c0_395], %994 {strides = array<i32>} : memref<16x64xf32, #tpu.memory_space<vmem>>, vector<8x16xf32>,
    %996 = vector.extract_strided_slice %875 {offsets = [8, 16], sizes = [8, 16], strides = [1, 1]} : vector<16x192xf32> to vector<8x16xf32>
    %cst_396 = arith.constant 2.500000e-01 : f32
    %997 = vector.broadcast %cst_396 : f32 to vector<8x16xf32>
    %998 = arith.mulf %996, %997 : vector<8x16xf32>
    %999 = arith.truncf %998 : vector<8x16xf32> to vector<8x16xbf16>
    %1000 = vector.extract_strided_slice %875 {offsets = [8, 80], sizes = [8, 16], strides = [1, 1]} : vector<16x192xf32> to vector<8x16xf32>
    %1001 = arith.truncf %1000 : vector<8x16xf32> to vector<8x16xbf16>
    %1002 = vector.extract_strided_slice %875 {offsets = [8, 144], sizes = [8, 16], strides = [1, 1]} : vector<16x192xf32> to vector<8x16xf32>
    %1003 = arith.truncf %1002 : vector<8x16xf32> to vector<8x16xbf16>
    %cst_397 = arith.constant dense<0.000000e+00> : vector<8x8xf32>
    %1004 = tpu.matmul %999, %1001, %cst_397 {dimension_numbers = #tpu.dot_dimension_numbers<[1], [1], [0], [0], [0, 0, 1, 0], [], []>} : vector<8x16xbf16>, vector<8x16xbf16>, vector<8x8xf32> -> vector<8x8xf32>
    %cst_398 = arith.constant -1.000000e+30 : f32
    %1005 = vector.broadcast %cst_398 : f32 to vector<8x8xf32>
    %1006 = arith.select %14, %1004, %1005 : vector<8x8xi1>, vector<8x8xf32>
    %cst_399 = arith.constant dense<0xFF800000> : vector<8xf32>
    %1007 = vector.multi_reduction <maximumf>, %1006, %cst_399 [1] : vector<8x8xf32> to vector<8xf32>
    %1008 = vector.shape_cast %1007 : vector<8xf32> to vector<8x1xf32>
    %1009 = vector.broadcast %1008 : vector<8x1xf32> to vector<8x8xf32>
    %1010 = arith.subf %1006, %1009 : vector<8x8xf32>
    %1011 = math.exp %1010 : vector<8x8xf32>
    %cst_400 = arith.constant dense<0.000000e+00> : vector<8xf32>
    %1012 = vector.multi_reduction <add>, %1011, %cst_400 [1] : vector<8x8xf32> to vector<8xf32>
    %1013 = vector.shape_cast %1012 : vector<8xf32> to vector<8x1xf32>
    %1014 = tpu.reciprocal %1013 {approx = true} : vector<8x1xf32> -> vector<8x1xf32>
    %1015 = vector.broadcast %1014 : vector<8x1xf32> to vector<8x8xf32>
    %1016 = arith.mulf %1011, %1015 : vector<8x8xf32>
    %1017 = arith.truncf %1016 : vector<8x8xf32> to vector<8x8xbf16>
    %cst_401 = arith.constant dense<0.000000e+00> : vector<8x16xf32>
    %1018 = tpu.matmul %1017, %1003, %cst_401 {dimension_numbers = #tpu.dot_dimension_numbers<[1], [0], [0], [1], [0, 0, 1, 1], [], []>} : vector<8x8xbf16>, vector<8x16xbf16>, vector<8x16xf32> -> vector<8x16xf32>
    %c8_402 = arith.constant 8 : index
    %c16_403 = arith.constant 16 : index
    %1019 = vector.load %arg20[%c8_402, %c16_403] : memref<16x64xf32, #tpu.memory_space<vmem>>, vector<8x16xf32>
    tpu.vector_store %arg20[%c8_402, %c16_403], %1018 {strides = array<i32>} : memref<16x64xf32, #tpu.memory_space<vmem>>, vector<8x16xf32>,
    %1020 = vector.extract_strided_slice %875 {offsets = [8, 32], sizes = [8, 16], strides = [1, 1]} : vector<16x192xf32> to vector<8x16xf32>
    %cst_404 = arith.constant 2.500000e-01 : f32
    %1021 = vector.broadcast %cst_404 : f32 to vector<8x16xf32>
    %1022 = arith.mulf %1020, %1021 : vector<8x16xf32>
    %1023 = arith.truncf %1022 : vector<8x16xf32> to vector<8x16xbf16>
    %1024 = vector.extract_strided_slice %875 {offsets = [8, 96], sizes = [8, 16], strides = [1, 1]} : vector<16x192xf32> to vector<8x16xf32>
    %1025 = arith.truncf %1024 : vector<8x16xf32> to vector<8x16xbf16>
    %1026 = vector.extract_strided_slice %875 {offsets = [8, 160], sizes = [8, 16], strides = [1, 1]} : vector<16x192xf32> to vector<8x16xf32>
    %1027 = arith.truncf %1026 : vector<8x16xf32> to vector<8x16xbf16>
    %cst_405 = arith.constant dense<0.000000e+00> : vector<8x8xf32>
    %1028 = tpu.matmul %1023, %1025, %cst_405 {dimension_numbers = #tpu.dot_dimension_numbers<[1], [1], [0], [0], [0, 0, 1, 0], [], []>} : vector<8x16xbf16>, vector<8x16xbf16>, vector<8x8xf32> -> vector<8x8xf32>
    %cst_406 = arith.constant -1.000000e+30 : f32
    %1029 = vector.broadcast %cst_406 : f32 to vector<8x8xf32>
    %1030 = arith.select %14, %1028, %1029 : vector<8x8xi1>, vector<8x8xf32>
    %cst_407 = arith.constant dense<0xFF800000> : vector<8xf32>
    %1031 = vector.multi_reduction <maximumf>, %1030, %cst_407 [1] : vector<8x8xf32> to vector<8xf32>
    %1032 = vector.shape_cast %1031 : vector<8xf32> to vector<8x1xf32>
    %1033 = vector.broadcast %1032 : vector<8x1xf32> to vector<8x8xf32>
    %1034 = arith.subf %1030, %1033 : vector<8x8xf32>
    %1035 = math.exp %1034 : vector<8x8xf32>
    %cst_408 = arith.constant dense<0.000000e+00> : vector<8xf32>
    %1036 = vector.multi_reduction <add>, %1035, %cst_408 [1] : vector<8x8xf32> to vector<8xf32>
    %1037 = vector.shape_cast %1036 : vector<8xf32> to vector<8x1xf32>
    %1038 = tpu.reciprocal %1037 {approx = true} : vector<8x1xf32> -> vector<8x1xf32>
    %1039 = vector.broadcast %1038 : vector<8x1xf32> to vector<8x8xf32>
    %1040 = arith.mulf %1035, %1039 : vector<8x8xf32>
    %1041 = arith.truncf %1040 : vector<8x8xf32> to vector<8x8xbf16>
    %cst_409 = arith.constant dense<0.000000e+00> : vector<8x16xf32>
    %1042 = tpu.matmul %1041, %1027, %cst_409 {dimension_numbers = #tpu.dot_dimension_numbers<[1], [0], [0], [1], [0, 0, 1, 1], [], []>} : vector<8x8xbf16>, vector<8x16xbf16>, vector<8x16xf32> -> vector<8x16xf32>
    %c8_410 = arith.constant 8 : index
    %c32_411 = arith.constant 32 : index
    %1043 = vector.load %arg20[%c8_410, %c32_411] : memref<16x64xf32, #tpu.memory_space<vmem>>, vector<8x16xf32>
    tpu.vector_store %arg20[%c8_410, %c32_411], %1042 {strides = array<i32>} : memref<16x64xf32, #tpu.memory_space<vmem>>, vector<8x16xf32>,
    %1044 = vector.extract_strided_slice %875 {offsets = [8, 48], sizes = [8, 16], strides = [1, 1]} : vector<16x192xf32> to vector<8x16xf32>
    %cst_412 = arith.constant 2.500000e-01 : f32
    %1045 = vector.broadcast %cst_412 : f32 to vector<8x16xf32>
    %1046 = arith.mulf %1044, %1045 : vector<8x16xf32>
    %1047 = arith.truncf %1046 : vector<8x16xf32> to vector<8x16xbf16>
    %1048 = vector.extract_strided_slice %875 {offsets = [8, 112], sizes = [8, 16], strides = [1, 1]} : vector<16x192xf32> to vector<8x16xf32>
    %1049 = arith.truncf %1048 : vector<8x16xf32> to vector<8x16xbf16>
    %1050 = vector.extract_strided_slice %875 {offsets = [8, 176], sizes = [8, 16], strides = [1, 1]} : vector<16x192xf32> to vector<8x16xf32>
    %1051 = arith.truncf %1050 : vector<8x16xf32> to vector<8x16xbf16>
    %cst_413 = arith.constant dense<0.000000e+00> : vector<8x8xf32>
    %1052 = tpu.matmul %1047, %1049, %cst_413 {dimension_numbers = #tpu.dot_dimension_numbers<[1], [1], [0], [0], [0, 0, 1, 0], [], []>} : vector<8x16xbf16>, vector<8x16xbf16>, vector<8x8xf32> -> vector<8x8xf32>
    %cst_414 = arith.constant -1.000000e+30 : f32
    %1053 = vector.broadcast %cst_414 : f32 to vector<8x8xf32>
    %1054 = arith.select %14, %1052, %1053 : vector<8x8xi1>, vector<8x8xf32>
    %cst_415 = arith.constant dense<0xFF800000> : vector<8xf32>
    %1055 = vector.multi_reduction <maximumf>, %1054, %cst_415 [1] : vector<8x8xf32> to vector<8xf32>
    %1056 = vector.shape_cast %1055 : vector<8xf32> to vector<8x1xf32>
    %1057 = vector.broadcast %1056 : vector<8x1xf32> to vector<8x8xf32>
    %1058 = arith.subf %1054, %1057 : vector<8x8xf32>
    %1059 = math.exp %1058 : vector<8x8xf32>
    %cst_416 = arith.constant dense<0.000000e+00> : vector<8xf32>
    %1060 = vector.multi_reduction <add>, %1059, %cst_416 [1] : vector<8x8xf32> to vector<8xf32>
    %1061 = vector.shape_cast %1060 : vector<8xf32> to vector<8x1xf32>
    %1062 = tpu.reciprocal %1061 {approx = true} : vector<8x1xf32> -> vector<8x1xf32>
    %1063 = vector.broadcast %1062 : vector<8x1xf32> to vector<8x8xf32>
    %1064 = arith.mulf %1059, %1063 : vector<8x8xf32>
    %1065 = arith.truncf %1064 : vector<8x8xf32> to vector<8x8xbf16>
    %cst_417 = arith.constant dense<0.000000e+00> : vector<8x16xf32>
    %1066 = tpu.matmul %1065, %1051, %cst_417 {dimension_numbers = #tpu.dot_dimension_numbers<[1], [0], [0], [1], [0, 0, 1, 1], [], []>} : vector<8x8xbf16>, vector<8x16xbf16>, vector<8x16xf32> -> vector<8x16xf32>
    %c8_418 = arith.constant 8 : index
    %c48_419 = arith.constant 48 : index
    %1067 = vector.load %arg20[%c8_418, %c48_419] : memref<16x64xf32, #tpu.memory_space<vmem>>, vector<8x16xf32>
    tpu.vector_store %arg20[%c8_418, %c48_419], %1066 {strides = array<i32>} : memref<16x64xf32, #tpu.memory_space<vmem>>, vector<8x16xf32>,
    %c0_420 = arith.constant 0 : index
    %c0_421 = arith.constant 0 : index
    %1068 = vector.load %arg20[%c0_420, %c0_421] : memref<16x64xf32, #tpu.memory_space<vmem>>, vector<16x64xf32>
    %1069 = arith.truncf %1068 : vector<16x64xf32> to vector<16x64xbf16>
    %c3_422 = arith.constant 3 : index
    %c0_423 = arith.constant 0 : index
    %c0_424 = arith.constant 0 : index
    %1070 = vector.load %arg7[%c3_422, %c0_423, %c0_424] : memref<4x64x64xbf16, #tpu.memory_space<vmem>>, vector<1x64x64xbf16>
    %1071 = vector.shape_cast %1070 : vector<1x64x64xbf16> to vector<64x64xbf16>
    %cst_425 = arith.constant dense<0.000000e+00> : vector<16x64xf32>
    %1072 = tpu.matmul %1069, %1071, %cst_425 {dimension_numbers = #tpu.dot_dimension_numbers<[1], [0], [0], [1], [0, 0, 1, 1], [], []>} : vector<16x64xbf16>, vector<64x64xbf16>, vector<16x64xf32> -> vector<16x64xf32>
    %c3_426 = arith.constant 3 : index
    %c0_427 = arith.constant 0 : index
    %c0_428 = arith.constant 0 : index
    %1073 = vector.load %arg8[%c3_426, %c0_427, %c0_428] : memref<4x1x64xf32, #tpu.memory_space<vmem>>, vector<1x1x64xf32>
    %1074 = vector.shape_cast %1073 : vector<1x1x64xf32> to vector<1x64xf32>
    %1075 = vector.broadcast %1074 : vector<1x64xf32> to vector<16x64xf32>
    %1076 = arith.addf %1072, %1075 : vector<16x64xf32>
    %1077 = arith.addf %845, %1076 : vector<16x64xf32>
    %c3_429 = arith.constant 3 : index
    %c0_430 = arith.constant 0 : index
    %c0_431 = arith.constant 0 : index
    %1078 = vector.load %arg9[%c3_429, %c0_430, %c0_431] : memref<4x1x64xf32, #tpu.memory_space<vmem>>, vector<1x1x64xf32>
    %1079 = vector.shape_cast %1078 : vector<1x1x64xf32> to vector<1x64xf32>
    %c3_432 = arith.constant 3 : index
    %c0_433 = arith.constant 0 : index
    %c0_434 = arith.constant 0 : index
    %1080 = vector.load %arg10[%c3_432, %c0_433, %c0_434] : memref<4x1x64xf32, #tpu.memory_space<vmem>>, vector<1x1x64xf32>
    %1081 = vector.shape_cast %1080 : vector<1x1x64xf32> to vector<1x64xf32>
    %cst_435 = arith.constant dense<0.000000e+00> : vector<16xf32>
    %1082 = vector.multi_reduction <add>, %1077, %cst_435 [1] : vector<16x64xf32> to vector<16xf32>
    %1083 = vector.shape_cast %1082 : vector<16xf32> to vector<16x1xf32>
    %cst_436 = arith.constant 6.400000e+01 : f32
    %1084 = vector.broadcast %cst_436 : f32 to vector<16x1xf32>
    %1085 = arith.divf %1083, %1084 : vector<16x1xf32>
    %1086 = vector.broadcast %1085 : vector<16x1xf32> to vector<16x64xf32>
    %1087 = arith.subf %1077, %1086 : vector<16x64xf32>
    %1088 = arith.mulf %1087, %1087 : vector<16x64xf32>
    %cst_437 = arith.constant dense<0.000000e+00> : vector<16xf32>
    %1089 = vector.multi_reduction <add>, %1088, %cst_437 [1] : vector<16x64xf32> to vector<16xf32>
    %1090 = vector.shape_cast %1089 : vector<16xf32> to vector<16x1xf32>
    %cst_438 = arith.constant 6.400000e+01 : f32
    %1091 = vector.broadcast %cst_438 : f32 to vector<16x1xf32>
    %1092 = arith.divf %1090, %1091 : vector<16x1xf32>
    %1093 = vector.broadcast %1085 : vector<16x1xf32> to vector<16x64xf32>
    %1094 = arith.subf %1077, %1093 : vector<16x64xf32>
    %cst_439 = arith.constant 9.99999974E-6 : f32
    %1095 = vector.broadcast %cst_439 : f32 to vector<16x1xf32>
    %1096 = arith.addf %1092, %1095 : vector<16x1xf32>
    %1097 = math.rsqrt %1096 : vector<16x1xf32>
    %1098 = vector.broadcast %1097 : vector<16x1xf32> to vector<16x64xf32>
    %1099 = arith.mulf %1094, %1098 : vector<16x64xf32>
    %1100 = vector.broadcast %1079 : vector<1x64xf32> to vector<16x64xf32>
    %1101 = arith.mulf %1099, %1100 : vector<16x64xf32>
    %1102 = vector.broadcast %1081 : vector<1x64xf32> to vector<16x64xf32>
    %1103 = arith.addf %1101, %1102 : vector<16x64xf32>
    %1104 = arith.truncf %1103 : vector<16x64xf32> to vector<16x64xbf16>
    %c3_440 = arith.constant 3 : index
    %c0_441 = arith.constant 0 : index
    %c0_442 = arith.constant 0 : index
    %1105 = vector.load %arg11[%c3_440, %c0_441, %c0_442] : memref<4x64x256xbf16, #tpu.memory_space<vmem>>, vector<1x64x256xbf16>
    %1106 = vector.shape_cast %1105 : vector<1x64x256xbf16> to vector<64x256xbf16>
    %cst_443 = arith.constant dense<0.000000e+00> : vector<16x256xf32>
    %1107 = tpu.matmul %1104, %1106, %cst_443 {dimension_numbers = #tpu.dot_dimension_numbers<[1], [0], [0], [1], [0, 0, 1, 1], [], []>} : vector<16x64xbf16>, vector<64x256xbf16>, vector<16x256xf32> -> vector<16x256xf32>
    %c3_444 = arith.constant 3 : index
    %c0_445 = arith.constant 0 : index
    %c0_446 = arith.constant 0 : index
    %1108 = vector.load %arg12[%c3_444, %c0_445, %c0_446] : memref<4x1x256xf32, #tpu.memory_space<vmem>>, vector<1x1x256xf32>
    %1109 = vector.shape_cast %1108 : vector<1x1x256xf32> to vector<1x256xf32>
    %1110 = vector.broadcast %1109 : vector<1x256xf32> to vector<16x256xf32>
    %1111 = arith.addf %1107, %1110 : vector<16x256xf32>
    %cst_447 = arith.constant 0.000000e+00 : f32
    %1112 = vector.broadcast %cst_447 : f32 to vector<16x256xf32>
    %1113 = arith.maximumf %1111, %1112 : vector<16x256xf32>
    %1114 = arith.truncf %1113 : vector<16x256xf32> to vector<16x256xbf16>
    %c3_448 = arith.constant 3 : index
    %c0_449 = arith.constant 0 : index
    %c0_450 = arith.constant 0 : index
    %1115 = vector.load %arg13[%c3_448, %c0_449, %c0_450] : memref<4x256x64xbf16, #tpu.memory_space<vmem>>, vector<1x256x64xbf16>
    %1116 = vector.shape_cast %1115 : vector<1x256x64xbf16> to vector<256x64xbf16>
    %cst_451 = arith.constant dense<0.000000e+00> : vector<16x64xf32>
    %1117 = tpu.matmul %1114, %1116, %cst_451 {dimension_numbers = #tpu.dot_dimension_numbers<[1], [0], [0], [1], [0, 0, 1, 1], [], []>} : vector<16x256xbf16>, vector<256x64xbf16>, vector<16x64xf32> -> vector<16x64xf32>
    %c3_452 = arith.constant 3 : index
    %c0_453 = arith.constant 0 : index
    %c0_454 = arith.constant 0 : index
    %1118 = vector.load %arg14[%c3_452, %c0_453, %c0_454] : memref<4x1x64xf32, #tpu.memory_space<vmem>>, vector<1x1x64xf32>
    %1119 = vector.shape_cast %1118 : vector<1x1x64xf32> to vector<1x64xf32>
    %1120 = vector.broadcast %1119 : vector<1x64xf32> to vector<16x64xf32>
    %1121 = arith.addf %1117, %1120 : vector<16x64xf32>
    %1122 = arith.addf %1077, %1121 : vector<16x64xf32>
    %c0_455 = arith.constant 0 : index
    %c0_456 = arith.constant 0 : index
    %1123 = vector.load %arg15[%c0_455, %c0_456] : memref<1x64xf32, #tpu.memory_space<vmem>>, vector<1x64xf32>
    %c0_457 = arith.constant 0 : index
    %c0_458 = arith.constant 0 : index
    %1124 = vector.load %arg16[%c0_457, %c0_458] : memref<1x64xf32, #tpu.memory_space<vmem>>, vector<1x64xf32>
    %cst_459 = arith.constant dense<0.000000e+00> : vector<16xf32>
    %1125 = vector.multi_reduction <add>, %1122, %cst_459 [1] : vector<16x64xf32> to vector<16xf32>
    %1126 = vector.shape_cast %1125 : vector<16xf32> to vector<16x1xf32>
    %cst_460 = arith.constant 6.400000e+01 : f32
    %1127 = vector.broadcast %cst_460 : f32 to vector<16x1xf32>
    %1128 = arith.divf %1126, %1127 : vector<16x1xf32>
    %1129 = vector.broadcast %1128 : vector<16x1xf32> to vector<16x64xf32>
    %1130 = arith.subf %1122, %1129 : vector<16x64xf32>
    %1131 = arith.mulf %1130, %1130 : vector<16x64xf32>
    %cst_461 = arith.constant dense<0.000000e+00> : vector<16xf32>
    %1132 = vector.multi_reduction <add>, %1131, %cst_461 [1] : vector<16x64xf32> to vector<16xf32>
    %1133 = vector.shape_cast %1132 : vector<16xf32> to vector<16x1xf32>
    %cst_462 = arith.constant 6.400000e+01 : f32
    %1134 = vector.broadcast %cst_462 : f32 to vector<16x1xf32>
    %1135 = arith.divf %1133, %1134 : vector<16x1xf32>
    %1136 = vector.broadcast %1128 : vector<16x1xf32> to vector<16x64xf32>
    %1137 = arith.subf %1122, %1136 : vector<16x64xf32>
    %cst_463 = arith.constant 9.99999974E-6 : f32
    %1138 = vector.broadcast %cst_463 : f32 to vector<16x1xf32>
    %1139 = arith.addf %1135, %1138 : vector<16x1xf32>
    %1140 = math.rsqrt %1139 : vector<16x1xf32>
    %1141 = vector.broadcast %1140 : vector<16x1xf32> to vector<16x64xf32>
    %1142 = arith.mulf %1137, %1141 : vector<16x64xf32>
    %1143 = vector.broadcast %1123 : vector<1x64xf32> to vector<16x64xf32>
    %1144 = arith.mulf %1142, %1143 : vector<16x64xf32>
    %1145 = vector.broadcast %1124 : vector<1x64xf32> to vector<16x64xf32>
    %1146 = arith.addf %1144, %1145 : vector<16x64xf32>
    %1147 = vector.extract_strided_slice %1146 {offsets = [0, 0], sizes = [8, 64], strides = [1, 1]} : vector<16x64xf32> to vector<8x64xf32>
    %cst_464 = arith.constant dense<0.000000e+00> : vector<64xf32>
    %1148 = vector.multi_reduction <add>, %1147, %cst_464 [0] : vector<8x64xf32> to vector<64xf32>
    %1149 = vector.shape_cast %1148 : vector<64xf32> to vector<1x64xf32>
    %1150 = vector.extract_strided_slice %1146 {offsets = [8, 0], sizes = [8, 64], strides = [1, 1]} : vector<16x64xf32> to vector<8x64xf32>
    %cst_465 = arith.constant dense<0.000000e+00> : vector<64xf32>
    %1151 = vector.multi_reduction <add>, %1150, %cst_465 [0] : vector<8x64xf32> to vector<64xf32>
    %1152 = vector.shape_cast %1151 : vector<64xf32> to vector<1x64xf32>
    %1153 = tpu.concatenate %1149, %1152 in 0 : vector<1x64xf32>, vector<1x64xf32> -> vector<2x64xf32>
    %c0_466 = arith.constant 0 : index
    %c0_467 = arith.constant 0 : index
    %1154 = vector.load %arg17[%c0_466, %c0_467] : memref<64x14xf32, #tpu.memory_space<vmem>>, vector<64x14xf32>
    %cst_468 = arith.constant dense<0.000000e+00> : vector<2x14xf32>
    %1155 = tpu.matmul %1153, %1154, %cst_468 {dimension_numbers = #tpu.dot_dimension_numbers<[1], [0], [0], [1], [0, 0, 1, 1], [], []>} : vector<2x64xf32>, vector<64x14xf32>, vector<2x14xf32> -> vector<2x14xf32>
    %c0_469 = arith.constant 0 : index
    %c0_470 = arith.constant 0 : index
    %1156 = vector.load %arg18[%c0_469, %c0_470] : memref<1x14xf32, #tpu.memory_space<vmem>>, vector<1x14xf32>
    %cst_471 = arith.constant 8.000000e+00 : f32
    %1157 = vector.broadcast %cst_471 : f32 to vector<1x14xf32>
    %1158 = arith.mulf %1157, %1156 : vector<1x14xf32>
    %1159 = vector.broadcast %1158 : vector<1x14xf32> to vector<2x14xf32>
    %1160 = arith.addf %1155, %1159 : vector<2x14xf32>
    %c0_472 = arith.constant 0 : index
    %c0_473 = arith.constant 0 : index
    %c0_474 = arith.constant 0 : index
    %1161 = vector.load %arg19[%c0_472, %c0_473, %c0_474] : memref<1x2x14xf32, #tpu.memory_space<vmem>>, vector<1x2x14xf32>
    %1162 = vector.shape_cast %1161 : vector<1x2x14xf32> to vector<2x14xf32>
    %1163 = vector.shape_cast %1160 : vector<2x14xf32> to vector<1x2x14xf32>
    tpu.vector_store %arg19[%c0_472, %c0_473, %c0_474], %1163 {strides = array<i32>} : memref<1x2x14xf32, #tpu.memory_space<vmem>>, vector<1x2x14xf32>,
    return
  }
  func.func @transform_0(%arg0: i32) -> (i32, i32, i32) {
    %c0_i32 = arith.constant 0 : i32
    %c0_i32_0 = arith.constant 0 : i32
    %c0_i32_1 = arith.constant 0 : i32
    return %arg0, %c0_i32, %c0_i32_0 : i32, i32, i32
  }
  func.func @transform_1(%arg0: i32) -> (i32, i32) {
    %c0_i32 = arith.constant 0 : i32
    %c0_i32_0 = arith.constant 0 : i32
    %c0_i32_1 = arith.constant 0 : i32
    return %c0_i32, %c0_i32_0 : i32, i32
  }
  func.func @transform_2(%arg0: i32) -> (i32, i32) {
    %c0_i32 = arith.constant 0 : i32
    %c0_i32_0 = arith.constant 0 : i32
    %c0_i32_1 = arith.constant 0 : i32
    return %c0_i32, %c0_i32_0 : i32, i32
  }
  func.func @transform_3(%arg0: i32) -> (i32, i32, i32) {
    %c0_i32 = arith.constant 0 : i32
    %c0_i32_0 = arith.constant 0 : i32
    %c0_i32_1 = arith.constant 0 : i32
    %c0_i32_2 = arith.constant 0 : i32
    return %c0_i32, %c0_i32_0, %c0_i32_1 : i32, i32, i32
  }
  func.func @transform_4(%arg0: i32) -> (i32, i32, i32) {
    %c0_i32 = arith.constant 0 : i32
    %c0_i32_0 = arith.constant 0 : i32
    %c0_i32_1 = arith.constant 0 : i32
    %c0_i32_2 = arith.constant 0 : i32
    return %c0_i32, %c0_i32_0, %c0_i32_1 : i32, i32, i32
  }
  func.func @transform_5(%arg0: i32) -> (i32, i32, i32) {
    %c0_i32 = arith.constant 0 : i32
    %c0_i32_0 = arith.constant 0 : i32
    %c0_i32_1 = arith.constant 0 : i32
    %c0_i32_2 = arith.constant 0 : i32
    return %c0_i32, %c0_i32_0, %c0_i32_1 : i32, i32, i32
  }
  func.func @transform_6(%arg0: i32) -> (i32, i32, i32) {
    %c0_i32 = arith.constant 0 : i32
    %c0_i32_0 = arith.constant 0 : i32
    %c0_i32_1 = arith.constant 0 : i32
    %c0_i32_2 = arith.constant 0 : i32
    return %c0_i32, %c0_i32_0, %c0_i32_1 : i32, i32, i32
  }
  func.func @transform_7(%arg0: i32) -> (i32, i32, i32) {
    %c0_i32 = arith.constant 0 : i32
    %c0_i32_0 = arith.constant 0 : i32
    %c0_i32_1 = arith.constant 0 : i32
    %c0_i32_2 = arith.constant 0 : i32
    return %c0_i32, %c0_i32_0, %c0_i32_1 : i32, i32, i32
  }
  func.func @transform_8(%arg0: i32) -> (i32, i32, i32) {
    %c0_i32 = arith.constant 0 : i32
    %c0_i32_0 = arith.constant 0 : i32
    %c0_i32_1 = arith.constant 0 : i32
    %c0_i32_2 = arith.constant 0 : i32
    return %c0_i32, %c0_i32_0, %c0_i32_1 : i32, i32, i32
  }
  func.func @transform_9(%arg0: i32) -> (i32, i32, i32) {
    %c0_i32 = arith.constant 0 : i32
    %c0_i32_0 = arith.constant 0 : i32
    %c0_i32_1 = arith.constant 0 : i32
    %c0_i32_2 = arith.constant 0 : i32
    return %c0_i32, %c0_i32_0, %c0_i32_1 : i32, i32, i32
  }
  func.func @transform_10(%arg0: i32) -> (i32, i32, i32) {
    %c0_i32 = arith.constant 0 : i32
    %c0_i32_0 = arith.constant 0 : i32
    %c0_i32_1 = arith.constant 0 : i32
    %c0_i32_2 = arith.constant 0 : i32
    return %c0_i32, %c0_i32_0, %c0_i32_1 : i32, i32, i32
  }
  func.func @transform_11(%arg0: i32) -> (i32, i32, i32) {
    %c0_i32 = arith.constant 0 : i32
    %c0_i32_0 = arith.constant 0 : i32
    %c0_i32_1 = arith.constant 0 : i32
    %c0_i32_2 = arith.constant 0 : i32
    return %c0_i32, %c0_i32_0, %c0_i32_1 : i32, i32, i32
  }
  func.func @transform_12(%arg0: i32) -> (i32, i32, i32) {
    %c0_i32 = arith.constant 0 : i32
    %c0_i32_0 = arith.constant 0 : i32
    %c0_i32_1 = arith.constant 0 : i32
    %c0_i32_2 = arith.constant 0 : i32
    return %c0_i32, %c0_i32_0, %c0_i32_1 : i32, i32, i32
  }
  func.func @transform_13(%arg0: i32) -> (i32, i32, i32) {
    %c0_i32 = arith.constant 0 : i32
    %c0_i32_0 = arith.constant 0 : i32
    %c0_i32_1 = arith.constant 0 : i32
    %c0_i32_2 = arith.constant 0 : i32
    return %c0_i32, %c0_i32_0, %c0_i32_1 : i32, i32, i32
  }
  func.func @transform_14(%arg0: i32) -> (i32, i32) {
    %c0_i32 = arith.constant 0 : i32
    %c0_i32_0 = arith.constant 0 : i32
    %c0_i32_1 = arith.constant 0 : i32
    return %c0_i32, %c0_i32_0 : i32, i32
  }
  func.func @transform_15(%arg0: i32) -> (i32, i32) {
    %c0_i32 = arith.constant 0 : i32
    %c0_i32_0 = arith.constant 0 : i32
    %c0_i32_1 = arith.constant 0 : i32
    return %c0_i32, %c0_i32_0 : i32, i32
  }
  func.func @transform_16(%arg0: i32) -> (i32, i32) {
    %c0_i32 = arith.constant 0 : i32
    %c0_i32_0 = arith.constant 0 : i32
    %c0_i32_1 = arith.constant 0 : i32
    return %c0_i32, %c0_i32_0 : i32, i32
  }
  func.func @transform_17(%arg0: i32) -> (i32, i32) {
    %c0_i32 = arith.constant 0 : i32
    %c0_i32_0 = arith.constant 0 : i32
    %c0_i32_1 = arith.constant 0 : i32
    return %c0_i32, %c0_i32_0 : i32, i32
  }
  func.func @transform_18(%arg0: i32) -> (i32, i32, i32) {
    %c0_i32 = arith.constant 0 : i32
    %c0_i32_0 = arith.constant 0 : i32
    %c0_i32_1 = arith.constant 0 : i32
    return %arg0, %c0_i32, %c0_i32_0 : i32, i32, i32
  }
}

</mosaic_0001>

<bundles_post_ra>
// kernel: tpu_custom_call.1
= control target key start
LH: loop header
LB: loop body
LE: loop exit
PB: predicated region body
PF: predicated region fallthrough
CT: control target
= control target key end

     0   :  { %s9525_s0 = inlined_call_operand.vmem [shape: s32[1,16,1], index: 0, kind: input, shape index: {}]   ;;  %s9526_s1 = inlined_call_operand.vmem [shape: f32[39,64], index: 1, kind: input, shape index: {}]   ;;  %s9527_s2 = inlined_call_operand.vmem [shape: f32[16,64], index: 2, kind: input, shape index: {}]   ;;  %s9528_s3 = inlined_call_operand.vmem [shape: f32[4,1,64], index: 3, kind: input, shape index: {}]   ;;  %s9529_s4 = inlined_call_operand.vmem [shape: f32[4,1,64], index: 4, kind: input, shape index: {}]   ;;  %s9530_s5 = inlined_call_operand.vmem [shape: bf16[4,64,192], index: 5, kind: input, shape index: {}]   ;;  %s9531_s6 = inlined_call_operand.vmem [shape: bf16[4,64,64], index: 6, kind: input, shape index: {}]   ;;  %s9532_s7 = inlined_call_operand.vmem [shape: f32[4,1,64], index: 7, kind: input, shape index: {}]   ;;  %s9533_s8 = inlined_call_operand.vmem [shape: f32[4,1,64], index: 8, kind: input, shape index: {}]   ;;  %s9534_s9 = inlined_call_operand.vmem [shape: f32[4,1,64], index: 9, kind: input, shape index: {}]   ;;  %s9535_s10 = inlined_call_operand.vmem [shape: bf16[4,64,256], index: 10, kind: input, shape index: {}]   ;;  %s9536_s11 = inlined_call_operand.vmem [shape: f32[4,1,256], index: 11, kind: input, shape index: {}]   ;;  %s9537_s12 = inlined_call_operand.vmem [shape: bf16[4,256,64], index: 12, kind: input, shape index: {}]   ;;  %s9538_s13 = inlined_call_operand.vmem [shape: f32[4,1,64], index: 13, kind: input, shape index: {}]   ;;  %s9539_s14 = inlined_call_operand.vmem [shape: f32[1,64], index: 14, kind: input, shape index: {}]   ;;  %s9540_s15 = inlined_call_operand.vmem [shape: f32[1,64], index: 15, kind: input, shape index: {}]   ;;  %s9541_s16 = inlined_call_operand.vmem [shape: f32[64,14], index: 16, kind: input, shape index: {}]   ;;  %s9542_s17 = inlined_call_operand.vmem [shape: f32[1,14], index: 17, kind: input, shape index: {}]   ;;  %s9543_s18 = inlined_call_operand.hbm [shape: f32[1,2,14], index: 18, kind: output, shape index: {}]  }
   0x1   :  { %9560 = sst [smem:[#allocation6_spill]] %s9525_s0 }
   0x2   :  { %9561 = sst [smem:[#allocation7_spill]] %s9526_s1 }
   0x3   :  { %9562 = sst [smem:[#allocation8_spill]] %s9527_s2 }
   0x4   :  { %9563 = sst [smem:[#allocation9_spill]] %s9538_s13 }
   0x5   :  { %s9564_s29 = sld [smem:[#allocation6_spill]]  ;;  %s9565_s13 = sld [smem:[#allocation7_spill]]  ;;  %v7885_v2 = vmov 0   ;;  %vm91_vm0 = vcmask 1046528   ;;  %v7886_v10 = vmov 0.0  }
   0x6   :  { %7520 = vset.pattern.permute.xlu0 %v7885_v2  ;;  %303 = vmatprep.mubr.bf16.mxu1 %v7885_v2 }
   0xb   :  { %v61_v0 = vld [vmem:[%s9564_s29] sm:$0xff]  ;;  %v62_v3 = vld [vmem:[%s9564_s29 + $0x8] sm:$0xff]  ;;  %v79_v5 = vld [vmem:[%s9565_s13 + $0x10] sm:$0xff] }
   0xc   :  { %v77_v1 = vld [vmem:[%s9565_s13] sm:$0xff]  ;;  %v78_v4 = vld [vmem:[%s9565_s13 + $0x8] sm:$0xff]  ;;  %v80_v6 = vld [vmem:[%s9565_s13 + $0x18] sm:$0xff]  ;;  %66 = vperm.xlu0 %7520, %v61_v0  }
   0xd   :  { %v7488_v7 = vpack.c.bf16 %v78_v4, %v77_v1  ;;  %v7492_v8 = vpack.c.bf16 %v80_v6, %v79_v5  ;;  %v81_v9 = vld [vmem:[%s9565_s13 + $0x20] sm:$0x7f] }
   0xf   :  { %7489 = vmatprep.subr.bf16.mxu0 %v7488_v7 }
  0x10   :  { %7491 = vmatpush3.bf16.msra.mxu0 %v7488_v7  ;;  %69 = vperm.xlu0 %7520, %v62_v3  }
  0x11   :  { %7493 = vmatprep.subr.bf16.mxu0 %v7492_v8 }
  0x14   :  { %7495 = vmatpush3.bf16.msra.mxu0 %v7492_v8 }
  0x15   :  { %7032 = vmatprep.subr.msk.mxu0 %vm91_vm0, %v81_v9 }
  0x18   :  { %7033 = vmatpush3.msk.msra.mxu0 %vm91_vm0, %v81_v9 }
  0x19   :  { %7049 = vmatprep.subr.bf16.mxu0 %v7886_v10 }
  0x1a   :  { %23 = vsyncpa [#allocation4], 0  ;;  %v63_v11 = vlaneseq  ;;  %vm84_vm1 = vcmask 318464   ;;  %s9566_s28 = sld [smem:[#allocation8_spill]]  ;;  %vm175_vm4 = vcmask 523264   ;;  %vm7887_vm5 = vmmov 0  }
  0x1b   :  { %v7521_v35 = vld [vmem:[%s9530_s5 + $0x4] ss:$8 sps:$4 sm:$0xff]   ;;  %v7523_v36 = vld [vmem:[%s9530_s5] ss:$8 sps:$4 sm:$0xff]   ;;  %v7524_v37 = vld [vmem:[%s9530_s5 + $0x14] ss:$8 sps:$4 sm:$0xff]  }
  0x1c   :  { %v8017_v12 = vand.u32 127, %v63_v11  ;;  %271 = vmatprep.subr.bf16.mxu1 %v7521_v35  ;;  %v7526_v38 = vld [vmem:[%s9530_s5 + $0x10] ss:$8 sps:$4 sm:$0xff]   ;;  %v7527_v39 = vld [vmem:[%s9530_s5 + $0x24] ss:$8 sps:$4 sm:$0xff]   ;;  %s9558_s21 = smov 64  }
  0x1d   :  { %272 = vmatpush1.bf16.msra.mxu1 %v7523_v36  ;;  %v7529_v40 = vld [vmem:[%s9530_s5 + $0x20] ss:$8 sps:$4 sm:$0xff]   ;;  %v7530_v41 = vld [vmem:[%s9530_s5 + $0x34] ss:$8 sps:$4 sm:$0xff]   ;;  %v7532_v42 = vld [vmem:[%s9530_s5 + $0x30] ss:$8 sps:$4 sm:$0xff]  }
  0x1e   :  { %273 = vmatprep.subr.bf16.mxu1 %v7524_v37  ;;  %v6336_v51 = vld [vmem:[%s9528_s3] ss:$0 sm:$0xff]  ;;  %s9556_s22 = smov 96   ;;  %s7890_s2 = smov 48   ;;  %vm321_vm6 = vcmask 130048   ;;  %vm385_vm7 = vcmask 1043456  }
  0x1f   :  { %v6337_v55 = vld [vmem:[%s9529_s4] ss:$0 sm:$0xff]  ;;  %s9550_s23 = smov 32   ;;  %s9554_s24 = smov 112   ;;  %v8139_v36 = vshrl.u32 %v63_v11, 7  ;;  %vm369_vm9 = vcmask 64512  }
  0x20   :  { %v82_v17 = vld [vmem:[%s9566_s28] sm:$0xff]  ;;  %v83_v19 = vld [vmem:[%s9566_s28 + $0x8] sm:$0xff]  ;;  %s9548_s25 = smov 16   ;;  %s9552_s26 = smov 80   ;;  %vm547_vm10 = vcmask 261248   ;;  %vm664_vm11 = vcmask 392448  }
  0x21   :  { %274 = vmatpush1.bf16.msra.mxu1 %v7526_v38  ;;  %vm8143_vm8 = vcmp.ge.s32.totalorder %v8139_v36, %v8017_v12  ;;  %vm781_vm12 = vcmask 523648   ;;  %s9569_s1 = sld [smem:[#allocation9_spill]]  ;;  %s9570_s20 = smov 32   ;;  %vm6224_vm13 = vcmask 1040384   ;;  %vm6315_vm14 = vcmask 107520  }
  0x22   :  { %275 = vmatprep.subr.bf16.mxu1 %v7527_v39  ;;  %s9572_s13 = smov 112   ;;  %s9573_s27 = smov 80  }
  0x23   :  { %s7896_s30 = smov [#allocation3]  }
  0x25   :  { %276 = vmatpush1.bf16.msra.mxu1 %v7529_v40 }
  0x26   :  { %277 = vmatprep.subr.bf16.mxu1 %v7530_v41 }
  0x29   :  { %278 = vmatpush1.bf16.msra.mxu1 %v7532_v42 }
  0x2a   :  { %7037 = vmatprep.subr.bf16.mxu1 %v7886_v10 }
  0x8b   :  { %v67_v13 = vpop.permute.xlu0 %66 }
  0x8c   :  { %vm71_vm2 = vcmp.eq.s32.totalorder %v67_v13, %v8017_v12 }
  0x8d   :  { %v6331_v14 = vsel %vm71_vm2, 1.0, %v7886_v10 }
  0x8e   :  { %7034 = vmatprep.mubr.msk.f32.mxu0 %vm84_vm1, %v6331_v14 }
  0x8f   :  { %v70_v15 = vpop.permute.xlu0 %69 }
  0x90   :  { %vm72_vm3 = vcmp.eq.s32.totalorder %v70_v15, %v8017_v12 }
  0x91   :  { %v6332_v16 = vsel %vm72_vm3, 1.0, %v7886_v10 }
  0x92   :  { %7035 = vmatmul.mubr.msk.f32.vlgmr.msra.gmra.mrb[0].mxu0 %vm84_vm1, %v6332_v16 }
  0x93   :  { %7051 = vmatprep.mubr.msk.bf16.mxu0 %vm7887_vm5, %v7886_v10 }
 0x165   :  { %v7036_v18 = vpop.f32.mrb[0].mxu0 }
 0x166   :  { %v161_v20 = vpop.f32.mrb[1].mxu0  ;;  %v8031_v22 = vadd.f32 %v7036_v18, %v83_v19 }
 0x167   :  { %v8029_v21 = vadd.f32 %v161_v20, %v82_v17 }
 0x168   :  { %v179_v24 = vsel %vm175_vm4, %v8031_v22, 0.0 }
 0x169   :  { %v176_v23 = vsel %vm175_vm4, %v8029_v21, 0.0 }
 0x16a   :  { %177 = vadd.xlane.f32.xlu1 %v176_v23 }
 0x16e   :  { %180 = vadd.xlane.f32.xlu1 %v179_v24 }
 0x1f7   :  { %v178_v25 = vpop.xlane.xlu1 %177 }
 0x1f8   :  { %v183_v26 = vmul.f32 0.015625, %v178_v25 }
 0x1fa   :  { %v185_v27 = vsub.f32 %v8029_v21, %v183_v26 }
 0x1fb   :  { %v181_v28 = vpop.xlane.xlu1 %180 }
 0x1fc   :  { %v184_v29 = vmul.f32 0.015625, %v181_v28  ;;  %v187_v30 = vmul.f32 %v185_v27, %v185_v27 }
 0x1fe   :  { %v186_v31 = vsub.f32 %v8031_v22, %v184_v29  ;;  %v189_v32 = vsel %vm175_vm4, %v187_v30, 0.0 }
 0x1ff   :  { %190 = vadd.xlane.f32.xlu0 %v189_v32 }
 0x200   :  { %v188_v33 = vmul.f32 %v186_v31, %v186_v31 }
 0x202   :  { %v192_v34 = vsel %vm175_vm4, %v188_v33, 0.0 }
 0x203   :  { %193 = vadd.xlane.f32.xlu1 %v192_v34 }
 0x28c   :  { %v191_v43 = vpop.xlane.xlu0 %190 }
 0x28d   :  { %v195_v44 = vmul.f32 0.015625, %v191_v43 }
 0x28f   :  { %v197_v45 = vadd.f32 1e-05, %v195_v44 }
 0x290   :  { %v194_v46 = vpop.xlane.xlu1 %193 }
 0x291   :  { %7697 = vrsqrt.f32 %v197_v45  ;;  %v196_v47 = vmul.f32 0.015625, %v194_v46 }
 0x293   :  { %v198_v48 = vadd.f32 1e-05, %v196_v47 }
 0x295   :  { %7699 = vrsqrt.f32 %v198_v48 }
 0x29b   :  { %v7698_v49 = vpop.eup %7697 }
 0x29c   :  { %v201_v50 = vmul.f32 %v7698_v49, %v185_v27 }
 0x29e   :  { %v209_v54 = vmul.f32 %v6336_v51, %v201_v50 }
 0x29f   :  { %v7700_v52 = vpop.eup %7699 }
 0x2a0   :  { %v202_v53 = vmul.f32 %v7700_v52, %v186_v31  ;;  %v217_v57 = vadd.f32 %v6337_v55, %v209_v54 }
 0x2a2   :  { %v210_v56 = vmul.f32 %v6336_v51, %v202_v53 }
 0x2a4   :  { %v218_v58 = vadd.f32 %v6337_v55, %v210_v56 }
 0x2a6   :  { %v219_v59 = vpack.c.bf16 %v218_v58, %v217_v57 }
 0x2a8   :  { %6346 = vmatmul.mubr.msk.bf16.vlgmr.msra.gmra.mrb[0].mxu1 %vm175_vm4, %v219_v59 }
 0x2a9   :  { %7039 = vmatprep.mubr.msk.bf16.mxu1 %vm7887_vm5, %v7886_v10 }
 0x37b   :  { %v305_v60 = vpop.f32.mrb[0].mxu1 }
 0x37c   :  { %v314_v61 = vmul.f32 0.25, %v305_v60  ;;  %v316_v62 = vpack.c.bf16 %v305_v60, %v305_v60  ;;  %v307_v63 = vpop.f32.mrb[1].mxu1 }
 0x37d   :  { %v309_v0 = vpop.f32.mrb[2].mxu1  ;;  %v8095_v13 = vpack.c.bf16 %v307_v63, %v307_v63 }
 0x37e   :  { %v315_v1 = vpack.c.bf16 %v314_v61, %v314_v61  ;;  %319 = vrot.lane.b32.xlu1 %v316_v62, %s9558_s21  ;;  %v8078_v3 = vpop.f32.mrb[3].mxu1  ;;  %v785_v4 = vpack.c.bf16 %v309_v0, %v309_v0  ;;  %v783_v5 = vmul.f32 0.25, %v309_v0 }
 0x37f   :  { %v387_v16 = vsel %vm385_vm7, %v8095_v13, 0 }
 0x380   :  { %549 = vrot.lane.b32.xlu0 %v315_v1, %s9556_s22  ;;  %v784_v6 = vpack.c.bf16 %v783_v5, %v783_v5 }
 0x382   :  { %433 = vrot.lane.b32.xlu1 %v316_v62, %s7890_s2 }
 0x384   :  { %1016 = vrot.lane.b32.xlu0 %v785_v4, %s9550_s23 }
 0x386   :  { %431 = vrot.lane.b32.xlu1 %v315_v1, %s9554_s24 }
 0x388   :  { %1132 = vrot.lane.b32.xlu0 %v785_v4, %s9548_s25 }
 0x38a   :  { %551 = vrot.lane.b32.xlu1 %v316_v62, %s9550_s23 }
 0x38e   :  { %668 = vrot.lane.b32.xlu1 %v316_v62, %s9548_s25 }
 0x392   :  { %666 = vrot.lane.b32.xlu1 %v315_v1, %s9552_s26 }
 0x396   :  { %788 = vrot.lane.b32.xlu1 %v785_v4, %s9558_s21 }
 0x39a   :  { %899 = vrot.lane.b32.xlu1 %v785_v4, %s7890_s2 }
 0x39e   :  { %897 = vrot.lane.b32.xlu1 %v784_v6, %s9554_s24 }
 0x3a2   :  { %1014 = vrot.lane.b32.xlu1 %v784_v6, %s9556_s22 }
 0x3a6   :  { %1130 = vrot.lane.b32.xlu1 %v784_v6, %s9552_s26 }
 0x3f0   :  { %v320_v7 = vpop.permute.xlu1 %319 }
 0x3f1   :  { %v326_v8 = vsel %vm321_vm6, %v320_v7, 0 }
 0x3f2   :  { %7038 = vmatpush3.bf16.xpose.msra.mxu1 %v326_v8  ;;  %v550_v20 = vpop.permute.xlu0 %549 }
 0x3f3   :  { %7043 = vmatprep.subr.bf16.mxu1 %v7886_v10 }
 0x3f4   :  { %v434_v9 = vpop.permute.xlu1 %433 }
 0x3f5   :  { %v439_v14 = vsel %vm321_vm6, %v434_v9, 0 }
 0x3f6   :  { %7050 = vmatpush3.bf16.xpose.msra.mxu0 %v439_v14  ;;  %v1017_v29 = vpop.permute.xlu0 %1016 }
 0x3f7   :  { %7061 = vmatprep.subr.bf16.mxu0 %v7886_v10  ;;  %v1022_v31 = vsel %vm321_vm6, %v1017_v29, 0 }
 0x3f8   :  { %v432_v15 = vpop.permute.xlu1 %431 }
 0x3f9   :  { %7040 = vmatmul.mubr.msk.bf16.vlgmr.msra.gmra.mrb[4].mxu1 %vm321_vm6, %v315_v1 }
 0x3fa   :  { %7044 = vmatpush3.bf16.msra.mxu1 %v387_v16  ;;  %7045 = vmatprep.mubr.msk.bf16.mxu1 %vm7887_vm5, %v7886_v10  ;;  %v1133_v32 = vpop.permute.xlu0 %1132 }
 0x3fb   :  { %7055 = vmatprep.subr.bf16.mxu1 %v7886_v10  ;;  %v1138_v34 = vsel %vm321_vm6, %v1133_v32, 0 }
 0x3fc   :  { %v552_v17 = vpop.permute.xlu1 %551 }
 0x3fd   :  { %v557_v18 = vsel %vm321_vm6, %v552_v17, 0  ;;  %7052 = vmatmul.mubr.msk.bf16.vlgmr.msra.gmra.mrb[4].mxu0 %vm321_vm6, %v432_v15 }
 0x3fe   :  { %7062 = vmatpush3.bf16.xpose.msra.mxu0 %v557_v18  ;;  %7063 = vmatprep.mubr.msk.bf16.mxu0 %vm7887_vm5, %v7886_v10 }
 0x3ff   :  { %7073 = vmatprep.subr.bf16.mxu0 %v7886_v10 }
 0x400   :  { %v669_v19 = vpop.permute.xlu1 %668 }
 0x401   :  { %v674_v24 = vsel %vm321_vm6, %v669_v19, 0 }
 0x404   :  { %v667_v23 = vpop.permute.xlu1 %666 }
 0x405   :  { %7064 = vmatmul.mubr.msk.bf16.vlgmr.msra.gmra.mrb[8].mxu0 %vm321_vm6, %v550_v20 }
 0x406   :  { %7074 = vmatpush3.bf16.xpose.msra.mxu0 %v674_v24  ;;  %7075 = vmatprep.mubr.msk.bf16.mxu0 %vm7887_vm5, %v7886_v10 }
 0x407   :  { %7085 = vmatprep.subr.bf16.mxu0 %v7886_v10 }
 0x408   :  { %v789_v25 = vpop.permute.xlu1 %788 }
 0x409   :  { %v794_v26 = vsel %vm321_vm6, %v789_v25, 0 }
 0x40c   :  { %v900_v27 = vpop.permute.xlu1 %899 }
 0x40d   :  { %7076 = vmatmul.mubr.msk.bf16.vlgmr.msra.gmra.mrb[12].mxu0 %vm321_vm6, %v667_v23  ;;  %v905_v28 = vsel %vm321_vm6, %v900_v27, 0 }
 0x40e   :  { %7086 = vmatpush3.bf16.xpose.msra.mxu0 %v794_v26  ;;  %7087 = vmatprep.mubr.msk.bf16.mxu0 %vm7887_vm5, %v7886_v10 }
 0x40f   :  { %7097 = vmatprep.subr.bf16.mxu0 %v7886_v10 }
 0x410   :  { %v898_v30 = vpop.permute.xlu1 %897 }
 0x414   :  { %v1015_v33 = vpop.permute.xlu1 %1014 }
 0x415   :  { %7088 = vmatmul.mubr.msk.bf16.vlgmr.msra.gmra.mrb[16].mxu0 %vm321_vm6, %v784_v6 }
 0x416   :  { %7098 = vmatpush3.bf16.xpose.msra.mxu0 %v905_v28  ;;  %7099 = vmatprep.mubr.msk.bf16.mxu0 %vm7887_vm5, %v7886_v10 }
 0x417   :  { %7109 = vmatprep.subr.bf16.mxu0 %v7886_v10 }
 0x418   :  { %v1131_v35 = vpop.permute.xlu1 %1130 }
 0x41d   :  { %7100 = vmatmul.mubr.msk.bf16.vlgmr.msra.gmra.mrb[20].mxu0 %vm321_vm6, %v898_v30 }
 0x41e   :  { %7110 = vmatpush3.bf16.xpose.msra.mxu0 %v1022_v31  ;;  %7111 = vmatprep.mubr.msk.bf16.mxu0 %vm7887_vm5, %v7886_v10 }
 0x41f   :  { %7121 = vmatprep.subr.bf16.mxu0 %v7886_v10 }
 0x425   :  { %7112 = vmatmul.mubr.msk.bf16.vlgmr.msra.gmra.mrb[24].mxu0 %vm321_vm6, %v1015_v33 }
 0x426   :  { %7122 = vmatpush3.bf16.xpose.msra.mxu0 %v1138_v34  ;;  %7123 = vmatprep.mubr.msk.bf16.mxu0 %vm7887_vm5, %v7886_v10 }
 0x427   :  { %7133 = vmatprep.subr.bf16.mxu0 %v7886_v10 }
 0x42d   :  { %7124 = vmatmul.mubr.msk.bf16.vlgmr.msra.gmra.mrb[28].mxu0 %vm321_vm6, %v1131_v35 }
 0x42e   :  { %7141 = vmatprep.mubr.msk.bf16.mxu0 %vm7887_vm5, %v7886_v10 }
 0x4cc   :  { %v362_v38 = vpop.f32.mrb[4].mxu1 }
 0x4cd   :  { %v368_v39 = vsel %vm8143_vm8, %v362_v38, -1e+30  ;;  %v7041_v40 = vpop.f32.mrb[5].mxu1 }
 0x4ce   :  { %v365_v41 = vpop.f32.mrb[6].mxu1  ;;  %v370_v42 = vsel %vm369_vm9, %v368_v39, -inf }
 0x4cf   :  { %371 = vmax.xlane.f32.xlu0 %v370_v42  ;;  %v7042_v43 = vpop.f32.mrb[7].mxu1 }
 0x4d0   :  { %v475_v44 = vpop.f32.mrb[4].mxu0 }
 0x4d1   :  { %v481_v11 = vsel %vm8143_vm8, %v475_v44, -1e+30  ;;  %v7053_v45 = vpop.f32.mrb[5].mxu0 }
 0x4d2   :  { %v478_v12 = vpop.f32.mrb[6].mxu0  ;;  %v482_v46 = vsel %vm369_vm9, %v481_v11, -inf }
 0x4d3   :  { %v7054_v47 = vpop.f32.mrb[7].mxu0  ;;  %483 = vmax.xlane.f32.xlu1 %v482_v46 }
 0x4d8   :  { %v593_v48 = vpop.f32.mrb[8].mxu0 }
 0x4d9   :  { %v599_v49 = vsel %vm8143_vm8, %v593_v48, -1e+30  ;;  %v7065_v50 = vpop.f32.mrb[9].mxu0 }
 0x4da   :  { %v596_v51 = vpop.f32.mrb[10].mxu0  ;;  %v600_v52 = vsel %vm369_vm9, %v599_v49, -inf }
 0x4db   :  { %v7066_v53 = vpop.f32.mrb[11].mxu0  ;;  %601 = vmax.xlane.f32.xlu0 %v600_v52 }
 0x4e0   :  { %v710_v54 = vpop.f32.mrb[12].mxu0 }
 0x4e1   :  { %v716_v55 = vsel %vm8143_vm8, %v710_v54, -1e+30  ;;  %v7077_v56 = vpop.f32.mrb[13].mxu0 }
 0x4e2   :  { %v713_v57 = vpop.f32.mrb[14].mxu0  ;;  %v717_v58 = vsel %vm369_vm9, %v716_v55, -inf }
 0x4e3   :  { %v7078_v59 = vpop.f32.mrb[15].mxu0  ;;  %718 = vmax.xlane.f32.xlu0 %v717_v58 }
 0x4e8   :  { %v830_v60 = vpop.f32.mrb[16].mxu0 }
 0x4e9   :  { %v8161_v61 = vsel %vm8143_vm8, %v830_v60, -1e+30  ;;  %v7089_v62 = vpop.f32.mrb[17].mxu0 }
 0x4ea   :  { %v833_v63 = vpop.f32.mrb[18].mxu0  ;;  %v837_v0 = vsel %vm369_vm9, %v8161_v61, -inf }
 0x4eb   :  { %838 = vmax.xlane.f32.xlu1 %v837_v0  ;;  %v7090_v1 = vpop.f32.mrb[19].mxu0 }
 0x4f0   :  { %v941_v4 = vpop.f32.mrb[20].mxu0 }
 0x4f1   :  { %v947_v5 = vsel %vm8143_vm8, %v941_v4, -1e+30  ;;  %v7101_v6 = vpop.f32.mrb[21].mxu0 }
 0x4f2   :  { %v944_v7 = vpop.f32.mrb[22].mxu0  ;;  %v948_v8 = vsel %vm369_vm9, %v947_v5, -inf }
 0x4f3   :  { %v7102_v9 = vpop.f32.mrb[23].mxu0  ;;  %949 = vmax.xlane.f32.xlu0 %v948_v8 }
 0x4f8   :  { %v1058_v14 = vpop.f32.mrb[24].mxu0 }
 0x4f9   :  { %v1064_v15 = vsel %vm8143_vm8, %v1058_v14, -1e+30  ;;  %v7113_v16 = vpop.f32.mrb[25].mxu0 }
 0x4fa   :  { %v1061_v17 = vpop.f32.mrb[26].mxu0  ;;  %v1065_v18 = vsel %vm369_vm9, %v1064_v15, -inf }
 0x4fb   :  { %1066 = vmax.xlane.f32.xlu1 %v1065_v18  ;;  %v7114_v19 = vpop.f32.mrb[27].mxu0 }
 0x500   :  { %v1174_v20 = vpop.f32.mrb[28].mxu0 }
 0x501   :  { %v1180_v23 = vsel %vm8143_vm8, %v1174_v20, -1e+30  ;;  %v7125_v24 = vpop.f32.mrb[29].mxu0 }
 0x502   :  { %v1177_v25 = vpop.f32.mrb[30].mxu0  ;;  %v1181_v26 = vsel %vm369_vm9, %v1180_v23, -inf }
 0x503   :  { %v7126_v27 = vpop.f32.mrb[31].mxu0  ;;  %1182 = vmax.xlane.f32.xlu0 %v1181_v26 }
 0x55c   :  { %v372_v28 = vpop.xlane.xlu0 %371 }
 0x55d   :  { %v373_v29 = vsub.f32 %v368_v39, %v372_v28 }
 0x55f   :  { %v374_v30 = vmul.f32 1.442695, %v373_v29 }
 0x560   :  { %v484_v31 = vpop.xlane.xlu1 %483 }
 0x561   :  { %7701 = vpow2.f32 %v374_v30  ;;  %v485_v32 = vsub.f32 %v481_v11, %v484_v31 }
 0x563   :  { %v486_v33 = vmul.f32 1.442695, %v485_v32 }
 0x565   :  { %7703 = vpow2.f32 %v486_v33 }
 0x568   :  { %v602_v34 = vpop.xlane.xlu0 %601 }
 0x569   :  { %v603_v35 = vsub.f32 %v599_v49, %v602_v34 }
 0x56b   :  { %v7702_v38 = vpop.eup %7701  ;;  %v604_v40 = vmul.f32 1.442695, %v603_v35 }
 0x56c   :  { %v376_v41 = vsel %vm369_vm9, %v7702_v38, 0.0 }
 0x56d   :  { %7705 = vpow2.f32 %v604_v40  ;;  %377 = vadd.xlane.f32.xlu1 %v376_v41 }
 0x56f   :  { %v7704_v42 = vpop.eup %7703 }
 0x570   :  { %v719_v43 = vpop.xlane.xlu0 %718  ;;  %v488_v44 = vsel %vm369_vm9, %v7704_v42, 0.0 }
 0x571   :  { %v720_v45 = vsub.f32 %v716_v55, %v719_v43  ;;  %489 = vadd.xlane.f32.xlu0 %v488_v44 }
 0x573   :  { %v721_v39 = vmul.f32 1.442695, %v720_v45 }
 0x575   :  { %7707 = vpow2.f32 %v721_v39 }
 0x577   :  { %v8176_v12 = vpop.eup %7705 }
 0x578   :  { %v606_v11 = vsel %vm369_vm9, %v8176_v12, 0.0  ;;  %v839_v48 = vpop.xlane.xlu1 %838 }
 0x579   :  { %607 = vadd.xlane.f32.xlu1 %v606_v11  ;;  %v840_v49 = vsub.f32 %v8161_v61, %v839_v48 }
 0x57b   :  { %v841_v53 = vmul.f32 1.442695, %v840_v49 }
 0x57d   :  { %7709 = vpow2.f32 %v841_v53 }
 0x57f   :  { %v8180_v46 = vpop.eup %7707 }
 0x580   :  { %v723_v47 = vsel %vm369_vm9, %v8180_v46, 0.0  ;;  %v950_v50 = vpop.xlane.xlu0 %949 }
 0x581   :  { %724 = vadd.xlane.f32.xlu0 %v723_v47  ;;  %v951_v52 = vsub.f32 %v947_v5, %v950_v50  ;;  %v786_v5 = vpack.c.bf16 %v8078_v3, %v8078_v3 }
 0x583   :  { %v952_v56 = vmul.f32 1.442695, %v951_v52  ;;  %v853_v33 = vsel %vm385_vm7, %v786_v5, 0 }
 0x585   :  { %7711 = vpow2.f32 %v952_v56 }
 0x587   :  { %v8191_v60 = vpop.eup %7709 }
 0x588   :  { %v1067_v51 = vpop.xlane.xlu1 %1066  ;;  %v843_v61 = vsel %vm369_vm9, %v8191_v60, 0.0 }
 0x589   :  { %v1068_v54 = vsub.f32 %v1064_v15, %v1067_v51 }
 0x58a   :  { %612 = vrot.lane.b32.xlu1 %v8095_v13, %s9556_s22 }
 0x58b   :  { %v1069_v57 = vmul.f32 1.442695, %v1068_v54 }
 0x58d   :  { %7713 = vpow2.f32 %v1069_v57 }
 0x58e   :  { %729 = vrot.lane.b32.xlu1 %v8095_v13, %s9552_s26 }
 0x590   :  { %v1183_v55 = vpop.xlane.xlu0 %1182 }
 0x591   :  { %v1184_v58 = vsub.f32 %v1180_v23, %v1183_v55 }
 0x593   :  { %v1185_v59 = vmul.f32 1.442695, %v1184_v58 }
 0x595   :  { %7715 = vpow2.f32 %v1185_v59 }
 0x597   :  { %495 = vrot.lane.b32.xlu0 %v8095_v13, %s9554_s24  ;;  %v8193_v13 = vpop.eup %7711 }
 0x598   :  { %v8197_v62 = vpop.eup %7713  ;;  %v954_v0 = vsel %vm369_vm9, %v8193_v13, 0.0 }
 0x599   :  { %v1071_v63 = vsel %vm369_vm9, %v8197_v62, 0.0 }
 0x59f   :  { %v8203_v1 = vpop.eup %7715 }
 0x5a0   :  { %v1187_v4 = vsel %vm369_vm9, %v8203_v1, 0.0 }
 0x5b2   :  { %844 = vadd.xlane.f32.xlu1 %v843_v61 }
 0x5b6   :  { %1072 = vadd.xlane.f32.xlu0 %v1071_v63  ;;  %955 = vadd.xlane.f32.xlu1 %v954_v0 }
 0x5ba   :  { %1188 = vadd.xlane.f32.xlu1 %v1187_v4 }
 0x5cb   :  { %1077 = vrot.lane.b32.xlu1 %v786_v5, %s9556_s22 }
 0x5cc   :  { %961 = vrot.lane.b32.xlu0 %v786_v5, %s9554_s24 }
 0x5d0   :  { %1193 = vrot.lane.b32.xlu0 %v786_v5, %s9552_s26 }
 0x5fa   :  { %v378_v6 = vpop.xlane.xlu1 %377 }
 0x5fb   :  { %7717 = vrcp.f32 %v378_v6 }
 0x5fe   :  { %v490_v7 = vpop.xlane.xlu0 %489 }
 0x5ff   :  { %7719 = vrcp.f32 %v490_v7 }
 0x605   :  { %v7718_v8 = vpop.eup %7717 }
 0x606   :  { %v380_v9 = vmul.f32 %v7718_v8, %v7702_v38  ;;  %v608_v15 = vpop.xlane.xlu1 %607 }
 0x607   :  { %7721 = vrcp.f32 %v608_v15 }
 0x608   :  { %v381_v14 = vpack.c.bf16 %v380_v9, %v380_v9 }
 0x609   :  { %v7720_v3 = vpop.eup %7719 }
 0x60a   :  { %7046 = vmatmul.mubr.msk.bf16.vlgmr.msra.gmra.mrb[8].mxu1 %vm369_vm9, %v381_v14  ;;  %v492_v17 = vmul.f32 %v7720_v3, %v7704_v42  ;;  %v613_v20 = vpop.permute.xlu1 %612 }
 0x60b   :  { %7057 = vmatprep.mubr.msk.bf16.mxu1 %vm7887_vm5, %v7886_v10  ;;  %v618_v25 = vsel %vm385_vm7, %v613_v20, 0 }
 0x60c   :  { %v493_v23 = vpack.c.bf16 %v492_v17, %v492_v17  ;;  %v7534_v17 = vld [vmem:[%s9531_s6 + $0x8] sm:$0xff]  }
 0x60e   :  { %v725_v16 = vpop.xlane.xlu0 %724  ;;  %v730_v27 = vpop.permute.xlu1 %729 }
 0x60f   :  { %7723 = vrcp.f32 %v725_v16  ;;  %v735_v30 = vsel %vm385_vm7, %v730_v27, 0  ;;  %v7533_v16 = vld [vmem:[%s9531_s6] sm:$0xff]  }
 0x610   :  { %7134 = vmatpush3.bf16.msra.mxu0 %v7533_v16  ;;  %v7555_v16 = vld [vmem:[%s9537_s12 + $0x58] sm:$0xff]  }
 0x611   :  { %v7722_v24 = vpop.eup %7721  ;;  %7135 = vmatprep.subr.bf16.mxu0 %v7886_v10 }
 0x612   :  { %v496_v18 = vpop.permute.xlu0 %495  ;;  %v610_v26 = vmul.f32 %v7722_v24, %v8176_v12  ;;  %v7535_v24 = vld [vmem:[%s9531_s6 + $0x10] sm:$0xff]  }
 0x613   :  { %v501_v19 = vsel %vm385_vm7, %v496_v18, 0 }
 0x614   :  { %7056 = vmatpush3.bf16.msra.mxu1 %v501_v19  ;;  %v611_v28 = vpack.c.bf16 %v610_v26, %v610_v26  ;;  %7136 = vmatpush3.bf16.msra.mxu0 %v7534_v17  ;;  %v7556_v17 = vld [vmem:[%s9537_s12 + $0x18] sm:$0xff]  }
 0x615   :  { %7067 = vmatprep.subr.bf16.mxu1 %v7886_v10  ;;  %7137 = vmatprep.subr.bf16.mxu0 %v7886_v10 }
 0x617   :  { %7058 = vmatmul.mubr.msk.bf16.vlgmr.msra.gmra.mrb[12].mxu1 %vm369_vm9, %v493_v23 }
 0x618   :  { %7068 = vmatpush3.bf16.msra.mxu1 %v618_v25  ;;  %7069 = vmatprep.mubr.msk.bf16.mxu1 %vm7887_vm5, %v7886_v10  ;;  %v7536_v25 = vld [vmem:[%s9531_s6 + $0x18] sm:$0xff]  }
 0x619   :  { %7079 = vmatprep.subr.bf16.mxu1 %v7886_v10  ;;  %v7724_v29 = vpop.eup %7723  ;;  %7138 = vmatpush3.bf16.msra.mxu0 %v7535_v24 }
 0x61a   :  { %v727_v31 = vmul.f32 %v7724_v29, %v8180_v46  ;;  %7139 = vmatprep.subr.bf16.mxu0 %v7886_v10 }
 0x61c   :  { %v728_v32 = vpack.c.bf16 %v727_v31, %v727_v31 }
 0x61d   :  { %7140 = vmatpush3.bf16.msra.mxu0 %v7536_v25 }
 0x61f   :  { %7070 = vmatmul.mubr.msk.bf16.vlgmr.msra.gmra.mrb[16].mxu1 %vm369_vm9, %v611_v28 }
 0x620   :  { %7080 = vmatpush3.bf16.msra.mxu1 %v735_v30  ;;  %7081 = vmatprep.mubr.msk.bf16.mxu1 %vm7887_vm5, %v7886_v10 }
 0x621   :  { %7091 = vmatprep.subr.bf16.mxu1 %v7886_v10 }
 0x627   :  { %7082 = vmatmul.mubr.msk.bf16.vlgmr.msra.gmra.mrb[20].mxu1 %vm369_vm9, %v728_v32 }
 0x628   :  { %7092 = vmatpush3.bf16.msra.mxu1 %v853_v33  ;;  %7093 = vmatprep.mubr.msk.bf16.mxu1 %vm7887_vm5, %v7886_v10 }
 0x629   :  { %7103 = vmatprep.subr.bf16.mxu1 %v7886_v10 }
 0x63f   :  { %v845_v34 = vpop.xlane.xlu1 %844 }
 0x640   :  { %7725 = vrcp.f32 %v845_v34 }
 0x643   :  { %v956_v35 = vpop.xlane.xlu1 %955  ;;  %v1073_v38 = vpop.xlane.xlu0 %1072 }
 0x644   :  { %7727 = vrcp.f32 %v956_v35 }
 0x645   :  { %7729 = vrcp.f32 %v1073_v38 }
 0x647   :  { %v962_v42 = vpop.permute.xlu0 %961  ;;  %v1189_v45 = vpop.xlane.xlu1 %1188 }
 0x648   :  { %v967_v39 = vsel %vm385_vm7, %v962_v42, 0  ;;  %7731 = vrcp.f32 %v1189_v45 }
 0x64a   :  { %v7726_v40 = vpop.eup %7725 }
 0x64b   :  { %v847_v41 = vmul.f32 %v7726_v40, %v8191_v60  ;;  %v1078_v11 = vpop.permute.xlu1 %1077  ;;  %v1194_v50 = vpop.permute.xlu0 %1193 }
 0x64c   :  { %v1083_v48 = vsel %vm385_vm7, %v1078_v11, 0  ;;  %v1199_v53 = vsel %vm385_vm7, %v1194_v50, 0 }
 0x64d   :  { %v848_v43 = vpack.c.bf16 %v847_v41, %v847_v41 }
 0x64e   :  { %v7728_v44 = vpop.eup %7727 }
 0x64f   :  { %7094 = vmatmul.mubr.msk.bf16.vlgmr.msra.gmra.mrb[24].mxu1 %vm369_vm9, %v848_v43  ;;  %v958_v12 = vmul.f32 %v7728_v44, %v8193_v13  ;;  %v7730_v47 = vpop.eup %7729 }
 0x650   :  { %7104 = vmatpush3.bf16.msra.mxu1 %v967_v39  ;;  %7105 = vmatprep.mubr.msk.bf16.mxu1 %vm7887_vm5, %v7886_v10  ;;  %v1075_v49 = vmul.f32 %v7730_v47, %v8197_v62  ;;  %v6363_v39 = vld [vmem:[%s9532_s7] ss:$0 sm:$0xff] }
 0x651   :  { %7115 = vmatprep.subr.bf16.mxu1 %v7886_v10  ;;  %v959_v46 = vpack.c.bf16 %v958_v12, %v958_v12 }
 0x652   :  { %v1076_v51 = vpack.c.bf16 %v1075_v49, %v1075_v49  ;;  %v7732_v52 = vpop.eup %7731 }
 0x653   :  { %v1191_v54 = vmul.f32 %v7732_v52, %v8203_v1 }
 0x655   :  { %v1192_v55 = vpack.c.bf16 %v1191_v54, %v1191_v54 }
 0x657   :  { %7106 = vmatmul.mubr.msk.bf16.vlgmr.msra.gmra.mrb[28].mxu1 %vm369_vm9, %v959_v46 }
 0x658   :  { %7116 = vmatpush3.bf16.msra.mxu1 %v1083_v48  ;;  %7117 = vmatprep.mubr.msk.bf16.mxu1 %vm7887_vm5, %v7886_v10 }
 0x659   :  { %7127 = vmatprep.subr.bf16.mxu1 %v7886_v10 }
 0x65f   :  { %7118 = vmatmul.mubr.msk.bf16.vlgmr.msra.gmra.mrb[32].mxu1 %vm369_vm9, %v1076_v51 }
 0x660   :  { %7128 = vmatpush3.bf16.msra.mxu1 %v1199_v53  ;;  %7129 = vmatprep.mubr.msk.bf16.mxu1 %vm7887_vm5, %v7886_v10 }
 0x667   :  { %7130 = vmatmul.mubr.msk.bf16.vlgmr.msra.gmra.mrb[36].mxu1 %vm369_vm9, %v1192_v55 }
 0x668   :  { %1474 = vmatprep.mubr.bf16.mxu1 %v7885_v2 }
 0x6dd   :  { %v423_v56 = vpop.f32.mrb[8].mxu1 }
 0x6de   :  { %429 = vst.msk [vmem:[#allocation2] sm:$0xff] %vm321_vm6, %v423_v56  ;;  %v7047_v57 = vpop.f32.mrb[9].mxu1 }
 0x6df   :  { %v426_v58 = vpop.f32.mrb[10].mxu1 }
 0x6e0   :  { %v7048_v59 = vpop.f32.mrb[11].mxu1 }
 0x6ea   :  { %v537_v60 = vpop.f32.mrb[12].mxu1 }
 0x6eb   :  { %544 = vrot.lane.b32.xlu0 %v537_v60, %s9548_s25  ;;  %v7059_v13 = vpop.f32.mrb[13].mxu1 }
 0x6ec   :  { %v540_v61 = vpop.f32.mrb[14].mxu1 }
 0x6ed   :  { %v7060_v62 = vpop.f32.mrb[15].mxu1  ;;  %v7539_v61 = vld [vmem:[%s9535_s10 + $0x4] ss:$8 sps:$4 sm:$0xff]  }
 0x6ee   :  { %v7537_v62 = vld [vmem:[%s9535_s10] ss:$8 sps:$4 sm:$0xff]   ;;  %1442 = vmatprep.subr.bf16.mxu1 %v7539_v61 }
 0x6ef   :  { %1443 = vmatpush1.bf16.msra.mxu1 %v7537_v62 }
 0x6f2   :  { %v654_v63 = vpop.f32.mrb[16].mxu1 }
 0x6f3   :  { %661 = vrot.lane.b32.xlu0 %v654_v63, %s9550_s23  ;;  %v7071_v0 = vpop.f32.mrb[17].mxu1  ;;  %v7542_v63 = vld [vmem:[%s9535_s10 + $0x14] ss:$8 sps:$4 sm:$0xff]  }
 0x6f4   :  { %v657_v1 = vpop.f32.mrb[18].mxu1  ;;  %v7540_v0 = vld [vmem:[%s9535_s10 + $0x10] ss:$8 sps:$4 sm:$0xff]   ;;  %1444 = vmatprep.subr.bf16.mxu1 %v7542_v63  ;;  %v6380_v63 = vld [vmem:[%s9569_s1] ss:$0 sm:$0xff] }
 0x6f5   :  { %v7072_v4 = vpop.f32.mrb[19].mxu1  ;;  %1445 = vmatpush1.bf16.msra.mxu1 %v7540_v0  ;;  %v7545_v1 = vld [vmem:[%s9535_s10 + $0x24] ss:$8 sps:$4 sm:$0xff]  }
 0x6f6   :  { %v7543_v4 = vld [vmem:[%s9535_s10 + $0x20] ss:$8 sps:$4 sm:$0xff]   ;;  %1446 = vmatprep.subr.bf16.mxu1 %v7545_v1 }
 0x6f9   :  { %1447 = vmatpush1.bf16.msra.mxu1 %v7543_v4 }
 0x6fa   :  { %v771_v5 = vpop.f32.mrb[20].mxu1 }
 0x6fb   :  { %778 = vrot.lane.b32.xlu0 %v771_v5, %s7890_s2  ;;  %v7083_v6 = vpop.f32.mrb[21].mxu1  ;;  %v7546_v5 = vld [vmem:[%s9535_s10 + $0x30] ss:$8 sps:$4 sm:$0xff]  }
 0x6fc   :  { %v774_v7 = vpop.f32.mrb[22].mxu1  ;;  %v7548_v6 = vld [vmem:[%s9535_s10 + $0x34] ss:$8 sps:$4 sm:$0xff]  }
 0x6fd   :  { %v7084_v8 = vpop.f32.mrb[23].mxu1  ;;  %1448 = vmatprep.subr.bf16.mxu1 %v7548_v6  ;;  %v7549_v7 = vld [vmem:[%s9537_s12 + $0x40] sm:$0xff]  }
 0x6fe   :  { %1449 = vmatpush1.bf16.msra.mxu1 %v7546_v5  ;;  %v7550_v8 = vld [vmem:[%s9537_s12] sm:$0xff]   ;;  %6816 = vmatprep.subr.bf16.mxu0 %v7549_v7 }
 0x722   :  { %v889_v9 = vpop.f32.mrb[24].mxu1 }
 0x723   :  { %895 = vst.msk [vmem:[#allocation2 + $0x8] sm:$0xff] %vm321_vm6, %v889_v9  ;;  %v7095_v14 = vpop.f32.mrb[25].mxu1  ;;  %v7551_v9 = vld [vmem:[%s9537_s12 + $0x48] sm:$0xff]  }
 0x724   :  { %v892_v15 = vpop.f32.mrb[26].mxu1  ;;  %v7552_v14 = vld [vmem:[%s9537_s12 + $0x8] sm:$0xff]  }
 0x725   :  { %v7096_v3 = vpop.f32.mrb[27].mxu1  ;;  %v7553_v15 = vld [vmem:[%s9537_s12 + $0x50] sm:$0xff]  }
 0x726   :  { %v7554_v3 = vld [vmem:[%s9537_s12 + $0x10] sm:$0xff]  }
 0x72a   :  { %v1003_v18 = vpop.f32.mrb[28].mxu1 }
 0x72b   :  { %1010 = vrot.lane.b32.xlu1 %v1003_v18, %s9548_s25  ;;  %v7107_v19 = vpop.f32.mrb[29].mxu1  ;;  %v7557_v18 = vld [vmem:[%s9537_s12 + $0x60] sm:$0xff]   ;;  %s9571_s25 = smov 16  }
 0x72c   :  { %v1006_v20 = vpop.f32.mrb[30].mxu1  ;;  %v7558_v19 = vld [vmem:[%s9537_s12 + $0x20] sm:$0xff]  }
 0x72d   :  { %v7108_v23 = vpop.f32.mrb[31].mxu1  ;;  %v7559_v20 = vld [vmem:[%s9537_s12 + $0x68] sm:$0xff]  }
 0x732   :  { %v1119_v26 = vpop.f32.mrb[32].mxu1 }
 0x733   :  { %1126 = vrot.lane.b32.xlu1 %v1119_v26, %s9550_s23  ;;  %v7119_v27 = vpop.f32.mrb[33].mxu1 }
 0x734   :  { %v1122_v28 = vpop.f32.mrb[34].mxu1 }
 0x735   :  { %v7120_v29 = vpop.f32.mrb[35].mxu1 }
 0x73a   :  { %v1235_v30 = vpop.f32.mrb[36].mxu1 }
 0x73b   :  { %1242 = vrot.lane.b32.xlu1 %v1235_v30, %s7890_s2  ;;  %v7131_v31 = vpop.f32.mrb[37].mxu1 }
 0x73c   :  { %v1238_v32 = vpop.f32.mrb[38].mxu1  ;;  %v6369_v31 = vld [vmem:[%s9533_s8] ss:$0 sm:$0xff] }
 0x73d   :  { %v7132_v33 = vpop.f32.mrb[39].mxu1 }
 0x75d   :  { %v545_v34 = vpop.permute.xlu0 %544 }
 0x75e   :  { %548 = vst.msk [vmem:[#allocation2] sm:$0xff] %vm547_vm10, %v545_v34 }
 0x765   :  { %v662_v35 = vpop.permute.xlu0 %661 }
 0x766   :  { %665 = vst.msk [vmem:[#allocation2] sm:$0xff] %vm664_vm11, %v662_v35  ;;  %v6370_v35 = vld [vmem:[%s9534_s9] ss:$0 sm:$0xff] }
 0x76d   :  { %v779_v38 = vpop.permute.xlu0 %778 }
 0x76e   :  { %782 = vst.msk [vmem:[#allocation2] sm:$0xff] %vm781_vm12, %v779_v38 }
 0x775   :  { %v1246_v43 = vld [vmem:[#allocation2] sm:$0xff] }
 0x79d   :  { %v1011_v40 = vpop.permute.xlu1 %1010 }
 0x79e   :  { %1013 = vst.msk [vmem:[#allocation2 + $0x8] sm:$0xff] %vm547_vm10, %v1011_v40 }
 0x7a5   :  { %v1127_v41 = vpop.permute.xlu1 %1126 }
 0x7a6   :  { %1129 = vst.msk [vmem:[#allocation2 + $0x8] sm:$0xff] %vm664_vm11, %v1127_v41 }
 0x7ad   :  { %v1243_v42 = vpop.permute.xlu1 %1242 }
 0x7ae   :  { %1245 = vst.msk [vmem:[#allocation2 + $0x8] sm:$0xff] %vm781_vm12, %v1243_v42 }
 0x7b5   :  { %v1247_v44 = vld [vmem:[#allocation2 + $0x8] sm:$0xff] }
 0x7b6   :  { %v1248_v45 = vpack.c.bf16 %v1247_v44, %v1246_v43  ;;  %v7560_v43 = vld [vmem:[%s9537_s12 + $0x28] sm:$0xff]   ;;  %v7561_v44 = vld [vmem:[%s9537_s12 + $0x70] sm:$0xff]  }
 0x7b8   :  { %7142 = vmatmul.mubr.msk.bf16.vlgmr.msra.gmra.mrb[32].mxu0 %vm175_vm4, %v1248_v45  ;;  %v7562_v45 = vld [vmem:[%s9537_s12 + $0x30] sm:$0xff]  }
 0x7b9   :  { %6817 = vmatpush3.bf16.msra.mxu0 %v7550_v8 }
 0x7ba   :  { %6818 = vmatprep.subr.bf16.mxu0 %v7551_v9 }
 0x7bd   :  { %6819 = vmatpush3.bf16.msra.mxu0 %v7552_v14 }
 0x7be   :  { %6820 = vmatprep.subr.bf16.mxu0 %v7553_v15 }
 0x7c1   :  { %6821 = vmatpush3.bf16.msra.mxu0 %v7554_v3 }
 0x7c2   :  { %6822 = vmatprep.subr.bf16.mxu0 %v7555_v16 }
 0x7c5   :  { %6823 = vmatpush3.bf16.msra.mxu0 %v7556_v17 }
 0x7c6   :  { %6824 = vmatprep.subr.bf16.mxu0 %v7557_v18 }
 0x7c9   :  { %6825 = vmatpush3.bf16.msra.mxu0 %v7558_v19 }
 0x7ca   :  { %6826 = vmatprep.subr.bf16.mxu0 %v7559_v20 }
 0x7cd   :  { %6827 = vmatpush3.bf16.msra.mxu0 %v7560_v43 }
 0x7ce   :  { %6828 = vmatprep.subr.bf16.mxu0 %v7561_v44  ;;  %v6399_v44 = vld [vmem:[%s9528_s3 + $0x1] ss:$0 sm:$0xff] }
 0x7d1   :  { %6829 = vmatpush3.bf16.msra.mxu0 %v7562_v45 }
 0x88b   :  { %v1325_v12 = vpop.f32.mrb[32].mxu0 }
 0x88c   :  { %v1326_v11 = vadd.f32 %v6363_v39, %v1325_v12  ;;  %v7143_v46 = vpop.f32.mrb[33].mxu0  ;;  %v7564_v12 = vld [vmem:[%s9537_s12 + $0x38] sm:$0xff]  }
 0x88d   :  { %v1328_v47 = vpop.f32.mrb[34].mxu0  ;;  %v1387_v46 = vld [vmem:[%s9536_s11] sm:$0x3] }
 0x88e   :  { %v8288_v48 = vadd.f32 %v1326_v11, %v8029_v21  ;;  %v1329_v49 = vadd.f32 %v6363_v39, %v1328_v47  ;;  %v7144_v50 = vpop.f32.mrb[35].mxu0  ;;  %v7563_v39 = vld [vmem:[%s9537_s12 + $0x78] sm:$0xff]   ;;  %v8383_v11 = vsub.s32 0, %v8139_v36  ;;  %v8389_v47 = vsub.s32 1, %v8139_v36 }
 0x88f   :  { %6830 = vmatprep.subr.bf16.mxu0 %v7563_v39 }
 0x890   :  { %v8291_v51 = vadd.f32 %v1329_v49, %v8031_v22  ;;  %v1336_v52 = vsel %vm175_vm4, %v8288_v48, 0.0  ;;  %6831 = vmatpush3.bf16.msra.mxu0 %v7564_v12  ;;  %v1392_v49 = vrot.slane %v1387_v46, %v8383_v11  ;;  %v1396_v50 = vrot.slane %v1387_v46, %v8389_v47 }
 0x891   :  { %1337 = vadd.xlane.f32.xlu0 %v1336_v52  ;;  %7157 = vmatprep.subr.bf16.mxu0 %v7886_v10 }
 0x892   :  { %v1339_v53 = vsel %vm175_vm4, %v8291_v51, 0.0 }
 0x893   :  { %1340 = vadd.xlane.f32.xlu1 %v1339_v53 }
 0x91e   :  { %v1338_v54 = vpop.xlane.xlu0 %1337 }
 0x91f   :  { %v1342_v55 = vmul.f32 0.015625, %v1338_v54 }
 0x920   :  { %v1341_v56 = vpop.xlane.xlu1 %1340 }
 0x921   :  { %v1344_v57 = vsub.f32 %v8288_v48, %v1342_v55  ;;  %v1343_v21 = vmul.f32 0.015625, %v1341_v56 }
 0x923   :  { %v1345_v58 = vsub.f32 %v8291_v51, %v1343_v21  ;;  %v1346_v59 = vmul.f32 %v1344_v57, %v1344_v57 }
 0x925   :  { %v1348_v22 = vsel %vm175_vm4, %v1346_v59, 0.0  ;;  %v1347_v60 = vmul.f32 %v1345_v58, %v1345_v58 }
 0x926   :  { %1349 = vadd.xlane.f32.xlu0 %v1348_v22 }
 0x927   :  { %v1351_v13 = vsel %vm175_vm4, %v1347_v60, 0.0 }
 0x92a   :  { %1352 = vadd.xlane.f32.xlu0 %v1351_v13 }
 0x9b3   :  { %v1350_v23 = vpop.xlane.xlu0 %1349 }
 0x9b4   :  { %v1354_v24 = vmul.f32 0.015625, %v1350_v23 }
 0x9b6   :  { %v1356_v25 = vadd.f32 1e-05, %v1354_v24 }
 0x9b7   :  { %v1353_v26 = vpop.xlane.xlu0 %1352 }
 0x9b8   :  { %7733 = vrsqrt.f32 %v1356_v25  ;;  %v1355_v27 = vmul.f32 0.015625, %v1353_v26  ;;  %v7567_v26 = vld [vmem:[%s9530_s5 + $0x44] ss:$8 sps:$4 sm:$0xff]  }
 0x9b9   :  { %1768 = vmatprep.subr.bf16.mxu1 %v7567_v26 }
 0x9ba   :  { %v1357_v28 = vadd.f32 1e-05, %v1355_v27  ;;  %v7565_v27 = vld [vmem:[%s9530_s5 + $0x40] ss:$8 sps:$4 sm:$0xff]  }
 0x9bc   :  { %7735 = vrsqrt.f32 %v1357_v28  ;;  %v7570_v28 = vld [vmem:[%s9530_s5 + $0x54] ss:$8 sps:$4 sm:$0xff]  }
 0x9c2   :  { %v7734_v29 = vpop.eup %7733 }
 0x9c3   :  { %v1360_v30 = vmul.f32 %v7734_v29, %v1344_v57  ;;  %v7568_v29 = vld [vmem:[%s9530_s5 + $0x50] ss:$8 sps:$4 sm:$0xff]  }
 0x9c5   :  { %v1368_v33 = vmul.f32 %v6369_v31, %v1360_v30  ;;  %v7573_v30 = vld [vmem:[%s9530_s5 + $0x64] ss:$8 sps:$4 sm:$0xff]  }
 0x9c6   :  { %v7736_v32 = vpop.eup %7735 }
 0x9c7   :  { %v1361_v34 = vmul.f32 %v7736_v32, %v1345_v58  ;;  %v1376_v40 = vadd.f32 %v6370_v35, %v1368_v33  ;;  %v7574_v32 = vld [vmem:[%s9530_s5 + $0x70] ss:$8 sps:$4 sm:$0xff]   ;;  %v7576_v33 = vld [vmem:[%s9530_s5 + $0x74] ss:$8 sps:$4 sm:$0xff]  }
 0x9c9   :  { %v1369_v38 = vmul.f32 %v6369_v31, %v1361_v34  ;;  %v7571_v31 = vld [vmem:[%s9530_s5 + $0x60] ss:$8 sps:$4 sm:$0xff]  }
 0x9cb   :  { %v1377_v41 = vadd.f32 %v6370_v35, %v1369_v38 }
 0x9cd   :  { %v1378_v42 = vpack.c.bf16 %v1377_v41, %v1376_v40 }
 0x9cf   :  { %6379 = vmatmul.mubr.msk.bf16.vlgmr.msra.gmra.mrb[40].mxu1 %vm175_vm4, %v1378_v42 }
 0x9d0   :  { %1800 = vmatprep.mubr.bf16.mxu1 %v7885_v2  ;;  %1769 = vmatpush1.bf16.msra.mxu1 %v7565_v27 }
 0x9d1   :  { %1770 = vmatprep.subr.bf16.mxu1 %v7570_v28 }
 0x9d4   :  { %1771 = vmatpush1.bf16.msra.mxu1 %v7568_v29 }
 0x9d5   :  { %1772 = vmatprep.subr.bf16.mxu1 %v7573_v30 }
 0x9d8   :  { %1773 = vmatpush1.bf16.msra.mxu1 %v7571_v31 }
 0x9d9   :  { %1774 = vmatprep.subr.bf16.mxu1 %v7576_v33 }
 0x9dc   :  { %1775 = vmatpush1.bf16.msra.mxu1 %v7574_v32 }
 0x9dd   :  { %7145 = vmatprep.subr.bf16.mxu1 %v7886_v10 }
 0xaa2   :  { %v1476_v52 = vpop.f32.mrb[40].mxu1 }
 0xaa3   :  { %v1477_v53 = vadd.f32 %v1476_v52, %v1392_v49  ;;  %v1478_v54 = vpop.f32.mrb[41].mxu1 }
 0xaa4   :  { %v1479_v55 = vadd.f32 %v1478_v54, %v1396_v50  ;;  %v1480_v56 = vpop.f32.mrb[42].mxu1 }
 0xaa5   :  { %v1481_v57 = vadd.f32 %v1480_v56, %v1392_v49  ;;  %v1482_v21 = vpop.f32.mrb[43].mxu1  ;;  %v1485_v59 = vmax.f32 %v1477_v53, 0.0  ;;  %v6400_v49 = vld [vmem:[%s9529_s4 + $0x1] ss:$0 sm:$0xff] }
 0xaa6   :  { %v1483_v58 = vadd.f32 %v1482_v21, %v1396_v50  ;;  %v1486_v60 = vmax.f32 %v1479_v55, 0.0 }
 0xaa7   :  { %v1487_v22 = vmax.f32 %v1481_v57, 0.0 }
 0xaa8   :  { %v1488_v13 = vmax.f32 %v1483_v58, 0.0 }
 0xaa9   :  { %v1489_v61 = vpack.c.bf16 %v1487_v22, %v1485_v59 }
 0xaaa   :  { %v1490_v62 = vpack.c.bf16 %v1488_v13, %v1486_v60 }
 0xaac   :  { %1658 = vmatprep.mubr.bf16.mxu0 %v1490_v62 }
 0xaad   :  { %1659 = vmatmul.mubr.bf16.vlgmr.msra.gmra.mrb[36].mxu0 %v1489_v61 }
 0xaae   :  { %7159 = vmatprep.mubr.msk.bf16.mxu0 %vm7887_vm5, %v7886_v10 }
 0xb80   :  { %v6832_v36 = vpop.f32.mrb[36].mxu0 }
 0xb81   :  { %v6833_v0 = vpop.f32.mrb[37].mxu0 }
 0xb82   :  { %v6834_v1 = vadd.f32 %v6833_v0, %v6832_v36  ;;  %v6835_v4 = vpop.f32.mrb[38].mxu0 }
 0xb83   :  { %v6836_v5 = vpop.f32.mrb[39].mxu0 }
 0xb84   :  { %v1661_v6 = vadd.f32 %v6834_v1, %v6380_v63  ;;  %v6837_v7 = vadd.f32 %v6836_v5, %v6835_v4 }
 0xb86   :  { %v8399_v8 = vadd.f32 %v1661_v6, %v8288_v48  ;;  %v1664_v9 = vadd.f32 %v6837_v7, %v6380_v63 }
 0xb88   :  { %v8402_v14 = vadd.f32 %v1664_v9, %v8291_v51  ;;  %v1673_v15 = vsel %vm175_vm4, %v8399_v8, 0.0 }
 0xb89   :  { %1674 = vadd.xlane.f32.xlu1 %v1673_v15 }
 0xb8a   :  { %v1676_v3 = vsel %vm175_vm4, %v8402_v14, 0.0 }
 0xb8b   :  { %1677 = vadd.xlane.f32.xlu0 %v1676_v3 }
 0xc16   :  { %v1675_v16 = vpop.xlane.xlu1 %1674 }
 0xc17   :  { %v1679_v17 = vmul.f32 0.015625, %v1675_v16 }
 0xc18   :  { %v1678_v18 = vpop.xlane.xlu0 %1677 }
 0xc19   :  { %v1681_v19 = vsub.f32 %v8399_v8, %v1679_v17  ;;  %v1680_v20 = vmul.f32 0.015625, %v1678_v18 }
 0xc1b   :  { %v1682_v48 = vsub.f32 %v8402_v14, %v1680_v20  ;;  %v1683_v23 = vmul.f32 %v1681_v19, %v1681_v19 }
 0xc1d   :  { %v1685_v51 = vsel %vm175_vm4, %v1683_v23, 0.0  ;;  %v1684_v24 = vmul.f32 %v1682_v48, %v1682_v48 }
 0xc1e   :  { %1686 = vadd.xlane.f32.xlu1 %v1685_v51 }
 0xc1f   :  { %v1688_v25 = vsel %vm175_vm4, %v1684_v24, 0.0 }
 0xc20   :  { %1689 = vadd.xlane.f32.xlu0 %v1688_v25 }
 0xcab   :  { %v1687_v34 = vpop.xlane.xlu1 %1686 }
 0xcac   :  { %v1691_v35 = vmul.f32 0.015625, %v1687_v34 }
 0xcad   :  { %v1690_v38 = vpop.xlane.xlu0 %1689 }
 0xcae   :  { %v1693_v40 = vadd.f32 1e-05, %v1691_v35  ;;  %v1692_v41 = vmul.f32 0.015625, %v1690_v38 }
 0xcb0   :  { %7737 = vrsqrt.f32 %v1693_v40  ;;  %v1694_v42 = vadd.f32 1e-05, %v1692_v41 }
 0xcb2   :  { %7739 = vrsqrt.f32 %v1694_v42 }
 0xcba   :  { %v7738_v43 = vpop.eup %7737 }
 0xcbb   :  { %v1697_v45 = vmul.f32 %v7738_v43, %v1681_v19 }
 0xcbc   :  { %v7740_v39 = vpop.eup %7739 }
 0xcbd   :  { %v1705_v12 = vmul.f32 %v6399_v44, %v1697_v45  ;;  %v1698_v46 = vmul.f32 %v7740_v39, %v1682_v48 }
 0xcbf   :  { %v1706_v50 = vmul.f32 %v6399_v44, %v1698_v46  ;;  %v1713_v52 = vadd.f32 %v6400_v49, %v1705_v12 }
 0xcc1   :  { %v1714_v53 = vadd.f32 %v6400_v49, %v1706_v50 }
 0xcc3   :  { %v1715_v54 = vpack.c.bf16 %v1714_v53, %v1713_v52 }
 0xcc5   :  { %6417 = vmatmul.mubr.msk.bf16.vlgmr.msra.gmra.mrb[44].mxu1 %vm175_vm4, %v1715_v54 }
 0xcc6   :  { %7147 = vmatprep.mubr.msk.bf16.mxu1 %vm7887_vm5, %v7886_v10 }
 0xd98   :  { %v1802_v55 = vpop.f32.mrb[44].mxu1 }
 0xd99   :  { %v1811_v56 = vmul.f32 0.25, %v1802_v55  ;;  %v1813_v57 = vpack.c.bf16 %v1802_v55, %v1802_v55  ;;  %v1804_v21 = vpop.f32.mrb[45].mxu1 }
 0xd9a   :  { %v1806_v58 = vpop.f32.mrb[46].mxu1  ;;  %v8466_v4 = vpack.c.bf16 %v1804_v21, %v1804_v21 }
 0xd9b   :  { %1927 = vrot.lane.b32.xlu0 %v1813_v57, %s7890_s2  ;;  %1816 = vrot.lane.b32.xlu1 %v1813_v57, %s9558_s21  ;;  %v8448_v59 = vpop.f32.mrb[47].mxu1  ;;  %v1812_v22 = vpack.c.bf16 %v1811_v56, %v1811_v56  ;;  %v2276_v60 = vpack.c.bf16 %v1806_v58, %v1806_v58  ;;  %v2274_v13 = vmul.f32 0.25, %v1806_v58 }
 0xd9c   :  { %v1881_v7 = vsel %vm385_vm7, %v8466_v4, 0 }
 0xd9d   :  { %v2275_v61 = vpack.c.bf16 %v2274_v13, %v2274_v13 }
 0xd9f   :  { %2042 = vrot.lane.b32.xlu0 %v1812_v22, %s9556_s22  ;;  %1925 = vrot.lane.b32.xlu1 %v1812_v22, %s9554_s24 }
 0xda3   :  { %2158 = vrot.lane.b32.xlu0 %v1812_v22, %s9552_s26  ;;  %2044 = vrot.lane.b32.xlu1 %v1813_v57, %s9570_s20 }
 0xda7   :  { %2160 = vrot.lane.b32.xlu1 %v1813_v57, %s9571_s25  ;;  %2390 = vrot.lane.b32.xlu0 %v2276_v60, %s7890_s2 }
 0xdab   :  { %2507 = vrot.lane.b32.xlu0 %v2276_v60, %s9570_s20  ;;  %2279 = vrot.lane.b32.xlu1 %v2276_v60, %s9558_s21 }
 0xdaf   :  { %2623 = vrot.lane.b32.xlu0 %v2276_v60, %s9571_s25  ;;  %2388 = vrot.lane.b32.xlu1 %v2275_v61, %s9554_s24 }
 0xdb3   :  { %2505 = vrot.lane.b32.xlu1 %v2275_v61, %s9556_s22 }
 0xdb7   :  { %2621 = vrot.lane.b32.xlu1 %v2275_v61, %s9552_s26 }
 0xe0d   :  { %v1928_v62 = vpop.permute.xlu0 %1927  ;;  %v1817_v36 = vpop.permute.xlu1 %1816 }
 0xe0e   :  { %v1933_v63 = vsel %vm321_vm6, %v1928_v62, 0  ;;  %v1822_v0 = vsel %vm321_vm6, %v1817_v36, 0 }
 0xe0f   :  { %7146 = vmatpush3.bf16.xpose.msra.mxu1 %v1822_v0  ;;  %7158 = vmatpush3.bf16.xpose.msra.mxu0 %v1933_v63 }
 0xe10   :  { %7151 = vmatprep.subr.bf16.mxu1 %v7886_v10  ;;  %7169 = vmatprep.subr.bf16.mxu0 %v7886_v10 }
 0xe11   :  { %v1926_v1 = vpop.permute.xlu1 %1925  ;;  %v2043_v15 = vpop.permute.xlu0 %2042 }
 0xe15   :  { %v2045_v5 = vpop.permute.xlu1 %2044  ;;  %v2159_v17 = vpop.permute.xlu0 %2158 }
 0xe16   :  { %v2050_v6 = vsel %vm321_vm6, %v2045_v5, 0  ;;  %7148 = vmatmul.mubr.msk.bf16.vlgmr.msra.gmra.mrb[48].mxu1 %vm321_vm6, %v1812_v22  ;;  %7160 = vmatmul.mubr.msk.bf16.vlgmr.msra.gmra.mrb[40].mxu0 %vm321_vm6, %v1926_v1 }
 0xe17   :  { %7152 = vmatpush3.bf16.msra.mxu1 %v1881_v7  ;;  %7170 = vmatpush3.bf16.xpose.msra.mxu0 %v2050_v6 }
 0xe18   :  { %7171 = vmatprep.mubr.msk.bf16.mxu0 %vm7887_vm5, %v7886_v10  ;;  %7181 = vmatprep.subr.bf16.mxu0 %v7886_v10 }
 0xe19   :  { %7153 = vmatprep.mubr.msk.bf16.mxu1 %vm7887_vm5, %v7886_v10  ;;  %7163 = vmatprep.subr.bf16.mxu1 %v7886_v10  ;;  %v2161_v9 = vpop.permute.xlu1 %2160  ;;  %v2391_v19 = vpop.permute.xlu0 %2390 }
 0xe1a   :  { %v2166_v3 = vsel %vm321_vm6, %v2161_v9, 0  ;;  %v2396_v20 = vsel %vm321_vm6, %v2391_v19, 0 }
 0xe1d   :  { %v2280_v16 = vpop.permute.xlu1 %2279  ;;  %v2508_v48 = vpop.permute.xlu0 %2507 }
 0xe1e   :  { %7172 = vmatmul.mubr.msk.bf16.vlgmr.msra.gmra.mrb[44].mxu0 %vm321_vm6, %v2043_v15  ;;  %v2285_v18 = vsel %vm321_vm6, %v2280_v16, 0  ;;  %v2513_v51 = vsel %vm321_vm6, %v2508_v48, 0 }
 0xe1f   :  { %7182 = vmatpush3.bf16.xpose.msra.mxu0 %v2166_v3  ;;  %7183 = vmatprep.mubr.msk.bf16.mxu0 %vm7887_vm5, %v7886_v10 }
 0xe20   :  { %7193 = vmatprep.subr.bf16.mxu0 %v7886_v10 }
 0xe21   :  { %v2389_v23 = vpop.permute.xlu1 %2388  ;;  %v2624_v24 = vpop.permute.xlu0 %2623 }
 0xe22   :  { %v2629_v26 = vsel %vm321_vm6, %v2624_v24, 0 }
 0xe25   :  { %v2506_v25 = vpop.permute.xlu1 %2505 }
 0xe26   :  { %7184 = vmatmul.mubr.msk.bf16.vlgmr.msra.gmra.mrb[48].mxu0 %vm321_vm6, %v2159_v17 }
 0xe27   :  { %7194 = vmatpush3.bf16.xpose.msra.mxu0 %v2285_v18  ;;  %7195 = vmatprep.mubr.msk.bf16.mxu0 %vm7887_vm5, %v7886_v10 }
 0xe28   :  { %7205 = vmatprep.subr.bf16.mxu0 %v7886_v10 }
 0xe29   :  { %v2622_v27 = vpop.permute.xlu1 %2621 }
 0xe2e   :  { %7196 = vmatmul.mubr.msk.bf16.vlgmr.msra.gmra.mrb[52].mxu0 %vm321_vm6, %v2275_v61 }
 0xe2f   :  { %7206 = vmatpush3.bf16.xpose.msra.mxu0 %v2396_v20  ;;  %7207 = vmatprep.mubr.msk.bf16.mxu0 %vm7887_vm5, %v7886_v10 }
 0xe30   :  { %7217 = vmatprep.subr.bf16.mxu0 %v7886_v10 }
 0xe36   :  { %7208 = vmatmul.mubr.msk.bf16.vlgmr.msra.gmra.mrb[56].mxu0 %vm321_vm6, %v2389_v23 }
 0xe37   :  { %7218 = vmatpush3.bf16.xpose.msra.mxu0 %v2513_v51  ;;  %7219 = vmatprep.mubr.msk.bf16.mxu0 %vm7887_vm5, %v7886_v10 }
 0xe38   :  { %7229 = vmatprep.subr.bf16.mxu0 %v7886_v10 }
 0xe3e   :  { %7220 = vmatmul.mubr.msk.bf16.vlgmr.msra.gmra.mrb[60].mxu0 %vm321_vm6, %v2506_v25 }
 0xe3f   :  { %7230 = vmatpush3.bf16.xpose.msra.mxu0 %v2629_v26  ;;  %7231 = vmatprep.mubr.msk.bf16.mxu0 %vm7887_vm5, %v7886_v10 }
 0xe40   :  { %7241 = vmatprep.subr.bf16.mxu0 %v7886_v10 }
 0xe46   :  { %7232 = vmatmul.mubr.msk.bf16.vlgmr.msra.gmra.mrb[64].mxu0 %vm321_vm6, %v2622_v27 }
 0xe47   :  { %7249 = vmatprep.mubr.msk.bf16.mxu0 %vm7887_vm5, %v7886_v10 }
 0xee9   :  { %v1858_v28 = vpop.f32.mrb[48].mxu1  ;;  %v1969_v29 = vpop.f32.mrb[40].mxu0 }
 0xeea   :  { %v1864_v30 = vsel %vm8143_vm8, %v1858_v28, -1e+30  ;;  %v1975_v31 = vsel %vm8143_vm8, %v1969_v29, -1e+30  ;;  %v7149_v32 = vpop.f32.mrb[49].mxu1  ;;  %v7161_v33 = vpop.f32.mrb[41].mxu0 }
 0xeeb   :  { %v1861_v34 = vpop.f32.mrb[50].mxu1  ;;  %v1972_v35 = vpop.f32.mrb[42].mxu0  ;;  %v1976_v38 = vsel %vm369_vm9, %v1975_v31, -inf  ;;  %v1865_v40 = vsel %vm369_vm9, %v1864_v30, -inf }
 0xeec   :  { %v7162_v41 = vpop.f32.mrb[43].mxu0  ;;  %1977 = vmax.xlane.f32.xlu1 %v1976_v38  ;;  %1866 = vmax.xlane.f32.xlu0 %v1865_v40  ;;  %v7150_v42 = vpop.f32.mrb[51].mxu1 }
 0xef1   :  { %v2086_v43 = vpop.f32.mrb[44].mxu0 }
 0xef2   :  { %v2092_v44 = vsel %vm8143_vm8, %v2086_v43, -1e+30  ;;  %v7173_v45 = vpop.f32.mrb[45].mxu0 }
 0xef3   :  { %v2089_v39 = vpop.f32.mrb[46].mxu0  ;;  %v2093_v12 = vsel %vm369_vm9, %v2092_v44, -inf }
 0xef4   :  { %v7174_v46 = vpop.f32.mrb[47].mxu0  ;;  %2094 = vmax.xlane.f32.xlu0 %v2093_v12 }
 0xef9   :  { %v2202_v49 = vpop.f32.mrb[48].mxu0 }
 0xefa   :  { %v2208_v50 = vsel %vm8143_vm8, %v2202_v49, -1e+30  ;;  %v7185_v52 = vpop.f32.mrb[49].mxu0 }
 0xefb   :  { %v2205_v53 = vpop.f32.mrb[50].mxu0  ;;  %v2209_v54 = vsel %vm369_vm9, %v2208_v50, -inf }
 0xefc   :  { %v7186_v55 = vpop.f32.mrb[51].mxu0  ;;  %2210 = vmax.xlane.f32.xlu0 %v2209_v54 }
 0xf01   :  { %v2321_v56 = vpop.f32.mrb[52].mxu0 }
 0xf02   :  { %v8521_v57 = vsel %vm8143_vm8, %v2321_v56, -1e+30  ;;  %v7197_v21 = vpop.f32.mrb[53].mxu0 }
 0xf03   :  { %v2324_v58 = vpop.f32.mrb[54].mxu0  ;;  %v2328_v22 = vsel %vm369_vm9, %v8521_v57, -inf }
 0xf04   :  { %2329 = vmax.xlane.f32.xlu1 %v2328_v22  ;;  %v7198_v60 = vpop.f32.mrb[55].mxu0 }
 0xf09   :  { %v2432_v13 = vpop.f32.mrb[56].mxu0 }
 0xf0a   :  { %v2438_v61 = vsel %vm8143_vm8, %v2432_v13, -1e+30  ;;  %v7209_v62 = vpop.f32.mrb[57].mxu0 }
 0xf0b   :  { %v2435_v36 = vpop.f32.mrb[58].mxu0  ;;  %v2439_v63 = vsel %vm369_vm9, %v2438_v61, -inf  ;;  %v2277_v62 = vpack.c.bf16 %v8448_v59, %v8448_v59 }
 0xf0c   :  { %v7210_v0 = vpop.f32.mrb[59].mxu0  ;;  %2440 = vmax.xlane.f32.xlu0 %v2439_v63 }
 0xf11   :  { %v2549_v1 = vpop.f32.mrb[60].mxu0 }
 0xf12   :  { %v2555_v5 = vsel %vm8143_vm8, %v2549_v1, -1e+30  ;;  %v7221_v6 = vpop.f32.mrb[61].mxu0 }
 0xf13   :  { %v2552_v7 = vpop.f32.mrb[62].mxu0  ;;  %v2556_v9 = vsel %vm369_vm9, %v2555_v5, -inf }
 0xf14   :  { %2557 = vmax.xlane.f32.xlu1 %v2556_v9  ;;  %v7222_v15 = vpop.f32.mrb[63].mxu0 }
 0xf19   :  { %v2665_v3 = vpop.f32.mrb[64].mxu0 }
 0xf1a   :  { %v2671_v16 = vsel %vm8143_vm8, %v2665_v3, -1e+30  ;;  %v7233_v17 = vpop.f32.mrb[65].mxu0 }
 0xf1b   :  { %v2668_v18 = vpop.f32.mrb[66].mxu0  ;;  %v2672_v19 = vsel %vm369_vm9, %v2671_v16, -inf }
 0xf1c   :  { %v7234_v20 = vpop.f32.mrb[67].mxu0  ;;  %2673 = vmax.xlane.f32.xlu0 %v2672_v19 }
 0xf79   :  { %v1978_v48 = vpop.xlane.xlu1 %1977  ;;  %v1867_v23 = vpop.xlane.xlu0 %1866 }
 0xf7a   :  { %v1979_v51 = vsub.f32 %v1975_v31, %v1978_v48  ;;  %v1868_v24 = vsub.f32 %v1864_v30, %v1867_v23 }
 0xf7c   :  { %v1980_v25 = vmul.f32 1.442695, %v1979_v51  ;;  %v1869_v26 = vmul.f32 1.442695, %v1868_v24 }
 0xf7e   :  { %7741 = vpow2.f32 %v1980_v25 }
 0xf7f   :  { %7743 = vpow2.f32 %v1869_v26 }
 0xf81   :  { %v2095_v27 = vpop.xlane.xlu0 %2094 }
 0xf82   :  { %v2096_v28 = vsub.f32 %v2092_v44, %v2095_v27  ;;  %v2344_v27 = vsel %vm385_vm7, %v2277_v62, 0 }
 0xf84   :  { %v2097_v29 = vmul.f32 1.442695, %v2096_v28 }
 0xf86   :  { %7745 = vpow2.f32 %v2097_v29 }
 0xf88   :  { %v8534_v32 = vpop.eup %7741 }
 0xf89   :  { %v7744_v33 = vpop.eup %7743  ;;  %v2211_v34 = vpop.xlane.xlu0 %2210  ;;  %v1982_v35 = vsel %vm369_vm9, %v8534_v32, 0.0 }
 0xf8a   :  { %v2212_v38 = vsub.f32 %v2208_v50, %v2211_v34  ;;  %1983 = vadd.xlane.f32.xlu0 %v1982_v35  ;;  %v1871_v31 = vsel %vm369_vm9, %v7744_v33, 0.0 }
 0xf8b   :  { %1872 = vadd.xlane.f32.xlu1 %v1871_v31 }
 0xf8c   :  { %v2213_v30 = vmul.f32 1.442695, %v2212_v38 }
 0xf8e   :  { %7747 = vpow2.f32 %v2213_v30 }
 0xf90   :  { %v8539_v40 = vpop.eup %7745 }
 0xf91   :  { %v2099_v41 = vsel %vm369_vm9, %v8539_v40, 0.0  ;;  %v2330_v44 = vpop.xlane.xlu1 %2329 }
 0xf92   :  { %2100 = vadd.xlane.f32.xlu1 %v2099_v41  ;;  %v2331_v45 = vsub.f32 %v8521_v57, %v2330_v44 }
 0xf94   :  { %v2332_v49 = vmul.f32 1.442695, %v2331_v45 }
 0xf96   :  { %7749 = vpow2.f32 %v2332_v49 }
 0xf98   :  { %v8543_v42 = vpop.eup %7747 }
 0xf99   :  { %v2215_v43 = vsel %vm369_vm9, %v8543_v42, 0.0  ;;  %v2441_v39 = vpop.xlane.xlu0 %2440 }
 0xf9a   :  { %2216 = vadd.xlane.f32.xlu0 %v2215_v43  ;;  %v2442_v46 = vsub.f32 %v2438_v61, %v2441_v39 }
 0xf9c   :  { %v2443_v53 = vmul.f32 1.442695, %v2442_v46 }
 0xf9e   :  { %7751 = vpow2.f32 %v2443_v53 }
 0xfa0   :  { %v8554_v21 = vpop.eup %7749 }
 0xfa1   :  { %v2558_v12 = vpop.xlane.xlu1 %2557  ;;  %v2334_v57 = vsel %vm369_vm9, %v8554_v21, 0.0 }
 0xfa2   :  { %v2559_v50 = vsub.f32 %v2555_v5, %v2558_v12 }
 0xfa3   :  { %2105 = vrot.lane.b32.xlu1 %v8466_v4, %s9556_s22 }
 0xfa4   :  { %v2560_v54 = vmul.f32 1.442695, %v2559_v50 }
 0xfa6   :  { %7753 = vpow2.f32 %v2560_v54 }
 0xfa7   :  { %2221 = vrot.lane.b32.xlu1 %v8466_v4, %s9552_s26 }
 0xfa9   :  { %v2674_v52 = vpop.xlane.xlu0 %2673 }
 0xfaa   :  { %v2675_v55 = vsub.f32 %v2671_v16, %v2674_v52 }
 0xfac   :  { %v2676_v56 = vmul.f32 1.442695, %v2675_v55 }
 0xfae   :  { %7755 = vpow2.f32 %v2676_v56 }
 0xfb0   :  { %1989 = vrot.lane.b32.xlu0 %v8466_v4, %s9554_s24  ;;  %v8556_v4 = vpop.eup %7751 }
 0xfb1   :  { %v8560_v58 = vpop.eup %7753  ;;  %v2445_v60 = vsel %vm369_vm9, %v8556_v4, 0.0 }
 0xfb2   :  { %v2562_v22 = vsel %vm369_vm9, %v8560_v58, 0.0 }
 0xfb8   :  { %v8566_v13 = vpop.eup %7755 }
 0xfb9   :  { %v2678_v61 = vsel %vm369_vm9, %v8566_v13, 0.0 }
 0xfcb   :  { %2335 = vadd.xlane.f32.xlu1 %v2334_v57 }
 0xfcf   :  { %2563 = vadd.xlane.f32.xlu0 %v2562_v22  ;;  %2446 = vadd.xlane.f32.xlu1 %v2445_v60 }
 0xfd3   :  { %2679 = vadd.xlane.f32.xlu1 %v2678_v61 }
 0xfe4   :  { %2568 = vrot.lane.b32.xlu1 %v2277_v62, %s9556_s22 }
 0xfe5   :  { %2452 = vrot.lane.b32.xlu0 %v2277_v62, %s9554_s24 }
 0xfe9   :  { %2684 = vrot.lane.b32.xlu0 %v2277_v62, %s9552_s26 }
0x1017   :  { %v1984_v63 = vpop.xlane.xlu0 %1983 }
0x1018   :  { %v1873_v36 = vpop.xlane.xlu1 %1872 }
0x1019   :  { %7757 = vrcp.f32 %v1873_v36 }
0x101a   :  { %7759 = vrcp.f32 %v1984_v63 }
0x101f   :  { %v2101_v0 = vpop.xlane.xlu1 %2100 }
0x1020   :  { %7761 = vrcp.f32 %v2101_v0 }
0x1023   :  { %v7758_v1 = vpop.eup %7757  ;;  %v2106_v16 = vpop.permute.xlu1 %2105 }
0x1024   :  { %v1875_v5 = vmul.f32 %v7758_v1, %v7744_v33  ;;  %v7760_v7 = vpop.eup %7759  ;;  %v2111_v19 = vsel %vm385_vm7, %v2106_v16, 0 }
0x1025   :  { %v1986_v59 = vmul.f32 %v7760_v7, %v8534_v32 }
0x1026   :  { %v1876_v6 = vpack.c.bf16 %v1875_v5, %v1875_v5 }
0x1027   :  { %v2217_v9 = vpop.xlane.xlu0 %2216  ;;  %v1987_v17 = vpack.c.bf16 %v1986_v59, %v1986_v59  ;;  %v2222_v48 = vpop.permute.xlu1 %2221  ;;  %v7577_v59 = vld [vmem:[%s9531_s6 + $0x20] sm:$0xff]  }
0x1028   :  { %7154 = vmatmul.mubr.msk.bf16.vlgmr.msra.gmra.mrb[52].mxu1 %vm369_vm9, %v1876_v6  ;;  %7763 = vrcp.f32 %v2217_v9  ;;  %v2227_v24 = vsel %vm385_vm7, %v2222_v48, 0  ;;  %7242 = vmatpush3.bf16.msra.mxu0 %v7577_v59  ;;  %v7598_v59 = vld [vmem:[%s9537_s12 + $0x90] sm:$0xff]  }
0x1029   :  { %7165 = vmatprep.mubr.msk.bf16.mxu1 %vm7887_vm5, %v7886_v10  ;;  %7243 = vmatprep.subr.bf16.mxu0 %v7886_v10 }
0x102a   :  { %v7762_v18 = vpop.eup %7761 }
0x102b   :  { %v1990_v15 = vpop.permute.xlu0 %1989  ;;  %v2103_v20 = vmul.f32 %v7762_v18, %v8539_v40 }
0x102c   :  { %v1995_v3 = vsel %vm385_vm7, %v1990_v15, 0  ;;  %v7578_v15 = vld [vmem:[%s9531_s6 + $0x28] sm:$0xff]  }
0x102d   :  { %7164 = vmatpush3.bf16.msra.mxu1 %v1995_v3  ;;  %v2104_v23 = vpack.c.bf16 %v2103_v20, %v2103_v20  ;;  %7244 = vmatpush3.bf16.msra.mxu0 %v7578_v15  ;;  %v7580_v20 = vld [vmem:[%s9531_s6 + $0x38] sm:$0xff]  }
0x102e   :  { %7175 = vmatprep.subr.bf16.mxu1 %v7886_v10  ;;  %7245 = vmatprep.subr.bf16.mxu0 %v7886_v10  ;;  %v7599_v15 = vld [vmem:[%s9537_s12 + $0xd8] sm:$0xff]  }
0x1030   :  { %7166 = vmatmul.mubr.msk.bf16.vlgmr.msra.gmra.mrb[56].mxu1 %vm369_vm9, %v1987_v17 }
0x1031   :  { %7176 = vmatpush3.bf16.msra.mxu1 %v2111_v19  ;;  %7177 = vmatprep.mubr.msk.bf16.mxu1 %vm7887_vm5, %v7886_v10  ;;  %v7579_v19 = vld [vmem:[%s9531_s6 + $0x30] sm:$0xff]  }
0x1032   :  { %7187 = vmatprep.subr.bf16.mxu1 %v7886_v10  ;;  %v7764_v51 = vpop.eup %7763  ;;  %7246 = vmatpush3.bf16.msra.mxu0 %v7579_v19 }
0x1033   :  { %v2219_v25 = vmul.f32 %v7764_v51, %v8543_v42  ;;  %7247 = vmatprep.subr.bf16.mxu0 %v7886_v10 }
0x1035   :  { %v2220_v26 = vpack.c.bf16 %v2219_v25, %v2219_v25 }
0x1036   :  { %7248 = vmatpush3.bf16.msra.mxu0 %v7580_v20 }
0x1038   :  { %7178 = vmatmul.mubr.msk.bf16.vlgmr.msra.gmra.mrb[60].mxu1 %vm369_vm9, %v2104_v23 }
0x1039   :  { %7188 = vmatpush3.bf16.msra.mxu1 %v2227_v24  ;;  %7189 = vmatprep.mubr.msk.bf16.mxu1 %vm7887_vm5, %v7886_v10 }
0x103a   :  { %7199 = vmatprep.subr.bf16.mxu1 %v7886_v10 }
0x1040   :  { %7190 = vmatmul.mubr.msk.bf16.vlgmr.msra.gmra.mrb[64].mxu1 %vm369_vm9, %v2220_v26 }
0x1041   :  { %7200 = vmatpush3.bf16.msra.mxu1 %v2344_v27  ;;  %7201 = vmatprep.mubr.msk.bf16.mxu1 %vm7887_vm5, %v7886_v10 }
0x1042   :  { %7211 = vmatprep.subr.bf16.mxu1 %v7886_v10 }
0x1058   :  { %v2336_v28 = vpop.xlane.xlu1 %2335 }
0x1059   :  { %7765 = vrcp.f32 %v2336_v28 }
0x105c   :  { %v2447_v29 = vpop.xlane.xlu1 %2446  ;;  %v2564_v32 = vpop.xlane.xlu0 %2563 }
0x105d   :  { %7767 = vrcp.f32 %v2447_v29 }
0x105e   :  { %7769 = vrcp.f32 %v2564_v32 }
0x1060   :  { %v2453_v35 = vpop.permute.xlu0 %2452  ;;  %v2680_v30 = vpop.xlane.xlu1 %2679 }
0x1061   :  { %v2458_v40 = vsel %vm385_vm7, %v2453_v35, 0  ;;  %7771 = vrcp.f32 %v2680_v30 }
0x1063   :  { %v7766_v33 = vpop.eup %7765 }
0x1064   :  { %v2338_v34 = vmul.f32 %v7766_v33, %v8554_v21  ;;  %v2569_v42 = vpop.permute.xlu1 %2568  ;;  %v2685_v12 = vpop.permute.xlu0 %2684 }
0x1065   :  { %v2574_v45 = vsel %vm385_vm7, %v2569_v42, 0  ;;  %v2690_v50 = vsel %vm385_vm7, %v2685_v12, 0 }
0x1066   :  { %v2339_v38 = vpack.c.bf16 %v2338_v34, %v2338_v34 }
0x1067   :  { %v7768_v31 = vpop.eup %7767 }
0x1068   :  { %7202 = vmatmul.mubr.msk.bf16.vlgmr.msra.gmra.mrb[68].mxu1 %vm369_vm9, %v2339_v38  ;;  %v2449_v41 = vmul.f32 %v7768_v31, %v8556_v4  ;;  %v7770_v44 = vpop.eup %7769 }
0x1069   :  { %7212 = vmatpush3.bf16.msra.mxu1 %v2458_v40  ;;  %7213 = vmatprep.mubr.msk.bf16.mxu1 %vm7887_vm5, %v7886_v10  ;;  %v2566_v39 = vmul.f32 %v7770_v44, %v8560_v58 }
0x106a   :  { %7223 = vmatprep.subr.bf16.mxu1 %v7886_v10  ;;  %v2450_v43 = vpack.c.bf16 %v2449_v41, %v2449_v41  ;;  %v6443_v41 = vld [vmem:[%s9532_s7 + $0x1] ss:$0 sm:$0xff] }
0x106b   :  { %v2567_v46 = vpack.c.bf16 %v2566_v39, %v2566_v39  ;;  %v7772_v49 = vpop.eup %7771 }
0x106c   :  { %v2682_v52 = vmul.f32 %v7772_v49, %v8566_v13 }
0x106e   :  { %v2683_v53 = vpack.c.bf16 %v2682_v52, %v2682_v52 }
0x1070   :  { %7214 = vmatmul.mubr.msk.bf16.vlgmr.msra.gmra.mrb[72].mxu1 %vm369_vm9, %v2450_v43 }
0x1071   :  { %7224 = vmatpush3.bf16.msra.mxu1 %v2574_v45  ;;  %7225 = vmatprep.mubr.msk.bf16.mxu1 %vm7887_vm5, %v7886_v10 }
0x1072   :  { %7235 = vmatprep.subr.bf16.mxu1 %v7886_v10 }
0x1078   :  { %7226 = vmatmul.mubr.msk.bf16.vlgmr.msra.gmra.mrb[76].mxu1 %vm369_vm9, %v2567_v46 }
0x1079   :  { %7236 = vmatpush3.bf16.msra.mxu1 %v2690_v50  ;;  %7237 = vmatprep.mubr.msk.bf16.mxu1 %vm7887_vm5, %v7886_v10 }
0x1080   :  { %7238 = vmatmul.mubr.msk.bf16.vlgmr.msra.gmra.mrb[80].mxu1 %vm369_vm9, %v2683_v53 }
0x1081   :  { %2971 = vmatprep.mubr.bf16.mxu1 %v7885_v2 }
0x10fb   :  { %v1917_v54 = vpop.f32.mrb[52].mxu1 }
0x10fc   :  { %1923 = vst.msk [vmem:[#allocation2] sm:$0xff] %vm321_vm6, %v1917_v54  ;;  %v7155_v55 = vpop.f32.mrb[53].mxu1 }
0x10fd   :  { %v1920_v56 = vpop.f32.mrb[54].mxu1 }
0x10fe   :  { %v7156_v21 = vpop.f32.mrb[55].mxu1 }
0x1103   :  { %v2031_v4 = vpop.f32.mrb[56].mxu1 }
0x1104   :  { %2038 = vrot.lane.b32.xlu0 %v2031_v4, %s9571_s25  ;;  %v7167_v57 = vpop.f32.mrb[57].mxu1 }
0x1105   :  { %v2034_v58 = vpop.f32.mrb[58].mxu1 }
0x1106   :  { %v7168_v22 = vpop.f32.mrb[59].mxu1 }
0x1107   :  { %v7583_v22 = vld [vmem:[%s9535_s10 + $0x44] ss:$8 sps:$4 sm:$0xff]  }
0x1108   :  { %2939 = vmatprep.subr.bf16.mxu1 %v7583_v22 }
0x110b   :  { %v2147_v60 = vpop.f32.mrb[60].mxu1 }
0x110c   :  { %2154 = vrot.lane.b32.xlu0 %v2147_v60, %s9570_s20  ;;  %v7179_v13 = vpop.f32.mrb[61].mxu1  ;;  %v7581_v60 = vld [vmem:[%s9535_s10 + $0x40] ss:$8 sps:$4 sm:$0xff]  }
0x110d   :  { %v2150_v61 = vpop.f32.mrb[62].mxu1  ;;  %2940 = vmatpush1.bf16.msra.mxu1 %v7581_v60  ;;  %v7586_v13 = vld [vmem:[%s9535_s10 + $0x54] ss:$8 sps:$4 sm:$0xff]  }
0x110e   :  { %v7180_v62 = vpop.f32.mrb[63].mxu1  ;;  %v7584_v61 = vld [vmem:[%s9535_s10 + $0x50] ss:$8 sps:$4 sm:$0xff]   ;;  %2941 = vmatprep.subr.bf16.mxu1 %v7586_v13  ;;  %v6504_v13 = vld [vmem:[%s9569_s1 + $0x1] ss:$0 sm:$0xff] }
0x110f   :  { %v7589_v62 = vld [vmem:[%s9535_s10 + $0x64] ss:$8 sps:$4 sm:$0xff]  }
0x1111   :  { %2942 = vmatpush1.bf16.msra.mxu1 %v7584_v61 }
0x1112   :  { %2943 = vmatprep.subr.bf16.mxu1 %v7589_v62 }
0x1113   :  { %v2263_v36 = vpop.f32.mrb[64].mxu1 }
0x1114   :  { %2270 = vrot.lane.b32.xlu0 %v2263_v36, %s7890_s2  ;;  %v7191_v63 = vpop.f32.mrb[65].mxu1  ;;  %v7587_v36 = vld [vmem:[%s9535_s10 + $0x60] ss:$8 sps:$4 sm:$0xff]  }
0x1115   :  { %v2266_v0 = vpop.f32.mrb[66].mxu1  ;;  %2944 = vmatpush1.bf16.msra.mxu1 %v7587_v36  ;;  %v7590_v63 = vld [vmem:[%s9535_s10 + $0x70] ss:$8 sps:$4 sm:$0xff]  }
0x1116   :  { %v7192_v1 = vpop.f32.mrb[67].mxu1  ;;  %v7592_v0 = vld [vmem:[%s9535_s10 + $0x74] ss:$8 sps:$4 sm:$0xff]  }
0x1117   :  { %2945 = vmatprep.subr.bf16.mxu1 %v7592_v0  ;;  %v7593_v1 = vld [vmem:[%s9537_s12 + $0xc0] sm:$0xff]  }
0x1118   :  { %6875 = vmatprep.subr.bf16.mxu0 %v7593_v1 }
0x1119   :  { %2946 = vmatpush1.bf16.msra.mxu1 %v7590_v63 }
0x113b   :  { %v2380_v5 = vpop.f32.mrb[68].mxu1 }
0x113c   :  { %2386 = vst.msk [vmem:[#allocation2 + $0x8] sm:$0xff] %vm321_vm6, %v2380_v5  ;;  %v7203_v6 = vpop.f32.mrb[69].mxu1  ;;  %v7594_v5 = vld [vmem:[%s9537_s12 + $0x80] sm:$0xff]  }
0x113d   :  { %v2383_v7 = vpop.f32.mrb[70].mxu1  ;;  %v7595_v6 = vld [vmem:[%s9537_s12 + $0xc8] sm:$0xff]  }
0x113e   :  { %v7204_v9 = vpop.f32.mrb[71].mxu1  ;;  %v7596_v7 = vld [vmem:[%s9537_s12 + $0x88] sm:$0xff]  }
0x113f   :  { %v7597_v9 = vld [vmem:[%s9537_s12 + $0xd0] sm:$0xff]  }
0x1143   :  { %v2494_v3 = vpop.f32.mrb[72].mxu1 }
0x1144   :  { %2501 = vrot.lane.b32.xlu1 %v2494_v3, %s9571_s25  ;;  %v7215_v16 = vpop.f32.mrb[73].mxu1  ;;  %v7600_v3 = vld [vmem:[%s9537_s12 + $0x98] sm:$0xff]  }
0x1145   :  { %v2497_v17 = vpop.f32.mrb[74].mxu1  ;;  %v7601_v16 = vld [vmem:[%s9537_s12 + $0xe0] sm:$0xff]  }
0x1146   :  { %v7216_v18 = vpop.f32.mrb[75].mxu1  ;;  %v7602_v17 = vld [vmem:[%s9537_s12 + $0xa0] sm:$0xff]  }
0x1147   :  { %v7603_v18 = vld [vmem:[%s9537_s12 + $0xe8] sm:$0xff]  }
0x114b   :  { %v2610_v48 = vpop.f32.mrb[76].mxu1 }
0x114c   :  { %2617 = vrot.lane.b32.xlu1 %v2610_v48, %s9570_s20  ;;  %v7227_v23 = vpop.f32.mrb[77].mxu1 }
0x114d   :  { %v2613_v51 = vpop.f32.mrb[78].mxu1 }
0x114e   :  { %v7228_v24 = vpop.f32.mrb[79].mxu1 }
0x1153   :  { %v2726_v25 = vpop.f32.mrb[80].mxu1 }
0x1154   :  { %2733 = vrot.lane.b32.xlu1 %v2726_v25, %s7890_s2  ;;  %v7239_v26 = vpop.f32.mrb[81].mxu1 }
0x1155   :  { %v2729_v27 = vpop.f32.mrb[82].mxu1 }
0x1156   :  { %v7240_v28 = vpop.f32.mrb[83].mxu1  ;;  %v6451_v27 = vld [vmem:[%s9533_s8 + $0x1] ss:$0 sm:$0xff] }
0x1176   :  { %v2039_v29 = vpop.permute.xlu0 %2038 }
0x1177   :  { %2041 = vst.msk [vmem:[#allocation2] sm:$0xff] %vm547_vm10, %v2039_v29 }
0x117e   :  { %v2155_v32 = vpop.permute.xlu0 %2154 }
0x117f   :  { %2157 = vst.msk [vmem:[#allocation2] sm:$0xff] %vm664_vm11, %v2155_v32 }
0x1186   :  { %v2271_v33 = vpop.permute.xlu0 %2270 }
0x1187   :  { %2273 = vst.msk [vmem:[#allocation2] sm:$0xff] %vm781_vm12, %v2271_v33  ;;  %v6452_v33 = vld [vmem:[%s9534_s9 + $0x1] ss:$0 sm:$0xff] }
0x118e   :  { %v2737_v31 = vld [vmem:[#allocation2] sm:$0xff] }
0x11b6   :  { %v2502_v34 = vpop.permute.xlu1 %2501 }
0x11b7   :  { %2504 = vst.msk [vmem:[#allocation2 + $0x8] sm:$0xff] %vm547_vm10, %v2502_v34 }
0x11be   :  { %v2618_v35 = vpop.permute.xlu1 %2617 }
0x11bf   :  { %2620 = vst.msk [vmem:[#allocation2 + $0x8] sm:$0xff] %vm664_vm11, %v2618_v35 }
0x11c6   :  { %v2734_v38 = vpop.permute.xlu1 %2733 }
0x11c7   :  { %2736 = vst.msk [vmem:[#allocation2 + $0x8] sm:$0xff] %vm781_vm12, %v2734_v38 }
0x11ce   :  { %v2738_v30 = vld [vmem:[#allocation2 + $0x8] sm:$0xff] }
0x11cf   :  { %v2739_v40 = vpack.c.bf16 %v2738_v30, %v2737_v31  ;;  %v7604_v30 = vld [vmem:[%s9537_s12 + $0xa8] sm:$0xff]  }
0x11d1   :  { %7250 = vmatmul.mubr.msk.bf16.vlgmr.msra.gmra.mrb[68].mxu0 %vm175_vm4, %v2739_v40  ;;  %v7605_v40 = vld [vmem:[%s9537_s12 + $0xf0] sm:$0xff]  }
0x11d2   :  { %6876 = vmatpush3.bf16.msra.mxu0 %v7594_v5 }
0x11d3   :  { %6877 = vmatprep.subr.bf16.mxu0 %v7595_v6 }
0x11d6   :  { %6878 = vmatpush3.bf16.msra.mxu0 %v7596_v7 }
0x11d7   :  { %6879 = vmatprep.subr.bf16.mxu0 %v7597_v9 }
0x11da   :  { %6880 = vmatpush3.bf16.msra.mxu0 %v7598_v59 }
0x11db   :  { %6881 = vmatprep.subr.bf16.mxu0 %v7599_v15 }
0x11de   :  { %6882 = vmatpush3.bf16.msra.mxu0 %v7600_v3 }
0x11df   :  { %6883 = vmatprep.subr.bf16.mxu0 %v7601_v16 }
0x11e2   :  { %6884 = vmatpush3.bf16.msra.mxu0 %v7602_v17 }
0x11e3   :  { %6885 = vmatprep.subr.bf16.mxu0 %v7603_v18 }
0x11e6   :  { %6886 = vmatpush3.bf16.msra.mxu0 %v7604_v30 }
0x11e7   :  { %6887 = vmatprep.subr.bf16.mxu0 %v7605_v40  ;;  %v6523_v40 = vld [vmem:[%s9528_s3 + $0x2] ss:$0 sm:$0xff] }
0x12a4   :  { %v2818_v42 = vpop.f32.mrb[68].mxu0 }
0x12a5   :  { %v2819_v43 = vadd.f32 %v6443_v41, %v2818_v42  ;;  %v7251_v44 = vpop.f32.mrb[69].mxu0  ;;  %v7607_v42 = vld [vmem:[%s9537_s12 + $0xf8] sm:$0xff]  }
0x12a6   :  { %v2821_v45 = vpop.f32.mrb[70].mxu0  ;;  %v6461_v44 = vld [vmem:[%s9536_s11 + $0x2] sm:$0x3] }
0x12a7   :  { %v8652_v39 = vadd.f32 %v2819_v43, %v8399_v8  ;;  %v2822_v12 = vadd.f32 %v6443_v41, %v2821_v45  ;;  %v7252_v46 = vpop.f32.mrb[71].mxu0  ;;  %v7606_v41 = vld [vmem:[%s9537_s12 + $0xb0] sm:$0xff]   ;;  %v7608_v43 = vld [vmem:[%s9537_s12 + $0xb8] sm:$0xff]   ;;  %v2889_v45 = vrot.slane %v6461_v44, %v8383_v11 }
0x12a8   :  { %6888 = vmatpush3.bf16.msra.mxu0 %v7606_v41 }
0x12a9   :  { %v8655_v49 = vadd.f32 %v2822_v12, %v8402_v14  ;;  %v2831_v50 = vsel %vm175_vm4, %v8652_v39, 0.0  ;;  %6889 = vmatprep.subr.bf16.mxu0 %v7607_v42  ;;  %v2893_v12 = vrot.slane %v6461_v44, %v8389_v47 }
0x12aa   :  { %2832 = vadd.xlane.f32.xlu0 %v2831_v50 }
0x12ab   :  { %v2834_v52 = vsel %vm175_vm4, %v8655_v49, 0.0 }
0x12ac   :  { %2835 = vadd.xlane.f32.xlu1 %v2834_v52  ;;  %6890 = vmatpush3.bf16.msra.mxu0 %v7608_v43 }
0x12ad   :  { %7265 = vmatprep.subr.bf16.mxu0 %v7886_v10 }
0x1337   :  { %v2833_v53 = vpop.xlane.xlu0 %2832 }
0x1338   :  { %v2837_v54 = vmul.f32 0.015625, %v2833_v53 }
0x1339   :  { %v2836_v55 = vpop.xlane.xlu1 %2835 }
0x133a   :  { %v2839_v56 = vsub.f32 %v8652_v39, %v2837_v54  ;;  %v2838_v8 = vmul.f32 0.015625, %v2836_v55 }
0x133c   :  { %v2840_v21 = vsub.f32 %v8655_v49, %v2838_v8  ;;  %v2841_v4 = vmul.f32 %v2839_v56, %v2839_v56 }
0x133e   :  { %v2843_v14 = vsel %vm175_vm4, %v2841_v4, 0.0  ;;  %v2842_v57 = vmul.f32 %v2840_v21, %v2840_v21 }
0x133f   :  { %2844 = vadd.xlane.f32.xlu0 %v2843_v14 }
0x1340   :  { %v2846_v58 = vsel %vm175_vm4, %v2842_v57, 0.0 }
0x1343   :  { %2847 = vadd.xlane.f32.xlu0 %v2846_v58 }
0x13cc   :  { %v2845_v19 = vpop.xlane.xlu0 %2844 }
0x13cd   :  { %v2849_v20 = vmul.f32 0.015625, %v2845_v19 }
0x13cf   :  { %v2851_v48 = vadd.f32 1e-05, %v2849_v20 }
0x13d0   :  { %v2848_v23 = vpop.xlane.xlu0 %2847 }
0x13d1   :  { %7773 = vrsqrt.f32 %v2851_v48  ;;  %v2850_v51 = vmul.f32 0.015625, %v2848_v23  ;;  %v7611_v23 = vld [vmem:[%s9530_s5 + $0x84] ss:$8 sps:$4 sm:$0xff]  }
0x13d2   :  { %3267 = vmatprep.subr.bf16.mxu1 %v7611_v23 }
0x13d3   :  { %v2852_v24 = vadd.f32 1e-05, %v2850_v51  ;;  %v7609_v51 = vld [vmem:[%s9530_s5 + $0x80] ss:$8 sps:$4 sm:$0xff]  }
0x13d5   :  { %7775 = vrsqrt.f32 %v2852_v24  ;;  %v7614_v24 = vld [vmem:[%s9530_s5 + $0x94] ss:$8 sps:$4 sm:$0xff]  }
0x13db   :  { %v7774_v25 = vpop.eup %7773 }
0x13dc   :  { %v2855_v26 = vmul.f32 %v7774_v25, %v2839_v56  ;;  %v7612_v25 = vld [vmem:[%s9530_s5 + $0x90] ss:$8 sps:$4 sm:$0xff]  }
0x13de   :  { %v2863_v29 = vmul.f32 %v6451_v27, %v2855_v26  ;;  %v7617_v26 = vld [vmem:[%s9530_s5 + $0xa4] ss:$8 sps:$4 sm:$0xff]  }
0x13df   :  { %v7776_v28 = vpop.eup %7775 }
0x13e0   :  { %v2856_v32 = vmul.f32 %v7776_v28, %v2840_v21  ;;  %v2871_v35 = vadd.f32 %v6452_v33, %v2863_v29  ;;  %v7618_v28 = vld [vmem:[%s9530_s5 + $0xb0] ss:$8 sps:$4 sm:$0xff]   ;;  %v7620_v29 = vld [vmem:[%s9530_s5 + $0xb4] ss:$8 sps:$4 sm:$0xff]  }
0x13e2   :  { %v2864_v34 = vmul.f32 %v6451_v27, %v2856_v32  ;;  %v7615_v27 = vld [vmem:[%s9530_s5 + $0xa0] ss:$8 sps:$4 sm:$0xff]  }
0x13e4   :  { %v2872_v38 = vadd.f32 %v6452_v33, %v2864_v34 }
0x13e6   :  { %v2873_v31 = vpack.c.bf16 %v2872_v38, %v2871_v35 }
0x13e8   :  { %6470 = vmatmul.mubr.msk.bf16.vlgmr.msra.gmra.mrb[84].mxu1 %vm175_vm4, %v2873_v31 }
0x13e9   :  { %3299 = vmatprep.mubr.bf16.mxu1 %v7885_v2  ;;  %3268 = vmatpush1.bf16.msra.mxu1 %v7609_v51 }
0x13ea   :  { %3269 = vmatprep.subr.bf16.mxu1 %v7614_v24 }
0x13ed   :  { %3270 = vmatpush1.bf16.msra.mxu1 %v7612_v25 }
0x13ee   :  { %3271 = vmatprep.subr.bf16.mxu1 %v7617_v26 }
0x13f1   :  { %3272 = vmatpush1.bf16.msra.mxu1 %v7615_v27 }
0x13f2   :  { %3273 = vmatprep.subr.bf16.mxu1 %v7620_v29 }
0x13f5   :  { %3274 = vmatpush1.bf16.msra.mxu1 %v7618_v28 }
0x13f6   :  { %7253 = vmatprep.subr.bf16.mxu1 %v7886_v10 }
0x14bb   :  { %v2973_v46 = vpop.f32.mrb[84].mxu1 }
0x14bc   :  { %v2974_v50 = vadd.f32 %v2973_v46, %v2889_v45  ;;  %v2975_v52 = vpop.f32.mrb[85].mxu1 }
0x14bd   :  { %v2976_v53 = vadd.f32 %v2975_v52, %v2893_v12  ;;  %v2977_v54 = vpop.f32.mrb[86].mxu1 }
0x14be   :  { %v2978_v55 = vadd.f32 %v2977_v54, %v2889_v45  ;;  %v2979_v56 = vpop.f32.mrb[87].mxu1  ;;  %v2982_v21 = vmax.f32 %v2974_v50, 0.0  ;;  %v6524_v45 = vld [vmem:[%s9529_s4 + $0x2] ss:$0 sm:$0xff] }
0x14bf   :  { %v2980_v8 = vadd.f32 %v2979_v56, %v2893_v12  ;;  %v2983_v14 = vmax.f32 %v2976_v53, 0.0 }
0x14c0   :  { %v2984_v4 = vmax.f32 %v2978_v55, 0.0 }
0x14c1   :  { %v2985_v57 = vmax.f32 %v2980_v8, 0.0 }
0x14c2   :  { %v2986_v58 = vpack.c.bf16 %v2984_v4, %v2982_v21 }
0x14c3   :  { %v2987_v22 = vpack.c.bf16 %v2985_v57, %v2983_v14 }
0x14c5   :  { %3157 = vmatprep.mubr.bf16.mxu0 %v2987_v22 }
0x14c6   :  { %3158 = vmatmul.mubr.bf16.vlgmr.msra.gmra.mrb[72].mxu0 %v2986_v58 }
0x14c7   :  { %7267 = vmatprep.mubr.msk.bf16.mxu0 %vm7887_vm5, %v7886_v10 }
0x1599   :  { %v6891_v60 = vpop.f32.mrb[72].mxu0 }
0x159a   :  { %v6892_v61 = vpop.f32.mrb[73].mxu0 }
0x159b   :  { %v6893_v62 = vadd.f32 %v6892_v61, %v6891_v60  ;;  %v6894_v36 = vpop.f32.mrb[74].mxu0 }
0x159c   :  { %v6895_v63 = vpop.f32.mrb[75].mxu0 }
0x159d   :  { %v3160_v0 = vadd.f32 %v6893_v62, %v6504_v13  ;;  %v6896_v1 = vadd.f32 %v6895_v63, %v6894_v36 }
0x159f   :  { %v8757_v5 = vadd.f32 %v3160_v0, %v8652_v39  ;;  %v3163_v6 = vadd.f32 %v6896_v1, %v6504_v13 }
0x15a1   :  { %v8760_v7 = vadd.f32 %v3163_v6, %v8655_v49  ;;  %v3172_v9 = vsel %vm175_vm4, %v8757_v5, 0.0 }
0x15a2   :  { %3173 = vadd.xlane.f32.xlu1 %v3172_v9 }
0x15a3   :  { %v3175_v59 = vsel %vm175_vm4, %v8760_v7, 0.0 }
0x15a4   :  { %3176 = vadd.xlane.f32.xlu0 %v3175_v59 }
0x162f   :  { %v3174_v15 = vpop.xlane.xlu1 %3173 }
0x1630   :  { %v3178_v3 = vmul.f32 0.015625, %v3174_v15 }
0x1631   :  { %v3177_v16 = vpop.xlane.xlu0 %3176 }
0x1632   :  { %v3180_v17 = vsub.f32 %v8757_v5, %v3178_v3  ;;  %v3179_v18 = vmul.f32 0.015625, %v3177_v16 }
0x1634   :  { %v3181_v39 = vsub.f32 %v8760_v7, %v3179_v18  ;;  %v3182_v19 = vmul.f32 %v3180_v17, %v3180_v17 }
0x1636   :  { %v3184_v49 = vsel %vm175_vm4, %v3182_v19, 0.0  ;;  %v3183_v20 = vmul.f32 %v3181_v39, %v3181_v39 }
0x1637   :  { %3185 = vadd.xlane.f32.xlu1 %v3184_v49 }
0x1638   :  { %v3187_v48 = vsel %vm175_vm4, %v3183_v20, 0.0 }
0x1639   :  { %3188 = vadd.xlane.f32.xlu0 %v3187_v48 }
0x16c4   :  { %v3186_v32 = vpop.xlane.xlu1 %3185 }
0x16c5   :  { %v3190_v33 = vmul.f32 0.015625, %v3186_v32 }
0x16c6   :  { %v3189_v34 = vpop.xlane.xlu0 %3188 }
0x16c7   :  { %v3192_v35 = vadd.f32 1e-05, %v3190_v33  ;;  %v3191_v38 = vmul.f32 0.015625, %v3189_v34 }
0x16c9   :  { %7777 = vrsqrt.f32 %v3192_v35  ;;  %v3193_v31 = vadd.f32 1e-05, %v3191_v38 }
0x16cb   :  { %7779 = vrsqrt.f32 %v3193_v31 }
0x16d3   :  { %v7778_v30 = vpop.eup %7777 }
0x16d4   :  { %v3196_v41 = vmul.f32 %v7778_v30, %v3180_v17 }
0x16d5   :  { %v7780_v42 = vpop.eup %7779 }
0x16d6   :  { %v3204_v43 = vmul.f32 %v6523_v40, %v3196_v41  ;;  %v3197_v44 = vmul.f32 %v7780_v42, %v3181_v39 }
0x16d8   :  { %v3205_v12 = vmul.f32 %v6523_v40, %v3197_v44  ;;  %v3212_v46 = vadd.f32 %v6524_v45, %v3204_v43 }
0x16da   :  { %v3213_v50 = vadd.f32 %v6524_v45, %v3205_v12 }
0x16dc   :  { %v3214_v52 = vpack.c.bf16 %v3213_v50, %v3212_v46 }
0x16de   :  { %6541 = vmatmul.mubr.msk.bf16.vlgmr.msra.gmra.mrb[88].mxu1 %vm175_vm4, %v3214_v52 }
0x16df   :  { %7255 = vmatprep.mubr.msk.bf16.mxu1 %vm7887_vm5, %v7886_v10 }
0x17b1   :  { %v3301_v53 = vpop.f32.mrb[88].mxu1 }
0x17b2   :  { %v3310_v54 = vmul.f32 0.25, %v3301_v53  ;;  %v3312_v55 = vpack.c.bf16 %v3301_v53, %v3301_v53  ;;  %v3303_v56 = vpop.f32.mrb[89].mxu1 }
0x17b3   :  { %v3305_v8 = vpop.f32.mrb[90].mxu1  ;;  %v8824_v36 = vpack.c.bf16 %v3303_v56, %v3303_v56 }
0x17b4   :  { %3426 = vrot.lane.b32.xlu0 %v3312_v55, %s7890_s2  ;;  %3315 = vrot.lane.b32.xlu1 %v3312_v55, %s9558_s21  ;;  %v8806_v21 = vpop.f32.mrb[91].mxu1  ;;  %v3311_v4 = vpack.c.bf16 %v3310_v54, %v3310_v54  ;;  %v3775_v14 = vpack.c.bf16 %v3305_v8, %v3305_v8  ;;  %v3773_v57 = vmul.f32 0.25, %v3305_v8 }
0x17b5   :  { %v3380_v1 = vsel %vm385_vm7, %v8824_v36, 0 }
0x17b6   :  { %v3774_v58 = vpack.c.bf16 %v3773_v57, %v3773_v57 }
0x17b8   :  { %3541 = vrot.lane.b32.xlu0 %v3311_v4, %s9556_s22  ;;  %3424 = vrot.lane.b32.xlu1 %v3311_v4, %s9572_s13 }
0x17bc   :  { %3657 = vrot.lane.b32.xlu0 %v3311_v4, %s9573_s27  ;;  %3543 = vrot.lane.b32.xlu1 %v3312_v55, %s9570_s20 }
0x17c0   :  { %3659 = vrot.lane.b32.xlu1 %v3312_v55, %s9571_s25  ;;  %3889 = vrot.lane.b32.xlu0 %v3775_v14, %s7890_s2 }
0x17c4   :  { %4006 = vrot.lane.b32.xlu0 %v3775_v14, %s9570_s20  ;;  %3778 = vrot.lane.b32.xlu1 %v3775_v14, %s9558_s21 }
0x17c8   :  { %4122 = vrot.lane.b32.xlu0 %v3775_v14, %s9571_s25  ;;  %3887 = vrot.lane.b32.xlu1 %v3774_v58, %s9572_s13 }
0x17cc   :  { %4004 = vrot.lane.b32.xlu1 %v3774_v58, %s9556_s22 }
0x17d0   :  { %4120 = vrot.lane.b32.xlu1 %v3774_v58, %s9573_s27 }
0x1826   :  { %v3427_v22 = vpop.permute.xlu0 %3426  ;;  %v3316_v60 = vpop.permute.xlu1 %3315 }
0x1827   :  { %v3432_v13 = vsel %vm321_vm6, %v3427_v22, 0  ;;  %v3321_v61 = vsel %vm321_vm6, %v3316_v60, 0 }
0x1828   :  { %7254 = vmatpush3.bf16.xpose.msra.mxu1 %v3321_v61  ;;  %7266 = vmatpush3.bf16.xpose.msra.mxu0 %v3432_v13 }
0x1829   :  { %7259 = vmatprep.subr.bf16.mxu1 %v7886_v10  ;;  %7277 = vmatprep.subr.bf16.mxu0 %v7886_v10 }
0x182a   :  { %v3425_v62 = vpop.permute.xlu1 %3424  ;;  %v3542_v9 = vpop.permute.xlu0 %3541 }
0x182e   :  { %v3544_v63 = vpop.permute.xlu1 %3543  ;;  %v3658_v3 = vpop.permute.xlu0 %3657 }
0x182f   :  { %v3549_v0 = vsel %vm321_vm6, %v3544_v63, 0  ;;  %7256 = vmatmul.mubr.msk.bf16.vlgmr.msra.gmra.mrb[92].mxu1 %vm321_vm6, %v3311_v4  ;;  %7268 = vmatmul.mubr.msk.bf16.vlgmr.msra.gmra.mrb[76].mxu0 %vm321_vm6, %v3425_v62 }
0x1830   :  { %7260 = vmatpush3.bf16.msra.mxu1 %v3380_v1  ;;  %7278 = vmatpush3.bf16.xpose.msra.mxu0 %v3549_v0 }
0x1831   :  { %7279 = vmatprep.mubr.msk.bf16.mxu0 %vm7887_vm5, %v7886_v10  ;;  %7289 = vmatprep.subr.bf16.mxu0 %v7886_v10 }
0x1832   :  { %7261 = vmatprep.mubr.msk.bf16.mxu1 %vm7887_vm5, %v7886_v10  ;;  %7271 = vmatprep.subr.bf16.mxu1 %v7886_v10  ;;  %v3660_v6 = vpop.permute.xlu1 %3659  ;;  %v3890_v17 = vpop.permute.xlu0 %3889 }
0x1833   :  { %v3665_v59 = vsel %vm321_vm6, %v3660_v6, 0  ;;  %v3895_v18 = vsel %vm321_vm6, %v3890_v17, 0 }
0x1836   :  { %v3779_v15 = vpop.permute.xlu1 %3778  ;;  %v4007_v39 = vpop.permute.xlu0 %4006 }
0x1837   :  { %7280 = vmatmul.mubr.msk.bf16.vlgmr.msra.gmra.mrb[80].mxu0 %vm321_vm6, %v3542_v9  ;;  %v3784_v16 = vsel %vm321_vm6, %v3779_v15, 0  ;;  %v4012_v49 = vsel %vm321_vm6, %v4007_v39, 0 }
0x1838   :  { %7290 = vmatpush3.bf16.xpose.msra.mxu0 %v3665_v59  ;;  %7291 = vmatprep.mubr.msk.bf16.mxu0 %vm7887_vm5, %v7886_v10 }
0x1839   :  { %7301 = vmatprep.subr.bf16.mxu0 %v7886_v10 }
0x183a   :  { %v3888_v19 = vpop.permute.xlu1 %3887  ;;  %v4123_v20 = vpop.permute.xlu0 %4122 }
0x183b   :  { %v4128_v23 = vsel %vm321_vm6, %v4123_v20, 0 }
0x183e   :  { %v4005_v48 = vpop.permute.xlu1 %4004 }
0x183f   :  { %7292 = vmatmul.mubr.msk.bf16.vlgmr.msra.gmra.mrb[84].mxu0 %vm321_vm6, %v3658_v3 }
0x1840   :  { %7302 = vmatpush3.bf16.xpose.msra.mxu0 %v3784_v16  ;;  %7303 = vmatprep.mubr.msk.bf16.mxu0 %vm7887_vm5, %v7886_v10 }
0x1841   :  { %7313 = vmatprep.subr.bf16.mxu0 %v7886_v10 }
0x1842   :  { %v4121_v51 = vpop.permute.xlu1 %4120 }
0x1847   :  { %7304 = vmatmul.mubr.msk.bf16.vlgmr.msra.gmra.mrb[88].mxu0 %vm321_vm6, %v3774_v58 }
0x1848   :  { %7314 = vmatpush3.bf16.xpose.msra.mxu0 %v3895_v18  ;;  %7315 = vmatprep.mubr.msk.bf16.mxu0 %vm7887_vm5, %v7886_v10 }
0x1849   :  { %7325 = vmatprep.subr.bf16.mxu0 %v7886_v10 }
0x184f   :  { %7316 = vmatmul.mubr.msk.bf16.vlgmr.msra.gmra.mrb[92].mxu0 %vm321_vm6, %v3888_v19 }
0x1850   :  { %7326 = vmatpush3.bf16.xpose.msra.mxu0 %v4012_v49  ;;  %7327 = vmatprep.mubr.msk.bf16.mxu0 %vm7887_vm5, %v7886_v10 }
0x1851   :  { %7337 = vmatprep.subr.bf16.mxu0 %v7886_v10 }
0x1857   :  { %7328 = vmatmul.mubr.msk.bf16.vlgmr.msra.gmra.mrb[96].mxu0 %vm321_vm6, %v4005_v48 }
0x1858   :  { %7338 = vmatpush3.bf16.xpose.msra.mxu0 %v4128_v23  ;;  %7339 = vmatprep.mubr.msk.bf16.mxu0 %vm7887_vm5, %v7886_v10 }
0x1859   :  { %7349 = vmatprep.subr.bf16.mxu0 %v7886_v10 }
0x185f   :  { %7340 = vmatmul.mubr.msk.bf16.vlgmr.msra.gmra.mrb[100].mxu0 %vm321_vm6, %v4121_v51 }
0x1860   :  { %7357 = vmatprep.mubr.msk.bf16.mxu0 %vm7887_vm5, %v7886_v10 }
0x1902   :  { %v3357_v24 = vpop.f32.mrb[92].mxu1  ;;  %v3468_v25 = vpop.f32.mrb[76].mxu0 }
0x1903   :  { %v3363_v26 = vsel %vm8143_vm8, %v3357_v24, -1e+30  ;;  %v3474_v27 = vsel %vm8143_vm8, %v3468_v25, -1e+30  ;;  %v7257_v28 = vpop.f32.mrb[93].mxu1  ;;  %v7269_v29 = vpop.f32.mrb[77].mxu0 }
0x1904   :  { %v3364_v32 = vsel %vm369_vm9, %v3363_v26, -inf  ;;  %v3475_v33 = vsel %vm369_vm9, %v3474_v27, -inf  ;;  %v3360_v34 = vpop.f32.mrb[94].mxu1  ;;  %v3471_v35 = vpop.f32.mrb[78].mxu0 }
0x1905   :  { %v7270_v38 = vpop.f32.mrb[79].mxu0  ;;  %3476 = vmax.xlane.f32.xlu1 %v3475_v33  ;;  %3365 = vmax.xlane.f32.xlu0 %v3364_v32  ;;  %v7258_v31 = vpop.f32.mrb[95].mxu1 }
0x190a   :  { %v3585_v30 = vpop.f32.mrb[80].mxu0 }
0x190b   :  { %v3591_v40 = vsel %vm8143_vm8, %v3585_v30, -1e+30  ;;  %v7281_v41 = vpop.f32.mrb[81].mxu0 }
0x190c   :  { %v3592_v42 = vsel %vm369_vm9, %v3591_v40, -inf  ;;  %v3588_v43 = vpop.f32.mrb[82].mxu0 }
0x190d   :  { %v7282_v44 = vpop.f32.mrb[83].mxu0  ;;  %3593 = vmax.xlane.f32.xlu0 %v3592_v42 }
0x1912   :  { %v3701_v45 = vpop.f32.mrb[84].mxu0 }
0x1913   :  { %v3707_v12 = vsel %vm8143_vm8, %v3701_v45, -1e+30  ;;  %v7293_v46 = vpop.f32.mrb[85].mxu0 }
0x1914   :  { %v3708_v50 = vsel %vm369_vm9, %v3707_v12, -inf  ;;  %v3704_v52 = vpop.f32.mrb[86].mxu0 }
0x1915   :  { %v7294_v53 = vpop.f32.mrb[87].mxu0  ;;  %3709 = vmax.xlane.f32.xlu0 %v3708_v50 }
0x191a   :  { %v3820_v54 = vpop.f32.mrb[88].mxu0 }
0x191b   :  { %v8879_v55 = vsel %vm8143_vm8, %v3820_v54, -1e+30  ;;  %v7305_v56 = vpop.f32.mrb[89].mxu0 }
0x191c   :  { %v3827_v8 = vsel %vm369_vm9, %v8879_v55, -inf  ;;  %v3823_v4 = vpop.f32.mrb[90].mxu0 }
0x191d   :  { %3828 = vmax.xlane.f32.xlu1 %v3827_v8  ;;  %v7306_v14 = vpop.f32.mrb[91].mxu0 }
0x1922   :  { %v3931_v57 = vpop.f32.mrb[92].mxu0 }
0x1923   :  { %v3937_v58 = vsel %vm8143_vm8, %v3931_v57, -1e+30  ;;  %v7317_v22 = vpop.f32.mrb[93].mxu0 }
0x1924   :  { %v3938_v60 = vsel %vm369_vm9, %v3937_v58, -inf  ;;  %v3934_v13 = vpop.f32.mrb[94].mxu0  ;;  %v3776_v22 = vpack.c.bf16 %v8806_v21, %v8806_v21 }
0x1925   :  { %v7318_v61 = vpop.f32.mrb[95].mxu0  ;;  %3939 = vmax.xlane.f32.xlu0 %v3938_v60 }
0x192a   :  { %v4048_v62 = vpop.f32.mrb[96].mxu0 }
0x192b   :  { %v4054_v63 = vsel %vm8143_vm8, %v4048_v62, -1e+30  ;;  %v7329_v0 = vpop.f32.mrb[97].mxu0 }
0x192c   :  { %v4055_v1 = vsel %vm369_vm9, %v4054_v63, -inf  ;;  %v4051_v6 = vpop.f32.mrb[98].mxu0 }
0x192d   :  { %4056 = vmax.xlane.f32.xlu1 %v4055_v1  ;;  %v7330_v9 = vpop.f32.mrb[99].mxu0 }
0x1932   :  { %v4164_v59 = vpop.f32.mrb[100].mxu0 }
0x1933   :  { %v4170_v15 = vsel %vm8143_vm8, %v4164_v59, -1e+30  ;;  %v7341_v3 = vpop.f32.mrb[101].mxu0 }
0x1934   :  { %v4171_v16 = vsel %vm369_vm9, %v4170_v15, -inf  ;;  %v4167_v17 = vpop.f32.mrb[102].mxu0 }
0x1935   :  { %v7342_v18 = vpop.f32.mrb[103].mxu0  ;;  %4172 = vmax.xlane.f32.xlu0 %v4171_v16 }
0x1992   :  { %v3477_v39 = vpop.xlane.xlu1 %3476  ;;  %v3366_v19 = vpop.xlane.xlu0 %3365 }
0x1993   :  { %v3478_v49 = vsub.f32 %v3474_v27, %v3477_v39  ;;  %v3367_v20 = vsub.f32 %v3363_v26, %v3366_v19 }
0x1995   :  { %v3479_v48 = vmul.f32 1.442695, %v3478_v49  ;;  %v3368_v23 = vmul.f32 1.442695, %v3367_v20 }
0x1997   :  { %7781 = vpow2.f32 %v3479_v48 }
0x1998   :  { %7783 = vpow2.f32 %v3368_v23 }
0x199a   :  { %v3594_v51 = vpop.xlane.xlu0 %3593 }
0x199b   :  { %v3595_v24 = vsub.f32 %v3591_v40, %v3594_v51  ;;  %v3843_v51 = vsel %vm385_vm7, %v3776_v22, 0 }
0x199d   :  { %v3596_v25 = vmul.f32 1.442695, %v3595_v24 }
0x199f   :  { %7785 = vpow2.f32 %v3596_v25 }
0x19a1   :  { %v8892_v28 = vpop.eup %7781 }
0x19a2   :  { %v7784_v29 = vpop.eup %7783  ;;  %v3710_v32 = vpop.xlane.xlu0 %3709  ;;  %v3481_v33 = vsel %vm369_vm9, %v8892_v28, 0.0 }
0x19a3   :  { %v3711_v34 = vsub.f32 %v3707_v12, %v3710_v32  ;;  %3482 = vadd.xlane.f32.xlu0 %v3481_v33  ;;  %v3370_v27 = vsel %vm369_vm9, %v7784_v29, 0.0 }
0x19a4   :  { %3371 = vadd.xlane.f32.xlu1 %v3370_v27 }
0x19a5   :  { %v3712_v26 = vmul.f32 1.442695, %v3711_v34 }
0x19a7   :  { %7787 = vpow2.f32 %v3712_v26 }
0x19a9   :  { %v8897_v35 = vpop.eup %7785 }
0x19aa   :  { %v3598_v38 = vsel %vm369_vm9, %v8897_v35, 0.0  ;;  %v3829_v40 = vpop.xlane.xlu1 %3828 }
0x19ab   :  { %3599 = vadd.xlane.f32.xlu1 %v3598_v38  ;;  %v3830_v41 = vsub.f32 %v8879_v55, %v3829_v40 }
0x19ad   :  { %v3831_v45 = vmul.f32 1.442695, %v3830_v41 }
0x19af   :  { %7789 = vpow2.f32 %v3831_v45 }
0x19b1   :  { %v8901_v31 = vpop.eup %7787 }
0x19b2   :  { %v3714_v30 = vsel %vm369_vm9, %v8901_v31, 0.0  ;;  %v3940_v42 = vpop.xlane.xlu0 %3939 }
0x19b3   :  { %3715 = vadd.xlane.f32.xlu0 %v3714_v30  ;;  %v3941_v44 = vsub.f32 %v3937_v58, %v3940_v42 }
0x19b5   :  { %v3942_v50 = vmul.f32 1.442695, %v3941_v44 }
0x19b7   :  { %7791 = vpow2.f32 %v3942_v50 }
0x19b9   :  { %v8912_v56 = vpop.eup %7789 }
0x19ba   :  { %v4057_v43 = vpop.xlane.xlu1 %4056  ;;  %v3833_v55 = vsel %vm369_vm9, %v8912_v56, 0.0 }
0x19bb   :  { %v4058_v12 = vsub.f32 %v4054_v63, %v4057_v43 }
0x19bc   :  { %3604 = vrot.lane.b32.xlu1 %v8824_v36, %s9556_s22 }
0x19bd   :  { %v4059_v52 = vmul.f32 1.442695, %v4058_v12 }
0x19bf   :  { %7793 = vpow2.f32 %v4059_v52 }
0x19c0   :  { %3720 = vrot.lane.b32.xlu1 %v8824_v36, %s9573_s27 }
0x19c2   :  { %v4173_v46 = vpop.xlane.xlu0 %4172 }
0x19c3   :  { %v4174_v53 = vsub.f32 %v4170_v15, %v4173_v46 }
0x19c5   :  { %v4175_v54 = vmul.f32 1.442695, %v4174_v53 }
0x19c7   :  { %7795 = vpow2.f32 %v4175_v54 }
0x19c9   :  { %3488 = vrot.lane.b32.xlu0 %v8824_v36, %s9572_s13  ;;  %v8914_v36 = vpop.eup %7791 }
0x19ca   :  { %v8918_v8 = vpop.eup %7793  ;;  %v3944_v14 = vsel %vm369_vm9, %v8914_v36, 0.0 }
0x19cb   :  { %v4061_v4 = vsel %vm369_vm9, %v8918_v8, 0.0 }
0x19d1   :  { %v8924_v57 = vpop.eup %7795 }
0x19d2   :  { %v4177_v58 = vsel %vm369_vm9, %v8924_v57, 0.0 }
0x19e4   :  { %3834 = vadd.xlane.f32.xlu1 %v3833_v55 }
0x19e8   :  { %4062 = vadd.xlane.f32.xlu0 %v4061_v4  ;;  %3945 = vadd.xlane.f32.xlu1 %v3944_v14 }
0x19ec   :  { %4178 = vadd.xlane.f32.xlu1 %v4177_v58 }
0x19fd   :  { %4067 = vrot.lane.b32.xlu1 %v3776_v22, %s9556_s22 }
0x19fe   :  { %3951 = vrot.lane.b32.xlu0 %v3776_v22, %s9572_s13 }
0x1a02   :  { %4183 = vrot.lane.b32.xlu0 %v3776_v22, %s9573_s27 }
0x1a30   :  { %v3483_v13 = vpop.xlane.xlu0 %3482 }
0x1a31   :  { %v3372_v60 = vpop.xlane.xlu1 %3371 }
0x1a32   :  { %7797 = vrcp.f32 %v3372_v60 }
0x1a33   :  { %7799 = vrcp.f32 %v3483_v13 }
0x1a38   :  { %v3600_v61 = vpop.xlane.xlu1 %3599 }
0x1a39   :  { %7801 = vrcp.f32 %v3600_v61 }
0x1a3c   :  { %v7798_v62 = vpop.eup %7797  ;;  %v3605_v15 = vpop.permute.xlu1 %3604 }
0x1a3d   :  { %v3374_v63 = vmul.f32 %v7798_v62, %v7784_v29  ;;  %v7800_v1 = vpop.eup %7799  ;;  %v3610_v17 = vsel %vm385_vm7, %v3605_v15, 0 }
0x1a3e   :  { %v3485_v21 = vmul.f32 %v7800_v1, %v8892_v28 }
0x1a3f   :  { %v3375_v0 = vpack.c.bf16 %v3374_v63, %v3374_v63 }
0x1a40   :  { %v3716_v6 = vpop.xlane.xlu0 %3715  ;;  %v3486_v3 = vpack.c.bf16 %v3485_v21, %v3485_v21  ;;  %v3721_v39 = vpop.permute.xlu1 %3720  ;;  %v7621_v21 = vld [vmem:[%s9531_s6 + $0x40] sm:$0xff]  }
0x1a41   :  { %7262 = vmatmul.mubr.msk.bf16.vlgmr.msra.gmra.mrb[96].mxu1 %vm369_vm9, %v3375_v0  ;;  %7803 = vrcp.f32 %v3716_v6  ;;  %v3726_v20 = vsel %vm385_vm7, %v3721_v39, 0  ;;  %7350 = vmatpush3.bf16.msra.mxu0 %v7621_v21  ;;  %v7642_v21 = vld [vmem:[%s9537_s12 + $0x110] sm:$0xff]  }
0x1a42   :  { %7273 = vmatprep.mubr.msk.bf16.mxu1 %vm7887_vm5, %v7886_v10  ;;  %7351 = vmatprep.subr.bf16.mxu0 %v7886_v10 }
0x1a43   :  { %v7802_v16 = vpop.eup %7801 }
0x1a44   :  { %v3489_v9 = vpop.permute.xlu0 %3488  ;;  %v3602_v18 = vmul.f32 %v7802_v16, %v8897_v35 }
0x1a45   :  { %v3494_v59 = vsel %vm385_vm7, %v3489_v9, 0  ;;  %v7622_v9 = vld [vmem:[%s9531_s6 + $0x48] sm:$0xff]  }
0x1a46   :  { %7272 = vmatpush3.bf16.msra.mxu1 %v3494_v59  ;;  %v3603_v19 = vpack.c.bf16 %v3602_v18, %v3602_v18  ;;  %7352 = vmatpush3.bf16.msra.mxu0 %v7622_v9  ;;  %v7624_v18 = vld [vmem:[%s9531_s6 + $0x58] sm:$0xff]  }
0x1a47   :  { %7283 = vmatprep.subr.bf16.mxu1 %v7886_v10  ;;  %7353 = vmatprep.subr.bf16.mxu0 %v7886_v10  ;;  %v7643_v9 = vld [vmem:[%s9537_s12 + $0x158] sm:$0xff]  }
0x1a49   :  { %7274 = vmatmul.mubr.msk.bf16.vlgmr.msra.gmra.mrb[100].mxu1 %vm369_vm9, %v3486_v3 }
0x1a4a   :  { %7284 = vmatpush3.bf16.msra.mxu1 %v3610_v17  ;;  %7285 = vmatprep.mubr.msk.bf16.mxu1 %vm7887_vm5, %v7886_v10  ;;  %v7623_v17 = vld [vmem:[%s9531_s6 + $0x50] sm:$0xff]  }
0x1a4b   :  { %7295 = vmatprep.subr.bf16.mxu1 %v7886_v10  ;;  %v7804_v49 = vpop.eup %7803  ;;  %7354 = vmatpush3.bf16.msra.mxu0 %v7623_v17 }
0x1a4c   :  { %v3718_v48 = vmul.f32 %v7804_v49, %v8901_v31  ;;  %7355 = vmatprep.subr.bf16.mxu0 %v7886_v10 }
0x1a4e   :  { %v3719_v23 = vpack.c.bf16 %v3718_v48, %v3718_v48 }
0x1a4f   :  { %7356 = vmatpush3.bf16.msra.mxu0 %v7624_v18 }
0x1a51   :  { %7286 = vmatmul.mubr.msk.bf16.vlgmr.msra.gmra.mrb[104].mxu1 %vm369_vm9, %v3603_v19 }
0x1a52   :  { %7296 = vmatpush3.bf16.msra.mxu1 %v3726_v20  ;;  %7297 = vmatprep.mubr.msk.bf16.mxu1 %vm7887_vm5, %v7886_v10 }
0x1a53   :  { %7307 = vmatprep.subr.bf16.mxu1 %v7886_v10 }
0x1a59   :  { %7298 = vmatmul.mubr.msk.bf16.vlgmr.msra.gmra.mrb[108].mxu1 %vm369_vm9, %v3719_v23 }
0x1a5a   :  { %7308 = vmatpush3.bf16.msra.mxu1 %v3843_v51  ;;  %7309 = vmatprep.mubr.msk.bf16.mxu1 %vm7887_vm5, %v7886_v10 }
0x1a5b   :  { %7319 = vmatprep.subr.bf16.mxu1 %v7886_v10 }
0x1a71   :  { %v3835_v24 = vpop.xlane.xlu1 %3834 }
0x1a72   :  { %7805 = vrcp.f32 %v3835_v24 }
0x1a75   :  { %v3946_v25 = vpop.xlane.xlu1 %3945  ;;  %v4063_v28 = vpop.xlane.xlu0 %4062 }
0x1a76   :  { %7807 = vrcp.f32 %v3946_v25 }
0x1a77   :  { %7809 = vrcp.f32 %v4063_v28 }
0x1a79   :  { %v3952_v33 = vpop.permute.xlu0 %3951  ;;  %v4179_v26 = vpop.xlane.xlu1 %4178 }
0x1a7a   :  { %v3957_v35 = vsel %vm385_vm7, %v3952_v33, 0  ;;  %7811 = vrcp.f32 %v4179_v26 }
0x1a7c   :  { %v7806_v29 = vpop.eup %7805 }
0x1a7d   :  { %v3837_v32 = vmul.f32 %v7806_v29, %v8912_v56  ;;  %v4068_v31 = vpop.permute.xlu1 %4067  ;;  %v4184_v43 = vpop.permute.xlu0 %4183 }
0x1a7e   :  { %v4073_v41 = vsel %vm385_vm7, %v4068_v31, 0  ;;  %v4189_v12 = vsel %vm385_vm7, %v4184_v43, 0 }
0x1a7f   :  { %v3838_v34 = vpack.c.bf16 %v3837_v32, %v3837_v32 }
0x1a80   :  { %v7808_v27 = vpop.eup %7807 }
0x1a81   :  { %7310 = vmatmul.mubr.msk.bf16.vlgmr.msra.gmra.mrb[112].mxu1 %vm369_vm9, %v3838_v34  ;;  %v3948_v38 = vmul.f32 %v7808_v27, %v8914_v36  ;;  %v7810_v40 = vpop.eup %7809 }
0x1a82   :  { %7320 = vmatpush3.bf16.msra.mxu1 %v3957_v35  ;;  %7321 = vmatprep.mubr.msk.bf16.mxu1 %vm7887_vm5, %v7886_v10  ;;  %v4065_v42 = vmul.f32 %v7810_v40, %v8918_v8 }
0x1a83   :  { %7331 = vmatprep.subr.bf16.mxu1 %v7886_v10  ;;  %v3949_v30 = vpack.c.bf16 %v3948_v38, %v3948_v38  ;;  %v6567_v38 = vld [vmem:[%s9532_s7 + $0x2] ss:$0 sm:$0xff] }
0x1a84   :  { %v4066_v44 = vpack.c.bf16 %v4065_v42, %v4065_v42  ;;  %v7812_v45 = vpop.eup %7811 }
0x1a85   :  { %v4181_v46 = vmul.f32 %v7812_v45, %v8924_v57 }
0x1a87   :  { %v4182_v50 = vpack.c.bf16 %v4181_v46, %v4181_v46 }
0x1a89   :  { %7322 = vmatmul.mubr.msk.bf16.vlgmr.msra.gmra.mrb[116].mxu1 %vm369_vm9, %v3949_v30 }
0x1a8a   :  { %7332 = vmatpush3.bf16.msra.mxu1 %v4073_v41  ;;  %7333 = vmatprep.mubr.msk.bf16.mxu1 %vm7887_vm5, %v7886_v10 }
0x1a8b   :  { %7343 = vmatprep.subr.bf16.mxu1 %v7886_v10 }
0x1a91   :  { %7334 = vmatmul.mubr.msk.bf16.vlgmr.msra.gmra.mrb[120].mxu1 %vm369_vm9, %v4066_v44 }
0x1a92   :  { %7344 = vmatpush3.bf16.msra.mxu1 %v4189_v12  ;;  %7345 = vmatprep.mubr.msk.bf16.mxu1 %vm7887_vm5, %v7886_v10 }
0x1a99   :  { %7346 = vmatmul.mubr.msk.bf16.vlgmr.msra.gmra.mrb[124].mxu1 %vm369_vm9, %v4182_v50 }
0x1a9a   :  { %4470 = vmatprep.mubr.bf16.mxu1 %v7885_v2 }
0x1b14   :  { %v3416_v52 = vpop.f32.mrb[96].mxu1 }
0x1b15   :  { %3422 = vst.msk [vmem:[#allocation2] sm:$0xff] %vm321_vm6, %v3416_v52  ;;  %v7263_v53 = vpop.f32.mrb[97].mxu1 }
0x1b16   :  { %v3419_v54 = vpop.f32.mrb[98].mxu1 }
0x1b17   :  { %v7264_v56 = vpop.f32.mrb[99].mxu1 }
0x1b1c   :  { %v3530_v36 = vpop.f32.mrb[100].mxu1 }
0x1b1d   :  { %3537 = vrot.lane.b32.xlu0 %v3530_v36, %s9571_s25  ;;  %v7275_v55 = vpop.f32.mrb[101].mxu1 }
0x1b1e   :  { %v3533_v8 = vpop.f32.mrb[102].mxu1 }
0x1b1f   :  { %v7276_v4 = vpop.f32.mrb[103].mxu1 }
0x1b20   :  { %v7627_v4 = vld [vmem:[%s9535_s10 + $0x84] ss:$8 sps:$4 sm:$0xff]  }
0x1b21   :  { %4438 = vmatprep.subr.bf16.mxu1 %v7627_v4 }
0x1b24   :  { %v3646_v14 = vpop.f32.mrb[104].mxu1 }
0x1b25   :  { %3653 = vrot.lane.b32.xlu0 %v3646_v14, %s9570_s20  ;;  %v7287_v57 = vpop.f32.mrb[105].mxu1  ;;  %v7625_v14 = vld [vmem:[%s9535_s10 + $0x80] ss:$8 sps:$4 sm:$0xff]  }
0x1b26   :  { %v3649_v58 = vpop.f32.mrb[106].mxu1  ;;  %4439 = vmatpush1.bf16.msra.mxu1 %v7625_v14  ;;  %v7630_v57 = vld [vmem:[%s9535_s10 + $0x94] ss:$8 sps:$4 sm:$0xff]  }
0x1b27   :  { %v7288_v22 = vpop.f32.mrb[107].mxu1  ;;  %v7628_v58 = vld [vmem:[%s9535_s10 + $0x90] ss:$8 sps:$4 sm:$0xff]   ;;  %4440 = vmatprep.subr.bf16.mxu1 %v7630_v57  ;;  %v6628_v57 = vld [vmem:[%s9569_s1 + $0x2] ss:$0 sm:$0xff] }
0x1b28   :  { %v7633_v22 = vld [vmem:[%s9535_s10 + $0xa4] ss:$8 sps:$4 sm:$0xff]  }
0x1b2a   :  { %4441 = vmatpush1.bf16.msra.mxu1 %v7628_v58 }
0x1b2b   :  { %4442 = vmatprep.subr.bf16.mxu1 %v7633_v22 }
0x1b2c   :  { %v3762_v60 = vpop.f32.mrb[108].mxu1 }
0x1b2d   :  { %3769 = vrot.lane.b32.xlu0 %v3762_v60, %s7890_s2  ;;  %v7299_v13 = vpop.f32.mrb[109].mxu1  ;;  %v7631_v60 = vld [vmem:[%s9535_s10 + $0xa0] ss:$8 sps:$4 sm:$0xff]  }
0x1b2e   :  { %v3765_v61 = vpop.f32.mrb[110].mxu1  ;;  %4443 = vmatpush1.bf16.msra.mxu1 %v7631_v60  ;;  %v7634_v13 = vld [vmem:[%s9535_s10 + $0xb0] ss:$8 sps:$4 sm:$0xff]  }
0x1b2f   :  { %v7300_v62 = vpop.f32.mrb[111].mxu1  ;;  %v7636_v61 = vld [vmem:[%s9535_s10 + $0xb4] ss:$8 sps:$4 sm:$0xff]  }
0x1b30   :  { %4444 = vmatprep.subr.bf16.mxu1 %v7636_v61  ;;  %v7637_v62 = vld [vmem:[%s9537_s12 + $0x140] sm:$0xff]  }
0x1b31   :  { %6934 = vmatprep.subr.bf16.mxu0 %v7637_v62 }
0x1b32   :  { %4445 = vmatpush1.bf16.msra.mxu1 %v7634_v13 }
0x1b54   :  { %v3879_v63 = vpop.f32.mrb[112].mxu1 }
0x1b55   :  { %3885 = vst.msk [vmem:[#allocation2 + $0x8] sm:$0xff] %vm321_vm6, %v3879_v63  ;;  %v7311_v0 = vpop.f32.mrb[113].mxu1  ;;  %v7638_v63 = vld [vmem:[%s9537_s12 + $0x100] sm:$0xff]  }
0x1b56   :  { %v3882_v1 = vpop.f32.mrb[114].mxu1  ;;  %v7639_v0 = vld [vmem:[%s9537_s12 + $0x148] sm:$0xff]  }
0x1b57   :  { %v7312_v6 = vpop.f32.mrb[115].mxu1  ;;  %v7640_v1 = vld [vmem:[%s9537_s12 + $0x108] sm:$0xff]  }
0x1b58   :  { %v7641_v6 = vld [vmem:[%s9537_s12 + $0x150] sm:$0xff]  }
0x1b5c   :  { %v3993_v59 = vpop.f32.mrb[116].mxu1 }
0x1b5d   :  { %4000 = vrot.lane.b32.xlu1 %v3993_v59, %s9571_s25  ;;  %v7323_v15 = vpop.f32.mrb[117].mxu1  ;;  %v7644_v59 = vld [vmem:[%s9537_s12 + $0x118] sm:$0xff]  }
0x1b5e   :  { %v3996_v3 = vpop.f32.mrb[118].mxu1  ;;  %v7645_v15 = vld [vmem:[%s9537_s12 + $0x160] sm:$0xff]  }
0x1b5f   :  { %v7324_v16 = vpop.f32.mrb[119].mxu1  ;;  %v7646_v3 = vld [vmem:[%s9537_s12 + $0x120] sm:$0xff]  }
0x1b60   :  { %v7647_v16 = vld [vmem:[%s9537_s12 + $0x168] sm:$0xff]  }
0x1b64   :  { %v4109_v39 = vpop.f32.mrb[120].mxu1 }
0x1b65   :  { %4116 = vrot.lane.b32.xlu1 %v4109_v39, %s9570_s20  ;;  %v7335_v19 = vpop.f32.mrb[121].mxu1 }
0x1b66   :  { %v4112_v49 = vpop.f32.mrb[122].mxu1 }
0x1b67   :  { %v7336_v20 = vpop.f32.mrb[123].mxu1 }
0x1b6c   :  { %v4225_v48 = vpop.f32.mrb[124].mxu1 }
0x1b6d   :  { %4232 = vrot.lane.b32.xlu1 %v4225_v48, %s7890_s2  ;;  %v7347_v23 = vpop.f32.mrb[125].mxu1 }
0x1b6e   :  { %v4228_v51 = vpop.f32.mrb[126].mxu1 }
0x1b6f   :  { %v7348_v24 = vpop.f32.mrb[127].mxu1  ;;  %v6575_v51 = vld [vmem:[%s9533_s8 + $0x2] ss:$0 sm:$0xff] }
0x1b8f   :  { %v3538_v25 = vpop.permute.xlu0 %3537 }
0x1b90   :  { %3540 = vst.msk [vmem:[#allocation2] sm:$0xff] %vm547_vm10, %v3538_v25 }
0x1b97   :  { %v3654_v28 = vpop.permute.xlu0 %3653 }
0x1b98   :  { %3656 = vst.msk [vmem:[#allocation2] sm:$0xff] %vm664_vm11, %v3654_v28 }
0x1b9f   :  { %v3770_v29 = vpop.permute.xlu0 %3769 }
0x1ba0   :  { %3772 = vst.msk [vmem:[#allocation2] sm:$0xff] %vm781_vm12, %v3770_v29  ;;  %v6576_v29 = vld [vmem:[%s9534_s9 + $0x2] ss:$0 sm:$0xff] }
0x1ba7   :  { %v4236_v27 = vld [vmem:[#allocation2] sm:$0xff] }
0x1bcf   :  { %v4001_v32 = vpop.permute.xlu1 %4000 }
0x1bd0   :  { %4003 = vst.msk [vmem:[#allocation2 + $0x8] sm:$0xff] %vm547_vm10, %v4001_v32 }
0x1bd7   :  { %v4117_v33 = vpop.permute.xlu1 %4116 }
0x1bd8   :  { %4119 = vst.msk [vmem:[#allocation2 + $0x8] sm:$0xff] %vm664_vm11, %v4117_v33 }
0x1bdf   :  { %v4233_v34 = vpop.permute.xlu1 %4232 }
0x1be0   :  { %4235 = vst.msk [vmem:[#allocation2 + $0x8] sm:$0xff] %vm781_vm12, %v4233_v34 }
0x1be7   :  { %v4237_v26 = vld [vmem:[#allocation2 + $0x8] sm:$0xff] }
0x1be8   :  { %v4238_v35 = vpack.c.bf16 %v4237_v26, %v4236_v27  ;;  %v7648_v26 = vld [vmem:[%s9537_s12 + $0x128] sm:$0xff]  }
0x1bea   :  { %7358 = vmatmul.mubr.msk.bf16.vlgmr.msra.gmra.mrb[104].mxu0 %vm175_vm4, %v4238_v35  ;;  %v7649_v35 = vld [vmem:[%s9537_s12 + $0x170] sm:$0xff]  }
0x1beb   :  { %6935 = vmatpush3.bf16.msra.mxu0 %v7638_v63 }
0x1bec   :  { %6936 = vmatprep.subr.bf16.mxu0 %v7639_v0 }
0x1bef   :  { %6937 = vmatpush3.bf16.msra.mxu0 %v7640_v1 }
0x1bf0   :  { %6938 = vmatprep.subr.bf16.mxu0 %v7641_v6 }
0x1bf3   :  { %6939 = vmatpush3.bf16.msra.mxu0 %v7642_v21 }
0x1bf4   :  { %6940 = vmatprep.subr.bf16.mxu0 %v7643_v9 }
0x1bf7   :  { %6941 = vmatpush3.bf16.msra.mxu0 %v7644_v59 }
0x1bf8   :  { %6942 = vmatprep.subr.bf16.mxu0 %v7645_v15 }
0x1bfb   :  { %6943 = vmatpush3.bf16.msra.mxu0 %v7646_v3 }
0x1bfc   :  { %6944 = vmatprep.subr.bf16.mxu0 %v7647_v16 }
0x1bff   :  { %6945 = vmatpush3.bf16.msra.mxu0 %v7648_v26 }
0x1c00   :  { %6946 = vmatprep.subr.bf16.mxu0 %v7649_v35  ;;  %v6647_v35 = vld [vmem:[%s9528_s3 + $0x3] ss:$0 sm:$0xff]  ;;  %s9574_s3 = smov 64  }
0x1cbd   :  { %v4317_v31 = vpop.f32.mrb[104].mxu0 }
0x1cbe   :  { %v4318_v30 = vadd.f32 %v6567_v38, %v4317_v31  ;;  %v7359_v40 = vpop.f32.mrb[105].mxu0  ;;  %v7651_v31 = vld [vmem:[%s9537_s12 + $0x178] sm:$0xff]  }
0x1cbf   :  { %v4320_v41 = vpop.f32.mrb[106].mxu0  ;;  %v6585_v40 = vld [vmem:[%s9536_s11 + $0x4] sm:$0x3] }
0x1cc0   :  { %v9010_v42 = vadd.f32 %v4318_v30, %v8757_v5  ;;  %v4321_v43 = vadd.f32 %v6567_v38, %v4320_v41  ;;  %v7360_v44 = vpop.f32.mrb[107].mxu0  ;;  %v7650_v38 = vld [vmem:[%s9537_s12 + $0x130] sm:$0xff]   ;;  %v7652_v30 = vld [vmem:[%s9537_s12 + $0x138] sm:$0xff]   ;;  %v4388_v41 = vrot.slane %v6585_v40, %v8383_v11 }
0x1cc1   :  { %6947 = vmatpush3.bf16.msra.mxu0 %v7650_v38 }
0x1cc2   :  { %v9013_v45 = vadd.f32 %v4321_v43, %v8760_v7  ;;  %v4330_v12 = vsel %vm175_vm4, %v9010_v42, 0.0  ;;  %6948 = vmatprep.subr.bf16.mxu0 %v7651_v31  ;;  %v4392_v43 = vrot.slane %v6585_v40, %v8389_v47 }
0x1cc3   :  { %4331 = vadd.xlane.f32.xlu0 %v4330_v12 }
0x1cc4   :  { %v4333_v46 = vsel %vm175_vm4, %v9013_v45, 0.0 }
0x1cc5   :  { %4334 = vadd.xlane.f32.xlu1 %v4333_v46  ;;  %6949 = vmatpush3.bf16.msra.mxu0 %v7652_v30 }
0x1cc6   :  { %7373 = vmatprep.subr.bf16.mxu0 %v7886_v10 }
0x1d50   :  { %v4332_v50 = vpop.xlane.xlu0 %4331 }
0x1d51   :  { %v4336_v52 = vmul.f32 0.015625, %v4332_v50 }
0x1d52   :  { %v4335_v53 = vpop.xlane.xlu1 %4334 }
0x1d53   :  { %v4338_v54 = vsub.f32 %v9010_v42, %v4336_v52  ;;  %v4337_v5 = vmul.f32 0.015625, %v4335_v53 }
0x1d55   :  { %v4339_v56 = vsub.f32 %v9013_v45, %v4337_v5  ;;  %v4340_v36 = vmul.f32 %v4338_v54, %v4338_v54 }
0x1d57   :  { %v4342_v7 = vsel %vm175_vm4, %v4340_v36, 0.0  ;;  %v4341_v55 = vmul.f32 %v4339_v56, %v4339_v56 }
0x1d58   :  { %4343 = vadd.xlane.f32.xlu0 %v4342_v7 }
0x1d59   :  { %v4345_v8 = vsel %vm175_vm4, %v4341_v55, 0.0 }
0x1d5c   :  { %4346 = vadd.xlane.f32.xlu0 %v4345_v8 }
0x1de5   :  { %v4344_v17 = vpop.xlane.xlu0 %4343 }
0x1de6   :  { %v4348_v18 = vmul.f32 0.015625, %v4344_v17 }
0x1de8   :  { %v4350_v39 = vadd.f32 1e-05, %v4348_v18 }
0x1de9   :  { %v4347_v19 = vpop.xlane.xlu0 %4346 }
0x1dea   :  { %7813 = vrsqrt.f32 %v4350_v39  ;;  %v4349_v49 = vmul.f32 0.015625, %v4347_v19  ;;  %v7655_v19 = vld [vmem:[%s9530_s5 + $0xc4] ss:$8 sps:$4 sm:$0xff]  }
0x1deb   :  { %4766 = vmatprep.subr.bf16.mxu1 %v7655_v19 }
0x1dec   :  { %v4351_v20 = vadd.f32 1e-05, %v4349_v49  ;;  %v7653_v49 = vld [vmem:[%s9530_s5 + $0xc0] ss:$8 sps:$4 sm:$0xff]  }
0x1dee   :  { %7815 = vrsqrt.f32 %v4351_v20  ;;  %v7658_v20 = vld [vmem:[%s9530_s5 + $0xd4] ss:$8 sps:$4 sm:$0xff]  }
0x1df4   :  { %v7814_v48 = vpop.eup %7813 }
0x1df5   :  { %v4354_v23 = vmul.f32 %v7814_v48, %v4338_v54  ;;  %v7656_v48 = vld [vmem:[%s9530_s5 + $0xd0] ss:$8 sps:$4 sm:$0xff]  }
0x1df7   :  { %v4362_v25 = vmul.f32 %v6575_v51, %v4354_v23  ;;  %v7661_v23 = vld [vmem:[%s9530_s5 + $0xe4] ss:$8 sps:$4 sm:$0xff]  }
0x1df8   :  { %v7816_v24 = vpop.eup %7815 }
0x1df9   :  { %v4355_v28 = vmul.f32 %v7816_v24, %v4339_v56  ;;  %v4370_v33 = vadd.f32 %v6576_v29, %v4362_v25  ;;  %v7662_v24 = vld [vmem:[%s9530_s5 + $0xf0] ss:$8 sps:$4 sm:$0xff]   ;;  %v7664_v25 = vld [vmem:[%s9530_s5 + $0xf4] ss:$8 sps:$4 sm:$0xff]  }
0x1dfb   :  { %v4363_v32 = vmul.f32 %v6575_v51, %v4355_v28  ;;  %v7659_v51 = vld [vmem:[%s9530_s5 + $0xe0] ss:$8 sps:$4 sm:$0xff]   ;;  %s6323_s5 = sshll.u32 %s7896_s30, 4  ;;  %s6324_s5 = int_to_ptr.vmem [resolvable:$true] %s6323_s5 }
0x1dfc   :  { %s7861_s0 = scalar_lea.vmem %s6324_s5, 32  ;;  %p7866_p1 = scmp.lt.s32.totalorder %s6324_s5, %s6324_s5 }
0x1dfd   :  { %v4371_v34 = vadd.f32 %v6576_v29, %v4363_v32  ;;  %p7862_p0 = scmp.ne.s32.totalorder %s6324_s5, %s7861_s0  ;;  %p7867_p2 = scmp.lt.s32.totalorder %s7861_s0, %s7861_s0 }
0x1dff   :  { %v4372_v27 = vpack.c.bf16 %v4371_v34, %v4370_v33  ;;  %p7868_p3 = por %p7867_p2, %p7866_p1 }
0x1e01   :  { %6594 = vmatmul.mubr.msk.bf16.vlgmr.msra.gmra.mrb[128].mxu1 %vm175_vm4, %v4372_v27  ;;  %p7869_p4 = pnand %p7868_p3, %p7862_p0 }
0x1e02   :  { %4798 = vmatprep.mubr.bf16.mxu1 %v7885_v2  ;;  %4767 = vmatpush1.bf16.msra.mxu1 %v7653_v49 }
0x1e03   :  { %4768 = vmatprep.subr.bf16.mxu1 %v7658_v20 }
0x1e06   :  { %4769 = vmatpush1.bf16.msra.mxu1 %v7656_v48 }
0x1e07   :  { %4770 = vmatprep.subr.bf16.mxu1 %v7661_v23 }
0x1e0a   :  { %4771 = vmatpush1.bf16.msra.mxu1 %v7659_v51 }
0x1e0b   :  { %4772 = vmatprep.subr.bf16.mxu1 %v7664_v25 }
0x1e0e   :  { %4773 = vmatpush1.bf16.msra.mxu1 %v7662_v24 }
0x1e0f   :  { %7361 = vmatprep.subr.bf16.mxu1 %v7886_v10 }
0x1ed4   :  { %v4472_v44 = vpop.f32.mrb[128].mxu1 }
0x1ed5   :  { %v4473_v12 = vadd.f32 %v4472_v44, %v4388_v41  ;;  %v4474_v46 = vpop.f32.mrb[129].mxu1 }
0x1ed6   :  { %v4475_v50 = vadd.f32 %v4474_v46, %v4392_v43  ;;  %v4476_v52 = vpop.f32.mrb[130].mxu1 }
0x1ed7   :  { %v4477_v53 = vadd.f32 %v4476_v52, %v4388_v41  ;;  %v4478_v54 = vpop.f32.mrb[131].mxu1  ;;  %v4481_v56 = vmax.f32 %v4473_v12, 0.0  ;;  %v6648_v41 = vld [vmem:[%s9529_s4 + $0x3] ss:$0 sm:$0xff]  ;;  %s9575_s4 = smov 96  }
0x1ed8   :  { %v4479_v5 = vadd.f32 %v4478_v54, %v4392_v43  ;;  %v4482_v7 = vmax.f32 %v4475_v50, 0.0 }
0x1ed9   :  { %v4483_v36 = vmax.f32 %v4477_v53, 0.0 }
0x1eda   :  { %v4484_v55 = vmax.f32 %v4479_v5, 0.0 }
0x1edb   :  { %v4485_v8 = vpack.c.bf16 %v4483_v36, %v4481_v56 }
0x1edc   :  { %v4486_v4 = vpack.c.bf16 %v4484_v55, %v4482_v7 }
0x1ede   :  { %4656 = vmatprep.mubr.bf16.mxu0 %v4486_v4 }
0x1edf   :  { %4657 = vmatmul.mubr.bf16.vlgmr.msra.gmra.mrb[108].mxu0 %v4485_v8 }
0x1ee0   :  { %7375 = vmatprep.mubr.msk.bf16.mxu0 %vm7887_vm5, %v7886_v10 }
0x1fb2   :  { %v6950_v14 = vpop.f32.mrb[108].mxu0 }
0x1fb3   :  { %v6951_v58 = vpop.f32.mrb[109].mxu0 }
0x1fb4   :  { %v6952_v22 = vadd.f32 %v6951_v58, %v6950_v14  ;;  %v6953_v60 = vpop.f32.mrb[110].mxu0 }
0x1fb5   :  { %v6954_v13 = vpop.f32.mrb[111].mxu0 }
0x1fb6   :  { %v4659_v61 = vadd.f32 %v6952_v22, %v6628_v57  ;;  %v6955_v62 = vadd.f32 %v6954_v13, %v6953_v60 }
0x1fb8   :  { %v9115_v63 = vadd.f32 %v4659_v61, %v9010_v42  ;;  %v4662_v0 = vadd.f32 %v6955_v62, %v6628_v57 }
0x1fba   :  { %v9118_v1 = vadd.f32 %v4662_v0, %v9013_v45  ;;  %v4671_v6 = vsel %vm175_vm4, %v9115_v63, 0.0 }
0x1fbb   :  { %4672 = vadd.xlane.f32.xlu1 %v4671_v6 }
0x1fbc   :  { %v4674_v21 = vsel %vm175_vm4, %v9118_v1, 0.0 }
0x1fbd   :  { %4675 = vadd.xlane.f32.xlu0 %v4674_v21 }
0x2048   :  { %v4673_v9 = vpop.xlane.xlu1 %4672 }
0x2049   :  { %v4677_v59 = vmul.f32 0.015625, %v4673_v9 }
0x204a   :  { %v4676_v15 = vpop.xlane.xlu0 %4675 }
0x204b   :  { %v4679_v3 = vsub.f32 %v9115_v63, %v4677_v59  ;;  %v4678_v16 = vmul.f32 0.015625, %v4676_v15 }
0x204d   :  { %v4680_v42 = vsub.f32 %v9118_v1, %v4678_v16  ;;  %v4681_v17 = vmul.f32 %v4679_v3, %v4679_v3 }
0x204f   :  { %v4683_v45 = vsel %vm175_vm4, %v4681_v17, 0.0  ;;  %v4682_v18 = vmul.f32 %v4680_v42, %v4680_v42 }
0x2050   :  { %4684 = vadd.xlane.f32.xlu1 %v4683_v45 }
0x2051   :  { %v4686_v39 = vsel %vm175_vm4, %v4682_v18, 0.0 }
0x2052   :  { %4687 = vadd.xlane.f32.xlu0 %v4686_v39 }
0x20dd   :  { %v4685_v28 = vpop.xlane.xlu1 %4684 }
0x20de   :  { %v4689_v29 = vmul.f32 0.015625, %v4685_v28 }
0x20df   :  { %v4688_v32 = vpop.xlane.xlu0 %4687 }
0x20e0   :  { %v4691_v33 = vadd.f32 1e-05, %v4689_v29  ;;  %v4690_v34 = vmul.f32 0.015625, %v4688_v32 }
0x20e2   :  { %7817 = vrsqrt.f32 %v4691_v33  ;;  %v4692_v27 = vadd.f32 1e-05, %v4690_v34 }
0x20e4   :  { %7819 = vrsqrt.f32 %v4692_v27 }
0x20ec   :  { %v7818_v26 = vpop.eup %7817 }
0x20ed   :  { %v4695_v38 = vmul.f32 %v7818_v26, %v4679_v3 }
0x20ee   :  { %v7820_v31 = vpop.eup %7819 }
0x20ef   :  { %v4703_v30 = vmul.f32 %v6647_v35, %v4695_v38  ;;  %v4696_v40 = vmul.f32 %v7820_v31, %v4680_v42 }
0x20f1   :  { %v4704_v43 = vmul.f32 %v6647_v35, %v4696_v40  ;;  %v4711_v44 = vadd.f32 %v6648_v41, %v4703_v30 }
0x20f3   :  { %v4712_v12 = vadd.f32 %v6648_v41, %v4704_v43 }
0x20f5   :  { %v4713_v46 = vpack.c.bf16 %v4712_v12, %v4711_v44 }
0x20f7   :  { %6665 = vmatmul.mubr.msk.bf16.vlgmr.msra.gmra.mrb[132].mxu1 %vm175_vm4, %v4713_v46 }
0x20f8   :  { %7363 = vmatprep.mubr.msk.bf16.mxu1 %vm7887_vm5, %v7886_v10 }
0x21ca   :  { %v4800_v50 = vpop.f32.mrb[132].mxu1 }
0x21cb   :  { %v4809_v52 = vmul.f32 0.25, %v4800_v50  ;;  %v4811_v53 = vpack.c.bf16 %v4800_v50, %v4800_v50  ;;  %v4802_v54 = vpop.f32.mrb[133].mxu1 }
0x21cc   :  { %v4804_v5 = vpop.f32.mrb[134].mxu1  ;;  %v9182_v60 = vpack.c.bf16 %v4802_v54, %v4802_v54 }
0x21cd   :  { %4925 = vrot.lane.b32.xlu0 %v4811_v53, %s7890_s2  ;;  %4814 = vrot.lane.b32.xlu1 %v4811_v53, %s9574_s3  ;;  %v9164_v56 = vpop.f32.mrb[135].mxu1  ;;  %v4810_v36 = vpack.c.bf16 %v4809_v52, %v4809_v52  ;;  %v5274_v7 = vpack.c.bf16 %v4804_v5, %v4804_v5  ;;  %v5272_v55 = vmul.f32 0.25, %v4804_v5 }
0x21ce   :  { %v4879_v62 = vsel %vm385_vm7, %v9182_v60, 0 }
0x21cf   :  { %v5273_v8 = vpack.c.bf16 %v5272_v55, %v5272_v55 }
0x21d1   :  { %5040 = vrot.lane.b32.xlu0 %v4810_v36, %s9575_s4  ;;  %4923 = vrot.lane.b32.xlu1 %v4810_v36, %s9572_s13 }
0x21d5   :  { %5156 = vrot.lane.b32.xlu0 %v4810_v36, %s9573_s27  ;;  %5042 = vrot.lane.b32.xlu1 %v4811_v53, %s9570_s20 }
0x21d9   :  { %5158 = vrot.lane.b32.xlu1 %v4811_v53, %s9571_s25  ;;  %5388 = vrot.lane.b32.xlu0 %v5274_v7, %s7890_s2 }
0x21dd   :  { %5505 = vrot.lane.b32.xlu0 %v5274_v7, %s9570_s20  ;;  %5277 = vrot.lane.b32.xlu1 %v5274_v7, %s9574_s3 }
0x21e1   :  { %5621 = vrot.lane.b32.xlu0 %v5274_v7, %s9571_s25  ;;  %5386 = vrot.lane.b32.xlu1 %v5273_v8, %s9572_s13 }
0x21e5   :  { %5503 = vrot.lane.b32.xlu1 %v5273_v8, %s9575_s4 }
0x21e9   :  { %5619 = vrot.lane.b32.xlu1 %v5273_v8, %s9573_s27 }
0x223f   :  { %v4926_v4 = vpop.permute.xlu0 %4925  ;;  %v4815_v14 = vpop.permute.xlu1 %4814 }
0x2240   :  { %v4931_v57 = vsel %vm321_vm6, %v4926_v4, 0  ;;  %v4820_v58 = vsel %vm321_vm6, %v4815_v14, 0 }
0x2241   :  { %7362 = vmatpush3.bf16.xpose.msra.mxu1 %v4820_v58  ;;  %7374 = vmatpush3.bf16.xpose.msra.mxu0 %v4931_v57 }
0x2242   :  { %7367 = vmatprep.subr.bf16.mxu1 %v7886_v10  ;;  %7385 = vmatprep.subr.bf16.mxu0 %v7886_v10 }
0x2243   :  { %v4924_v22 = vpop.permute.xlu1 %4923  ;;  %v5041_v6 = vpop.permute.xlu0 %5040 }
0x2247   :  { %v5043_v13 = vpop.permute.xlu1 %5042  ;;  %v5157_v59 = vpop.permute.xlu0 %5156 }
0x2248   :  { %v5048_v61 = vsel %vm321_vm6, %v5043_v13, 0  ;;  %7364 = vmatmul.mubr.msk.bf16.vlgmr.msra.gmra.mrb[136].mxu1 %vm321_vm6, %v4810_v36  ;;  %7376 = vmatmul.mubr.msk.bf16.vlgmr.msra.gmra.mrb[112].mxu0 %vm321_vm6, %v4924_v22 }
0x2249   :  { %7368 = vmatpush3.bf16.msra.mxu1 %v4879_v62  ;;  %7386 = vmatpush3.bf16.xpose.msra.mxu0 %v5048_v61 }
0x224a   :  { %7387 = vmatprep.mubr.msk.bf16.mxu0 %vm7887_vm5, %v7886_v10  ;;  %7397 = vmatprep.subr.bf16.mxu0 %v7886_v10 }
0x224b   :  { %7369 = vmatprep.mubr.msk.bf16.mxu1 %vm7887_vm5, %v7886_v10  ;;  %7379 = vmatprep.subr.bf16.mxu1 %v7886_v10  ;;  %v5159_v0 = vpop.permute.xlu1 %5158  ;;  %v5389_v3 = vpop.permute.xlu0 %5388 }
0x224c   :  { %v5164_v21 = vsel %vm321_vm6, %v5159_v0, 0  ;;  %v5394_v16 = vsel %vm321_vm6, %v5389_v3, 0 }
0x224f   :  { %v5278_v9 = vpop.permute.xlu1 %5277  ;;  %v5506_v42 = vpop.permute.xlu0 %5505 }
0x2250   :  { %7388 = vmatmul.mubr.msk.bf16.vlgmr.msra.gmra.mrb[116].mxu0 %vm321_vm6, %v5041_v6  ;;  %v5283_v15 = vsel %vm321_vm6, %v5278_v9, 0  ;;  %v5511_v45 = vsel %vm321_vm6, %v5506_v42, 0 }
0x2251   :  { %7398 = vmatpush3.bf16.xpose.msra.mxu0 %v5164_v21  ;;  %7399 = vmatprep.mubr.msk.bf16.mxu0 %vm7887_vm5, %v7886_v10 }
0x2252   :  { %7409 = vmatprep.subr.bf16.mxu0 %v7886_v10 }
0x2253   :  { %v5387_v17 = vpop.permute.xlu1 %5386  ;;  %v5622_v18 = vpop.permute.xlu0 %5621 }
0x2254   :  { %v5627_v19 = vsel %vm321_vm6, %v5622_v18, 0 }
0x2257   :  { %v5504_v39 = vpop.permute.xlu1 %5503 }
0x2258   :  { %7400 = vmatmul.mubr.msk.bf16.vlgmr.msra.gmra.mrb[120].mxu0 %vm321_vm6, %v5157_v59 }
0x2259   :  { %7410 = vmatpush3.bf16.xpose.msra.mxu0 %v5283_v15  ;;  %7411 = vmatprep.mubr.msk.bf16.mxu0 %vm7887_vm5, %v7886_v10 }
0x225a   :  { %7421 = vmatprep.subr.bf16.mxu0 %v7886_v10 }
0x225b   :  { %v5620_v49 = vpop.permute.xlu1 %5619 }
0x2260   :  { %7412 = vmatmul.mubr.msk.bf16.vlgmr.msra.gmra.mrb[124].mxu0 %vm321_vm6, %v5273_v8 }
0x2261   :  { %7422 = vmatpush3.bf16.xpose.msra.mxu0 %v5394_v16  ;;  %7423 = vmatprep.mubr.msk.bf16.mxu0 %vm7887_vm5, %v7886_v10 }
0x2262   :  { %7433 = vmatprep.subr.bf16.mxu0 %v7886_v10 }
0x2268   :  { %7424 = vmatmul.mubr.msk.bf16.vlgmr.msra.gmra.mrb[128].mxu0 %vm321_vm6, %v5387_v17 }
0x2269   :  { %7434 = vmatpush3.bf16.xpose.msra.mxu0 %v5511_v45  ;;  %7435 = vmatprep.mubr.msk.bf16.mxu0 %vm7887_vm5, %v7886_v10 }
0x226a   :  { %7445 = vmatprep.subr.bf16.mxu0 %v7886_v10 }
0x2270   :  { %7436 = vmatmul.mubr.msk.bf16.vlgmr.msra.gmra.mrb[132].mxu0 %vm321_vm6, %v5504_v39 }
0x2271   :  { %7446 = vmatpush3.bf16.xpose.msra.mxu0 %v5627_v19  ;;  %7447 = vmatprep.mubr.msk.bf16.mxu0 %vm7887_vm5, %v7886_v10 }
0x2272   :  { %7457 = vmatprep.subr.bf16.mxu0 %v7886_v10 }
0x2278   :  { %7448 = vmatmul.mubr.msk.bf16.vlgmr.msra.gmra.mrb[136].mxu0 %vm321_vm6, %v5620_v49 }
0x2279   :  { %7465 = vmatprep.mubr.msk.bf16.mxu0 %vm7887_vm5, %v7886_v10 }
0x231b   :  { %v4856_v20 = vpop.f32.mrb[136].mxu1  ;;  %v4967_v48 = vpop.f32.mrb[112].mxu0 }
0x231c   :  { %v4862_v23 = vsel %vm8143_vm8, %v4856_v20, -1e+30  ;;  %v4973_v51 = vsel %vm8143_vm8, %v4967_v48, -1e+30  ;;  %v7365_v24 = vpop.f32.mrb[137].mxu1  ;;  %v7377_v25 = vpop.f32.mrb[113].mxu0 }
0x231d   :  { %v4863_v28 = vsel %vm369_vm9, %v4862_v23, -inf  ;;  %v4974_v29 = vsel %vm369_vm9, %v4973_v51, -inf  ;;  %v4859_v32 = vpop.f32.mrb[138].mxu1  ;;  %v4970_v33 = vpop.f32.mrb[114].mxu0 }
0x231e   :  { %v7378_v34 = vpop.f32.mrb[115].mxu0  ;;  %4975 = vmax.xlane.f32.xlu1 %v4974_v29  ;;  %4864 = vmax.xlane.f32.xlu0 %v4863_v28  ;;  %v7366_v27 = vpop.f32.mrb[139].mxu1 }
0x2323   :  { %v5084_v26 = vpop.f32.mrb[116].mxu0 }
0x2324   :  { %v5090_v35 = vsel %vm8143_vm8, %v5084_v26, -1e+30  ;;  %v7389_v38 = vpop.f32.mrb[117].mxu0 }
0x2325   :  { %v5091_v31 = vsel %vm369_vm9, %v5090_v35, -inf  ;;  %v5087_v30 = vpop.f32.mrb[118].mxu0 }
0x2326   :  { %v7390_v40 = vpop.f32.mrb[119].mxu0  ;;  %5092 = vmax.xlane.f32.xlu0 %v5091_v31 }
0x232b   :  { %v5200_v41 = vpop.f32.mrb[120].mxu0 }
0x232c   :  { %v5206_v43 = vsel %vm8143_vm8, %v5200_v41, -1e+30  ;;  %v7401_v44 = vpop.f32.mrb[121].mxu0 }
0x232d   :  { %v5207_v12 = vsel %vm369_vm9, %v5206_v43, -inf  ;;  %v5203_v46 = vpop.f32.mrb[122].mxu0 }
0x232e   :  { %v7402_v50 = vpop.f32.mrb[123].mxu0  ;;  %5208 = vmax.xlane.f32.xlu0 %v5207_v12 }
0x2333   :  { %v5319_v52 = vpop.f32.mrb[124].mxu0 }
0x2334   :  { %v9237_v53 = vsel %vm8143_vm8, %v5319_v52, -1e+30  ;;  %v7413_v54 = vpop.f32.mrb[125].mxu0 }
0x2335   :  { %v5326_v5 = vsel %vm369_vm9, %v9237_v53, -inf  ;;  %v5322_v36 = vpop.f32.mrb[126].mxu0 }
0x2336   :  { %5327 = vmax.xlane.f32.xlu1 %v5326_v5  ;;  %v7414_v7 = vpop.f32.mrb[127].mxu0 }
0x233b   :  { %v5430_v55 = vpop.f32.mrb[128].mxu0 }
0x233c   :  { %v5436_v8 = vsel %vm8143_vm8, %v5430_v55, -1e+30  ;;  %v7425_v4 = vpop.f32.mrb[129].mxu0 }
0x233d   :  { %v5437_v14 = vsel %vm369_vm9, %v5436_v8, -inf  ;;  %v5433_v57 = vpop.f32.mrb[130].mxu0 }
0x233e   :  { %v7426_v58 = vpop.f32.mrb[131].mxu0  ;;  %5438 = vmax.xlane.f32.xlu0 %v5437_v14 }
0x2343   :  { %v5547_v22 = vpop.f32.mrb[132].mxu0 }
0x2344   :  { %v5553_v13 = vsel %vm8143_vm8, %v5547_v22, -1e+30  ;;  %v7437_v61 = vpop.f32.mrb[133].mxu0 }
0x2345   :  { %v5554_v62 = vsel %vm369_vm9, %v5553_v13, -inf  ;;  %v5550_v0 = vpop.f32.mrb[134].mxu0 }
0x2346   :  { %5555 = vmax.xlane.f32.xlu1 %v5554_v62  ;;  %v7438_v6 = vpop.f32.mrb[135].mxu0 }
0x234b   :  { %v5663_v21 = vpop.f32.mrb[136].mxu0 }
0x234c   :  { %v5669_v9 = vsel %vm8143_vm8, %v5663_v21, -1e+30  ;;  %v7449_v59 = vpop.f32.mrb[137].mxu0 }
0x234d   :  { %v5670_v15 = vsel %vm369_vm9, %v5669_v9, -inf  ;;  %v5666_v3 = vpop.f32.mrb[138].mxu0 }
0x234e   :  { %v7450_v16 = vpop.f32.mrb[139].mxu0  ;;  %5671 = vmax.xlane.f32.xlu0 %v5670_v15 }
0x23ab   :  { %v4976_v42 = vpop.xlane.xlu1 %4975  ;;  %v4865_v17 = vpop.xlane.xlu0 %4864 }
0x23ac   :  { %v4977_v45 = vsub.f32 %v4973_v51, %v4976_v42  ;;  %v4866_v18 = vsub.f32 %v4862_v23, %v4865_v17 }
0x23ae   :  { %v4978_v39 = vmul.f32 1.442695, %v4977_v45  ;;  %v4867_v19 = vmul.f32 1.442695, %v4866_v18 }
0x23b0   :  { %7821 = vpow2.f32 %v4978_v39 }
0x23b1   :  { %7823 = vpow2.f32 %v4867_v19 }
0x23b3   :  { %v5093_v49 = vpop.xlane.xlu0 %5092 }
0x23b4   :  { %v5094_v20 = vsub.f32 %v5090_v35, %v5093_v49 }
0x23b6   :  { %v5095_v48 = vmul.f32 1.442695, %v5094_v20 }
0x23b8   :  { %7825 = vpow2.f32 %v5095_v48 }
0x23ba   :  { %v9250_v37 = vpop.eup %7821 }
0x23bb   :  { %v7824_v24 = vpop.eup %7823  ;;  %v5209_v25 = vpop.xlane.xlu0 %5208  ;;  %v4980_v28 = vsel %vm369_vm9, %v9250_v37, 0.0 }
0x23bc   :  { %v5210_v29 = vsub.f32 %v5206_v43, %v5209_v25  ;;  %4981 = vadd.xlane.f32.xlu0 %v4980_v28  ;;  %v4869_v51 = vsel %vm369_vm9, %v7824_v24, 0.0 }
0x23bd   :  { %4870 = vadd.xlane.f32.xlu1 %v4869_v51 }
0x23be   :  { %v5211_v23 = vmul.f32 1.442695, %v5210_v29 }
0x23c0   :  { %7827 = vpow2.f32 %v5211_v23 }
0x23c2   :  { %v9255_v32 = vpop.eup %7825 }
0x23c3   :  { %v5097_v33 = vsel %vm369_vm9, %v9255_v32, 0.0  ;;  %v5328_v26 = vpop.xlane.xlu1 %5327 }
0x23c4   :  { %5098 = vadd.xlane.f32.xlu1 %v5097_v33  ;;  %v5329_v35 = vsub.f32 %v9237_v53, %v5328_v26 }
0x23c6   :  { %v5330_v40 = vmul.f32 1.442695, %v5329_v35 }
0x23c8   :  { %7829 = vpow2.f32 %v5330_v40 }
0x23ca   :  { %v9259_v34 = vpop.eup %7827 }
0x23cb   :  { %v5213_v27 = vsel %vm369_vm9, %v9259_v34, 0.0  ;;  %v5439_v38 = vpop.xlane.xlu0 %5438 }
0x23cc   :  { %5214 = vadd.xlane.f32.xlu0 %v5213_v27  ;;  %v5440_v30 = vsub.f32 %v5436_v8, %v5439_v38  ;;  %v5275_v8 = vpack.c.bf16 %v9164_v56, %v9164_v56 }
0x23ce   :  { %v5441_v44 = vmul.f32 1.442695, %v5440_v30  ;;  %v5342_v19 = vsel %vm385_vm7, %v5275_v8, 0 }
0x23d0   :  { %7831 = vpow2.f32 %v5441_v44 }
0x23d2   :  { %v9270_v52 = vpop.eup %7829 }
0x23d3   :  { %v5556_v31 = vpop.xlane.xlu1 %5555  ;;  %v5332_v53 = vsel %vm369_vm9, %v9270_v52, 0.0 }
0x23d4   :  { %v5557_v41 = vsub.f32 %v5553_v13, %v5556_v31 }
0x23d5   :  { %5103 = vrot.lane.b32.xlu1 %v9182_v60, %s9575_s4 }
0x23d6   :  { %v5558_v12 = vmul.f32 1.442695, %v5557_v41 }
0x23d8   :  { %7833 = vpow2.f32 %v5558_v12 }
0x23d9   :  { %5219 = vrot.lane.b32.xlu1 %v9182_v60, %s9573_s27 }
0x23db   :  { %v5672_v43 = vpop.xlane.xlu0 %5671 }
0x23dc   :  { %v5673_v46 = vsub.f32 %v5669_v9, %v5672_v43 }
0x23de   :  { %v5674_v50 = vmul.f32 1.442695, %v5673_v46 }
0x23e0   :  { %7835 = vpow2.f32 %v5674_v50 }
0x23e2   :  { %4987 = vrot.lane.b32.xlu0 %v9182_v60, %s9572_s13  ;;  %v9272_v60 = vpop.eup %7831 }
0x23e3   :  { %v9276_v54 = vpop.eup %7833  ;;  %v5443_v36 = vsel %vm369_vm9, %v9272_v60, 0.0 }
0x23e4   :  { %v5560_v5 = vsel %vm369_vm9, %v9276_v54, 0.0 }
0x23ea   :  { %v9282_v7 = vpop.eup %7835 }
0x23eb   :  { %v5676_v55 = vsel %vm369_vm9, %v9282_v7, 0.0 }
0x23fd   :  { %5333 = vadd.xlane.f32.xlu1 %v5332_v53 }
0x2401   :  { %5561 = vadd.xlane.f32.xlu0 %v5560_v5  ;;  %5444 = vadd.xlane.f32.xlu1 %v5443_v36 }
0x2405   :  { %5677 = vadd.xlane.f32.xlu1 %v5676_v55 }
0x2416   :  { %5566 = vrot.lane.b32.xlu1 %v5275_v8, %s9575_s4 }
0x2417   :  { %5450 = vrot.lane.b32.xlu0 %v5275_v8, %s9572_s13 }
0x241b   :  { %5682 = vrot.lane.b32.xlu0 %v5275_v8, %s9573_s27 }
0x2449   :  { %v4982_v14 = vpop.xlane.xlu0 %4981 }
0x244a   :  { %v4871_v4 = vpop.xlane.xlu1 %4870 }
0x244b   :  { %7837 = vrcp.f32 %v4871_v4 }
0x244c   :  { %7839 = vrcp.f32 %v4982_v14 }
0x2451   :  { %v5099_v57 = vpop.xlane.xlu1 %5098 }
0x2452   :  { %7841 = vrcp.f32 %v5099_v57 }
0x2455   :  { %v7838_v58 = vpop.eup %7837  ;;  %v5104_v21 = vpop.permute.xlu1 %5103 }
0x2456   :  { %v4873_v22 = vmul.f32 %v7838_v58, %v7824_v24  ;;  %v7840_v61 = vpop.eup %7839  ;;  %v5109_v15 = vsel %vm385_vm7, %v5104_v21, 0 }
0x2457   :  { %v4984_v56 = vmul.f32 %v7840_v61, %v9250_v37  ;;  %v7665_v61 = vld [vmem:[%s9531_s6 + $0x60] sm:$0xff]  }
0x2458   :  { %v4874_v13 = vpack.c.bf16 %v4873_v22, %v4873_v22  ;;  %7458 = vmatpush3.bf16.msra.mxu0 %v7665_v61  ;;  %v7688_v61 = vld [vmem:[%s9537_s12 + $0x198] sm:$0xff]  }
0x2459   :  { %v5215_v62 = vpop.xlane.xlu0 %5214  ;;  %v4985_v9 = vpack.c.bf16 %v4984_v56, %v4984_v56  ;;  %v5220_v16 = vpop.permute.xlu1 %5219  ;;  %7459 = vmatprep.subr.bf16.mxu0 %v7886_v10 }
0x245a   :  { %7370 = vmatmul.mubr.msk.bf16.vlgmr.msra.gmra.mrb[140].mxu1 %vm369_vm9, %v4874_v13  ;;  %7843 = vrcp.f32 %v5215_v62  ;;  %v5225_v45 = vsel %vm385_vm7, %v5220_v16, 0  ;;  %v7666_v62 = vld [vmem:[%s9531_s6 + $0x68] sm:$0xff]  }
0x245b   :  { %7381 = vmatprep.mubr.msk.bf16.mxu1 %vm7887_vm5, %v7886_v10 }
0x245c   :  { %v7842_v59 = vpop.eup %7841  ;;  %7460 = vmatpush3.bf16.msra.mxu0 %v7666_v62  ;;  %v7689_v62 = vld [vmem:[%s9537_s12 + $0x1e0] sm:$0xff]  }
0x245d   :  { %v4988_v0 = vpop.permute.xlu0 %4987  ;;  %v5101_v3 = vmul.f32 %v7842_v59, %v9255_v32  ;;  %7461 = vmatprep.subr.bf16.mxu0 %v7886_v10  ;;  %v7668_v59 = vld [vmem:[%s9531_s6 + $0x78] sm:$0xff]  }
0x245e   :  { %v4993_v6 = vsel %vm385_vm7, %v4988_v0, 0 }
0x245f   :  { %7380 = vmatpush3.bf16.msra.mxu1 %v4993_v6  ;;  %v5102_v42 = vpack.c.bf16 %v5101_v3, %v5101_v3 }
0x2460   :  { %7391 = vmatprep.subr.bf16.mxu1 %v7886_v10 }
0x2462   :  { %7382 = vmatmul.mubr.msk.bf16.vlgmr.msra.gmra.mrb[144].mxu1 %vm369_vm9, %v4985_v9  ;;  %v7667_v9 = vld [vmem:[%s9531_s6 + $0x70] sm:$0xff]  }
0x2463   :  { %7392 = vmatpush3.bf16.msra.mxu1 %v5109_v15  ;;  %7393 = vmatprep.mubr.msk.bf16.mxu1 %vm7887_vm5, %v7886_v10 }
0x2464   :  { %7403 = vmatprep.subr.bf16.mxu1 %v7886_v10  ;;  %v7844_v17 = vpop.eup %7843  ;;  %7462 = vmatpush3.bf16.msra.mxu0 %v7667_v9 }
0x2465   :  { %v5217_v18 = vmul.f32 %v7844_v17, %v9259_v34  ;;  %7463 = vmatprep.subr.bf16.mxu0 %v7886_v10 }
0x2467   :  { %v5218_v39 = vpack.c.bf16 %v5217_v18, %v5217_v18 }
0x2468   :  { %7464 = vmatpush3.bf16.msra.mxu0 %v7668_v59 }
0x246a   :  { %7394 = vmatmul.mubr.msk.bf16.vlgmr.msra.gmra.mrb[148].mxu1 %vm369_vm9, %v5102_v42 }
0x246b   :  { %7404 = vmatpush3.bf16.msra.mxu1 %v5225_v45  ;;  %7405 = vmatprep.mubr.msk.bf16.mxu1 %vm7887_vm5, %v7886_v10 }
0x246c   :  { %7415 = vmatprep.subr.bf16.mxu1 %v7886_v10 }
0x2472   :  { %7406 = vmatmul.mubr.msk.bf16.vlgmr.msra.gmra.mrb[152].mxu1 %vm369_vm9, %v5218_v39 }
0x2473   :  { %7416 = vmatpush3.bf16.msra.mxu1 %v5342_v19  ;;  %7417 = vmatprep.mubr.msk.bf16.mxu1 %vm7887_vm5, %v7886_v10 }
0x2474   :  { %7427 = vmatprep.subr.bf16.mxu1 %v7886_v10 }
0x248a   :  { %v5334_v49 = vpop.xlane.xlu1 %5333 }
0x248b   :  { %7845 = vrcp.f32 %v5334_v49 }
0x248e   :  { %v5445_v20 = vpop.xlane.xlu1 %5444  ;;  %v5562_v48 = vpop.xlane.xlu0 %5561 }
0x248f   :  { %7847 = vrcp.f32 %v5445_v20 }
0x2490   :  { %7849 = vrcp.f32 %v5562_v48 }
0x2492   :  { %v5451_v25 = vpop.permute.xlu0 %5450  ;;  %v5678_v51 = vpop.xlane.xlu1 %5677 }
0x2493   :  { %v5456_v23 = vsel %vm385_vm7, %v5451_v25, 0  ;;  %7851 = vrcp.f32 %v5678_v51  ;;  %v6691_v51 = vld [vmem:[%s9532_s7 + $0x3] ss:$0 sm:$0xff] }
0x2495   :  { %v7846_v37 = vpop.eup %7845 }
0x2496   :  { %v5336_v24 = vmul.f32 %v7846_v37, %v9270_v52  ;;  %v5567_v33 = vpop.permute.xlu1 %5566  ;;  %v5683_v38 = vpop.permute.xlu0 %5682 }
0x2497   :  { %v5572_v26 = vsel %vm385_vm7, %v5567_v33, 0  ;;  %v5688_v40 = vsel %vm385_vm7, %v5683_v38, 0 }
0x2498   :  { %v5337_v28 = vpack.c.bf16 %v5336_v24, %v5336_v24 }
0x2499   :  { %v7848_v29 = vpop.eup %7847 }
0x249a   :  { %7418 = vmatmul.mubr.msk.bf16.vlgmr.msra.gmra.mrb[156].mxu1 %vm369_vm9, %v5337_v28  ;;  %v5447_v32 = vmul.f32 %v7848_v29, %v9272_v60  ;;  %v7850_v27 = vpop.eup %7849 }
0x249b   :  { %7428 = vmatpush3.bf16.msra.mxu1 %v5456_v23  ;;  %7429 = vmatprep.mubr.msk.bf16.mxu1 %vm7887_vm5, %v7886_v10  ;;  %v5564_v35 = vmul.f32 %v7850_v27, %v9276_v54 }
0x249c   :  { %7439 = vmatprep.subr.bf16.mxu1 %v7886_v10  ;;  %v5448_v34 = vpack.c.bf16 %v5447_v32, %v5447_v32 }
0x249d   :  { %v5565_v31 = vpack.c.bf16 %v5564_v35, %v5564_v35  ;;  %v7852_v30 = vpop.eup %7851 }
0x249e   :  { %v5680_v41 = vmul.f32 %v7852_v30, %v9282_v7 }
0x24a0   :  { %v5681_v43 = vpack.c.bf16 %v5680_v41, %v5680_v41 }
0x24a2   :  { %7430 = vmatmul.mubr.msk.bf16.vlgmr.msra.gmra.mrb[160].mxu1 %vm369_vm9, %v5448_v34 }
0x24a3   :  { %7440 = vmatpush3.bf16.msra.mxu1 %v5572_v26  ;;  %7441 = vmatprep.mubr.msk.bf16.mxu1 %vm7887_vm5, %v7886_v10 }
0x24a4   :  { %7451 = vmatprep.subr.bf16.mxu1 %v7886_v10 }
0x24aa   :  { %7442 = vmatmul.mubr.msk.bf16.vlgmr.msra.gmra.mrb[164].mxu1 %vm369_vm9, %v5565_v31 }
0x24ab   :  { %7452 = vmatpush3.bf16.msra.mxu1 %v5688_v40  ;;  %7453 = vmatprep.mubr.msk.bf16.mxu1 %vm7887_vm5, %v7886_v10 }
0x24b2   :  { %7454 = vmatmul.mubr.msk.bf16.vlgmr.msra.gmra.mrb[168].mxu1 %vm369_vm9, %v5681_v43 }
0x24b3   :  { %5969 = vmatprep.mubr.bf16.mxu1 %v7885_v2 }
0x252d   :  { %v4915_v44 = vpop.f32.mrb[140].mxu1 }
0x252e   :  { %4921 = vst.msk [vmem:[#allocation2] sm:$0xff] %vm321_vm6, %v4915_v44  ;;  %v7371_v12 = vpop.f32.mrb[141].mxu1 }
0x252f   :  { %v4918_v46 = vpop.f32.mrb[142].mxu1 }
0x2530   :  { %v7372_v50 = vpop.f32.mrb[143].mxu1 }
0x2535   :  { %v5029_v52 = vpop.f32.mrb[144].mxu1 }
0x2536   :  { %5036 = vrot.lane.b32.xlu0 %v5029_v52, %s9571_s25  ;;  %v7383_v60 = vpop.f32.mrb[145].mxu1 }
0x2537   :  { %v5032_v53 = vpop.f32.mrb[146].mxu1  ;;  %v7671_v60 = vld [vmem:[%s9535_s10 + $0xc4] ss:$8 sps:$4 sm:$0xff]  }
0x2538   :  { %v7384_v54 = vpop.f32.mrb[147].mxu1  ;;  %v7669_v53 = vld [vmem:[%s9535_s10 + $0xc0] ss:$8 sps:$4 sm:$0xff]   ;;  %5937 = vmatprep.subr.bf16.mxu1 %v7671_v60 }
0x2539   :  { %5938 = vmatpush1.bf16.msra.mxu1 %v7669_v53  ;;  %v7674_v54 = vld [vmem:[%s9535_s10 + $0xd4] ss:$8 sps:$4 sm:$0xff]  }
0x253a   :  { %5939 = vmatprep.subr.bf16.mxu1 %v7674_v54 }
0x253d   :  { %v5145_v5 = vpop.f32.mrb[148].mxu1 }
0x253e   :  { %5152 = vrot.lane.b32.xlu0 %v5145_v5, %s9570_s20  ;;  %v7395_v36 = vpop.f32.mrb[149].mxu1  ;;  %v7672_v5 = vld [vmem:[%s9535_s10 + $0xd0] ss:$8 sps:$4 sm:$0xff]  }
0x253f   :  { %v5148_v7 = vpop.f32.mrb[150].mxu1  ;;  %5940 = vmatpush1.bf16.msra.mxu1 %v7672_v5  ;;  %v7677_v36 = vld [vmem:[%s9535_s10 + $0xe4] ss:$8 sps:$4 sm:$0xff]  }
0x2540   :  { %v7396_v55 = vpop.f32.mrb[151].mxu1  ;;  %v7675_v7 = vld [vmem:[%s9535_s10 + $0xe0] ss:$8 sps:$4 sm:$0xff]   ;;  %5941 = vmatprep.subr.bf16.mxu1 %v7677_v36 }
0x2541   :  { %v7678_v55 = vld [vmem:[%s9535_s10 + $0xf0] ss:$8 sps:$4 sm:$0xff]  }
0x2543   :  { %5942 = vmatpush1.bf16.msra.mxu1 %v7675_v7 }
0x2545   :  { %v5261_v8 = vpop.f32.mrb[152].mxu1 }
0x2546   :  { %5268 = vrot.lane.b32.xlu0 %v5261_v8, %s7890_s2  ;;  %v7407_v2 = vpop.f32.mrb[153].mxu1  ;;  %v7680_v8 = vld [vmem:[%s9535_s10 + $0xf4] ss:$8 sps:$4 sm:$0xff]  }
0x2547   :  { %v5264_v4 = vpop.f32.mrb[154].mxu1  ;;  %5943 = vmatprep.subr.bf16.mxu1 %v7680_v8  ;;  %v7681_v2 = vld [vmem:[%s9537_s12 + $0x1c0] sm:$0xff]  }
0x2548   :  { %v7408_v14 = vpop.f32.mrb[155].mxu1  ;;  %5944 = vmatpush1.bf16.msra.mxu1 %v7678_v55  ;;  %v7682_v4 = vld [vmem:[%s9537_s12 + $0x180] sm:$0xff]   ;;  %6993 = vmatprep.subr.bf16.mxu0 %v7681_v2 }
0x2549   :  { %v7683_v14 = vld [vmem:[%s9537_s12 + $0x1c8] sm:$0xff]  }
0x256d   :  { %v5378_v57 = vpop.f32.mrb[156].mxu1 }
0x256e   :  { %5384 = vst.msk [vmem:[#allocation2 + $0x8] sm:$0xff] %vm321_vm6, %v5378_v57  ;;  %v7419_v58 = vpop.f32.mrb[157].mxu1  ;;  %v7684_v57 = vld [vmem:[%s9537_s12 + $0x188] sm:$0xff]  }
0x256f   :  { %v5381_v22 = vpop.f32.mrb[158].mxu1  ;;  %v7685_v58 = vld [vmem:[%s9537_s12 + $0x1d0] sm:$0xff]  }
0x2570   :  { %v7420_v13 = vpop.f32.mrb[159].mxu1  ;;  %v7686_v22 = vld [vmem:[%s9537_s12 + $0x190] sm:$0xff]  }
0x2571   :  { %v7687_v13 = vld [vmem:[%s9537_s12 + $0x1d8] sm:$0xff]  }
0x2575   :  { %v5492_v56 = vpop.f32.mrb[160].mxu1 }
0x2576   :  { %5499 = vrot.lane.b32.xlu1 %v5492_v56, %s9571_s25  ;;  %v7431_v0 = vpop.f32.mrb[161].mxu1  ;;  %v7690_v56 = vld [vmem:[%s9537_s12 + $0x1a0] sm:$0xff]  }
0x2577   :  { %v5495_v6 = vpop.f32.mrb[162].mxu1  ;;  %v7691_v0 = vld [vmem:[%s9537_s12 + $0x1e8] sm:$0xff]  }
0x2578   :  { %v7432_v21 = vpop.f32.mrb[163].mxu1 }
0x257d   :  { %v5608_v15 = vpop.f32.mrb[164].mxu1 }
0x257e   :  { %5615 = vrot.lane.b32.xlu1 %v5608_v15, %s9570_s20  ;;  %v7443_v3 = vpop.f32.mrb[165].mxu1 }
0x257f   :  { %v5611_v16 = vpop.f32.mrb[166].mxu1 }
0x2580   :  { %v7444_v42 = vpop.f32.mrb[167].mxu1 }
0x2585   :  { %v5724_v17 = vpop.f32.mrb[168].mxu1 }
0x2586   :  { %5731 = vrot.lane.b32.xlu1 %v5724_v17, %s7890_s2  ;;  %v7455_v45 = vpop.f32.mrb[169].mxu1  ;;  %v6699_v17 = vld [vmem:[%s9533_s8 + $0x3] ss:$0 sm:$0xff] }
0x2587   :  { %v5727_v18 = vpop.f32.mrb[170].mxu1 }
0x2588   :  { %v7456_v39 = vpop.f32.mrb[171].mxu1 }
0x25a8   :  { %v5037_v19 = vpop.permute.xlu0 %5036 }
0x25a9   :  { %5039 = vst.msk [vmem:[#allocation2] sm:$0xff] %vm547_vm10, %v5037_v19  ;;  %v6700_v19 = vld [vmem:[%s9534_s9 + $0x3] ss:$0 sm:$0xff] }
0x25b0   :  { %v5153_v49 = vpop.permute.xlu0 %5152 }
0x25b1   :  { %5155 = vst.msk [vmem:[#allocation2] sm:$0xff] %vm664_vm11, %v5153_v49 }
0x25b8   :  { %v5269_v20 = vpop.permute.xlu0 %5268 }
0x25b9   :  { %5271 = vst.msk [vmem:[#allocation2] sm:$0xff] %vm781_vm12, %v5269_v20 }
0x25c0   :  { %v5735_v25 = vld [vmem:[#allocation2] sm:$0xff] }
0x25e8   :  { %v5500_v48 = vpop.permute.xlu1 %5499 }
0x25e9   :  { %5502 = vst.msk [vmem:[#allocation2 + $0x8] sm:$0xff] %vm547_vm10, %v5500_v48 }
0x25f0   :  { %v5616_v37 = vpop.permute.xlu1 %5615 }
0x25f1   :  { %5618 = vst.msk [vmem:[#allocation2 + $0x8] sm:$0xff] %vm664_vm11, %v5616_v37 }
0x25f8   :  { %v5732_v24 = vpop.permute.xlu1 %5731 }
0x25f9   :  { %5734 = vst.msk [vmem:[#allocation2 + $0x8] sm:$0xff] %vm781_vm12, %v5732_v24  ;;  %v7692_v24 = vld [vmem:[%s9537_s12 + $0x1a8] sm:$0xff]  }
0x2600   :  { %v5736_v28 = vld [vmem:[#allocation2 + $0x8] sm:$0xff] }
0x2601   :  { %v5737_v29 = vpack.c.bf16 %v5736_v28, %v5735_v25  ;;  %v7693_v25 = vld [vmem:[%s9537_s12 + $0x1f0] sm:$0xff]  }
0x2602   :  { %v7694_v28 = vld [vmem:[%s9537_s12 + $0x1b0] sm:$0xff]  }
0x2603   :  { %7466 = vmatmul.mubr.msk.bf16.vlgmr.msra.gmra.mrb[140].mxu0 %vm175_vm4, %v5737_v29  ;;  %v7695_v29 = vld [vmem:[%s9537_s12 + $0x1f8] sm:$0xff]  }
0x2604   :  { %6994 = vmatpush3.bf16.msra.mxu0 %v7682_v4 }
0x2605   :  { %6995 = vmatprep.subr.bf16.mxu0 %v7683_v14 }
0x2608   :  { %6996 = vmatpush3.bf16.msra.mxu0 %v7684_v57 }
0x2609   :  { %6997 = vmatprep.subr.bf16.mxu0 %v7685_v58 }
0x260c   :  { %6998 = vmatpush3.bf16.msra.mxu0 %v7686_v22 }
0x260d   :  { %6999 = vmatprep.subr.bf16.mxu0 %v7687_v13 }
0x2610   :  { %7000 = vmatpush3.bf16.msra.mxu0 %v7688_v61 }
0x2611   :  { %7001 = vmatprep.subr.bf16.mxu0 %v7689_v62 }
0x2614   :  { %7002 = vmatpush3.bf16.msra.mxu0 %v7690_v56 }
0x2615   :  { %7003 = vmatprep.subr.bf16.mxu0 %v7691_v0 }
0x2618   :  { %7004 = vmatpush3.bf16.msra.mxu0 %v7692_v24 }
0x2619   :  { %7005 = vmatprep.subr.bf16.mxu0 %v7693_v25 }
0x261c   :  { %7006 = vmatpush3.bf16.msra.mxu0 %v7694_v28  ;;  %v6769_v28 = vld [vmem:[%s9539_s14] ss:$0 sm:$0xff] }
0x261d   :  { %7007 = vmatprep.subr.bf16.mxu0 %v7695_v29 }
0x26d6   :  { %v5816_v23 = vpop.f32.mrb[140].mxu0 }
0x26d7   :  { %v5817_v32 = vadd.f32 %v6691_v51, %v5816_v23  ;;  %v7467_v33 = vpop.f32.mrb[141].mxu0 }
0x26d8   :  { %v5819_v34 = vpop.f32.mrb[142].mxu0 }
0x26d9   :  { %v9368_v27 = vadd.f32 %v5817_v32, %v9115_v63  ;;  %v5820_v26 = vadd.f32 %v6691_v51, %v5819_v34  ;;  %v7468_v35 = vpop.f32.mrb[143].mxu0  ;;  %v6709_v51 = vld [vmem:[%s9536_s11 + $0x6] sm:$0x3] }
0x26da   :  { %v5887_v23 = vrot.slane %v6709_v51, %v8383_v11  ;;  %v5891_v32 = vrot.slane %v6709_v51, %v8389_v47  ;;  %v6752_v47 = vld [vmem:[%s9569_s1 + $0x3] ss:$0 sm:$0xff]  ;;  %v6770_v51 = vld [vmem:[%s9540_s15] ss:$0 sm:$0xff] }
0x26db   :  { %v9371_v38 = vadd.f32 %v5820_v26, %v9118_v1  ;;  %v5829_v31 = vsel %vm175_vm4, %v9368_v27, 0.0 }
0x26dc   :  { %5830 = vadd.xlane.f32.xlu0 %v5829_v31 }
0x26dd   :  { %v5832_v30 = vsel %vm175_vm4, %v9371_v38, 0.0 }
0x26de   :  { %5833 = vadd.xlane.f32.xlu1 %v5832_v30 }
0x2769   :  { %v5831_v40 = vpop.xlane.xlu0 %5830 }
0x276a   :  { %v5835_v41 = vmul.f32 0.015625, %v5831_v40 }
0x276b   :  { %v5834_v43 = vpop.xlane.xlu1 %5833 }
0x276c   :  { %v5837_v44 = vsub.f32 %v9368_v27, %v5835_v41  ;;  %v5836_v63 = vmul.f32 0.015625, %v5834_v43 }
0x276e   :  { %v5838_v12 = vsub.f32 %v9371_v38, %v5836_v63  ;;  %v5839_v46 = vmul.f32 %v5837_v44, %v5837_v44 }
0x2770   :  { %v5841_v1 = vsel %vm175_vm4, %v5839_v46, 0.0  ;;  %v5840_v50 = vmul.f32 %v5838_v12, %v5838_v12 }
0x2771   :  { %5842 = vadd.xlane.f32.xlu0 %v5841_v1 }
0x2772   :  { %v5844_v52 = vsel %vm175_vm4, %v5840_v50, 0.0 }
0x2775   :  { %5845 = vadd.xlane.f32.xlu0 %v5844_v52 }
0x27fe   :  { %v5843_v6 = vpop.xlane.xlu0 %5842 }
0x27ff   :  { %v5847_v21 = vmul.f32 0.015625, %v5843_v6  ;;  %v6227_v6 = vld [vmem:[%s9541_s16 + $0x8] sm:$0xff] }
0x2801   :  { %v5849_v9 = vadd.f32 1e-05, %v5847_v21 }
0x2802   :  { %v5846_v59 = vpop.xlane.xlu0 %5845 }
0x2803   :  { %7853 = vrsqrt.f32 %v5849_v9  ;;  %v5848_v15 = vmul.f32 0.015625, %v5846_v59  ;;  %v6228_v9 = vld [vmem:[%s9541_s16 + $0x10] sm:$0xff]  ;;  %v6229_v59 = vld [vmem:[%s9541_s16 + $0x18] sm:$0xff] }
0x2805   :  { %v5850_v3 = vadd.f32 1e-05, %v5848_v15  ;;  %v7895_v15 = vmov 0.0|0.0  }
0x2806   :  { %7496 = vmatprep.subr.bf16.mxu1 %v7895_v15 }
0x2807   :  { %7855 = vrsqrt.f32 %v5850_v3  ;;  %v7500_v3 = vpack.c.bf16 %v6229_v59, %v6228_v9 }
0x280d   :  { %v7854_v16 = vpop.eup %7853 }
0x280e   :  { %v5853_v42 = vmul.f32 %v7854_v16, %v5837_v44  ;;  %v6230_v16 = vld [vmem:[%s9541_s16 + $0x20] sm:$0xff] }
0x2810   :  { %v5861_v18 = vmul.f32 %v6699_v17, %v5853_v42  ;;  %v6231_v42 = vld [vmem:[%s9541_s16 + $0x28] sm:$0xff] }
0x2811   :  { %v7856_v45 = vpop.eup %7855 }
0x2812   :  { %v5854_v39 = vmul.f32 %v7856_v45, %v5838_v12  ;;  %v5869_v20 = vadd.f32 %v6700_v19, %v5861_v18  ;;  %v6232_v45 = vld [vmem:[%s9541_s16 + $0x30] sm:$0xff]  ;;  %v6233_v18 = vld [vmem:[%s9541_s16 + $0x38] sm:$0xff] }
0x2814   :  { %v5862_v49 = vmul.f32 %v6699_v17, %v5854_v39  ;;  %v7503_v17 = vpack.c.bf16 %v6231_v42, %v6230_v16  ;;  %v7506_v39 = vpack.c.bf16 %v6233_v18, %v6232_v45 }
0x2816   :  { %v5870_v48 = vadd.f32 %v6700_v19, %v5862_v49 }
0x2818   :  { %v5871_v37 = vpack.c.bf16 %v5870_v48, %v5869_v20 }
0x281a   :  { %6718 = vmatmul.mubr.msk.bf16.vlgmr.msra.gmra.mrb[172].mxu1 %vm175_vm4, %v5871_v37 }
0x281b   :  { %7485 = vmatprep.mubr.msk.f32.mxu1 %vm7887_vm5, %v7886_v10  ;;  %v7696_v10 = vld [vmem:[%s9537_s12 + $0x1b8] sm:$0xff]  }
0x281c   :  { %7008 = vmatpush3.bf16.msra.mxu0 %v7696_v10 }
0x28ed   :  { %v5971_v33 = vpop.f32.mrb[172].mxu1 }
0x28ee   :  { %v5972_v34 = vadd.f32 %v5971_v33, %v5887_v23  ;;  %v5973_v26 = vpop.f32.mrb[173].mxu1 }
0x28ef   :  { %v5974_v35 = vadd.f32 %v5973_v26, %v5891_v32  ;;  %v5975_v31 = vpop.f32.mrb[174].mxu1 }
0x28f0   :  { %v5976_v30 = vadd.f32 %v5975_v31, %v5887_v23  ;;  %v5977_v40 = vpop.f32.mrb[175].mxu1  ;;  %v5980_v43 = vmax.f32 %v5972_v34, 0.0 }
0x28f1   :  { %v5978_v41 = vadd.f32 %v5977_v40, %v5891_v32  ;;  %v5981_v63 = vmax.f32 %v5974_v35, 0.0 }
0x28f2   :  { %v5982_v44 = vmax.f32 %v5976_v30, 0.0 }
0x28f3   :  { %v5983_v12 = vmax.f32 %v5978_v41, 0.0 }
0x28f4   :  { %v5984_v46 = vpack.c.bf16 %v5982_v44, %v5980_v43 }
0x28f5   :  { %v5985_v1 = vpack.c.bf16 %v5983_v12, %v5981_v63 }
0x28f7   :  { %6155 = vmatprep.mubr.bf16.mxu0 %v5985_v1 }
0x28f8   :  { %6156 = vmatmul.mubr.bf16.vlgmr.msra.gmra.mrb[144].mxu0 %v5984_v46 }
0x29cb   :  { %v7009_v50 = vpop.f32.mrb[144].mxu0 }
0x29cc   :  { %v7010_v52 = vpop.f32.mrb[145].mxu0 }
0x29cd   :  { %v7011_v60 = vadd.f32 %v7010_v52, %v7009_v50  ;;  %v7012_v53 = vpop.f32.mrb[146].mxu0 }
0x29ce   :  { %v7013_v54 = vpop.f32.mrb[147].mxu0 }
0x29cf   :  { %v6158_v5 = vadd.f32 %v7011_v60, %v6752_v47  ;;  %v7014_v36 = vadd.f32 %v7013_v54, %v7012_v53  ;;  %v6234_v53 = vld [vmem:[%s9542_s17] sm:$0x1] }
0x29d0   :  { %v6235_v54 = vmul.f32 8.0, %v6234_v53 }
0x29d1   :  { %v6161_v7 = vadd.f32 %v7014_v36, %v6752_v47  ;;  %v6164_v55 = vadd.f32 %v6158_v5, %v9368_v27 }
0x29d2   :  { %v6240_v5 = vrot.slane %v6235_v54, %v8383_v11 }
0x29d3   :  { %v6168_v8 = vsel %vm175_vm4, %v6164_v55, 0.0  ;;  %v6165_v2 = vadd.f32 %v6161_v7, %v9371_v38  ;;  %v6226_v38 = vld [vmem:[%s9541_s16] sm:$0xff] }
0x29d4   :  { %6169 = vadd.xlane.f32.xlu1 %v6168_v8  ;;  %v7497_v21 = vpack.c.bf16 %v6227_v6, %v6226_v38 }
0x29d5   :  { %v6171_v4 = vsel %vm175_vm4, %v6165_v2, 0.0 }
0x29d6   :  { %6172 = vadd.xlane.f32.xlu0 %v6171_v4  ;;  %7498 = vmatpush3.bf16.msra.mxu1 %v7497_v21 }
0x29d7   :  { %7499 = vmatprep.subr.bf16.mxu1 %v7895_v15 }
0x29da   :  { %7501 = vmatpush3.bf16.msra.mxu1 %v7500_v3 }
0x29db   :  { %7502 = vmatprep.subr.bf16.mxu1 %v7895_v15 }
0x29de   :  { %7504 = vmatpush3.bf16.msra.mxu1 %v7503_v17 }
0x29df   :  { %7505 = vmatprep.subr.bf16.mxu1 %v7895_v15 }
0x29e2   :  { %7507 = vmatpush3.bf16.msra.mxu1 %v7506_v39 }
0x2a61   :  { %v6170_v14 = vpop.xlane.xlu1 %6169 }
0x2a62   :  { %v6174_v57 = vmul.f32 0.015625, %v6170_v14 }
0x2a63   :  { %v6173_v58 = vpop.xlane.xlu0 %6172 }
0x2a64   :  { %v6176_v22 = vsub.f32 %v6164_v55, %v6174_v57  ;;  %v6175_v13 = vmul.f32 0.015625, %v6173_v58 }
0x2a66   :  { %v6177_v61 = vsub.f32 %v6165_v2, %v6175_v13  ;;  %v6178_v62 = vmul.f32 %v6176_v22, %v6176_v22 }
0x2a68   :  { %v6180_v56 = vsel %vm175_vm4, %v6178_v62, 0.0  ;;  %v6179_v0 = vmul.f32 %v6177_v61, %v6177_v61 }
0x2a69   :  { %6181 = vadd.xlane.f32.xlu1 %v6180_v56 }
0x2a6a   :  { %v6183_v27 = vsel %vm175_vm4, %v6179_v0, 0.0 }
0x2a6b   :  { %6184 = vadd.xlane.f32.xlu0 %v6183_v27 }
0x2af6   :  { %v6182_v19 = vpop.xlane.xlu1 %6181 }
0x2af7   :  { %v6186_v49 = vmul.f32 0.015625, %v6182_v19 }
0x2af8   :  { %v6185_v20 = vpop.xlane.xlu0 %6184 }
0x2af9   :  { %v6188_v48 = vadd.f32 1e-05, %v6186_v49  ;;  %v6187_v37 = vmul.f32 0.015625, %v6185_v20 }
0x2afb   :  { %7857 = vrsqrt.f32 %v6188_v48  ;;  %v6189_v24 = vadd.f32 1e-05, %v6187_v37 }
0x2afd   :  { %7859 = vrsqrt.f32 %v6189_v24 }
0x2b05   :  { %v7858_v25 = vpop.eup %7857 }
0x2b06   :  { %v6192_v29 = vmul.f32 %v7858_v25, %v6176_v22 }
0x2b07   :  { %v7860_v10 = vpop.eup %7859 }
0x2b08   :  { %v6200_v23 = vmul.f32 %v6769_v28, %v6192_v29  ;;  %v6193_v32 = vmul.f32 %v7860_v10, %v6177_v61 }
0x2b0a   :  { %v6208_v33 = vadd.f32 %v6770_v51, %v6200_v23  ;;  %v6201_v34 = vmul.f32 %v6769_v28, %v6193_v32 }
0x2b0c   :  { %v6209_v26 = vadd.f32 %v6770_v51, %v6201_v34  ;;  %v6210_v35 = vsel %vm175_vm4, %v6208_v33, 0.0 }
0x2b0d   :  { %v6211_v31 = vrot.slane %v6210_v35, 4 }
0x2b0e   :  { %v6217_v30 = vsel %vm175_vm4, %v6209_v26, 0.0 }
0x2b0f   :  { %v6212_v40 = vadd.f32 %v6211_v31, %v6210_v35  ;;  %v6218_v41 = vrot.slane %v6217_v30, 4 }
0x2b11   :  { %v6213_v43 = vrot.slane %v6212_v40, 2  ;;  %v6219_v44 = vadd.f32 %v6218_v41, %v6217_v30 }
0x2b13   :  { %v6214_v63 = vadd.f32 %v6213_v43, %v6212_v40  ;;  %v6220_v12 = vrot.slane %v6219_v44, 2 }
0x2b15   :  { %v6215_v46 = vrot.slane %v6214_v63, 1  ;;  %v6221_v1 = vadd.f32 %v6220_v12, %v6219_v44 }
0x2b17   :  { %v6222_v50 = vrot.slane %v6221_v1, 1  ;;  %v6216_v47 = vadd.f32 %v6215_v46, %v6214_v63 }
0x2b19   :  { %v6223_v52 = vadd.f32 %v6222_v50, %v6221_v1 }
0x2b1b   :  { %v6225_v60 = vsel %vm6224_vm13, %v6216_v47, %v6223_v52 }
0x2b1c   :  { %7486 = vmatmul.mubr.msk.f32.vlgmr.msra.gmra.mrb[176].mxu1 %vm175_vm4, %v6225_v60 }
0x2bef   :  { %v6311_v36 = vpop.f32.mrb[176].mxu1 }
0x2bf0   :  { %v6312_v7 = vadd.f32 %v6311_v36, %v6240_v5  ;;  %v7487_v55 = vpop.f32.mrb[177].mxu1 }
0x2bf2   :  { %6316 = vst.msk [vmem:[#allocation3] sm:$0x3] %vm6315_vm14, %v6312_v7 }
0x2bf3   :  { %7872 = shalt.err (!%p7869_p4)
}
0x2bf4   :  { %s7873_s4 = scalar_lea.hbm %s9543_s18, 32 }
0x2bf5   :  { %p7874_p5 = scmp.ne.s32.totalorder %s9543_s18, %s7873_s4  ;;  %p7877_p6 = scmp.lt.u32.totalorder %s7873_s4, %s9543_s18 }
0x2bf7   :  { %p7879_p7 = pnand %p7877_p6, %p7874_p5 }
0x2bf9   :  { %7882 = shalt.err (!%p7879_p7)
}
0x2bfa   :  { %6326 = dma.vmem_to_hbm [thread:$0]  %s6324_s5, 32, %s9543_s18, [#allocation4]  }
0x2bfb   :  { %7883 = dma.done.wait [#allocation4], 32  }
0x2bfc   :  { %7884 = vsyncadd [#allocation4], 4294967264 }
0x2bfd   :  { %6330 = vsyncpa [#allocation4], 1 }

</bundles_post_ra>
